<compile_context>
chip_gen: v6e
topology: v6e:2x2x1
jax: 0.10.0
libtpu: 0.0.40
codegen_flags: <defaults>
</compile_context>

<pallas_src>
import numpy as np

import jax
import jax.numpy as jnp
from jax.experimental import pallas as pl
from jax.experimental.pallas import tpu as pltpu


# Stem geometry implied by FC0(input_size=10752) = 64 * 12 * 14.
_PH, _PW, _CO = 12, 14, 64


# ----------------------------------------------------------------------------
# Kernel 1: fused conv1 + BN(folded) + ReLU + maxpool (one image per grid step)
# ----------------------------------------------------------------------------
def _stem_conv_pool_kernel(cols_ref, w_ref, b_ref, o_ref):
    """cols_ref: (1, 9, PH*PW, KC) bf16  im2col patches, one group per pool offset
       w_ref:    (KC, CO) bf16           BN-folded conv weights
       b_ref:    (1, CO) f32             BN-folded bias
       o_ref:    (1, PH*PW, CO) bf16     pooled output rows (HWC order)
    """
    t, phw, kc = cols_ref.shape[1], cols_ref.shape[2], cols_ref.shape[3]
    co = o_ref.shape[2]
    # Single MXU pass over all 9 pool offsets (one weight push / one drain).
    # Leading-dim flatten is sublane-preserving (phw % 8 == 0) -> free.
    x = cols_ref[...].reshape(t * phw, kc)
    y = jnp.dot(x, w_ref[...], preferred_element_type=jnp.float32)
    y = y.reshape(t, phw, co)
    # Running max on the VPU (slot has slack under the MXU pass).
    acc = y[0]
    for i in range(1, 9):
        acc = jnp.maximum(acc, y[i])
    # max_t relu(x_t@w + b) == relu(max_t(x_t@w) + b)  (bias is per-channel)
    o_ref[0] = jnp.maximum(acc + b_ref[...], 0.0).astype(o_ref.dtype)


def pallas_stem(cols, w_conv, b_conv):
    Nb, T, PHW, KC = cols.shape
    CO = w_conv.shape[1]
    return pl.pallas_call(
        _stem_conv_pool_kernel,
        out_shape=jax.ShapeDtypeStruct((Nb, PHW, CO), jnp.bfloat16),
        grid_spec=pltpu.PrefetchScalarGridSpec(
            num_scalar_prefetch=0,
            grid=(Nb,),
            in_specs=[
                pl.BlockSpec((1, T, PHW, KC), lambda n: (n, 0, 0, 0)),
                pl.BlockSpec((KC, CO), lambda n: (0, 0)),
                pl.BlockSpec((1, CO), lambda n: (0, 0)),
            ],
            out_specs=pl.BlockSpec((1, PHW, CO), lambda n: (n, 0, 0)),
        ),
        compiler_params=pltpu.CompilerParams(
            dimension_semantics=("parallel",)),
    )(cols, w_conv, b_conv)


# ----------------------------------------------------------------------------
# Kernel 2: FC0 (10752 -> 1024 padded), int8 weight stream, f32 accumulator
# ----------------------------------------------------------------------------
def _fc0_kernel(x_ref, w_ref, s_ref, b_ref, o_ref, acc_ref):
    k = pl.program_id(1)

    @pl.when(k == 0)
    def _():
        acc_ref[...] = jnp.zeros_like(acc_ref)

    # int8 weight stream, dequant to bf16 on the VPU (hidden under weight DMA).
    w = w_ref[...].astype(jnp.bfloat16)
    acc_ref[...] += jnp.dot(x_ref[...], w, preferred_element_type=jnp.float32)

    @pl.when(k == pl.num_programs(1) - 1)
    def _():
        # per-output-channel dequant scale folded into the bias/ReLU epilogue
        o_ref[...] = jnp.maximum(acc_ref[...] * s_ref[...] + b_ref[...],
                                 0.0).astype(o_ref.dtype)


def pallas_fc0(x_bf16, w_int8, s_f32, b_f32, *, tk=5376, tn=512):
    M, K = x_bf16.shape
    Kw, N = w_int8.shape
    assert K == Kw and K % tk == 0 and N % tn == 0
    grid = (N // tn, K // tk)     # ('parallel' output tiles -> megacore, 'arbitrary' K)
    return pl.pallas_call(
        _fc0_kernel,
        out_shape=jax.ShapeDtypeStruct((M, N), jnp.float32),
        grid_spec=pltpu.PrefetchScalarGridSpec(
            num_scalar_prefetch=0,
            grid=grid,
            in_specs=[
                pl.BlockSpec((M, tk), lambda j, k: (0, k)),
                pl.BlockSpec((tk, tn), lambda j, k: (k, j)),
                pl.BlockSpec((1, tn), lambda j, k: (0, j)),
                pl.BlockSpec((1, tn), lambda j, k: (0, j)),
            ],
            out_specs=pl.BlockSpec((M, tn), lambda j, k: (0, j)),
            scratch_shapes=[pltpu.VMEM((M, tn), jnp.float32)],
        ),
        compiler_params=pltpu.CompilerParams(
            dimension_semantics=("parallel", "arbitrary")),
    )(x_bf16, w_int8, s_f32, b_f32)


# ----------------------------------------------------------------------------
# Kernel 3: fused FC tail (FC1, FC2, FC3+relu, cond_FC1, concat-as-split FC4)
#           all widths padded to 128 lanes; real outputs live in cols [:2].
# ----------------------------------------------------------------------------
def _fc_tail_kernel(h0_ref, m_ref,
                    w1_ref, b1_ref, w2_ref, b2_ref, w3_ref, b3_ref,
                    wc_ref, bc_ref, w4h_ref, w4m_ref, b4_ref, o_ref):
    f32 = jnp.float32
    h1 = jnp.maximum(jnp.dot(h0_ref[...], w1_ref[...],
                             preferred_element_type=f32) + b1_ref[...], 0.0)
    h2 = jnp.maximum(jnp.dot(h1, w2_ref[...],
                             preferred_element_type=f32) + b2_ref[...], 0.0)
    h3 = jnp.maximum(jnp.dot(h2, w3_ref[...],
                             preferred_element_type=f32) + b3_ref[...], 0.0)
    mc = jnp.maximum(jnp.dot(m_ref[...], wc_ref[...],
                             preferred_element_type=f32) + bc_ref[...], 0.0)
    # FC4 on cat([h3, mc]) == h3 @ W4[:10] + mc @ W4[10:] + b4 (no concat needed)
    out = (jnp.dot(h3, w4h_ref[...], preferred_element_type=f32)
           + jnp.dot(mc, w4m_ref[...], preferred_element_type=f32)
           + b4_ref[...])
    o_ref[...] = out.astype(o_ref.dtype)


def pallas_fc_tail(h0, meas, prep):
    M = h0.shape[0]
    return pl.pallas_call(          # whole-array blocks, single launch
        _fc_tail_kernel,
        out_shape=jax.ShapeDtypeStruct((M, 128), jnp.float32),
    )(h0, meas,
      prep["fc1_w"], prep["fc1_b"], prep["fc2_w"], prep["fc2_b"],
      prep["fc3_w"], prep["fc3_b"], prep["cond_w"], prep["cond_b"],
      prep["fc4_wh"], prep["fc4_wm"], prep["fc4_b"])


# ----------------------------------------------------------------------------
# XLA glue: pool-grouped im2col (layout only, no heavy compute), bf16 output
# ----------------------------------------------------------------------------
def _stem_pool_cols(x_nhwc, kh=7, kw=7, stride=2, pad=3, pk=3, ps=2, ppad=1):
    # The clamp-out-of-range-to-in-window trick below is only exact for this
    # pool configuration (clamped index stays inside the same pool window).
    assert (pk, ps, ppad) == (3, 2, 1), "clamp trick requires 3x3/s2/pad1 pool"

    N, H, W, C = x_nhwc.shape
    OH = (H + 2 * pad - kh) // stride + 1        # 24
    OW = (W + 2 * pad - kw) // stride + 1        # 28
    PH = (OH + 2 * ppad - pk) // ps + 1          # 12
    PW = (OW + 2 * ppad - pk) // ps + 1          # 14
    x_pad = jnp.pad(x_nhwc, ((0, 0), (pad, pad), (pad, pad), (0, 0)))

    # standard conv im2col patches: (N, OH, OW, kh*kw*C)
    slabs = []
    for i in range(kh):
        for j in range(kw):
            patch = jax.lax.slice(
                x_pad, (0, i, j, 0),
                (N, i + stride * (OH - 1) + 1, j + stride * (OW - 1) + 1, C),
                (1, stride, stride, 1))
            slabs.append(patch)
    P = jnp.stack(slabs, axis=3).reshape(N, OH, OW, kh * kw * C)

    # regroup per pool-window offset; clamp out-of-range offsets to a valid
    # in-window position (row/col 2p), which leaves the window max unchanged.
    groups = []
    for di in range(pk):
        h_idx = np.clip(2 * np.arange(PH) - ppad + di, 0, OH - 1)
        for dj in range(pk):
            w_idx = np.clip(2 * np.arange(PW) - ppad + dj, 0, OW - 1)
            groups.append(P[:, h_idx][:, :, w_idx])          # (N, PH, PW, KC)
    cols = jnp.stack(groups, axis=1)                          # (N, 9, PH, PW, KC)
    cols = cols.reshape(N, pk * pk, PH * PW, kh * kw * C).astype(jnp.bfloat16)
    return cols, PH, PW


# ----------------------------------------------------------------------------
# Parameters (deterministic synthetic init — no checkpoint loading)
# ----------------------------------------------------------------------------
def _init_linear(key, fan_in, fan_out):
    kw, kb = jax.random.split(key)
    s = 1.0 / float(fan_in) ** 0.5
    w = jax.random.uniform(kw, (fan_in, fan_out), jnp.float32, -s, s)
    b = jax.random.uniform(kb, (fan_out,), jnp.float32, -s, s)
    return w, b


def init_params(key):
    ks = jax.random.split(key, 12)
    p = {}
    # ResNet-18 stem: conv1 (OIHW, bias=False), bn1 running stats + affine.
    # TODO(synk): pretrained torchvision weights are not loadable in-script;
    # synthetic init stands in for models.resnet18(pretrained=True).
    p["conv1_w"] = 0.05 * jax.random.normal(ks[0], (64, 3, 7, 7), jnp.float32)
    p["bn_gamma"] = 1.0 + 0.1 * jax.random.normal(ks[1], (64,), jnp.float32)
    p["bn_beta"] = 0.1 * jax.random.normal(ks[2], (64,), jnp.float32)
    p["bn_mean"] = 0.1 * jax.random.normal(ks[3], (64,), jnp.float32)
    p["bn_var"] = 0.5 + jnp.abs(jax.random.normal(ks[4], (64,), jnp.float32))
    p["fc0"] = _init_linear(ks[5], 10752, 1000)
    p["fc1"] = _init_linear(ks[6], 1000, 100)
    p["fc2"] = _init_linear(ks[7], 100, 50)
    p["fc3"] = _init_linear(ks[8], 50, 10)
    p["fc4"] = _init_linear(ks[9], 12, 2)
    p["cond_fc1"] = _init_linear(ks[10], 4, 2)
    return p


def _pad2(w, rows, cols):
    out = jnp.zeros((rows, cols), jnp.float32)
    return out.at[:w.shape[0], :w.shape[1]].set(w)


def _padb(b, cols):
    return jnp.zeros((1, cols), jnp.float32).at[0, :b.shape[0]].set(b)


def prepare_params(p):
    """One-time host-side transforms: BN fold, feature-permute fold, int8
    quantization of fc0_w, lane-dense (128) padding of the FC tail."""
    eps = 1e-5
    scale = p["bn_gamma"] / jnp.sqrt(p["bn_var"] + eps)
    # OIHW -> (kh, kw, ci, co) -> (147, 64); fold BN scale/shift into conv.
    w_conv = jnp.transpose(p["conv1_w"], (2, 3, 1, 0)).reshape(7 * 7 * 3, 64)
    w_conv = (w_conv * scale[None, :]).astype(jnp.bfloat16)
    b_conv = (p["bn_beta"] - p["bn_mean"] * scale).reshape(1, 64)

    # ---- FC0: fold the NCHW flatten order into the weight rows --------------
    # Stem kernel emits rows in HWC order (p = h*PW+w major, c minor); the
    # PyTorch reshape-after-permute expects CHW order.  Permuting fc0_w's rows
    # once here removes the transpose between the stem and FC0 kernels.
    w0, b0 = p["fc0"]                               # (10752, 1000)
    PHW = _PH * _PW
    chw_of_hwc = (np.arange(_CO)[None, :] * PHW
                  + np.arange(PHW)[:, None]).reshape(-1)        # (10752,)
    w0p = w0[chw_of_hwc, :]

    # ---- int8 per-output-channel quantization (scale folded into epilogue) --
    absmax = jnp.max(jnp.abs(w0p), axis=0)                       # (1000,)
    qscale = jnp.where(absmax > 0, absmax / 127.0, 1.0)
    w0q = jnp.clip(jnp.round(w0p / qscale[None, :]), -127, 127).astype(jnp.int8)

    n0_pad = 1024                                   # lane-dense / tileable output
    w0q_pad = jnp.zeros((10752, n0_pad), jnp.int8).at[:, :1000].set(w0q)
    s0_pad = jnp.ones((1, n0_pad), jnp.float32).at[0, :1000].set(qscale)
    b0_pad = jnp.zeros((1, n0_pad), jnp.float32).at[0, :1000].set(b0)

    # ---- FC tail: pad every width to 128 lanes (zeros are inert through relu)
    w1, b1 = p["fc1"]                               # (1000, 100)
    w2, b2 = p["fc2"]                               # (100, 50)
    w3, b3 = p["fc3"]                               # (50, 10)
    wc, bc = p["cond_fc1"]                          # (4, 2)
    w4, b4 = p["fc4"]                               # (12, 2): rows 0..9 h, 10..11 meas

    return {
        "conv_w": w_conv, "conv_b": b_conv,
        "fc0_wq": w0q_pad, "fc0_scale": s0_pad, "fc0_b": b0_pad,
        "fc1_w": _pad2(w1, n0_pad, 128), "fc1_b": _padb(b1, 128),
        "fc2_w": _pad2(w2, 128, 128), "fc2_b": _padb(b2, 128),
        "fc3_w": _pad2(w3, 128, 128), "fc3_b": _padb(b3, 128),
        "cond_w": _pad2(wc, 4, 128), "cond_b": _padb(bc, 128),
        "fc4_wh": _pad2(w4[:10], 128, 128),
        "fc4_wm": _pad2(w4[10:], 128, 128),
        "fc4_b": _padb(b4, 128),
    }


# ----------------------------------------------------------------------------
# Forward pass
# ----------------------------------------------------------------------------
def pretrained_resnet_forward(prep, x, measurements):
    """x: (N, H, W, C) NHWC; measurements: (N, 4)."""
    N = x.shape[0]

    # --- ResNet18Begin: conv1 + bn1 + relu + maxpool, fully fused ------------
    # TODO(synk): exact ResNet18Begin slice is undefined in the source; the
    # stem here is the prefix consistent with FC0's 10752-dim input.
    cols, PH, PW = _stem_pool_cols(x)                     # (N, 9, 168, 147) bf16
    assert (PH, PW) == (_PH, _PW)
    pooled = pallas_stem(cols, prep["conv_w"], prep["conv_b"])   # (N, 168, 64) bf16

    # NCHW flatten order is folded into fc0_w's rows -> plain HWC reshape here,
    # no transpose / dtype-convert glue between the stem and FC0 kernels.
    feat = pooled.reshape(N, PH * PW * _CO)               # (N, 10752) bf16

    # --- FC0: int8 weight stream, f32 accumulate, scale+bias+ReLU fused ------
    h0 = pallas_fc0(feat, prep["fc0_wq"], prep["fc0_scale"], prep["fc0_b"])

    # --- fused FC tail (FC1..FC3+relu, cond_FC1, concat-as-split, FC4) -------
    out_pad = pallas_fc_tail(h0, measurements.reshape(N, -1), prep)
    return out_pad[:, :2]


# ----------------------------------------------------------------------------
if __name__ == "__main__":
    key = jax.random.PRNGKey(0)
    kx, km = jax.random.split(key)

    # Small NHWC input whose stem output flattens to exactly 10752 features.
    N, H, W, C = 2, 48, 56, 3
    x = jax.random.normal(kx, (N, H, W, C), jnp.float32)
    measurements = jax.random.normal(km, (N, 4), jnp.float32)

    params = init_params(jax.random.PRNGKey(42))
    prep = prepare_params(params)

    fwd = jax.jit(pretrained_resnet_forward)
    out = jax.block_until_ready(fwd(prep, x, measurements))
    assert out.shape == (N, 2), out.shape
    assert out.dtype == jnp.float32
    print("KERNEL_OK")
</pallas_src>

<mosaic_0001>
module attributes {stable_mosaic.version = 11 : i64} {
  func.func @_stem_conv_pool_kernel(%arg0: i32, %arg1: memref<1x9x168x147xbf16, #tpu.memory_space<vmem>>, %arg2: memref<147x64xbf16, #tpu.memory_space<vmem>>, %arg3: memref<1x64xf32, #tpu.memory_space<vmem>>, %arg4: memref<1x168x64xbf16, #tpu.memory_space<vmem>>) attributes {dimension_semantics = [#tpu.dimension_semantics<parallel>], iteration_bounds = array<i64: 2>, scalar_prefetch = 0 : i64, scratch_operands = 0 : i64, tpu.core_type = #tpu.core_type<tc>, window_params = [{transform_indices = @transform_0, window_bounds = array<i64: 1, 9, 168, 147>}, {pipeline_mode = #tpu.pipeline_mode<synchronous>, transform_indices = @transform_1, window_bounds = array<i64: 147, 64>}, {pipeline_mode = #tpu.pipeline_mode<synchronous>, transform_indices = @transform_2, window_bounds = array<i64: 1, 64>}, {transform_indices = @transform_3, window_bounds = array<i64: 1, 168, 64>}]} {
    %c0 = arith.constant 0 : index
    %c0_0 = arith.constant 0 : index
    %c0_1 = arith.constant 0 : index
    %c0_2 = arith.constant 0 : index
    %0 = vector.load %arg1[%c0, %c0_0, %c0_1, %c0_2] : memref<1x9x168x147xbf16, #tpu.memory_space<vmem>>, vector<1x9x168x147xbf16>
    %1 = vector.shape_cast %0 : vector<1x9x168x147xbf16> to vector<1512x147xbf16>
    %c0_3 = arith.constant 0 : index
    %c0_4 = arith.constant 0 : index
    %2 = vector.load %arg2[%c0_3, %c0_4] : memref<147x64xbf16, #tpu.memory_space<vmem>>, vector<147x64xbf16>
    %cst = arith.constant dense<0.000000e+00> : vector<1512x64xf32>
    %3 = tpu.matmul %1, %2, %cst {dimension_numbers = #tpu.dot_dimension_numbers<[1], [0], [0], [1], [0, 0, 1, 1], [], []>} : vector<1512x147xbf16>, vector<147x64xbf16>, vector<1512x64xf32> -> vector<1512x64xf32>
    %4 = vector.shape_cast %3 : vector<1512x64xf32> to vector<9x168x64xf32>
    %5 = vector.extract_strided_slice %4 {offsets = [0, 0, 0], sizes = [1, 168, 64], strides = [1, 1, 1]} : vector<9x168x64xf32> to vector<1x168x64xf32>
    %6 = vector.shape_cast %5 : vector<1x168x64xf32> to vector<168x64xf32>
    %7 = vector.extract_strided_slice %4 {offsets = [1, 0, 0], sizes = [1, 168, 64], strides = [1, 1, 1]} : vector<9x168x64xf32> to vector<1x168x64xf32>
    %8 = vector.shape_cast %7 : vector<1x168x64xf32> to vector<168x64xf32>
    %9 = arith.maximumf %6, %8 : vector<168x64xf32>
    %10 = vector.extract_strided_slice %4 {offsets = [2, 0, 0], sizes = [1, 168, 64], strides = [1, 1, 1]} : vector<9x168x64xf32> to vector<1x168x64xf32>
    %11 = vector.shape_cast %10 : vector<1x168x64xf32> to vector<168x64xf32>
    %12 = arith.maximumf %9, %11 : vector<168x64xf32>
    %13 = vector.extract_strided_slice %4 {offsets = [3, 0, 0], sizes = [1, 168, 64], strides = [1, 1, 1]} : vector<9x168x64xf32> to vector<1x168x64xf32>
    %14 = vector.shape_cast %13 : vector<1x168x64xf32> to vector<168x64xf32>
    %15 = arith.maximumf %12, %14 : vector<168x64xf32>
    %16 = vector.extract_strided_slice %4 {offsets = [4, 0, 0], sizes = [1, 168, 64], strides = [1, 1, 1]} : vector<9x168x64xf32> to vector<1x168x64xf32>
    %17 = vector.shape_cast %16 : vector<1x168x64xf32> to vector<168x64xf32>
    %18 = arith.maximumf %15, %17 : vector<168x64xf32>
    %19 = vector.extract_strided_slice %4 {offsets = [5, 0, 0], sizes = [1, 168, 64], strides = [1, 1, 1]} : vector<9x168x64xf32> to vector<1x168x64xf32>
    %20 = vector.shape_cast %19 : vector<1x168x64xf32> to vector<168x64xf32>
    %21 = arith.maximumf %18, %20 : vector<168x64xf32>
    %22 = vector.extract_strided_slice %4 {offsets = [6, 0, 0], sizes = [1, 168, 64], strides = [1, 1, 1]} : vector<9x168x64xf32> to vector<1x168x64xf32>
    %23 = vector.shape_cast %22 : vector<1x168x64xf32> to vector<168x64xf32>
    %24 = arith.maximumf %21, %23 : vector<168x64xf32>
    %25 = vector.extract_strided_slice %4 {offsets = [7, 0, 0], sizes = [1, 168, 64], strides = [1, 1, 1]} : vector<9x168x64xf32> to vector<1x168x64xf32>
    %26 = vector.shape_cast %25 : vector<1x168x64xf32> to vector<168x64xf32>
    %27 = arith.maximumf %24, %26 : vector<168x64xf32>
    %28 = vector.extract_strided_slice %4 {offsets = [8, 0, 0], sizes = [1, 168, 64], strides = [1, 1, 1]} : vector<9x168x64xf32> to vector<1x168x64xf32>
    %29 = vector.shape_cast %28 : vector<1x168x64xf32> to vector<168x64xf32>
    %30 = arith.maximumf %27, %29 : vector<168x64xf32>
    %c0_5 = arith.constant 0 : index
    %c0_6 = arith.constant 0 : index
    %31 = vector.load %arg3[%c0_5, %c0_6] : memref<1x64xf32, #tpu.memory_space<vmem>>, vector<1x64xf32>
    %32 = vector.broadcast %31 : vector<1x64xf32> to vector<168x64xf32>
    %33 = arith.addf %30, %32 : vector<168x64xf32>
    %cst_7 = arith.constant 0.000000e+00 : f32
    %34 = vector.broadcast %cst_7 : f32 to vector<168x64xf32>
    %35 = arith.maximumf %33, %34 : vector<168x64xf32>
    %36 = arith.truncf %35 : vector<168x64xf32> to vector<168x64xbf16>
    %c0_8 = arith.constant 0 : index
    %c0_9 = arith.constant 0 : index
    %c0_10 = arith.constant 0 : index
    %37 = vector.load %arg4[%c0_8, %c0_9, %c0_10] : memref<1x168x64xbf16, #tpu.memory_space<vmem>>, vector<1x168x64xbf16>
    %38 = vector.shape_cast %37 : vector<1x168x64xbf16> to vector<168x64xbf16>
    %39 = vector.shape_cast %36 : vector<168x64xbf16> to vector<1x168x64xbf16>
    tpu.vector_store %arg4[%c0_8, %c0_9, %c0_10], %39 {strides = array<i32>} : memref<1x168x64xbf16, #tpu.memory_space<vmem>>, vector<1x168x64xbf16>,
    return
  }
  func.func @transform_0(%arg0: i32) -> (i32, i32, i32, i32) {
    %c0_i32 = arith.constant 0 : i32
    %c0_i32_0 = arith.constant 0 : i32
    %c0_i32_1 = arith.constant 0 : i32
    %c0_i32_2 = arith.constant 0 : i32
    return %arg0, %c0_i32, %c0_i32_0, %c0_i32_1 : i32, i32, i32, i32
  }
  func.func @transform_1(%arg0: i32) -> (i32, i32) {
    %c0_i32 = arith.constant 0 : i32
    %c0_i32_0 = arith.constant 0 : i32
    %c0_i32_1 = arith.constant 0 : i32
    return %c0_i32, %c0_i32_0 : i32, i32
  }
  func.func @transform_2(%arg0: i32) -> (i32, i32) {
    %c0_i32 = arith.constant 0 : i32
    %c0_i32_0 = arith.constant 0 : i32
    %c0_i32_1 = arith.constant 0 : i32
    return %c0_i32, %c0_i32_0 : i32, i32
  }
  func.func @transform_3(%arg0: i32) -> (i32, i32, i32) {
    %c0_i32 = arith.constant 0 : i32
    %c0_i32_0 = arith.constant 0 : i32
    %c0_i32_1 = arith.constant 0 : i32
    return %arg0, %c0_i32, %c0_i32_0 : i32, i32, i32
  }
}

module attributes {stable_mosaic.version = 11 : i64} {
  func.func @_fc0_kernel(%arg0: i32, %arg1: i32, %arg2: memref<2x5376xbf16, #tpu.memory_space<vmem>>, %arg3: memref<5376x512xi8, #tpu.memory_space<vmem>>, %arg4: memref<1x512xf32, #tpu.memory_space<vmem>>, %arg5: memref<1x512xf32, #tpu.memory_space<vmem>>, %arg6: memref<2x512xf32, #tpu.memory_space<vmem>>, %arg7: memref<2x512xf32, #tpu.memory_space<vmem>>) attributes {dimension_semantics = [#tpu.dimension_semantics<parallel>, #tpu.dimension_semantics<arbitrary>], iteration_bounds = array<i64: 2, 2>, scalar_prefetch = 0 : i64, scratch_operands = 1 : i64, tpu.core_type = #tpu.core_type<tc>, window_params = [{transform_indices = @transform_0, window_bounds = array<i64: 2, 5376>}, {transform_indices = @transform_1, window_bounds = array<i64: 5376, 512>}, {transform_indices = @transform_2, window_bounds = array<i64: 1, 512>}, {transform_indices = @transform_3, window_bounds = array<i64: 1, 512>}, {transform_indices = @transform_4, window_bounds = array<i64: 2, 512>}]} {
    %c0_i32 = arith.constant 0 : i32
    %0 = arith.cmpi eq, %arg1, %c0_i32 : i32
    %1 = arith.extui %0 : i1 to i32
    %c0_i32_0 = arith.constant 0 : i32
    %2 = arith.cmpi ne, %1, %c0_i32_0 : i32
    scf.if %2 {
      %cst_9 = arith.constant 0.000000e+00 : f32
      %13 = vector.broadcast %cst_9 : f32 to vector<2x512xf32>
      %c0_10 = arith.constant 0 : index
      %c0_11 = arith.constant 0 : index
      %14 = vector.load %arg7[%c0_10, %c0_11] : memref<2x512xf32, #tpu.memory_space<vmem>>, vector<2x512xf32>
      tpu.vector_store %arg7[%c0_10, %c0_11], %13 {strides = array<i32>} : memref<2x512xf32, #tpu.memory_space<vmem>>, vector<2x512xf32>,
    } else {
    }
    %c0 = arith.constant 0 : index
    %c0_1 = arith.constant 0 : index
    %3 = vector.load %arg3[%c0, %c0_1] : memref<5376x512xi8, #tpu.memory_space<vmem>>, vector<5376x512xi8>
    %4 = arith.sitofp %3 : vector<5376x512xi8> to vector<5376x512xbf16>
    %c0_2 = arith.constant 0 : index
    %c0_3 = arith.constant 0 : index
    %5 = vector.load %arg7[%c0_2, %c0_3] : memref<2x512xf32, #tpu.memory_space<vmem>>, vector<2x512xf32>
    %c0_4 = arith.constant 0 : index
    %c0_5 = arith.constant 0 : index
    %6 = vector.load %arg2[%c0_4, %c0_5] : memref<2x5376xbf16, #tpu.memory_space<vmem>>, vector<2x5376xbf16>
    %cst = arith.constant dense<0.000000e+00> : vector<2x512xf32>
    %7 = tpu.matmul %6, %4, %cst {dimension_numbers = #tpu.dot_dimension_numbers<[1], [0], [0], [1], [0, 0, 1, 1], [], []>} : vector<2x5376xbf16>, vector<5376x512xbf16>, vector<2x512xf32> -> vector<2x512xf32>
    %8 = arith.addf %5, %7 : vector<2x512xf32>
    %c0_6 = arith.constant 0 : index
    %c0_7 = arith.constant 0 : index
    %9 = vector.load %arg7[%c0_6, %c0_7] : memref<2x512xf32, #tpu.memory_space<vmem>>, vector<2x512xf32>
    tpu.vector_store %arg7[%c0_6, %c0_7], %8 {strides = array<i32>} : memref<2x512xf32, #tpu.memory_space<vmem>>, vector<2x512xf32>,
    %c1_i32 = arith.constant 1 : i32
    %10 = arith.cmpi eq, %arg1, %c1_i32 : i32
    %11 = arith.extui %10 : i1 to i32
    %c0_i32_8 = arith.constant 0 : i32
    %12 = arith.cmpi ne, %11, %c0_i32_8 : i32
    scf.if %12 {
      %c0_9 = arith.constant 0 : index
      %c0_10 = arith.constant 0 : index
      %13 = vector.load %arg7[%c0_9, %c0_10] : memref<2x512xf32, #tpu.memory_space<vmem>>, vector<2x512xf32>
      %c0_11 = arith.constant 0 : index
      %c0_12 = arith.constant 0 : index
      %14 = vector.load %arg4[%c0_11, %c0_12] : memref<1x512xf32, #tpu.memory_space<vmem>>, vector<1x512xf32>
      %15 = vector.broadcast %14 : vector<1x512xf32> to vector<2x512xf32>
      %16 = arith.mulf %13, %15 : vector<2x512xf32>
      %c0_13 = arith.constant 0 : index
      %c0_14 = arith.constant 0 : index
      %17 = vector.load %arg5[%c0_13, %c0_14] : memref<1x512xf32, #tpu.memory_space<vmem>>, vector<1x512xf32>
      %18 = vector.broadcast %17 : vector<1x512xf32> to vector<2x512xf32>
      %19 = arith.addf %16, %18 : vector<2x512xf32>
      %cst_15 = arith.constant 0.000000e+00 : f32
      %20 = vector.broadcast %cst_15 : f32 to vector<2x512xf32>
      %21 = arith.maximumf %19, %20 : vector<2x512xf32>
      %c0_16 = arith.constant 0 : index
      %c0_17 = arith.constant 0 : index
      %22 = vector.load %arg6[%c0_16, %c0_17] : memref<2x512xf32, #tpu.memory_space<vmem>>, vector<2x512xf32>
      tpu.vector_store %arg6[%c0_16, %c0_17], %21 {strides = array<i32>} : memref<2x512xf32, #tpu.memory_space<vmem>>, vector<2x512xf32>,
    } else {
    }
    return
  }
  func.func @transform_0(%arg0: i32, %arg1: i32) -> (i32, i32) {
    %c0_i32 = arith.constant 0 : i32
    %c0_i32_0 = arith.constant 0 : i32
    return %c0_i32, %arg1 : i32, i32
  }
  func.func @transform_1(%arg0: i32, %arg1: i32) -> (i32, i32) {
    %c0_i32 = arith.constant 0 : i32
    return %arg1, %arg0 : i32, i32
  }
  func.func @transform_2(%arg0: i32, %arg1: i32) -> (i32, i32) {
    %c0_i32 = arith.constant 0 : i32
    %c0_i32_0 = arith.constant 0 : i32
    return %c0_i32, %arg0 : i32, i32
  }
  func.func @transform_3(%arg0: i32, %arg1: i32) -> (i32, i32) {
    %c0_i32 = arith.constant 0 : i32
    %c0_i32_0 = arith.constant 0 : i32
    return %c0_i32, %arg0 : i32, i32
  }
  func.func @transform_4(%arg0: i32, %arg1: i32) -> (i32, i32) {
    %c0_i32 = arith.constant 0 : i32
    %c0_i32_0 = arith.constant 0 : i32
    return %c0_i32, %arg0 : i32, i32
  }
}

module attributes {stable_mosaic.version = 11 : i64} {
  func.func @_fc_tail_kernel(%arg0: memref<2x1024xf32, #tpu.memory_space<vmem>>, %arg1: memref<2x4xf32, #tpu.memory_space<vmem>>, %arg2: memref<1024x128xf32, #tpu.memory_space<vmem>>, %arg3: memref<1x128xf32, #tpu.memory_space<vmem>>, %arg4: memref<128x128xf32, #tpu.memory_space<vmem>>, %arg5: memref<1x128xf32, #tpu.memory_space<vmem>>, %arg6: memref<128x128xf32, #tpu.memory_space<vmem>>, %arg7: memref<1x128xf32, #tpu.memory_space<vmem>>, %arg8: memref<4x128xf32, #tpu.memory_space<vmem>>, %arg9: memref<1x128xf32, #tpu.memory_space<vmem>>, %arg10: memref<128x128xf32, #tpu.memory_space<vmem>>, %arg11: memref<128x128xf32, #tpu.memory_space<vmem>>, %arg12: memref<1x128xf32, #tpu.memory_space<vmem>>, %arg13: memref<2x128xf32, #tpu.memory_space<vmem>>) attributes {dimension_semantics = [], scalar_prefetch = 0 : i64, scratch_operands = 0 : i64, tpu.core_type = #tpu.core_type<tc>} {
    %c0 = arith.constant 0 : index
    %c0_0 = arith.constant 0 : index
    %0 = vector.load %arg0[%c0, %c0_0] : memref<2x1024xf32, #tpu.memory_space<vmem>>, vector<2x1024xf32>
    %c0_1 = arith.constant 0 : index
    %c0_2 = arith.constant 0 : index
    %1 = vector.load %arg2[%c0_1, %c0_2] : memref<1024x128xf32, #tpu.memory_space<vmem>>, vector<1024x128xf32>
    %cst = arith.constant dense<0.000000e+00> : vector<2x128xf32>
    %2 = tpu.matmul %0, %1, %cst {dimension_numbers = #tpu.dot_dimension_numbers<[1], [0], [0], [1], [0, 0, 1, 1], [], []>} : vector<2x1024xf32>, vector<1024x128xf32>, vector<2x128xf32> -> vector<2x128xf32>
    %c0_3 = arith.constant 0 : index
    %c0_4 = arith.constant 0 : index
    %3 = vector.load %arg3[%c0_3, %c0_4] : memref<1x128xf32, #tpu.memory_space<vmem>>, vector<1x128xf32>
    %4 = vector.broadcast %3 : vector<1x128xf32> to vector<2x128xf32>
    %5 = arith.addf %2, %4 : vector<2x128xf32>
    %cst_5 = arith.constant 0.000000e+00 : f32
    %6 = vector.broadcast %cst_5 : f32 to vector<2x128xf32>
    %7 = arith.maximumf %5, %6 : vector<2x128xf32>
    %c0_6 = arith.constant 0 : index
    %c0_7 = arith.constant 0 : index
    %8 = vector.load %arg4[%c0_6, %c0_7] : memref<128x128xf32, #tpu.memory_space<vmem>>, vector<128x128xf32>
    %cst_8 = arith.constant dense<0.000000e+00> : vector<2x128xf32>
    %9 = tpu.matmul %7, %8, %cst_8 {dimension_numbers = #tpu.dot_dimension_numbers<[1], [0], [0], [1], [0, 0, 1, 1], [], []>} : vector<2x128xf32>, vector<128x128xf32>, vector<2x128xf32> -> vector<2x128xf32>
    %c0_9 = arith.constant 0 : index
    %c0_10 = arith.constant 0 : index
    %10 = vector.load %arg5[%c0_9, %c0_10] : memref<1x128xf32, #tpu.memory_space<vmem>>, vector<1x128xf32>
    %11 = vector.broadcast %10 : vector<1x128xf32> to vector<2x128xf32>
    %12 = arith.addf %9, %11 : vector<2x128xf32>
    %cst_11 = arith.constant 0.000000e+00 : f32
    %13 = vector.broadcast %cst_11 : f32 to vector<2x128xf32>
    %14 = arith.maximumf %12, %13 : vector<2x128xf32>
    %c0_12 = arith.constant 0 : index
    %c0_13 = arith.constant 0 : index
    %15 = vector.load %arg6[%c0_12, %c0_13] : memref<128x128xf32, #tpu.memory_space<vmem>>, vector<128x128xf32>
    %cst_14 = arith.constant dense<0.000000e+00> : vector<2x128xf32>
    %16 = tpu.matmul %14, %15, %cst_14 {dimension_numbers = #tpu.dot_dimension_numbers<[1], [0], [0], [1], [0, 0, 1, 1], [], []>} : vector<2x128xf32>, vector<128x128xf32>, vector<2x128xf32> -> vector<2x128xf32>
    %c0_15 = arith.constant 0 : index
    %c0_16 = arith.constant 0 : index
    %17 = vector.load %arg7[%c0_15, %c0_16] : memref<1x128xf32, #tpu.memory_space<vmem>>, vector<1x128xf32>
    %18 = vector.broadcast %17 : vector<1x128xf32> to vector<2x128xf32>
    %19 = arith.addf %16, %18 : vector<2x128xf32>
    %cst_17 = arith.constant 0.000000e+00 : f32
    %20 = vector.broadcast %cst_17 : f32 to vector<2x128xf32>
    %21 = arith.maximumf %19, %20 : vector<2x128xf32>
    %c0_18 = arith.constant 0 : index
    %c0_19 = arith.constant 0 : index
    %22 = vector.load %arg1[%c0_18, %c0_19] : memref<2x4xf32, #tpu.memory_space<vmem>>, vector<2x4xf32>
    %c0_20 = arith.constant 0 : index
    %c0_21 = arith.constant 0 : index
    %23 = vector.load %arg8[%c0_20, %c0_21] : memref<4x128xf32, #tpu.memory_space<vmem>>, vector<4x128xf32>
    %cst_22 = arith.constant dense<0.000000e+00> : vector<2x128xf32>
    %24 = tpu.matmul %22, %23, %cst_22 {dimension_numbers = #tpu.dot_dimension_numbers<[1], [0], [0], [1], [0, 0, 1, 1], [], []>} : vector<2x4xf32>, vector<4x128xf32>, vector<2x128xf32> -> vector<2x128xf32>
    %c0_23 = arith.constant 0 : index
    %c0_24 = arith.constant 0 : index
    %25 = vector.load %arg9[%c0_23, %c0_24] : memref<1x128xf32, #tpu.memory_space<vmem>>, vector<1x128xf32>
    %26 = vector.broadcast %25 : vector<1x128xf32> to vector<2x128xf32>
    %27 = arith.addf %24, %26 : vector<2x128xf32>
    %cst_25 = arith.constant 0.000000e+00 : f32
    %28 = vector.broadcast %cst_25 : f32 to vector<2x128xf32>
    %29 = arith.maximumf %27, %28 : vector<2x128xf32>
    %c0_26 = arith.constant 0 : index
    %c0_27 = arith.constant 0 : index
    %30 = vector.load %arg10[%c0_26, %c0_27] : memref<128x128xf32, #tpu.memory_space<vmem>>, vector<128x128xf32>
    %cst_28 = arith.constant dense<0.000000e+00> : vector<2x128xf32>
    %31 = tpu.matmul %21, %30, %cst_28 {dimension_numbers = #tpu.dot_dimension_numbers<[1], [0], [0], [1], [0, 0, 1, 1], [], []>} : vector<2x128xf32>, vector<128x128xf32>, vector<2x128xf32> -> vector<2x128xf32>
    %c0_29 = arith.constant 0 : index
    %c0_30 = arith.constant 0 : index
    %32 = vector.load %arg11[%c0_29, %c0_30] : memref<128x128xf32, #tpu.memory_space<vmem>>, vector<128x128xf32>
    %cst_31 = arith.constant dense<0.000000e+00> : vector<2x128xf32>
    %33 = tpu.matmul %29, %32, %cst_31 {dimension_numbers = #tpu.dot_dimension_numbers<[1], [0], [0], [1], [0, 0, 1, 1], [], []>} : vector<2x128xf32>, vector<128x128xf32>, vector<2x128xf32> -> vector<2x128xf32>
    %34 = arith.addf %31, %33 : vector<2x128xf32>
    %c0_32 = arith.constant 0 : index
    %c0_33 = arith.constant 0 : index
    %35 = vector.load %arg12[%c0_32, %c0_33] : memref<1x128xf32, #tpu.memory_space<vmem>>, vector<1x128xf32>
    %36 = vector.broadcast %35 : vector<1x128xf32> to vector<2x128xf32>
    %37 = arith.addf %34, %36 : vector<2x128xf32>
    %c0_34 = arith.constant 0 : index
    %c0_35 = arith.constant 0 : index
    %38 = vector.load %arg13[%c0_34, %c0_35] : memref<2x128xf32, #tpu.memory_space<vmem>>, vector<2x128xf32>
    tpu.vector_store %arg13[%c0_34, %c0_35], %37 {strides = array<i32>} : memref<2x128xf32, #tpu.memory_space<vmem>>, vector<2x128xf32>,
    return
  }
}

</mosaic_0001>

<bundles_post_ra>
// kernel: pretrained_resnet_forward.5
= control target key start
LH: loop header
LB: loop body
LE: loop exit
PB: predicated region body
PF: predicated region fallthrough
CT: control target
= control target key end

     0   :  { %v1368_v30 = vmov 1983009808   ;;  %v188_v32 = vlaneseq  ;;  %s2129_s0 = inlined_call_operand.vmem [shape: f32[2,1024], index: 0, kind: input, shape index: {}]   ;;  %s2130_s1 = inlined_call_operand.vmem [shape: f32[2,4], index: 1, kind: input, shape index: {}]   ;;  %s2131_s2 = inlined_call_operand.vmem [shape: f32[1024,128], index: 2, kind: input, shape index: {}]   ;;  %s2132_s3 = inlined_call_operand.vmem [shape: f32[1,128], index: 3, kind: input, shape index: {}]   ;;  %s2133_s4 = inlined_call_operand.vmem [shape: f32[128,128], index: 4, kind: input, shape index: {}]   ;;  %s2134_s5 = inlined_call_operand.vmem [shape: f32[1,128], index: 5, kind: input, shape index: {}]   ;;  %s2135_s6 = inlined_call_operand.vmem [shape: f32[128,128], index: 6, kind: input, shape index: {}]   ;;  %s2136_s7 = inlined_call_operand.vmem [shape: f32[1,128], index: 7, kind: input, shape index: {}]   ;;  %s2137_s8 = inlined_call_operand.vmem [shape: f32[4,128], index: 8, kind: input, shape index: {}]   ;;  %s2138_s9 = inlined_call_operand.vmem [shape: f32[1,128], index: 9, kind: input, shape index: {}]   ;;  %s2139_s10 = inlined_call_operand.vmem [shape: f32[128,128], index: 10, kind: input, shape index: {}]   ;;  %s2140_s11 = inlined_call_operand.vmem [shape: f32[128,128], index: 11, kind: input, shape index: {}]   ;;  %s2141_s12 = inlined_call_operand.vmem [shape: f32[1,128], index: 12, kind: input, shape index: {}]   ;;  %s2142_s13 = inlined_call_operand.hbm [shape: f32[2,128], index: 13, kind: output, shape index: {}]  }
   0x1   :  { %v78_v0 = vld [vmem:[%s2131_s2 + $0xf8] sm:$0xff]  ;;  %v77_v4 = vld [vmem:[%s2131_s2 + $0xf0] sm:$0xff]  ;;  %v76_v8 = vld [vmem:[%s2131_s2 + $0xe8] sm:$0xff]  ;;  %v186_v31 = vunpack.c.l.s4 %v1368_v30 }
   0x2   :  { %v110_v1 = vld [vmem:[%s2131_s2 + $0x1f8] sm:$0xff]  ;;  %985 = vmatprep.subr.mxu0 %v78_v0  ;;  %v109_v5 = vld [vmem:[%s2131_s2 + $0x1f0] sm:$0xff]  ;;  %v108_v9 = vld [vmem:[%s2131_s2 + $0x1e8] sm:$0xff]  ;;  %v189_v42 = vshrl.u32 %v188_v32, 7 }
   0x3   :  { %v62_v2 = vld [vmem:[%s2131_s2 + $0x78] sm:$0xff]  ;;  %1020 = vmatprep.subr.mxu1 %v110_v1  ;;  %v61_v6 = vld [vmem:[%s2131_s2 + $0x70] sm:$0xff]  ;;  %v60_v10 = vld [vmem:[%s2131_s2 + $0x68] sm:$0xff]  ;;  %v187_v41 = vunpack.c.0.s8 %v186_v31 }
   0x4   :  { %v94_v3 = vld [vmem:[%s2131_s2 + $0x178] sm:$0xff]  ;;  %986 = vmatpush3.msra.mxu0 %v62_v2  ;;  %v93_v7 = vld [vmem:[%s2131_s2 + $0x170] sm:$0xff]  ;;  %v92_v11 = vld [vmem:[%s2131_s2 + $0x168] sm:$0xff] }
   0x5   :  { %1021 = vmatpush3.msra.mxu1 %v94_v3  ;;  %987 = vmatprep.subr.mxu0 %v77_v4  ;;  %v75_v12 = vld [vmem:[%s2131_s2 + $0xe0] sm:$0xff]  ;;  %v74_v16 = vld [vmem:[%s2131_s2 + $0xd8] sm:$0xff]  ;;  %v73_v20 = vld [vmem:[%s2131_s2 + $0xd0] sm:$0xff]  ;;  %v1580_v51 = vsub.s32 %v187_v41, %v189_v42 }
   0x6   :  { %1022 = vmatprep.subr.mxu1 %v109_v5  ;;  %988 = vmatpush3.msra.mxu0 %v61_v6  ;;  %v107_v13 = vld [vmem:[%s2131_s2 + $0x1e0] sm:$0xff]  ;;  %v106_v17 = vld [vmem:[%s2131_s2 + $0x1d8] sm:$0xff]  ;;  %v105_v21 = vld [vmem:[%s2131_s2 + $0x1d0] sm:$0xff] }
   0x7   :  { %1023 = vmatpush3.msra.mxu1 %v93_v7  ;;  %989 = vmatprep.subr.mxu0 %v76_v8  ;;  %v59_v14 = vld [vmem:[%s2131_s2 + $0x60] sm:$0xff]  ;;  %v58_v18 = vld [vmem:[%s2131_s2 + $0x58] sm:$0xff]  ;;  %v57_v22 = vld [vmem:[%s2131_s2 + $0x50] sm:$0xff] }
   0x8   :  { %1024 = vmatprep.subr.mxu1 %v108_v9  ;;  %v91_v15 = vld [vmem:[%s2131_s2 + $0x160] sm:$0xff]  ;;  %990 = vmatpush3.msra.mxu0 %v60_v10  ;;  %v90_v19 = vld [vmem:[%s2131_s2 + $0x158] sm:$0xff]  ;;  %v89_v23 = vld [vmem:[%s2131_s2 + $0x150] sm:$0xff] }
   0x9   :  { %1025 = vmatpush3.msra.mxu1 %v92_v11  ;;  %991 = vmatprep.subr.mxu0 %v75_v12  ;;  %v72_v24 = vld [vmem:[%s2131_s2 + $0xc8] sm:$0xff]  ;;  %v71_v28 = vld [vmem:[%s2131_s2 + $0xc0] sm:$0xff]  ;;  %v70_v35 = vld [vmem:[%s2131_s2 + $0xb8] sm:$0xff] }
   0xa   :  { %1026 = vmatprep.subr.mxu1 %v107_v13  ;;  %992 = vmatpush3.msra.mxu0 %v59_v14  ;;  %v104_v25 = vld [vmem:[%s2131_s2 + $0x1c8] sm:$0xff]  ;;  %v103_v29 = vld [vmem:[%s2131_s2 + $0x1c0] sm:$0xff]  ;;  %v102_v36 = vld [vmem:[%s2131_s2 + $0x1b8] sm:$0xff] }
   0xb   :  { %1027 = vmatpush3.msra.mxu1 %v91_v15  ;;  %993 = vmatprep.subr.mxu0 %v74_v16  ;;  %v56_v26 = vld [vmem:[%s2131_s2 + $0x48] sm:$0xff]  ;;  %v55_v33 = vld [vmem:[%s2131_s2 + $0x40] sm:$0xff]  ;;  %v54_v37 = vld [vmem:[%s2131_s2 + $0x38] sm:$0xff] }
   0xc   :  { %1028 = vmatprep.subr.mxu1 %v106_v17  ;;  %994 = vmatpush3.msra.mxu0 %v58_v18  ;;  %v88_v27 = vld [vmem:[%s2131_s2 + $0x148] sm:$0xff]  ;;  %v87_v34 = vld [vmem:[%s2131_s2 + $0x140] sm:$0xff]  ;;  %v86_v38 = vld [vmem:[%s2131_s2 + $0x138] sm:$0xff] }
   0xd   :  { %1029 = vmatpush3.msra.mxu1 %v90_v19  ;;  %995 = vmatprep.subr.mxu0 %v73_v20  ;;  %v69_v39 = vld [vmem:[%s2131_s2 + $0xb0] sm:$0xff]  ;;  %v68_v45 = vld [vmem:[%s2131_s2 + $0xa8] sm:$0xff]  ;;  %v67_v49 = vld [vmem:[%s2131_s2 + $0xa0] sm:$0xff] }
   0xe   :  { %1030 = vmatprep.subr.mxu1 %v105_v21  ;;  %996 = vmatpush3.msra.mxu0 %v57_v22  ;;  %v101_v40 = vld [vmem:[%s2131_s2 + $0x1b0] sm:$0xff]  ;;  %v100_v46 = vld [vmem:[%s2131_s2 + $0x1a8] sm:$0xff]  ;;  %v99_v50 = vld [vmem:[%s2131_s2 + $0x1a0] sm:$0xff] }
   0xf   :  { %1031 = vmatpush3.msra.mxu1 %v89_v23  ;;  %997 = vmatprep.subr.mxu0 %v72_v24  ;;  %v53_v43 = vld [vmem:[%s2131_s2 + $0x30] sm:$0xff]  ;;  %v52_v47 = vld [vmem:[%s2131_s2 + $0x28] sm:$0xff]  ;;  %v51_v52 = vld [vmem:[%s2131_s2 + $0x20] sm:$0xff] }
  0x10   :  { %1032 = vmatprep.subr.mxu1 %v104_v25  ;;  %998 = vmatpush3.msra.mxu0 %v56_v26  ;;  %v85_v44 = vld [vmem:[%s2131_s2 + $0x130] sm:$0xff]  ;;  %v84_v48 = vld [vmem:[%s2131_s2 + $0x128] sm:$0xff]  ;;  %v83_v53 = vld [vmem:[%s2131_s2 + $0x120] sm:$0xff] }
  0x11   :  { %1033 = vmatpush3.msra.mxu1 %v88_v27  ;;  %999 = vmatprep.subr.mxu0 %v71_v28  ;;  %v45_v54 = vld [vmem:[%s2129_s0] sm:$0xff]  ;;  %v66_v55 = vld [vmem:[%s2131_s2 + $0x98] sm:$0xff]  ;;  %v65_v60 = vld [vmem:[%s2131_s2 + $0x90] sm:$0xff] }
  0x12   :  { %1034 = vmatprep.subr.mxu1 %v103_v29  ;;  %1000 = vmatpush3.msra.mxu0 %v55_v33  ;;  %v98_v56 = vld [vmem:[%s2131_s2 + $0x198] sm:$0xff]  ;;  %v184_v57 = vcombine.high %v45_v54, %v45_v54  ;;  %v97_v61 = vld [vmem:[%s2131_s2 + $0x190] sm:$0xff]  ;;  %v191_v62 = vrot.slane %v45_v54, %v1580_v51  ;;  %v64_v1 = vld [vmem:[%s2131_s2 + $0x88] sm:$0xff] }
  0x13   :  { %1035 = vmatpush3.msra.mxu1 %v87_v34  ;;  %1001 = vmatprep.subr.mxu0 %v70_v35  ;;  %v50_v58 = vld [vmem:[%s2131_s2 + $0x18] sm:$0xff]  ;;  %v49_v63 = vld [vmem:[%s2131_s2 + $0x10] sm:$0xff]  ;;  %v96_v2 = vld [vmem:[%s2131_s2 + $0x188] sm:$0xff] }
  0x14   :  { %1036 = vmatprep.subr.mxu1 %v102_v36  ;;  %1002 = vmatpush3.msra.mxu0 %v54_v37  ;;  %v82_v59 = vld [vmem:[%s2131_s2 + $0x118] sm:$0xff]  ;;  %v81_v0 = vld [vmem:[%s2131_s2 + $0x110] sm:$0xff]  ;;  %v198_v3 = vrot.slane %v184_v57, %v1580_v51  ;;  %v48_v4 = vld [vmem:[%s2131_s2 + $0x8] sm:$0xff]  ;;  %v199_v8 = vcombine.high %v191_v62, %v191_v62 }
  0x15   :  { %1037 = vmatpush3.msra.mxu1 %v86_v38  ;;  %1003 = vmatprep.subr.mxu0 %v69_v39  ;;  %v80_v5 = vld [vmem:[%s2131_s2 + $0x108] sm:$0xff]  ;;  %v63_v6 = vld [vmem:[%s2131_s2 + $0x80] sm:$0xff]  ;;  %v142_v12 = vld [vmem:[%s2131_s2 + $0x2f8] sm:$0xff] }
  0x16   :  { %1038 = vmatprep.subr.mxu1 %v101_v40  ;;  %1004 = vmatpush3.msra.mxu0 %v53_v43  ;;  %v95_v7 = vld [vmem:[%s2131_s2 + $0x180] sm:$0xff]  ;;  %v200_v11 = vcombine.high %v198_v3, %v198_v3  ;;  %v174_v13 = vld [vmem:[%s2131_s2 + $0x3f8] sm:$0xff]  ;;  %v141_v16 = vld [vmem:[%s2131_s2 + $0x2f0] sm:$0xff] }
  0x17   :  { %1039 = vmatpush3.msra.mxu1 %v85_v44  ;;  %1005 = vmatprep.subr.mxu0 %v68_v45  ;;  %v47_v9 = vld [vmem:[%s2131_s2] sm:$0xff]  ;;  %v126_v14 = vld [vmem:[%s2131_s2 + $0x278] sm:$0xff]  ;;  %v173_v17 = vld [vmem:[%s2131_s2 + $0x3f0] sm:$0xff] }
  0x18   :  { %1040 = vmatprep.subr.mxu1 %v100_v46  ;;  %1006 = vmatpush3.msra.mxu0 %v52_v47  ;;  %v79_v10 = vld [vmem:[%s2131_s2 + $0x100] sm:$0xff]  ;;  %v158_v15 = vld [vmem:[%s2131_s2 + $0x378] sm:$0xff]  ;;  %v125_v18 = vld [vmem:[%s2131_s2 + $0x270] sm:$0xff] }
  0x19   :  { %1041 = vmatpush3.msra.mxu1 %v84_v48  ;;  %1007 = vmatprep.subr.mxu0 %v67_v49  ;;  %v157_v19 = vld [vmem:[%s2131_s2 + $0x370] sm:$0xff]  ;;  %v140_v20 = vld [vmem:[%s2131_s2 + $0x2e8] sm:$0xff]  ;;  %v139_v24 = vld [vmem:[%s2131_s2 + $0x2e0] sm:$0xff] }
  0x1a   :  { %1042 = vmatprep.subr.mxu1 %v99_v50  ;;  %1008 = vmatpush3.msra.mxu0 %v51_v52  ;;  %v172_v21 = vld [vmem:[%s2131_s2 + $0x3e8] sm:$0xff]  ;;  %v171_v25 = vld [vmem:[%s2131_s2 + $0x3e0] sm:$0xff]  ;;  %v138_v28 = vld [vmem:[%s2131_s2 + $0x2d8] sm:$0xff] }
  0x1b   :  { %1043 = vmatpush3.msra.mxu1 %v83_v53  ;;  %1009 = vmatprep.subr.mxu0 %v66_v55  ;;  %v124_v22 = vld [vmem:[%s2131_s2 + $0x268] sm:$0xff]  ;;  %v123_v26 = vld [vmem:[%s2131_s2 + $0x260] sm:$0xff]  ;;  %v170_v29 = vld [vmem:[%s2131_s2 + $0x3d8] sm:$0xff] }
  0x1c   :  { %1044 = vmatprep.subr.mxu1 %v98_v56  ;;  %1010 = vmatpush3.msra.mxu0 %v50_v58  ;;  %v156_v23 = vld [vmem:[%s2131_s2 + $0x368] sm:$0xff]  ;;  %v155_v27 = vld [vmem:[%s2131_s2 + $0x360] sm:$0xff]  ;;  %v122_v30 = vld [vmem:[%s2131_s2 + $0x258] sm:$0xff] }
  0x1d   :  { %1045 = vmatpush3.msra.mxu1 %v82_v59  ;;  %1011 = vmatprep.subr.mxu0 %v65_v60  ;;  %v154_v31 = vld [vmem:[%s2131_s2 + $0x358] sm:$0xff]  ;;  %v137_v32 = vld [vmem:[%s2131_s2 + $0x2d0] sm:$0xff] }
  0x1e   :  { %1046 = vmatprep.subr.mxu1 %v97_v61  ;;  %1012 = vmatpush3.msra.mxu0 %v49_v63  ;;  %v169_v33 = vld [vmem:[%s2131_s2 + $0x3d0] sm:$0xff] }
  0x1f   :  { %1047 = vmatpush3.msra.mxu1 %v81_v0  ;;  %1013 = vmatprep.subr.mxu0 %v64_v1  ;;  %v121_v34 = vld [vmem:[%s2131_s2 + $0x250] sm:$0xff] }
  0x20   :  { %1048 = vmatprep.subr.mxu1 %v96_v2  ;;  %1014 = vmatpush3.msra.mxu0 %v48_v4  ;;  %v153_v35 = vld [vmem:[%s2131_s2 + $0x350] sm:$0xff] }
  0x21   :  { %1049 = vmatpush3.msra.mxu1 %v80_v5  ;;  %1015 = vmatprep.subr.mxu0 %v63_v6 }
  0x22   :  { %1050 = vmatprep.subr.mxu1 %v95_v7  ;;  %1016 = vmatpush3.msra.mxu0 %v47_v9 }
  0x23   :  { %290 = vmatprep.mubr.f32.mxu0 %v199_v8  ;;  %1051 = vmatpush3.msra.mxu1 %v79_v10 }
  0x24   :  { %291 = vmatmul.mubr.f32.vlgmr.msra.gmra.mxu0 %v191_v62  ;;  %360 = vmatprep.mubr.f32.mxu1 %v200_v11 }
  0x25   :  { %1055 = vmatprep.subr.mxu0 %v142_v12  ;;  %1090 = vmatprep.subr.mxu1 %v174_v13 }
  0x26   :  { %361 = vmatmul.mubr.f32.vlgmr.msra.gmra.mxu1 %v198_v3  ;;  %1056 = vmatpush3.msra.mxu0 %v126_v14 }
  0x27   :  { %1091 = vmatpush3.msra.mxu1 %v158_v15  ;;  %1057 = vmatprep.subr.mxu0 %v141_v16 }
  0x28   :  { %1092 = vmatprep.subr.mxu1 %v173_v17  ;;  %1058 = vmatpush3.msra.mxu0 %v125_v18 }
  0x29   :  { %1093 = vmatpush3.msra.mxu1 %v157_v19  ;;  %1059 = vmatprep.subr.mxu0 %v140_v20 }
  0x2a   :  { %1094 = vmatprep.subr.mxu1 %v172_v21  ;;  %1060 = vmatpush3.msra.mxu0 %v124_v22 }
  0x2b   :  { %1095 = vmatpush3.msra.mxu1 %v156_v23  ;;  %1061 = vmatprep.subr.mxu0 %v139_v24 }
  0x2c   :  { %1096 = vmatprep.subr.mxu1 %v171_v25  ;;  %1062 = vmatpush3.msra.mxu0 %v123_v26 }
  0x2d   :  { %1097 = vmatpush3.msra.mxu1 %v155_v27  ;;  %1063 = vmatprep.subr.mxu0 %v138_v28 }
  0x2e   :  { %1098 = vmatprep.subr.mxu1 %v170_v29 }
  0x2f   :  { %18 = vsyncpa [#allocation3], 0  ;;  %1064 = vmatpush3.msra.mxu0 %v122_v30  ;;  %1099 = vmatpush3.msra.mxu1 %v154_v31  ;;  %v136_v36 = vld [vmem:[%s2131_s2 + $0x2c8] sm:$0xff]  ;;  %v135_v40 = vld [vmem:[%s2131_s2 + $0x2c0] sm:$0xff]  ;;  %v1369_v19 = vmov 0.0   ;;  %vm1370_vm0 = vmmov 0  }
  0x30   :  { %v168_v37 = vld [vmem:[%s2131_s2 + $0x3c8] sm:$0xff]  ;;  %1065 = vmatprep.subr.mxu0 %v137_v32  ;;  %1100 = vmatprep.subr.mxu1 %v169_v33  ;;  %v167_v41 = vld [vmem:[%s2131_s2 + $0x3c0] sm:$0xff]  ;;  %v134_v44 = vld [vmem:[%s2131_s2 + $0x2b8] sm:$0xff]  ;;  %vm708_vm1 = vcmask 1043456   ;;  %vm704_vm2 = vcmask 31744   ;;  %s1371_s15 = smov [#allocation2]  }
  0x31   :  { %v120_v38 = vld [vmem:[%s2131_s2 + $0x248] sm:$0xff]  ;;  %1066 = vmatpush3.msra.mxu0 %v121_v34  ;;  %1101 = vmatpush3.msra.mxu1 %v153_v35  ;;  %v119_v42 = vld [vmem:[%s2131_s2 + $0x240] sm:$0xff]  ;;  %v166_v45 = vld [vmem:[%s2131_s2 + $0x3b8] sm:$0xff]  ;;  %s970_s16 = sshll.u32 %s1371_s15, 4  ;;  %s971_s16 = int_to_ptr.vmem [resolvable:$true] %s970_s16 }
  0x32   :  { %v152_v39 = vld [vmem:[%s2131_s2 + $0x348] sm:$0xff]  ;;  %1067 = vmatprep.subr.mxu0 %v136_v36  ;;  %1102 = vmatprep.subr.mxu1 %v168_v37  ;;  %v151_v43 = vld [vmem:[%s2131_s2 + $0x340] sm:$0xff]  ;;  %v118_v46 = vld [vmem:[%s2131_s2 + $0x238] sm:$0xff]  ;;  %p1351_p1 = scmp.lt.s32.totalorder %s971_s16, %s971_s16 }
  0x33   :  { %1068 = vmatpush3.msra.mxu0 %v120_v38  ;;  %1103 = vmatpush3.msra.mxu1 %v152_v39  ;;  %v150_v47 = vld [vmem:[%s2131_s2 + $0x338] sm:$0xff]  ;;  %v133_v48 = vld [vmem:[%s2131_s2 + $0x2b0] sm:$0xff]  ;;  %v132_v53 = vld [vmem:[%s2131_s2 + $0x2a8] sm:$0xff] }
  0x34   :  { %1069 = vmatprep.subr.mxu0 %v135_v40  ;;  %1104 = vmatprep.subr.mxu1 %v167_v41  ;;  %v165_v49 = vld [vmem:[%s2131_s2 + $0x3b0] sm:$0xff]  ;;  %v164_v54 = vld [vmem:[%s2131_s2 + $0x3a8] sm:$0xff]  ;;  %v131_v58 = vld [vmem:[%s2131_s2 + $0x2a0] sm:$0xff] }
  0x35   :  { %1070 = vmatpush3.msra.mxu0 %v119_v42  ;;  %1105 = vmatpush3.msra.mxu1 %v151_v43  ;;  %v117_v50 = vld [vmem:[%s2131_s2 + $0x230] sm:$0xff]  ;;  %v46_v55 = vld [vmem:[%s2129_s0 + $0x8] sm:$0xff]  ;;  %v163_v59 = vld [vmem:[%s2131_s2 + $0x3a0] sm:$0xff] }
  0x36   :  { %1071 = vmatprep.subr.mxu0 %v134_v44  ;;  %1106 = vmatprep.subr.mxu1 %v166_v45  ;;  %v149_v52 = vld [vmem:[%s2131_s2 + $0x330] sm:$0xff]  ;;  %v116_v56 = vld [vmem:[%s2131_s2 + $0x228] sm:$0xff]  ;;  %v115_v60 = vld [vmem:[%s2131_s2 + $0x220] sm:$0xff]  ;;  %v201_v62 = vcombine.high %v46_v55, %v46_v55  ;;  %v208_v5 = vrot.slane %v46_v55, %v1580_v51 }
  0x37   :  { %1072 = vmatpush3.msra.mxu0 %v118_v46  ;;  %1107 = vmatpush3.msra.mxu1 %v150_v47  ;;  %v148_v57 = vld [vmem:[%s2131_s2 + $0x328] sm:$0xff]  ;;  %v147_v61 = vld [vmem:[%s2131_s2 + $0x320] sm:$0xff]  ;;  %v130_v63 = vld [vmem:[%s2131_s2 + $0x298] sm:$0xff] }
  0x38   :  { %1073 = vmatprep.subr.mxu0 %v133_v48  ;;  %1108 = vmatprep.subr.mxu1 %v165_v49  ;;  %v162_v0 = vld [vmem:[%s2131_s2 + $0x398] sm:$0xff]  ;;  %v129_v3 = vld [vmem:[%s2131_s2 + $0x290] sm:$0xff]  ;;  %v215_v8 = vrot.slane %v201_v62, %v1580_v51  ;;  %v128_v9 = vld [vmem:[%s2131_s2 + $0x288] sm:$0xff]  ;;  %v216_v14 = vcombine.high %v208_v5, %v208_v5 }
  0x39   :  { %1074 = vmatpush3.msra.mxu0 %v117_v50  ;;  %1109 = vmatpush3.msra.mxu1 %v149_v52  ;;  %v114_v1 = vld [vmem:[%s2131_s2 + $0x218] sm:$0xff]  ;;  %v161_v4 = vld [vmem:[%s2131_s2 + $0x390] sm:$0xff]  ;;  %v160_v10 = vld [vmem:[%s2131_s2 + $0x388] sm:$0xff] }
  0x3a   :  { %1075 = vmatprep.subr.mxu0 %v132_v53  ;;  %1110 = vmatprep.subr.mxu1 %v164_v54  ;;  %v146_v2 = vld [vmem:[%s2131_s2 + $0x318] sm:$0xff]  ;;  %v113_v6 = vld [vmem:[%s2131_s2 + $0x210] sm:$0xff]  ;;  %v112_v11 = vld [vmem:[%s2131_s2 + $0x208] sm:$0xff]  ;;  %v217_v16 = vcombine.high %v215_v8, %v215_v8 }
  0x3b   :  { %1076 = vmatpush3.msra.mxu0 %v116_v56  ;;  %1111 = vmatpush3.msra.mxu1 %v148_v57  ;;  %v145_v7 = vld [vmem:[%s2131_s2 + $0x310] sm:$0xff]  ;;  %v144_v51 = vld [vmem:[%s2131_s2 + $0x308] sm:$0xff]  ;;  %v127_v12 = vld [vmem:[%s2131_s2 + $0x280] sm:$0xff] }
  0x3c   :  { %1077 = vmatprep.subr.mxu0 %v131_v58  ;;  %1112 = vmatprep.subr.mxu1 %v163_v59  ;;  %v159_v13 = vld [vmem:[%s2131_s2 + $0x380] sm:$0xff]  ;;  %v522_v18 = vld [vmem:[%s2133_s4 + $0x78] sm:$0xff]  ;;  %v521_v20 = vld [vmem:[%s2133_s4 + $0x70] sm:$0xff] }
  0x3d   :  { %1078 = vmatpush3.msra.mxu0 %v115_v60  ;;  %1113 = vmatpush3.msra.mxu1 %v147_v61  ;;  %v111_v15 = vld [vmem:[%s2131_s2 + $0x200] sm:$0xff]  ;;  %v520_v21 = vld [vmem:[%s2133_s4 + $0x68] sm:$0xff]  ;;  %v518_v23 = vld [vmem:[%s2133_s4 + $0x58] sm:$0xff] }
  0x3e   :  { %1079 = vmatprep.subr.mxu0 %v130_v63  ;;  %1114 = vmatprep.subr.mxu1 %v162_v0  ;;  %v143_v17 = vld [vmem:[%s2131_s2 + $0x300] sm:$0xff]  ;;  %v517_v24 = vld [vmem:[%s2133_s4 + $0x50] sm:$0xff]  ;;  %v516_v25 = vld [vmem:[%s2133_s4 + $0x48] sm:$0xff] }
  0x3f   :  { %1080 = vmatpush3.msra.mxu0 %v114_v1  ;;  %1115 = vmatpush3.msra.mxu1 %v146_v2  ;;  %v519_v22 = vld [vmem:[%s2133_s4 + $0x60] sm:$0xff]  ;;  %v514_v27 = vld [vmem:[%s2133_s4 + $0x38] sm:$0xff]  ;;  %v513_v28 = vld [vmem:[%s2133_s4 + $0x30] sm:$0xff] }
  0x40   :  { %1081 = vmatprep.subr.mxu0 %v129_v3  ;;  %1116 = vmatprep.subr.mxu1 %v161_v4  ;;  %v515_v26 = vld [vmem:[%s2133_s4 + $0x40] sm:$0xff]  ;;  %v512_v29 = vld [vmem:[%s2133_s4 + $0x28] sm:$0xff]  ;;  %v510_v31 = vld [vmem:[%s2133_s4 + $0x18] sm:$0xff] }
  0x41   :  { %1082 = vmatpush3.msra.mxu0 %v113_v6  ;;  %1117 = vmatpush3.msra.mxu1 %v145_v7  ;;  %v511_v30 = vld [vmem:[%s2133_s4 + $0x20] sm:$0xff]  ;;  %v509_v32 = vld [vmem:[%s2133_s4 + $0x10] sm:$0xff]  ;;  %v508_v33 = vld [vmem:[%s2133_s4 + $0x8] sm:$0xff] }
  0x42   :  { %1083 = vmatprep.subr.mxu0 %v128_v9  ;;  %1118 = vmatprep.subr.mxu1 %v160_v10  ;;  %v507_v34 = vld [vmem:[%s2133_s4] sm:$0xff]  ;;  %v616_v35 = vld [vmem:[%s2135_s6 + $0x78] sm:$0xff]  ;;  %v615_v36 = vld [vmem:[%s2135_s6 + $0x70] sm:$0xff] }
  0x43   :  { %1084 = vmatpush3.msra.mxu0 %v112_v11  ;;  %1119 = vmatpush3.msra.mxu1 %v144_v51  ;;  %v614_v37 = vld [vmem:[%s2135_s6 + $0x68] sm:$0xff]  ;;  %v613_v38 = vld [vmem:[%s2135_s6 + $0x60] sm:$0xff]  ;;  %v612_v39 = vld [vmem:[%s2135_s6 + $0x58] sm:$0xff] }
  0x44   :  { %1085 = vmatprep.subr.mxu0 %v127_v12  ;;  %1120 = vmatprep.subr.mxu1 %v159_v13  ;;  %v611_v40 = vld [vmem:[%s2135_s6 + $0x50] sm:$0xff]  ;;  %v610_v41 = vld [vmem:[%s2135_s6 + $0x48] sm:$0xff]  ;;  %v609_v42 = vld [vmem:[%s2135_s6 + $0x40] sm:$0xff] }
  0x45   :  { %1086 = vmatpush3.msra.mxu0 %v111_v15  ;;  %430 = vmatprep.mubr.f32.mxu0 %v216_v14  ;;  %v608_v43 = vld [vmem:[%s2135_s6 + $0x38] sm:$0xff]  ;;  %v607_v44 = vld [vmem:[%s2135_s6 + $0x30] sm:$0xff]  ;;  %v606_v45 = vld [vmem:[%s2135_s6 + $0x28] sm:$0xff] }
  0x46   :  { %1121 = vmatpush3.msra.mxu1 %v143_v17  ;;  %500 = vmatprep.mubr.f32.mxu1 %v217_v16  ;;  %v605_v46 = vld [vmem:[%s2135_s6 + $0x20] sm:$0xff]  ;;  %v604_v47 = vld [vmem:[%s2135_s6 + $0x18] sm:$0xff]  ;;  %v603_v3 = vld [vmem:[%s2135_s6 + $0x10] sm:$0xff] }
  0x47   :  { %431 = vmatmul.mubr.f32.vlgmr.msra.gmra.mxu0 %v208_v5  ;;  %501 = vmatmul.mubr.f32.vlgmr.msra.gmra.mxu1 %v215_v8  ;;  %v978_v53 = vld [vmem:[%s2132_s3] ss:$0 sm:$0xff]  ;;  %v602_v5 = vld [vmem:[%s2135_s6 + $0x8] sm:$0xff]  ;;  %v798_v8 = vld [vmem:[%s2139_s10 + $0x78] sm:$0xff] }
  0x48   :  { %1195 = vmatprep.subr.mxu0 %v1369_v19  ;;  %1230 = vmatprep.subr.mxu1 %v1369_v19  ;;  %v696_v4 = vld [vmem:[%s2137_s8] sm:$0xf]  ;;  %v797_v9 = vld [vmem:[%s2139_s10 + $0x70] sm:$0xff]  ;;  %v796_v10 = vld [vmem:[%s2139_s10 + $0x68] sm:$0xff] }
  0x49   :  { %1196 = vmatpush3.msra.mxu0 %v522_v18  ;;  %1227 = vmatprep.mubr.msk.f32.mxu0 %vm1370_vm0, %v1369_v19  ;;  %v695_v6 = vld [vmem:[%s2130_s1] sm:$0x3]  ;;  %v794_v51 = vld [vmem:[%s2139_s10 + $0x58] sm:$0xff]  ;;  %v793_v12 = vld [vmem:[%s2139_s10 + $0x50] sm:$0xff] }
  0x4a   :  { %1197 = vmatprep.subr.mxu0 %v1369_v19  ;;  %1262 = vmatprep.mubr.msk.f32.mxu1 %vm1370_vm0, %v1369_v19  ;;  %v601_v7 = vld [vmem:[%s2135_s6] sm:$0xff]  ;;  %v792_v13 = vld [vmem:[%s2139_s10 + $0x48] sm:$0xff]  ;;  %v790_v15 = vld [vmem:[%s2139_s10 + $0x38] sm:$0xff] }
  0x4b   :  { %1198 = vmatpush3.msra.mxu0 %v521_v20  ;;  %1231 = vmatpush3.msra.mxu1 %v616_v35  ;;  %v795_v11 = vld [vmem:[%s2139_s10 + $0x60] sm:$0xff]  ;;  %v789_v16 = vld [vmem:[%s2139_s10 + $0x30] sm:$0xff]  ;;  %v788_v17 = vld [vmem:[%s2139_s10 + $0x28] sm:$0xff] }
  0x4c   :  { %1199 = vmatprep.subr.mxu0 %v1369_v19  ;;  %1232 = vmatprep.subr.mxu1 %v1369_v19  ;;  %v791_v14 = vld [vmem:[%s2139_s10 + $0x40] sm:$0xff]  ;;  %v786_v20 = vld [vmem:[%s2139_s10 + $0x18] sm:$0xff]  ;;  %v805_v35 = vld [vmem:[%s2140_s11 + $0x30] sm:$0xff] }
  0x4d   :  { %1200 = vmatpush3.msra.mxu0 %v520_v21  ;;  %1233 = vmatpush3.msra.mxu1 %v615_v36  ;;  %v787_v18 = vld [vmem:[%s2139_s10 + $0x20] sm:$0xff]  ;;  %v804_v36 = vld [vmem:[%s2140_s11 + $0x28] sm:$0xff] }
  0x4e   :  { %1201 = vmatprep.subr.mxu0 %v1369_v19  ;;  %1234 = vmatprep.subr.mxu1 %v1369_v19  ;;  %v979_v21 = vld [vmem:[%s2134_s5] ss:$0 sm:$0xff] }
  0x4f   :  { %1202 = vmatpush3.msra.mxu0 %v519_v22  ;;  %1235 = vmatpush3.msra.mxu1 %v614_v37  ;;  %v803_v37 = vld [vmem:[%s2140_s11 + $0x20] sm:$0xff] }
  0x50   :  { %1203 = vmatprep.subr.mxu0 %v1369_v19  ;;  %1236 = vmatprep.subr.mxu1 %v1369_v19 }
  0x51   :  { %1204 = vmatpush3.msra.mxu0 %v518_v23  ;;  %1237 = vmatpush3.msra.mxu1 %v613_v38  ;;  %v802_v38 = vld [vmem:[%s2140_s11 + $0x18] sm:$0xff] }
  0x52   :  { %1205 = vmatprep.subr.mxu0 %v1369_v19  ;;  %1238 = vmatprep.subr.mxu1 %v1369_v19 }
  0x53   :  { %1206 = vmatpush3.msra.mxu0 %v517_v24  ;;  %1239 = vmatpush3.msra.mxu1 %v612_v39  ;;  %v801_v39 = vld [vmem:[%s2140_s11 + $0x10] sm:$0xff] }
  0x54   :  { %1207 = vmatprep.subr.mxu0 %v1369_v19  ;;  %1240 = vmatprep.subr.mxu1 %v1369_v19 }
  0x55   :  { %1208 = vmatpush3.msra.mxu0 %v516_v25  ;;  %1241 = vmatpush3.msra.mxu1 %v611_v40  ;;  %v981_v40 = vld [vmem:[%s2138_s9] ss:$0 sm:$0xff] }
  0x56   :  { %1209 = vmatprep.subr.mxu0 %v1369_v19  ;;  %1242 = vmatprep.subr.mxu1 %v1369_v19 }
  0x57   :  { %1210 = vmatpush3.msra.mxu0 %v515_v26  ;;  %1243 = vmatpush3.msra.mxu1 %v610_v41  ;;  %v814_v26 = vld [vmem:[%s2140_s11 + $0x78] sm:$0xff] }
  0x58   :  { %1211 = vmatprep.subr.mxu0 %v1369_v19  ;;  %1244 = vmatprep.subr.mxu1 %v1369_v19 }
  0x59   :  { %1212 = vmatpush3.msra.mxu0 %v514_v27  ;;  %1245 = vmatpush3.msra.mxu1 %v609_v42  ;;  %v813_v27 = vld [vmem:[%s2140_s11 + $0x70] sm:$0xff] }
  0x5a   :  { %1213 = vmatprep.subr.mxu0 %v1369_v19  ;;  %1246 = vmatprep.subr.mxu1 %v1369_v19 }
  0x5b   :  { %1214 = vmatpush3.msra.mxu0 %v513_v28  ;;  %1247 = vmatpush3.msra.mxu1 %v608_v43  ;;  %v812_v28 = vld [vmem:[%s2140_s11 + $0x68] sm:$0xff] }
  0x5c   :  { %1215 = vmatprep.subr.mxu0 %v1369_v19  ;;  %1248 = vmatprep.subr.mxu1 %v1369_v19  ;;  %v800_v43 = vld [vmem:[%s2140_s11 + $0x8] sm:$0xff] }
  0x5d   :  { %1216 = vmatpush3.msra.mxu0 %v512_v29  ;;  %1249 = vmatpush3.msra.mxu1 %v607_v44  ;;  %v811_v29 = vld [vmem:[%s2140_s11 + $0x60] sm:$0xff]  ;;  %v785_v44 = vld [vmem:[%s2139_s10 + $0x10] sm:$0xff] }
  0x5e   :  { %1217 = vmatprep.subr.mxu0 %v1369_v19  ;;  %1250 = vmatprep.subr.mxu1 %v1369_v19 }
  0x5f   :  { %1218 = vmatpush3.msra.mxu0 %v511_v30  ;;  %1251 = vmatpush3.msra.mxu1 %v606_v45  ;;  %v810_v30 = vld [vmem:[%s2140_s11 + $0x58] sm:$0xff] }
  0x60   :  { %1219 = vmatprep.subr.mxu0 %v1369_v19  ;;  %1252 = vmatprep.subr.mxu1 %v1369_v19 }
  0x61   :  { %1220 = vmatpush3.msra.mxu0 %v510_v31  ;;  %1253 = vmatpush3.msra.mxu1 %v605_v46  ;;  %v809_v31 = vld [vmem:[%s2140_s11 + $0x50] sm:$0xff] }
  0x62   :  { %1221 = vmatprep.subr.mxu0 %v1369_v19  ;;  %1254 = vmatprep.subr.mxu1 %v1369_v19 }
  0x63   :  { %1222 = vmatpush3.msra.mxu0 %v509_v32  ;;  %1255 = vmatpush3.msra.mxu1 %v604_v47  ;;  %v808_v32 = vld [vmem:[%s2140_s11 + $0x48] sm:$0xff]  ;;  %v799_v47 = vld [vmem:[%s2140_s11] sm:$0xff] }
  0x64   :  { %1223 = vmatprep.subr.mxu0 %v1369_v19  ;;  %1256 = vmatprep.subr.mxu1 %v1369_v19 }
  0x65   :  { %1224 = vmatpush3.msra.mxu0 %v508_v33  ;;  %1257 = vmatpush3.msra.mxu1 %v603_v3  ;;  %v807_v33 = vld [vmem:[%s2140_s11 + $0x40] sm:$0xff] }
  0x66   :  { %1225 = vmatprep.subr.mxu0 %v1369_v19  ;;  %1258 = vmatprep.subr.mxu1 %v1369_v19 }
  0x67   :  { %1226 = vmatpush3.msra.mxu0 %v507_v34  ;;  %1259 = vmatpush3.msra.mxu1 %v602_v5  ;;  %v806_v34 = vld [vmem:[%s2140_s11 + $0x38] sm:$0xff] }
  0x68   :  { %1265 = vmatprep.subr.mxu0 %v1369_v19  ;;  %1260 = vmatprep.subr.mxu1 %v1369_v19 }
  0x69   :  { %1261 = vmatpush3.msra.mxu1 %v601_v7 }
  0x6a   :  { %1270 = vmatprep.subr.mxu1 %v1369_v19 }
  0xe4   :  { %v1017_v48 = vpop.f32.mrf.mxu0 }
  0xe6   :  { %v1052_v49 = vpop.f32.mrf.mxu1  ;;  %v1018_v50 = vpop.f32.mrf.mxu0 }
  0xe7   :  { %v1019_v52 = vadd.f32 %v1018_v50, %v1017_v48  ;;  %v784_v48 = vld [vmem:[%s2139_s10 + $0x8] sm:$0xff]  ;;  %v980_v50 = vld [vmem:[%s2136_s7] ss:$0 sm:$0xff]  ;;  %s1346_s7 = scalar_lea.vmem %s971_s16, 32 }
  0xe8   :  { %v1053_v54 = vpop.f32.mrf.mxu1  ;;  %p1347_p0 = scmp.ne.s32.totalorder %s971_s16, %s1346_s7  ;;  %p1352_p2 = scmp.lt.s32.totalorder %s1346_s7, %s1346_s7 }
  0xe9   :  { %v293_v55 = vadd.f32 %v1019_v52, %v978_v53  ;;  %v1054_v56 = vadd.f32 %v1053_v54, %v1052_v49  ;;  %v783_v49 = vld [vmem:[%s2139_s10] sm:$0xff] }
  0xea   :  { %p1353_p3 = por %p1352_p2, %p1351_p1 }
  0xeb   :  { %v363_v61 = vadd.f32 %v1054_v56, %v293_v55 }
  0xec   :  { %p1354_p4 = pnand %p1353_p3, %p1347_p0 }
 0x107   :  { %v1087_v57 = vpop.f32.mrf.mxu0  ;;  %v1122_v58 = vpop.f32.mrf.mxu1 }
 0x109   :  { %v1088_v59 = vpop.f32.mrf.mxu0  ;;  %v1123_v60 = vpop.f32.mrf.mxu1 }
 0x10a   :  { %v1089_v62 = vadd.f32 %v1088_v59, %v1087_v57  ;;  %v1124_v0 = vadd.f32 %v1123_v60, %v1122_v58 }
 0x10c   :  { %v433_v63 = vadd.f32 %v1089_v62, %v363_v61 }
 0x10e   :  { %v503_v1 = vadd.f32 %v1124_v0, %v433_v63 }
 0x110   :  { %v506_v2 = vmax.f32 %v503_v1, 0.0 }
 0x112   :  { %1228 = vmatmul.mubr.f32.vlgmr.msra.gmra.mxu0 %v506_v2 }
 0x113   :  { %1267 = vmatprep.mubr.msk.f32.mxu0 %vm1370_vm0, %v1369_v19  ;;  %1266 = vmatpush3.msk.msra.mxu0 %vm708_vm1, %v696_v4 }
 0x114   :  { %1305 = vmatprep.subr.mxu0 %v1369_v19 }
 0x116   :  { %1268 = vmatmul.mubr.msk.f32.vlgmr.msra.gmra.mxu0 %vm704_vm2, %v695_v6 }
 0x117   :  { %1337 = vmatprep.mubr.msk.f32.mxu0 %vm1370_vm0, %v1369_v19  ;;  %1306 = vmatpush3.msra.mxu0 %v798_v8 }
 0x118   :  { %1307 = vmatprep.subr.mxu0 %v1369_v19 }
 0x119   :  { %1308 = vmatpush3.msra.mxu0 %v797_v9 }
 0x11a   :  { %1309 = vmatprep.subr.mxu0 %v1369_v19 }
 0x11b   :  { %1310 = vmatpush3.msra.mxu0 %v796_v10 }
 0x11c   :  { %1311 = vmatprep.subr.mxu0 %v1369_v19 }
 0x11d   :  { %1312 = vmatpush3.msra.mxu0 %v795_v11 }
 0x11e   :  { %1313 = vmatprep.subr.mxu0 %v1369_v19 }
 0x11f   :  { %1314 = vmatpush3.msra.mxu0 %v794_v51 }
 0x120   :  { %1315 = vmatprep.subr.mxu0 %v1369_v19 }
 0x121   :  { %1316 = vmatpush3.msra.mxu0 %v793_v12 }
 0x122   :  { %1317 = vmatprep.subr.mxu0 %v1369_v19 }
 0x123   :  { %1318 = vmatpush3.msra.mxu0 %v792_v13 }
 0x124   :  { %1319 = vmatprep.subr.mxu0 %v1369_v19 }
 0x125   :  { %1320 = vmatpush3.msra.mxu0 %v791_v14 }
 0x126   :  { %1321 = vmatprep.subr.mxu0 %v1369_v19 }
 0x127   :  { %1322 = vmatpush3.msra.mxu0 %v790_v15 }
 0x128   :  { %1323 = vmatprep.subr.mxu0 %v1369_v19 }
 0x129   :  { %1324 = vmatpush3.msra.mxu0 %v789_v16 }
 0x12a   :  { %1325 = vmatprep.subr.mxu0 %v1369_v19 }
 0x12b   :  { %1326 = vmatpush3.msra.mxu0 %v788_v17 }
 0x12c   :  { %1327 = vmatprep.subr.mxu0 %v1369_v19 }
 0x12d   :  { %1328 = vmatpush3.msra.mxu0 %v787_v18 }
 0x12e   :  { %1329 = vmatprep.subr.mxu0 %v1369_v19 }
 0x12f   :  { %1330 = vmatpush3.msra.mxu0 %v786_v20 }
 0x130   :  { %1331 = vmatprep.subr.mxu0 %v1369_v19 }
 0x131   :  { %1332 = vmatpush3.msra.mxu0 %v785_v44 }
 0x132   :  { %1333 = vmatprep.subr.mxu0 %v1369_v19 }
 0x133   :  { %1334 = vmatpush3.msra.mxu0 %v784_v48 }
 0x134   :  { %1335 = vmatprep.subr.mxu0 %v1369_v19 }
 0x135   :  { %1336 = vmatpush3.msra.mxu0 %v783_v49 }
 0x1d2   :  { %v596_v22 = vpop.f32.mrf.mxu0 }
 0x1d3   :  { %v597_v23 = vadd.f32 %v979_v21, %v596_v22 }
 0x1d4   :  { %v1229_v24 = vpop.f32.mrf.mxu0 }
 0x1d5   :  { %v600_v25 = vmax.f32 %v597_v23, 0.0 }
 0x1d6   :  { %v778_v41 = vpop.f32.mrf.mxu0 }
 0x1d7   :  { %1263 = vmatmul.mubr.f32.vlgmr.msra.gmra.mxu1 %v600_v25  ;;  %v779_v42 = vadd.f32 %v981_v40, %v778_v41 }
 0x1d8   :  { %1271 = vmatpush3.msra.mxu1 %v814_v26  ;;  %1302 = vmatprep.mubr.msk.f32.mxu1 %vm1370_vm0, %v1369_v19  ;;  %v1269_v45 = vpop.f32.mrf.mxu0 }
 0x1d9   :  { %1272 = vmatprep.subr.mxu1 %v1369_v19  ;;  %v782_v46 = vmax.f32 %v779_v42, 0.0 }
 0x1da   :  { %1273 = vmatpush3.msra.mxu1 %v813_v27 }
 0x1db   :  { %1274 = vmatprep.subr.mxu1 %v1369_v19 }
 0x1dc   :  { %1275 = vmatpush3.msra.mxu1 %v812_v28 }
 0x1dd   :  { %1276 = vmatprep.subr.mxu1 %v1369_v19 }
 0x1de   :  { %1277 = vmatpush3.msra.mxu1 %v811_v29 }
 0x1df   :  { %1278 = vmatprep.subr.mxu1 %v1369_v19 }
 0x1e0   :  { %1279 = vmatpush3.msra.mxu1 %v810_v30 }
 0x1e1   :  { %1280 = vmatprep.subr.mxu1 %v1369_v19 }
 0x1e2   :  { %1281 = vmatpush3.msra.mxu1 %v809_v31 }
 0x1e3   :  { %1282 = vmatprep.subr.mxu1 %v1369_v19 }
 0x1e4   :  { %1283 = vmatpush3.msra.mxu1 %v808_v32 }
 0x1e5   :  { %1284 = vmatprep.subr.mxu1 %v1369_v19 }
 0x1e6   :  { %1285 = vmatpush3.msra.mxu1 %v807_v33 }
 0x1e7   :  { %1286 = vmatprep.subr.mxu1 %v1369_v19 }
 0x1e8   :  { %1287 = vmatpush3.msra.mxu1 %v806_v34 }
 0x1e9   :  { %1288 = vmatprep.subr.mxu1 %v1369_v19 }
 0x1ea   :  { %1289 = vmatpush3.msra.mxu1 %v805_v35 }
 0x1eb   :  { %1290 = vmatprep.subr.mxu1 %v1369_v19 }
 0x1ec   :  { %1291 = vmatpush3.msra.mxu1 %v804_v36 }
 0x1ed   :  { %1292 = vmatprep.subr.mxu1 %v1369_v19 }
 0x1ee   :  { %1293 = vmatpush3.msra.mxu1 %v803_v37 }
 0x1ef   :  { %1294 = vmatprep.subr.mxu1 %v1369_v19 }
 0x1f0   :  { %1295 = vmatpush3.msra.mxu1 %v802_v38 }
 0x1f1   :  { %1296 = vmatprep.subr.mxu1 %v1369_v19 }
 0x1f2   :  { %1297 = vmatpush3.msra.mxu1 %v801_v39 }
 0x1f3   :  { %1298 = vmatprep.subr.mxu1 %v1369_v19 }
 0x1f4   :  { %1299 = vmatpush3.msra.mxu1 %v800_v43 }
 0x1f5   :  { %1300 = vmatprep.subr.mxu1 %v1369_v19  ;;  %v984_v19 = vld [vmem:[%s2141_s12] ss:$0 sm:$0xff] }
 0x1f6   :  { %1301 = vmatpush3.msra.mxu1 %v799_v47 }
 0x1f7   :  { %1303 = vmatmul.mubr.f32.vlgmr.msra.gmra.mxu1 %v782_v46 }
 0x297   :  { %v690_v52 = vpop.f32.mrf.mxu1 }
 0x298   :  { %v691_v53 = vadd.f32 %v980_v50, %v690_v52 }
 0x299   :  { %v1264_v54 = vpop.f32.mrf.mxu1 }
 0x29a   :  { %v694_v55 = vmax.f32 %v691_v53, 0.0 }
 0x29c   :  { %1338 = vmatmul.mubr.f32.vlgmr.msra.gmra.mxu0 %v694_v55 }
 0x2b7   :  { %v881_v56 = vpop.f32.mrf.mxu1 }
 0x2b9   :  { %v1304_v57 = vpop.f32.mrf.mxu1 }
 0x35c   :  { %v951_v58 = vpop.f32.mrf.mxu0 }
 0x35d   :  { %v952_v59 = vadd.f32 %v951_v58, %v881_v56 }
 0x35e   :  { %v1339_v60 = vpop.f32.mrf.mxu0 }
 0x35f   :  { %v962_v61 = vadd.f32 %v984_v19, %v952_v59 }
 0x361   :  { %963 = vst [vmem:[#allocation2] sm:$0x3] %v962_v61 }
 0x362   :  { %1357 = shalt.err (!%p1354_p4)
}
 0x363   :  { %973 = dma.vmem_to_hbm [thread:$0]  %s971_s16, 32, %s2142_s13, [#allocation3]  }
 0x364   :  { %1366 = dma.done.wait [#allocation3], 32  }
 0x365   :  { %1367 = vsyncadd [#allocation3], 4294967264 }
 0x366   :  { %977 = vsyncpa [#allocation3], 1 }

// kernel: pretrained_resnet_forward.3
= control target key start
LH: loop header
LB: loop body
LE: loop exit
PB: predicated region body
PF: predicated region fallthrough
CT: control target
= control target key end

     0   :  { %s3456_s12 = smov 0   ;;  %s4496_s0 = inlined_call_operand.vmem [shape: bf16[2,9,168,147], index: 0, kind: input, shape index: {}]   ;;  %s4497_s1 = inlined_call_operand.vmem [shape: bf16[147,64], index: 1, kind: input, shape index: {}]   ;;  %s4498_s2 = inlined_call_operand.vmem [shape: f32[1,64], index: 2, kind: input, shape index: {}]   ;;  %s4499_s3 = inlined_call_operand.vmem [shape: bf16[2,168,64], index: 3, kind: output, shape index: {}]  }
   0x1 LB: > { %s2753_s13 = sadd.s32 4294967295, %s3432_s12   ;;  %p2757_p0 = scmp.ge.s32.totalorder %s3432_s12, 1  ;;  %s3432_s12 = sphi %s3456_s12, %s13_s12  }
   0x2   : > { %p137_p1 = scmp.lt.s32.totalorder %s3432_s12, 3 }
   0x4   : > { %p138_p2 = pnand %p2757_p0, %p137_p1 }
   0x6   : > { %141 = sbr.rel (%p138_p2) target bundleno = 634 (0x27a), region = 32 }
   0xb   : > { %v3132_v0 = vld [vmem:[%s4497_s1 + $0x38] sm:$0xff]   ;;  %v3434_v1 = vmov 0   ;;  %v3133_v2 = vld [vmem:[%s4497_s1 + $0x30] sm:$0xff]   ;;  %v3134_v3 = vld [vmem:[%s4497_s1 + $0x28] sm:$0xff]   ;;  %p161_p3 = scmp.lt.s32.totalorder %s2753_s13, 1  ;;  %vm1289_vm0 = vcmask 154624  }
   0xc   : > { %1582 = vmatprep.subr.bf16.mxu0 %v3434_v1  ;;  %3100 = vmatprep.subr.bf16.mxu1 %v3434_v1  ;;  %v3135_v4 = vld [vmem:[%s4497_s1 + $0x20] sm:$0xff]   ;;  %v3136_v5 = vld [vmem:[%s4497_s1 + $0x18] sm:$0xff]   ;;  %v3137_v8 = vld [vmem:[%s4497_s1 + $0x10] sm:$0xff]   ;;  %vm1575_vm1 = vcmask 1040384   ;;  %vm1576_vm2 = vcmask 1041408   ;;  %v3435_v10 = vmov 65535  }
   0xd   : > { %1583 = vmatpush1.bf16.msra.mxu0 %v3132_v0  ;;  %3110 = vmatpush1.bf16.msra.mxu1 %v3132_v0  ;;  %s4544_s13 = smov (!%p161_p3, %s2753_s13), 1  ;;  %v3138_v9 = vld [vmem:[%s4497_s1 + $0x8] sm:$0xff]   ;;  %v1577_v11 = vsel %vm1575_vm1, 4294967295, %v3435_v10  ;;  %v3139_v12 = vld [vmem:[%s4497_s1] sm:$0xff]   ;;  %vm2676_vm3 = vcmask 519168  }
   0xe   : > { %1584 = vmatprep.subr.bf16.mxu0 %v3434_v1  ;;  %3101 = vmatprep.subr.bf16.mxu1 %v3434_v1  ;;  %s3120_s22 = smul.u32 1512, %s4544_s13  ;;  %v3140_v13 = vld [vmem:[%s4497_s1 + $0x48] ss:$0 sps:$4 sm:$0x33]   ;;  %v1578_v14 = vsel %vm1576_vm2, %v1577_v11, 0  ;;  %v3141_v16 = vld [vmem:[%s4497_s1 + $0x40] sm:$0xff]  }
   0xf   : > { %v1580_v15 = vand.u32 %v3140_v13, %v1578_v14  ;;  %s3121_s15 = smul.u32 84, %s4544_s13 }
  0x10   : > { %s3482_s25 = scalar_lea.vmem %s4496_s0, %s3120_s22 }
  0x11   : > { %1585 = vmatpush1.bf16.msra.mxu0 %v3133_v2  ;;  %3111 = vmatpush1.bf16.msra.mxu1 %v3133_v2  ;;  %v3144_v6 = vld [vmem:[%s3482_s25 + $0x4] ss:$8 sps:$4 sm:$0xff]   ;;  %v3142_v17 = vld [vmem:[%s3482_s25] ss:$8 sps:$4 sm:$0xff]   ;;  %v3148_v19 = vld [vmem:[%s3482_s25 + $0x14] ss:$8 sps:$4 sm:$0xff]   ;;  %s4389_s17 = scalar_lea.vmem %s4499_s3, %s3121_s15 }
  0x12   : > { %1586 = vmatprep.subr.bf16.mxu0 %v3434_v1  ;;  %3102 = vmatprep.subr.bf16.mxu1 %v3434_v1  ;;  %v3147_v7 = vld [vmem:[%s3482_s25 + $0x304] ss:$8 sps:$4 sm:$0xff]   ;;  %v3145_v18 = vld [vmem:[%s3482_s25 + $0x300] ss:$8 sps:$4 sm:$0xff]   ;;  %v3150_v20 = vld [vmem:[%s3482_s25 + $0x314] ss:$8 sps:$4 sm:$0xff]  }
  0x13   : > { %2960 = vmatprep.mubr.msk.bf16.mxu0 %vm1289_vm0, %v3144_v6  ;;  %3008 = vmatprep.mubr.msk.bf16.mxu1 %vm1289_vm0, %v3147_v7  ;;  %v3152_v21 = vld [vmem:[%s3482_s25 + $0x10] ss:$8 sps:$4 sm:$0xff]   ;;  %v3154_v23 = vld [vmem:[%s3482_s25 + $0x24] ss:$8 sps:$4 sm:$0xff]   ;;  %v3158_v25 = vld [vmem:[%s3482_s25 + $0x20] ss:$8 sps:$4 sm:$0xff]  }
  0x14   : > { %v3153_v22 = vld [vmem:[%s3482_s25 + $0x310] ss:$8 sps:$4 sm:$0xff]   ;;  %v3156_v24 = vld [vmem:[%s3482_s25 + $0x324] ss:$8 sps:$4 sm:$0xff]   ;;  %v3159_v26 = vld [vmem:[%s3482_s25 + $0x320] ss:$8 sps:$4 sm:$0xff]  }
  0x15   : > { %1587 = vmatpush1.bf16.msra.mxu0 %v3134_v3  ;;  %3112 = vmatpush1.bf16.msra.mxu1 %v3134_v3  ;;  %v3160_v27 = vld [vmem:[%s3482_s25 + $0x34] ss:$8 sps:$4 sm:$0xff]   ;;  %v3164_v29 = vld [vmem:[%s3482_s25 + $0x30] ss:$8 sps:$4 sm:$0xff]   ;;  %v3166_v31 = vld [vmem:[%s3482_s25 + $0x44] ss:$8 sps:$4 sm:$0xff]  }
  0x16   : > { %1588 = vmatprep.subr.bf16.mxu0 %v3434_v1  ;;  %3103 = vmatprep.subr.bf16.mxu1 %v3434_v1  ;;  %v3162_v28 = vld [vmem:[%s3482_s25 + $0x334] ss:$8 sps:$4 sm:$0xff]   ;;  %v3165_v30 = vld [vmem:[%s3482_s25 + $0x330] ss:$8 sps:$4 sm:$0xff]   ;;  %v3168_v32 = vld [vmem:[%s3482_s25 + $0x344] ss:$8 sps:$4 sm:$0xff]  }
  0x17   : > { %v3170_v33 = vld [vmem:[%s3482_s25 + $0x40] ss:$8 sps:$4 sm:$0xff]   ;;  %v3172_v35 = vld [vmem:[%s3482_s25 + $0x54] ss:$8 sps:$4 sm:$0xff]   ;;  %v3176_v37 = vld [vmem:[%s3482_s25 + $0x50] ss:$8 sps:$4 sm:$0xff]  }
  0x18   : > { %v3171_v34 = vld [vmem:[%s3482_s25 + $0x340] ss:$8 sps:$4 sm:$0xff]   ;;  %v3174_v36 = vld [vmem:[%s3482_s25 + $0x354] ss:$8 sps:$4 sm:$0xff]   ;;  %v3177_v38 = vld [vmem:[%s3482_s25 + $0x350] ss:$8 sps:$4 sm:$0xff]  }
  0x19   : > { %1589 = vmatpush1.bf16.msra.mxu0 %v3135_v4  ;;  %3113 = vmatpush1.bf16.msra.mxu1 %v3135_v4  ;;  %v3178_v39 = vld [vmem:[%s3482_s25 + $0x64] ss:$8 sps:$4 sm:$0xff]   ;;  %v3182_v41 = vld [vmem:[%s3482_s25 + $0x60] ss:$8 sps:$4 sm:$0xff]   ;;  %v3184_v43 = vld [vmem:[%s3482_s25 + $0x74] ss:$8 sps:$4 sm:$0xff]  }
  0x1a   : > { %1590 = vmatprep.subr.bf16.mxu0 %v3434_v1  ;;  %3104 = vmatprep.subr.bf16.mxu1 %v3434_v1  ;;  %v3180_v40 = vld [vmem:[%s3482_s25 + $0x364] ss:$8 sps:$4 sm:$0xff]   ;;  %v3183_v42 = vld [vmem:[%s3482_s25 + $0x360] ss:$8 sps:$4 sm:$0xff]   ;;  %v3186_v44 = vld [vmem:[%s3482_s25 + $0x374] ss:$8 sps:$4 sm:$0xff]  }
  0x1b   : > { %v3188_v45 = vld [vmem:[%s3482_s25 + $0x70] ss:$8 sps:$4 sm:$0xff]   ;;  %v3190_v47 = vld [vmem:[%s3482_s25 + $0x84] ss:$8 sps:$4 sm:$0xff]   ;;  %v3194_v49 = vld [vmem:[%s3482_s25 + $0x80] ss:$8 sps:$4 sm:$0xff]  }
  0x1c   : > { %v3189_v46 = vld [vmem:[%s3482_s25 + $0x370] ss:$8 sps:$4 sm:$0xff]   ;;  %v3192_v48 = vld [vmem:[%s3482_s25 + $0x384] ss:$8 sps:$4 sm:$0xff]   ;;  %v3195_v50 = vld [vmem:[%s3482_s25 + $0x380] ss:$8 sps:$4 sm:$0xff]  }
  0x1d   : > { %1591 = vmatpush1.bf16.msra.mxu0 %v3136_v5  ;;  %3114 = vmatpush1.bf16.msra.mxu1 %v3136_v5  ;;  %v3196_v51 = vld [vmem:[%s3482_s25 + $0x94] ss:$8 sps:$4 sm:$0xff]   ;;  %v3200_v53 = vld [vmem:[%s3482_s25 + $0x90] ss:$8 sps:$4 sm:$0xff]   ;;  %v3202_v55 = vld [vmem:[%s3482_s25 + $0xa4] ss:$8 sps:$4 sm:$0xff]  }
  0x1e   : > { %1592 = vmatprep.subr.bf16.mxu0 %v3434_v1  ;;  %3105 = vmatprep.subr.bf16.mxu1 %v3434_v1  ;;  %v3198_v52 = vld [vmem:[%s3482_s25 + $0x394] ss:$8 sps:$4 sm:$0xff]   ;;  %v3201_v54 = vld [vmem:[%s3482_s25 + $0x390] ss:$8 sps:$4 sm:$0xff]   ;;  %v3204_v56 = vld [vmem:[%s3482_s25 + $0x3a4] ss:$8 sps:$4 sm:$0xff]  }
  0x1f   : > { %v3206_v57 = vld [vmem:[%s3482_s25 + $0xa0] ss:$8 sps:$4 sm:$0xff]   ;;  %v3208_v59 = vld [vmem:[%s3482_s25 + $0xb4] ss:$8 sps:$4 sm:$0xff]   ;;  %v3212_v61 = vld [vmem:[%s3482_s25 + $0xb0] ss:$8 sps:$4 sm:$0xff]  }
  0x20   : > { %v3207_v58 = vld [vmem:[%s3482_s25 + $0x3a0] ss:$8 sps:$4 sm:$0xff]   ;;  %v3210_v60 = vld [vmem:[%s3482_s25 + $0x3b4] ss:$8 sps:$4 sm:$0xff]   ;;  %v3213_v62 = vld [vmem:[%s3482_s25 + $0x3b0] ss:$8 sps:$4 sm:$0xff]  }
  0x21   : > { %1593 = vmatpush1.bf16.msra.mxu0 %v3137_v8  ;;  %3115 = vmatpush1.bf16.msra.mxu1 %v3137_v8  ;;  %v3214_v63 = vld [vmem:[%s3482_s25 + $0xc4] ss:$8 sps:$4 sm:$0xff]   ;;  %v3219_v2 = vld [vmem:[%s3482_s25 + $0x3c0] ss:$8 sps:$4 sm:$0xff]   ;;  %v3220_v3 = vld [vmem:[%s3482_s25 + $0xd4] ss:$8 sps:$4 sm:$0xff]  }
  0x22   : > { %1594 = vmatprep.subr.bf16.mxu0 %v3434_v1  ;;  %3106 = vmatprep.subr.bf16.mxu1 %v3434_v1  ;;  %v3216_v0 = vld [vmem:[%s3482_s25 + $0x3c4] ss:$8 sps:$4 sm:$0xff]   ;;  %v3222_v4 = vld [vmem:[%s3482_s25 + $0x3d4] ss:$8 sps:$4 sm:$0xff]   ;;  %v3224_v5 = vld [vmem:[%s3482_s25 + $0xd0] ss:$8 sps:$4 sm:$0xff]  }
  0x23   : > { %v3225_v6 = vld [vmem:[%s3482_s25 + $0x3d0] ss:$8 sps:$4 sm:$0xff]   ;;  %v3226_v7 = vld [vmem:[%s3482_s25 + $0xe4] ss:$8 sps:$4 sm:$0xff]   ;;  %v3231_v10 = vld [vmem:[%s3482_s25 + $0x3e0] ss:$8 sps:$4 sm:$0xff]  }
  0x24   : > { %v3228_v8 = vld [vmem:[%s3482_s25 + $0x3e4] ss:$8 sps:$4 sm:$0xff]   ;;  %v3232_v11 = vld [vmem:[%s3482_s25 + $0xf4] ss:$8 sps:$4 sm:$0xff]   ;;  %v3236_v13 = vld [vmem:[%s3482_s25 + $0xf0] ss:$8 sps:$4 sm:$0xff]  }
  0x25   : > { %1595 = vmatpush1.bf16.msra.mxu0 %v3138_v9  ;;  %3116 = vmatpush1.bf16.msra.mxu1 %v3138_v9  ;;  %v3230_v9 = vld [vmem:[%s3482_s25 + $0xe0] ss:$8 sps:$4 sm:$0xff]   ;;  %v3237_v14 = vld [vmem:[%s3482_s25 + $0x3f0] ss:$8 sps:$4 sm:$0xff]  }
  0x26   : > { %1596 = vmatprep.subr.bf16.mxu0 %v3434_v1  ;;  %3107 = vmatprep.subr.bf16.mxu1 %v3434_v1 }
  0x29   : > { %1597 = vmatpush1.bf16.msra.mxu0 %v3139_v12  ;;  %3117 = vmatpush1.bf16.msra.mxu1 %v3139_v12  ;;  %v3234_v12 = vld [vmem:[%s3482_s25 + $0x3f4] ss:$8 sps:$4 sm:$0xff]  }
  0x2a   : > { %1610 = vmatprep.subr.bf16.mxu0 %v3434_v1  ;;  %3108 = vmatprep.subr.bf16.mxu1 %v3434_v1 }
  0x2d   : > { %1611 = vmatpush2.bf16.msra.mxu0 %v1580_v15  ;;  %3118 = vmatpush2.bf16.msra.mxu1 %v1580_v15  ;;  %v3238_v15 = vld [vmem:[%s3482_s25 + $0x104] ss:$8 sps:$4 sm:$0xff]  }
  0x2e   : > { %1612 = vmatprep.subr.bf16.mxu0 %v3434_v1  ;;  %3109 = vmatprep.subr.bf16.mxu1 %v3434_v1  ;;  %v3218_v1 = vld [vmem:[%s3482_s25 + $0xc0] ss:$8 sps:$4 sm:$0xff]  }
  0x31   : > { %1613 = vmatpush2.bf16.msra.mxu0 %v3141_v16  ;;  %3119 = vmatpush2.bf16.msra.mxu1 %v3141_v16  ;;  %v3240_v16 = vld [vmem:[%s3482_s25 + $0x404] ss:$8 sps:$4 sm:$0xff]  }
  0x34   : > { %1615 = vmatmul.mubr.bf16.vlgmr.msra.gmra.mxu0 %v3142_v17  ;;  %1999 = vmatmul.mubr.bf16.vlgmr.msra.gmra.mxu1 %v3145_v18  ;;  %v3242_v17 = vld [vmem:[%s3482_s25 + $0x100] ss:$8 sps:$4 sm:$0xff]  }
  0x35   : > { %2961 = vmatprep.mubr.msk.bf16.mxu0 %vm1289_vm0, %v3148_v19  ;;  %3009 = vmatprep.mubr.msk.bf16.mxu1 %vm1289_vm0, %v3150_v20  ;;  %v3243_v18 = vld [vmem:[%s3482_s25 + $0x400] ss:$8 sps:$4 sm:$0xff]   ;;  %v3244_v19 = vld [vmem:[%s3482_s25 + $0x114] ss:$8 sps:$4 sm:$0xff]  }
  0x36   : > { %v3246_v20 = vld [vmem:[%s3482_s25 + $0x414] ss:$8 sps:$4 sm:$0xff]  }
  0x3c   : > { %1623 = vmatmul.mubr.bf16.gmra.mxu0 %v3152_v21  ;;  %2007 = vmatmul.mubr.bf16.gmra.mxu1 %v3153_v22  ;;  %v3248_v21 = vld [vmem:[%s3482_s25 + $0x110] ss:$8 sps:$4 sm:$0xff]  }
  0x3d   : > { %2962 = vmatprep.mubr.msk.bf16.mxu0 %vm1289_vm0, %v3154_v23  ;;  %3010 = vmatprep.mubr.msk.bf16.mxu1 %vm1289_vm0, %v3156_v24  ;;  %v3249_v22 = vld [vmem:[%s3482_s25 + $0x410] ss:$8 sps:$4 sm:$0xff]   ;;  %v3250_v23 = vld [vmem:[%s3482_s25 + $0x124] ss:$8 sps:$4 sm:$0xff]  }
  0x3e   : > { %v3252_v24 = vld [vmem:[%s3482_s25 + $0x424] ss:$8 sps:$4 sm:$0xff]  }
  0x44   : > { %1631 = vmatmul.mubr.bf16.gmra.mxu0 %v3158_v25  ;;  %2015 = vmatmul.mubr.bf16.gmra.mxu1 %v3159_v26  ;;  %v3254_v25 = vld [vmem:[%s3482_s25 + $0x120] ss:$8 sps:$4 sm:$0xff]  }
  0x45   : > { %2963 = vmatprep.mubr.msk.bf16.mxu0 %vm1289_vm0, %v3160_v27  ;;  %3011 = vmatprep.mubr.msk.bf16.mxu1 %vm1289_vm0, %v3162_v28  ;;  %v3255_v26 = vld [vmem:[%s3482_s25 + $0x420] ss:$8 sps:$4 sm:$0xff]   ;;  %v3256_v27 = vld [vmem:[%s3482_s25 + $0x134] ss:$8 sps:$4 sm:$0xff]  }
  0x46   : > { %v3258_v28 = vld [vmem:[%s3482_s25 + $0x434] ss:$8 sps:$4 sm:$0xff]  }
  0x4c   : > { %1639 = vmatmul.mubr.bf16.gmra.mxu0 %v3164_v29  ;;  %2023 = vmatmul.mubr.bf16.gmra.mxu1 %v3165_v30  ;;  %v3260_v29 = vld [vmem:[%s3482_s25 + $0x130] ss:$8 sps:$4 sm:$0xff]  }
  0x4d   : > { %2964 = vmatprep.mubr.msk.bf16.mxu0 %vm1289_vm0, %v3166_v31  ;;  %3012 = vmatprep.mubr.msk.bf16.mxu1 %vm1289_vm0, %v3168_v32  ;;  %v3261_v30 = vld [vmem:[%s3482_s25 + $0x430] ss:$8 sps:$4 sm:$0xff]   ;;  %v3262_v31 = vld [vmem:[%s3482_s25 + $0x144] ss:$8 sps:$4 sm:$0xff]  }
  0x4e   : > { %v3264_v32 = vld [vmem:[%s3482_s25 + $0x444] ss:$8 sps:$4 sm:$0xff]  }
  0x54   : > { %1647 = vmatmul.mubr.bf16.gmra.mxu0 %v3170_v33  ;;  %2031 = vmatmul.mubr.bf16.gmra.mxu1 %v3171_v34  ;;  %v3266_v33 = vld [vmem:[%s3482_s25 + $0x140] ss:$8 sps:$4 sm:$0xff]  }
  0x55   : > { %2965 = vmatprep.mubr.msk.bf16.mxu0 %vm1289_vm0, %v3172_v35  ;;  %3013 = vmatprep.mubr.msk.bf16.mxu1 %vm1289_vm0, %v3174_v36  ;;  %v3267_v34 = vld [vmem:[%s3482_s25 + $0x440] ss:$8 sps:$4 sm:$0xff]   ;;  %v3268_v35 = vld [vmem:[%s3482_s25 + $0x154] ss:$8 sps:$4 sm:$0xff]  }
  0x56   : > { %v3270_v36 = vld [vmem:[%s3482_s25 + $0x454] ss:$8 sps:$4 sm:$0xff]  }
  0x5c   : > { %1655 = vmatmul.mubr.bf16.gmra.mxu0 %v3176_v37  ;;  %2039 = vmatmul.mubr.bf16.gmra.mxu1 %v3177_v38  ;;  %v3272_v37 = vld [vmem:[%s3482_s25 + $0x150] ss:$8 sps:$4 sm:$0xff]  }
  0x5d   : > { %2966 = vmatprep.mubr.msk.bf16.mxu0 %vm1289_vm0, %v3178_v39  ;;  %3014 = vmatprep.mubr.msk.bf16.mxu1 %vm1289_vm0, %v3180_v40  ;;  %v3273_v38 = vld [vmem:[%s3482_s25 + $0x450] ss:$8 sps:$4 sm:$0xff]   ;;  %v3274_v39 = vld [vmem:[%s3482_s25 + $0x164] ss:$8 sps:$4 sm:$0xff]  }
  0x5e   : > { %v3276_v40 = vld [vmem:[%s3482_s25 + $0x464] ss:$8 sps:$4 sm:$0xff]  }
  0x64   : > { %1663 = vmatmul.mubr.bf16.gmra.mxu0 %v3182_v41  ;;  %2047 = vmatmul.mubr.bf16.gmra.mxu1 %v3183_v42  ;;  %v3278_v41 = vld [vmem:[%s3482_s25 + $0x160] ss:$8 sps:$4 sm:$0xff]  }
  0x65   : > { %2967 = vmatprep.mubr.msk.bf16.mxu0 %vm1289_vm0, %v3184_v43  ;;  %3015 = vmatprep.mubr.msk.bf16.mxu1 %vm1289_vm0, %v3186_v44  ;;  %v3279_v42 = vld [vmem:[%s3482_s25 + $0x460] ss:$8 sps:$4 sm:$0xff]   ;;  %v3280_v43 = vld [vmem:[%s3482_s25 + $0x174] ss:$8 sps:$4 sm:$0xff]  }
  0x66   : > { %v3282_v44 = vld [vmem:[%s3482_s25 + $0x474] ss:$8 sps:$4 sm:$0xff]  }
  0x6c   : > { %1671 = vmatmul.mubr.bf16.gmra.mxu0 %v3188_v45  ;;  %2055 = vmatmul.mubr.bf16.gmra.mxu1 %v3189_v46  ;;  %v3284_v45 = vld [vmem:[%s3482_s25 + $0x170] ss:$8 sps:$4 sm:$0xff]  }
  0x6d   : > { %2968 = vmatprep.mubr.msk.bf16.mxu0 %vm1289_vm0, %v3190_v47  ;;  %3016 = vmatprep.mubr.msk.bf16.mxu1 %vm1289_vm0, %v3192_v48  ;;  %v3285_v46 = vld [vmem:[%s3482_s25 + $0x470] ss:$8 sps:$4 sm:$0xff]   ;;  %v3286_v47 = vld [vmem:[%s3482_s25 + $0x184] ss:$8 sps:$4 sm:$0xff]  }
  0x6e   : > { %v3288_v48 = vld [vmem:[%s3482_s25 + $0x484] ss:$8 sps:$4 sm:$0xff]  }
  0x74   : > { %1679 = vmatmul.mubr.bf16.gmra.mxu0 %v3194_v49  ;;  %2063 = vmatmul.mubr.bf16.gmra.mxu1 %v3195_v50  ;;  %v3290_v49 = vld [vmem:[%s3482_s25 + $0x180] ss:$8 sps:$4 sm:$0xff]  }
  0x75   : > { %2969 = vmatprep.mubr.msk.bf16.mxu0 %vm1289_vm0, %v3196_v51  ;;  %3017 = vmatprep.mubr.msk.bf16.mxu1 %vm1289_vm0, %v3198_v52  ;;  %v3291_v50 = vld [vmem:[%s3482_s25 + $0x480] ss:$8 sps:$4 sm:$0xff]   ;;  %v3292_v51 = vld [vmem:[%s3482_s25 + $0x194] ss:$8 sps:$4 sm:$0xff]  }
  0x76   : > { %v3294_v52 = vld [vmem:[%s3482_s25 + $0x494] ss:$8 sps:$4 sm:$0xff]  }
  0x7c   : > { %1687 = vmatmul.mubr.bf16.gmra.mxu0 %v3200_v53  ;;  %2071 = vmatmul.mubr.bf16.gmra.mxu1 %v3201_v54 }
  0x7d   : > { %2970 = vmatprep.mubr.msk.bf16.mxu0 %vm1289_vm0, %v3202_v55  ;;  %3018 = vmatprep.mubr.msk.bf16.mxu1 %vm1289_vm0, %v3204_v56 }
  0x84   : > { %1695 = vmatmul.mubr.bf16.gmra.mxu0 %v3206_v57  ;;  %2079 = vmatmul.mubr.bf16.gmra.mxu1 %v3207_v58 }
  0x85   : > { %2971 = vmatprep.mubr.msk.bf16.mxu0 %vm1289_vm0, %v3208_v59  ;;  %3019 = vmatprep.mubr.msk.bf16.mxu1 %vm1289_vm0, %v3210_v60  ;;  %v3296_v59 = vld [vmem:[%s3482_s25 + $0x190] ss:$8 sps:$4 sm:$0xff]  }
  0x86   : > { %v3297_v60 = vld [vmem:[%s3482_s25 + $0x490] ss:$8 sps:$4 sm:$0xff]  }
  0x8c   : > { %1703 = vmatmul.mubr.bf16.gmra.mxu0 %v3212_v61  ;;  %2087 = vmatmul.mubr.bf16.gmra.mxu1 %v3213_v62  ;;  %v3298_v61 = vld [vmem:[%s3482_s25 + $0x1a4] ss:$8 sps:$4 sm:$0xff]  }
  0x8d   : > { %2972 = vmatprep.mubr.msk.bf16.mxu0 %vm1289_vm0, %v3214_v63  ;;  %3020 = vmatprep.mubr.msk.bf16.mxu1 %vm1289_vm0, %v3216_v0  ;;  %v3300_v62 = vld [vmem:[%s3482_s25 + $0x4a4] ss:$8 sps:$4 sm:$0xff]  }
  0x94   : > { %1711 = vmatmul.mubr.bf16.gmra.mxu0 %v3218_v1  ;;  %2095 = vmatmul.mubr.bf16.gmra.mxu1 %v3219_v2 }
  0x95   : > { %2973 = vmatprep.mubr.msk.bf16.mxu0 %vm1289_vm0, %v3220_v3  ;;  %3021 = vmatprep.mubr.msk.bf16.mxu1 %vm1289_vm0, %v3222_v4 }
  0x9c   : > { %1719 = vmatmul.mubr.bf16.gmra.mxu0 %v3224_v5  ;;  %2103 = vmatmul.mubr.bf16.gmra.mxu1 %v3225_v6 }
  0x9d   : > { %2974 = vmatprep.mubr.msk.bf16.mxu0 %vm1289_vm0, %v3226_v7  ;;  %3022 = vmatprep.mubr.msk.bf16.mxu1 %vm1289_vm0, %v3228_v8  ;;  %v3302_v7 = vld [vmem:[%s3482_s25 + $0x1a0] ss:$8 sps:$4 sm:$0xff]  }
  0x9e   : > { %v3303_v8 = vld [vmem:[%s3482_s25 + $0x4a0] ss:$8 sps:$4 sm:$0xff]  }
  0xa4   : > { %1727 = vmatmul.mubr.bf16.gmra.mxu0 %v3230_v9  ;;  %2111 = vmatmul.mubr.bf16.gmra.mxu1 %v3231_v10  ;;  %v3304_v9 = vld [vmem:[%s3482_s25 + $0x1b4] ss:$8 sps:$4 sm:$0xff]  }
  0xa5   : > { %2975 = vmatprep.mubr.msk.bf16.mxu0 %vm1289_vm0, %v3232_v11  ;;  %3023 = vmatprep.mubr.msk.bf16.mxu1 %vm1289_vm0, %v3234_v12  ;;  %v3306_v10 = vld [vmem:[%s3482_s25 + $0x4b4] ss:$8 sps:$4 sm:$0xff]  }
  0xac   : > { %1735 = vmatmul.mubr.bf16.gmra.mxu0 %v3236_v13  ;;  %2119 = vmatmul.mubr.bf16.gmra.mxu1 %v3237_v14 }
  0xad   : > { %2976 = vmatprep.mubr.msk.bf16.mxu0 %vm1289_vm0, %v3238_v15  ;;  %3024 = vmatprep.mubr.msk.bf16.mxu1 %vm1289_vm0, %v3240_v16 }
  0xb4   : > { %1743 = vmatmul.mubr.bf16.gmra.mxu0 %v3242_v17  ;;  %2127 = vmatmul.mubr.bf16.gmra.mxu1 %v3243_v18 }
  0xb5   : > { %2977 = vmatprep.mubr.msk.bf16.mxu0 %vm1289_vm0, %v3244_v19  ;;  %3025 = vmatprep.mubr.msk.bf16.mxu1 %vm1289_vm0, %v3246_v20  ;;  %v3308_v19 = vld [vmem:[%s3482_s25 + $0x1b0] ss:$8 sps:$4 sm:$0xff]  }
  0xb6   : > { %v3309_v20 = vld [vmem:[%s3482_s25 + $0x4b0] ss:$8 sps:$4 sm:$0xff]  }
  0xbc   : > { %1751 = vmatmul.mubr.bf16.gmra.mxu0 %v3248_v21  ;;  %2135 = vmatmul.mubr.bf16.gmra.mxu1 %v3249_v22  ;;  %v3310_v21 = vld [vmem:[%s3482_s25 + $0x1c4] ss:$8 sps:$4 sm:$0xff]  }
  0xbd   : > { %2978 = vmatprep.mubr.msk.bf16.mxu0 %vm1289_vm0, %v3250_v23  ;;  %3026 = vmatprep.mubr.msk.bf16.mxu1 %vm1289_vm0, %v3252_v24  ;;  %v3312_v22 = vld [vmem:[%s3482_s25 + $0x4c4] ss:$8 sps:$4 sm:$0xff]  }
  0xc4   : > { %1759 = vmatmul.mubr.bf16.gmra.mxu0 %v3254_v25  ;;  %2143 = vmatmul.mubr.bf16.gmra.mxu1 %v3255_v26 }
  0xc5   : > { %2979 = vmatprep.mubr.msk.bf16.mxu0 %vm1289_vm0, %v3256_v27  ;;  %3027 = vmatprep.mubr.msk.bf16.mxu1 %vm1289_vm0, %v3258_v28 }
  0xcc   : > { %1767 = vmatmul.mubr.bf16.gmra.mxu0 %v3260_v29  ;;  %2151 = vmatmul.mubr.bf16.gmra.mxu1 %v3261_v30 }
  0xcd   : > { %2980 = vmatprep.mubr.msk.bf16.mxu0 %vm1289_vm0, %v3262_v31  ;;  %3028 = vmatprep.mubr.msk.bf16.mxu1 %vm1289_vm0, %v3264_v32  ;;  %v3314_v31 = vld [vmem:[%s3482_s25 + $0x1c0] ss:$8 sps:$4 sm:$0xff]  }
  0xce   : > { %v3315_v32 = vld [vmem:[%s3482_s25 + $0x4c0] ss:$8 sps:$4 sm:$0xff]  }
  0xd4   : > { %1775 = vmatmul.mubr.bf16.gmra.mxu0 %v3266_v33  ;;  %2159 = vmatmul.mubr.bf16.gmra.mxu1 %v3267_v34  ;;  %v3316_v33 = vld [vmem:[%s3482_s25 + $0x1d4] ss:$8 sps:$4 sm:$0xff]  }
  0xd5   : > { %2981 = vmatprep.mubr.msk.bf16.mxu0 %vm1289_vm0, %v3268_v35  ;;  %3029 = vmatprep.mubr.msk.bf16.mxu1 %vm1289_vm0, %v3270_v36  ;;  %v3318_v34 = vld [vmem:[%s3482_s25 + $0x4d4] ss:$8 sps:$4 sm:$0xff]  }
  0xdc   : > { %1783 = vmatmul.mubr.bf16.gmra.mxu0 %v3272_v37  ;;  %2167 = vmatmul.mubr.bf16.gmra.mxu1 %v3273_v38 }
  0xdd   : > { %2982 = vmatprep.mubr.msk.bf16.mxu0 %vm1289_vm0, %v3274_v39  ;;  %3030 = vmatprep.mubr.msk.bf16.mxu1 %vm1289_vm0, %v3276_v40 }
  0xe4   : > { %1791 = vmatmul.mubr.bf16.gmra.mxu0 %v3278_v41  ;;  %2175 = vmatmul.mubr.bf16.gmra.mxu1 %v3279_v42 }
  0xe5   : > { %2983 = vmatprep.mubr.msk.bf16.mxu0 %vm1289_vm0, %v3280_v43  ;;  %3031 = vmatprep.mubr.msk.bf16.mxu1 %vm1289_vm0, %v3282_v44  ;;  %v3320_v43 = vld [vmem:[%s3482_s25 + $0x1d0] ss:$8 sps:$4 sm:$0xff]  }
  0xe6   : > { %v3321_v44 = vld [vmem:[%s3482_s25 + $0x4d0] ss:$8 sps:$4 sm:$0xff]  }
  0xec   : > { %1799 = vmatmul.mubr.bf16.gmra.mxu0 %v3284_v45  ;;  %2183 = vmatmul.mubr.bf16.gmra.mxu1 %v3285_v46  ;;  %v3322_v46 = vld [vmem:[%s3482_s25 + $0x1e4] ss:$8 sps:$4 sm:$0xff]  }
  0xed   : > { %2984 = vmatprep.mubr.msk.bf16.mxu0 %vm1289_vm0, %v3286_v47  ;;  %3032 = vmatprep.mubr.msk.bf16.mxu1 %vm1289_vm0, %v3288_v48  ;;  %v3324_v47 = vld [vmem:[%s3482_s25 + $0x4e4] ss:$8 sps:$4 sm:$0xff]  }
  0xf4   : > { %v3654_v53 = vpop.f32.mrf.mxu0  ;;  %1807 = vmatmul.mubr.bf16.gmra.mxu0 %v3290_v49  ;;  %v3656_v54 = vpop.f32.mrf.mxu1  ;;  %2191 = vmatmul.mubr.bf16.gmra.mxu1 %v3291_v50 }
  0xf5   : > { %2985 = vmatprep.mubr.msk.bf16.mxu0 %vm1289_vm0, %v3292_v51  ;;  %3033 = vmatprep.mubr.msk.bf16.mxu1 %vm1289_vm0, %v3294_v52 }
  0xf6   : > { %v1618_v55 = vpop.f32.mrf.mxu0  ;;  %v2002_v56 = vpop.f32.mrf.mxu1 }
  0xf8   : > { %v3660_v57 = vpop.f32.mrf.mxu0  ;;  %v3662_v58 = vpop.f32.mrf.mxu1 }
  0xfa   : > { %v1621_v63 = vpop.f32.mrf.mxu0  ;;  %v2005_v0 = vpop.f32.mrf.mxu1 }
  0xfb   : > { %v3328_v0 = vld [vmem:[%s3482_s25 + $0x1f4] ss:$8 sps:$4 sm:$0xff]  }
  0xfc   : > { %v3668_v1 = vpop.f32.mrf.mxu0  ;;  %1815 = vmatmul.mubr.bf16.gmra.mxu0 %v3296_v59  ;;  %v3670_v2 = vpop.f32.mrf.mxu1  ;;  %2199 = vmatmul.mubr.bf16.gmra.mxu1 %v3297_v60 }
  0xfd   : > { %2986 = vmatprep.mubr.msk.bf16.mxu0 %vm1289_vm0, %v3298_v61  ;;  %3034 = vmatprep.mubr.msk.bf16.mxu1 %vm1289_vm0, %v3300_v62  ;;  %v3326_v61 = vld [vmem:[%s3482_s25 + $0x1e0] ss:$8 sps:$4 sm:$0xff]  }
  0xfe   : > { %v1626_v3 = vpop.f32.mrf.mxu0  ;;  %v2010_v4 = vpop.f32.mrf.mxu1  ;;  %v3327_v62 = vld [vmem:[%s3482_s25 + $0x4e0] ss:$8 sps:$4 sm:$0xff]  }
  0xff   : > { %v3330_v3 = vld [vmem:[%s3482_s25 + $0x4f4] ss:$8 sps:$4 sm:$0xff]  }
 0x100   : > { %v3674_v5 = vpop.f32.mrf.mxu0  ;;  %v3676_v6 = vpop.f32.mrf.mxu1 }
 0x102   : > { %v1629_v11 = vpop.f32.mrf.mxu0  ;;  %v2013_v12 = vpop.f32.mrf.mxu1 }
 0x104   : > { %v3682_v13 = vpop.f32.mrf.mxu0  ;;  %1823 = vmatmul.mubr.bf16.gmra.mxu0 %v3302_v7  ;;  %v3684_v14 = vpop.f32.mrf.mxu1  ;;  %2207 = vmatmul.mubr.bf16.gmra.mxu1 %v3303_v8 }
 0x105   : > { %4500 = vst [vmem:[#allocation2_spill] sm:$0xff] %v3684_v14  ;;  %2987 = vmatprep.mubr.msk.bf16.mxu0 %vm1289_vm0, %v3304_v9  ;;  %3035 = vmatprep.mubr.msk.bf16.mxu1 %vm1289_vm0, %v3306_v10 }
 0x106   : > { %v1634_v15 = vpop.f32.mrf.mxu0  ;;  %v2018_v16 = vpop.f32.mrf.mxu1 }
 0x108   : > { %v3688_v17 = vpop.f32.mrf.mxu0  ;;  %v3690_v18 = vpop.f32.mrf.mxu1 }
 0x109   : > { %4501 = vst [vmem:[#allocation3_spill] sm:$0xff] %v3690_v18 }
 0x10a   : > { %v1637_v23 = vpop.f32.mrf.mxu0  ;;  %v2021_v24 = vpop.f32.mrf.mxu1 }
 0x10b   : > { %v3336_v23 = vld [vmem:[%s3482_s25 + $0x504] ss:$8 sps:$4 sm:$0xff]  }
 0x10c   : > { %v3696_v25 = vpop.f32.mrf.mxu0  ;;  %1831 = vmatmul.mubr.bf16.gmra.mxu0 %v3308_v19  ;;  %v3698_v26 = vpop.f32.mrf.mxu1  ;;  %2215 = vmatmul.mubr.bf16.gmra.mxu1 %v3309_v20  ;;  %v3332_v19 = vld [vmem:[%s3482_s25 + $0x1f0] ss:$8 sps:$4 sm:$0xff]  }
 0x10d   : > { %4502 = vst [vmem:[#allocation4_spill] sm:$0xff] %v3698_v26  ;;  %2988 = vmatprep.mubr.msk.bf16.mxu0 %vm1289_vm0, %v3310_v21  ;;  %3036 = vmatprep.mubr.msk.bf16.mxu1 %vm1289_vm0, %v3312_v22  ;;  %v3333_v20 = vld [vmem:[%s3482_s25 + $0x4f0] ss:$8 sps:$4 sm:$0xff]   ;;  %v3334_v22 = vld [vmem:[%s3482_s25 + $0x204] ss:$8 sps:$4 sm:$0xff]  }
 0x10e   : > { %v1642_v27 = vpop.f32.mrf.mxu0  ;;  %v2026_v28 = vpop.f32.mrf.mxu1  ;;  %v3417_v26 = vld [vmem:[%s3482_s25 + $0x5d0] ss:$8 sps:$4 sm:$0xff]  }
 0x110   : > { %v3702_v29 = vpop.f32.mrf.mxu0  ;;  %v3704_v30 = vpop.f32.mrf.mxu1 }
 0x111   : > { %4503 = vst [vmem:[#allocation5_spill] sm:$0xff] %v3704_v30  ;;  %v360_v30 = vld [vmem:[%s3482_s25 + $0x5e0] sm:$0xff] }
 0x112   : > { %v1645_v35 = vpop.f32.mrf.mxu0  ;;  %v2029_v36 = vpop.f32.mrf.mxu1 }
 0x114   : > { %v3710_v37 = vpop.f32.mrf.mxu0  ;;  %1839 = vmatmul.mubr.bf16.gmra.mxu0 %v3314_v31  ;;  %v3712_v38 = vpop.f32.mrf.mxu1  ;;  %2223 = vmatmul.mubr.bf16.gmra.mxu1 %v3315_v32 }
 0x115   : > { %4504 = vst [vmem:[#allocation6_spill] sm:$0xff] %v3712_v38  ;;  %2989 = vmatprep.mubr.msk.bf16.mxu0 %vm1289_vm0, %v3316_v33  ;;  %3037 = vmatprep.mubr.msk.bf16.mxu1 %vm1289_vm0, %v3318_v34  ;;  %v3414_v38 = vld [vmem:[%s3482_s25 + $0x5d4] ss:$8 sps:$4 sm:$0xff]  }
 0x116   : > { %v1650_v39 = vpop.f32.mrf.mxu0  ;;  %v2034_v40 = vpop.f32.mrf.mxu1 }
 0x117   : > { %v3338_v39 = vld [vmem:[%s3482_s25 + $0x200] ss:$8 sps:$4 sm:$0xff]  }
 0x118   : > { %v3716_v41 = vpop.f32.mrf.mxu0  ;;  %v3718_v42 = vpop.f32.mrf.mxu1  ;;  %v3339_v40 = vld [vmem:[%s3482_s25 + $0x500] ss:$8 sps:$4 sm:$0xff]  }
 0x119   : > { %v2374_v45 = vmax.f32 %v3654_v53, %v3718_v42 }
 0x11a   : > { %v1653_v48 = vpop.f32.mrf.mxu0  ;;  %v2037_v49 = vpop.f32.mrf.mxu1 }
 0x11c   : > { %v3726_v50 = vpop.f32.mrf.mxu0  ;;  %1847 = vmatmul.mubr.bf16.gmra.mxu0 %v3320_v43  ;;  %v3728_v51 = vpop.f32.mrf.mxu1  ;;  %2231 = vmatmul.mubr.bf16.gmra.mxu1 %v3321_v44  ;;  %v3340_v44 = vld [vmem:[%s3482_s25 + $0x214] ss:$8 sps:$4 sm:$0xff]  }
 0x11d   : > { %v2375_v52 = vmax.f32 %v3660_v57, %v3728_v51  ;;  %2990 = vmatprep.mubr.msk.bf16.mxu0 %vm1289_vm0, %v3322_v46  ;;  %3038 = vmatprep.mubr.msk.bf16.mxu1 %vm1289_vm0, %v3324_v47  ;;  %v3342_v46 = vld [vmem:[%s3482_s25 + $0x514] ss:$8 sps:$4 sm:$0xff]  }
 0x11e   : > { %v1658_v55 = vpop.f32.mrf.mxu0  ;;  %v2042_v56 = vpop.f32.mrf.mxu1  ;;  %v3364_v57 = vld [vmem:[%s3482_s25 + $0x254] ss:$8 sps:$4 sm:$0xff]  }
 0x11f   : > { %v3366_v51 = vld [vmem:[%s3482_s25 + $0x554] ss:$8 sps:$4 sm:$0xff]  }
 0x120   : > { %v3734_v59 = vpop.f32.mrf.mxu0  ;;  %v3736_v60 = vpop.f32.mrf.mxu1 }
 0x121   : > { %v2376_v63 = vmax.f32 %v3668_v1, %v3736_v60 }
 0x122   : > { %v1661_v4 = vpop.f32.mrf.mxu0  ;;  %v2045_v7 = vpop.f32.mrf.mxu1 }
 0x123   : > { %v3344_v4 = vld [vmem:[%s3482_s25 + $0x210] ss:$8 sps:$4 sm:$0xff]  }
 0x124   : > { %v3744_v8 = vpop.f32.mrf.mxu0  ;;  %1855 = vmatmul.mubr.bf16.gmra.mxu0 %v3326_v61  ;;  %v3746_v9 = vpop.f32.mrf.mxu1  ;;  %2239 = vmatmul.mubr.bf16.gmra.mxu1 %v3327_v62  ;;  %v3345_v7 = vld [vmem:[%s3482_s25 + $0x510] ss:$8 sps:$4 sm:$0xff]  }
 0x125   : > { %v2377_v10 = vmax.f32 %v3674_v5, %v3746_v9  ;;  %2991 = vmatprep.mubr.msk.bf16.mxu0 %vm1289_vm0, %v3328_v0  ;;  %3039 = vmatprep.mubr.msk.bf16.mxu1 %vm1289_vm0, %v3330_v3  ;;  %v3370_v5 = vld [vmem:[%s3482_s25 + $0x264] ss:$8 sps:$4 sm:$0xff]  }
 0x126   : > { %v1666_v11 = vpop.f32.mrf.mxu0  ;;  %v2050_v12 = vpop.f32.mrf.mxu1  ;;  %v3372_v9 = vld [vmem:[%s3482_s25 + $0x564] ss:$8 sps:$4 sm:$0xff]  }
 0x127   : > { %v3346_v12 = vld [vmem:[%s3482_s25 + $0x224] ss:$8 sps:$4 sm:$0xff]  }
 0x128   : > { %v3752_v15 = vpop.f32.mrf.mxu0  ;;  %v3754_v16 = vpop.f32.mrf.mxu1 }
 0x129   : > { %v2378_v21 = vmax.f32 %v3682_v13, %v3754_v16 }
 0x12a   : > { %v1669_v24 = vpop.f32.mrf.mxu0  ;;  %v2053_v27 = vpop.f32.mrf.mxu1 }
 0x12c   : > { %v3762_v28 = vpop.f32.mrf.mxu0  ;;  %1863 = vmatmul.mubr.bf16.gmra.mxu0 %v3332_v19  ;;  %v3764_v31 = vpop.f32.mrf.mxu1  ;;  %2247 = vmatmul.mubr.bf16.gmra.mxu1 %v3333_v20  ;;  %v3348_v19 = vld [vmem:[%s3482_s25 + $0x524] ss:$8 sps:$4 sm:$0xff]  }
 0x12d   : > { %v2379_v32 = vmax.f32 %v3688_v17, %v3764_v31  ;;  %2992 = vmatprep.mubr.msk.bf16.mxu0 %vm1289_vm0, %v3334_v22  ;;  %3040 = vmatprep.mubr.msk.bf16.mxu1 %vm1289_vm0, %v3336_v23  ;;  %v3376_v17 = vld [vmem:[%s3482_s25 + $0x274] ss:$8 sps:$4 sm:$0xff]  }
 0x12e   : > { %v1674_v33 = vpop.f32.mrf.mxu0  ;;  %v2058_v34 = vpop.f32.mrf.mxu1  ;;  %v3378_v31 = vld [vmem:[%s3482_s25 + $0x574] ss:$8 sps:$4 sm:$0xff]  }
 0x130   : > { %v3770_v35 = vpop.f32.mrf.mxu0  ;;  %v3772_v36 = vpop.f32.mrf.mxu1 }
 0x131   : > { %v2380_v43 = vmax.f32 %v3696_v25, %v3772_v36 }
 0x132   : > { %v1677_v47 = vpop.f32.mrf.mxu0  ;;  %v2061_v48 = vpop.f32.mrf.mxu1 }
 0x133   : > { %v3352_v48 = vld [vmem:[%s3482_s25 + $0x234] ss:$8 sps:$4 sm:$0xff]  }
 0x134   : > { %v3780_v49 = vpop.f32.mrf.mxu0  ;;  %1871 = vmatmul.mubr.bf16.gmra.mxu0 %v3338_v39  ;;  %v3782_v55 = vpop.f32.mrf.mxu1  ;;  %2255 = vmatmul.mubr.bf16.gmra.mxu1 %v3339_v40 }
 0x135   : > { %v2381_v56 = vmax.f32 %v3702_v29, %v3782_v55  ;;  %2993 = vmatprep.mubr.msk.bf16.mxu0 %vm1289_vm0, %v3340_v44  ;;  %3041 = vmatprep.mubr.msk.bf16.mxu1 %vm1289_vm0, %v3342_v46  ;;  %v3350_v44 = vld [vmem:[%s3482_s25 + $0x220] ss:$8 sps:$4 sm:$0xff]   ;;  %v3384_v29 = vld [vmem:[%s3482_s25 + $0x584] ss:$8 sps:$4 sm:$0xff]  }
 0x136   : > { %v1682_v61 = vpop.f32.mrf.mxu0  ;;  %v2066_v62 = vpop.f32.mrf.mxu1  ;;  %v3351_v46 = vld [vmem:[%s3482_s25 + $0x520] ss:$8 sps:$4 sm:$0xff]  }
 0x137   : > { %v3354_v61 = vld [vmem:[%s3482_s25 + $0x534] ss:$8 sps:$4 sm:$0xff]  }
 0x138   : > { %v3788_v0 = vpop.f32.mrf.mxu0  ;;  %v3790_v3 = vpop.f32.mrf.mxu1 }
 0x139   : > { %v2382_v11 = vmax.f32 %v3710_v37, %v3790_v3 }
 0x13a   : > { %v1685_v20 = vpop.f32.mrf.mxu0  ;;  %v2069_v22 = vpop.f32.mrf.mxu1 }
 0x13c   : > { %v3798_v23 = vpop.f32.mrf.mxu0  ;;  %1879 = vmatmul.mubr.bf16.gmra.mxu0 %v3344_v4  ;;  %v3800_v24 = vpop.f32.mrf.mxu1  ;;  %2263 = vmatmul.mubr.bf16.gmra.mxu1 %v3345_v7 }
 0x13d   : > { %v2383_v27 = vmax.f32 %v3716_v41, %v3800_v24  ;;  %2994 = vmatprep.mubr.msk.bf16.mxu0 %vm1289_vm0, %v3346_v12  ;;  %3042 = vmatprep.mubr.msk.bf16.mxu1 %vm1289_vm0, %v3348_v19  ;;  %v3360_v19 = vld [vmem:[%s3482_s25 + $0x544] ss:$8 sps:$4 sm:$0xff]  }
 0x13e   : > { %v1690_v33 = vpop.f32.mrf.mxu0  ;;  %v2074_v34 = vpop.f32.mrf.mxu1 }
 0x140   : > { %v3806_v39 = vpop.f32.mrf.mxu0  ;;  %v3808_v40 = vpop.f32.mrf.mxu1 }
 0x142   : > { %v1693_v62 = vpop.f32.mrf.mxu0  ;;  %v2077_v4 = vpop.f32.mrf.mxu1 }
 0x143   : > { %v3356_v62 = vld [vmem:[%s3482_s25 + $0x230] ss:$8 sps:$4 sm:$0xff]  }
 0x144   : > { %v3816_v7 = vpop.f32.mrf.mxu0  ;;  %1887 = vmatmul.mubr.bf16.gmra.mxu0 %v3350_v44  ;;  %v3818_v12 = vpop.f32.mrf.mxu1  ;;  %2271 = vmatmul.mubr.bf16.gmra.mxu1 %v3351_v46  ;;  %v3357_v4 = vld [vmem:[%s3482_s25 + $0x530] ss:$8 sps:$4 sm:$0xff]   ;;  %v3358_v46 = vld [vmem:[%s3482_s25 + $0x244] ss:$8 sps:$4 sm:$0xff]  }
 0x145   : > { %2995 = vmatprep.mubr.msk.bf16.mxu0 %vm1289_vm0, %v3352_v48  ;;  %3043 = vmatprep.mubr.msk.bf16.mxu1 %vm1289_vm0, %v3354_v61 }
 0x146   : > { %v1698_v20 = vpop.f32.mrf.mxu0  ;;  %v2082_v22 = vpop.f32.mrf.mxu1 }
 0x148   : > { %v1699_v33 = vpop.f32.mrf.mxu0  ;;  %v3824_v34 = vpop.f32.mrf.mxu1 }
 0x149   : > { %v3831_v44 = vmax.f32 %v2374_v45, %v1699_v33  ;;  %v3362_v33 = vld [vmem:[%s3482_s25 + $0x240] ss:$8 sps:$4 sm:$0xff]  }
 0x14a   : > { %v1701_v47 = vpop.f32.mrf.mxu0  ;;  %v2085_v48 = vpop.f32.mrf.mxu1 }
 0x14b   : > { %v3363_v48 = vld [vmem:[%s3482_s25 + $0x540] ss:$8 sps:$4 sm:$0xff]  }
 0x14c   : > { %v1704_v61 = vpop.f32.mrf.mxu0  ;;  %1895 = vmatmul.mubr.bf16.gmra.mxu0 %v3356_v62  ;;  %v3835_v20 = vpop.f32.mrf.mxu1  ;;  %2279 = vmatmul.mubr.bf16.gmra.mxu1 %v3357_v4 }
 0x14d   : > { %v3840_v22 = vmax.f32 %v2375_v52, %v1704_v61  ;;  %2996 = vmatprep.mubr.msk.bf16.mxu0 %vm1289_vm0, %v3358_v46  ;;  %3044 = vmatprep.mubr.msk.bf16.mxu1 %vm1289_vm0, %v3360_v19 }
 0x14e   : > { %v1706_v53 = vpop.f32.mrf.mxu0  ;;  %v2090_v42 = vpop.f32.mrf.mxu1 }
 0x14f   : > { %v3368_v42 = vld [vmem:[%s3482_s25 + $0x250] ss:$8 sps:$4 sm:$0xff]  }
 0x150   : > { %v1707_v45 = vpop.f32.mrf.mxu0  ;;  %v3844_v47 = vpop.f32.mrf.mxu1 }
 0x151   : > { %v3851_v62 = vmax.f32 %v2376_v63, %v1707_v45  ;;  %v3369_v45 = vld [vmem:[%s3482_s25 + $0x550] ss:$8 sps:$4 sm:$0xff]  }
 0x152   : > { %v1709_v52 = vpop.f32.mrf.mxu0  ;;  %v2093_v4 = vpop.f32.mrf.mxu1 }
 0x154   : > { %v1712_v19 = vpop.f32.mrf.mxu0  ;;  %1903 = vmatmul.mubr.bf16.gmra.mxu0 %v3362_v33  ;;  %v3855_v46 = vpop.f32.mrf.mxu1  ;;  %2287 = vmatmul.mubr.bf16.gmra.mxu1 %v3363_v48 }
 0x155   : > { %4505 = vst [vmem:[#allocation7_spill] sm:$0xff] %v3855_v46  ;;  %v3860_v61 = vmax.f32 %v2377_v10, %v1712_v19  ;;  %2997 = vmatprep.mubr.msk.bf16.mxu0 %vm1289_vm0, %v3364_v57  ;;  %3045 = vmatprep.mubr.msk.bf16.mxu1 %vm1289_vm0, %v3366_v51  ;;  %v3374_v19 = vld [vmem:[%s3482_s25 + $0x260] ss:$8 sps:$4 sm:$0xff]  }
 0x156   : > { %v1714_v1 = vpop.f32.mrf.mxu0  ;;  %v2098_v60 = vpop.f32.mrf.mxu1 }
 0x157   : > { %v3375_v1 = vld [vmem:[%s3482_s25 + $0x560] ss:$8 sps:$4 sm:$0xff]  }
 0x158   : > { %v1715_v63 = vpop.f32.mrf.mxu0  ;;  %v3864_v53 = vpop.f32.mrf.mxu1 }
 0x159   : > { %4506 = vst [vmem:[#allocation8_spill] sm:$0xff] %v3864_v53  ;;  %v3871_v33 = vmax.f32 %v2378_v21, %v1715_v63 }
 0x15a   : > { %v1717_v10 = vpop.f32.mrf.mxu0  ;;  %v2101_v48 = vpop.f32.mrf.mxu1 }
 0x15b   : > { %v3380_v10 = vld [vmem:[%s3482_s25 + $0x270] ss:$8 sps:$4 sm:$0xff]  }
 0x15c   : > { %v1720_v57 = vpop.f32.mrf.mxu0  ;;  %1911 = vmatmul.mubr.bf16.gmra.mxu0 %v3368_v42  ;;  %v3875_v51 = vpop.f32.mrf.mxu1  ;;  %2295 = vmatmul.mubr.bf16.gmra.mxu1 %v3369_v45  ;;  %v3381_v48 = vld [vmem:[%s3482_s25 + $0x570] ss:$8 sps:$4 sm:$0xff]  }
 0x15d   : > { %4507 = vst [vmem:[#allocation9_spill] sm:$0xff] %v3875_v51  ;;  %v3880_v52 = vmax.f32 %v2379_v32, %v1720_v57  ;;  %2998 = vmatprep.mubr.msk.bf16.mxu0 %vm1289_vm0, %v3370_v5  ;;  %3046 = vmatprep.mubr.msk.bf16.mxu1 %vm1289_vm0, %v3372_v9  ;;  %v2949_v51 = vcombine.high %v360_v30, %v360_v30 }
 0x15e   : > { %v1722_v13 = vpop.f32.mrf.mxu0  ;;  %v2106_v16 = vpop.f32.mrf.mxu1 }
 0x15f   : > { %v3382_v13 = vld [vmem:[%s3482_s25 + $0x284] ss:$8 sps:$4 sm:$0xff]  }
 0x160   : > { %v1723_v21 = vpop.f32.mrf.mxu0  ;;  %v3884_v4 = vpop.f32.mrf.mxu1 }
 0x161   : > { %4508 = vst [vmem:[#allocation10_spill] sm:$0xff] %v3884_v4  ;;  %v3891_v60 = vmax.f32 %v2380_v43, %v1723_v21 }
 0x162   : > { %v1725_v32 = vpop.f32.mrf.mxu0  ;;  %v2109_v63 = vpop.f32.mrf.mxu1 }
 0x163   : > { %v3387_v32 = vld [vmem:[%s3482_s25 + $0x580] ss:$8 sps:$4 sm:$0xff]   ;;  %v4511_v63 = vmax.f32 %v3726_v50, %v3808_v40  ;;  %v4512_v50 = vmax.f32 %v3734_v59, %v3818_v12  ;;  %v3394_v12 = vld [vmem:[%s3482_s25 + $0x2a4] ss:$8 sps:$4 sm:$0xff]   ;;  %v3405_v59 = vld [vmem:[%s3482_s25 + $0x5b0] ss:$8 sps:$4 sm:$0xff]  }
 0x164   : > { %v1728_v42 = vpop.f32.mrf.mxu0  ;;  %1919 = vmatmul.mubr.bf16.gmra.mxu0 %v3374_v19  ;;  %v3895_v45 = vpop.f32.mrf.mxu1  ;;  %2303 = vmatmul.mubr.bf16.gmra.mxu1 %v3375_v1 }
 0x165   : > { %4509 = vst [vmem:[#allocation11_spill] sm:$0xff] %v3895_v45  ;;  %v3900_v5 = vmax.f32 %v2381_v56, %v1728_v42  ;;  %2999 = vmatprep.mubr.msk.bf16.mxu0 %vm1289_vm0, %v3376_v17  ;;  %3047 = vmatprep.mubr.msk.bf16.mxu1 %vm1289_vm0, %v3378_v31  ;;  %v3386_v31 = vld [vmem:[%s3482_s25 + $0x280] ss:$8 sps:$4 sm:$0xff]   ;;  %v3390_v42 = vld [vmem:[%s3482_s25 + $0x594] ss:$8 sps:$4 sm:$0xff]  }
 0x166   : > { %v1730_v25 = vpop.f32.mrf.mxu0  ;;  %v2114_v36 = vpop.f32.mrf.mxu1 }
 0x168   : > { %v1731_v43 = vpop.f32.mrf.mxu0  ;;  %v3904_v9 = vpop.f32.mrf.mxu1 }
 0x169   : > { %4510 = vst [vmem:[#allocation12_spill] sm:$0xff] %v3904_v9  ;;  %v3911_v57 = vmax.f32 %v2382_v11, %v1731_v43  ;;  %v3411_v9 = vld [vmem:[%s3482_s25 + $0x5c0] ss:$8 sps:$4 sm:$0xff]  }
 0x16a   : > { %v1733_v55 = vpop.f32.mrf.mxu0  ;;  %v2117_v56 = vpop.f32.mrf.mxu1 }
 0x16c   : > { %v1736_v16 = vpop.f32.mrf.mxu0  ;;  %1927 = vmatmul.mubr.bf16.gmra.mxu0 %v3380_v10  ;;  %v3915_v21 = vpop.f32.mrf.mxu1  ;;  %2311 = vmatmul.mubr.bf16.gmra.mxu1 %v3381_v48  ;;  %v3408_v48 = vld [vmem:[%s3482_s25 + $0x5c4] ss:$8 sps:$4 sm:$0xff]  }
 0x16d   : > { %v3920_v19 = vmax.f32 %v2383_v27, %v1736_v16  ;;  %3000 = vmatprep.mubr.msk.bf16.mxu0 %vm1289_vm0, %v3382_v13  ;;  %3048 = vmatprep.mubr.msk.bf16.mxu1 %vm1289_vm0, %v3384_v29  ;;  %v3388_v27 = vld [vmem:[%s3482_s25 + $0x294] ss:$8 sps:$4 sm:$0xff]   ;;  %v3392_v16 = vld [vmem:[%s3482_s25 + $0x290] ss:$8 sps:$4 sm:$0xff]  }
 0x16e   : > { %v1738_v3 = vpop.f32.mrf.mxu0  ;;  %v2122_v11 = vpop.f32.mrf.mxu1 }
 0x16f   : > { %v3393_v3 = vld [vmem:[%s3482_s25 + $0x590] ss:$8 sps:$4 sm:$0xff]   ;;  %v3396_v11 = vld [vmem:[%s3482_s25 + $0x5a4] ss:$8 sps:$4 sm:$0xff]  }
 0x170   : > { %v1739_v1 = vpop.f32.mrf.mxu0  ;;  %v3926_v17 = vpop.f32.mrf.mxu1 }
 0x171   : > { %v3933_v41 = vmax.f32 %v4511_v63, %v1739_v1 }
 0x172   : > { %v1741_v25 = vpop.f32.mrf.mxu0  ;;  %v2125_v36 = vpop.f32.mrf.mxu1 }
 0x174   : > { %v1744_v43 = vpop.f32.mrf.mxu0  ;;  %1935 = vmatmul.mubr.bf16.gmra.mxu0 %v3386_v31  ;;  %v3939_v10 = vpop.f32.mrf.mxu1  ;;  %2319 = vmatmul.mubr.bf16.gmra.mxu1 %v3387_v32 }
 0x175   : > { %v3944_v40 = vmax.f32 %v4512_v50, %v1744_v43  ;;  %3001 = vmatprep.mubr.msk.bf16.mxu0 %vm1289_vm0, %v3388_v27  ;;  %3049 = vmatprep.mubr.msk.bf16.mxu1 %vm1289_vm0, %v3390_v42  ;;  %v3398_v50 = vld [vmem:[%s3482_s25 + $0x2a0] ss:$8 sps:$4 sm:$0xff]  }
 0x176   : > { %v1746_v13 = vpop.f32.mrf.mxu0  ;;  %v2130_v29 = vpop.f32.mrf.mxu1 }
 0x177   : > { %v3399_v13 = vld [vmem:[%s3482_s25 + $0x5a0] ss:$8 sps:$4 sm:$0xff]  }
 0x178   : > { %v3950_v55 = vpop.f32.mrf.mxu0  ;;  %v3952_v56 = vpop.f32.mrf.mxu1 }
 0x17a   : > { %v1749_v1 = vpop.f32.mrf.mxu0  ;;  %v2133_v31 = vpop.f32.mrf.mxu1 }
 0x17c   : > { %v3960_v32 = vpop.f32.mrf.mxu0  ;;  %1943 = vmatmul.mubr.bf16.gmra.mxu0 %v3392_v16  ;;  %v3962_v63 = vpop.f32.mrf.mxu1  ;;  %2327 = vmatmul.mubr.bf16.gmra.mxu1 %v3393_v3  ;;  %v3400_v16 = vld [vmem:[%s3482_s25 + $0x2b4] ss:$8 sps:$4 sm:$0xff]  }
 0x17d   : > { %3002 = vmatprep.mubr.msk.bf16.mxu0 %vm1289_vm0, %v3394_v12  ;;  %3050 = vmatprep.mubr.msk.bf16.mxu1 %vm1289_vm0, %v3396_v11  ;;  %v3402_v3 = vld [vmem:[%s3482_s25 + $0x5b4] ss:$8 sps:$4 sm:$0xff]  }
 0x17e   : > { %v1754_v42 = vpop.f32.mrf.mxu0  ;;  %v2138_v25 = vpop.f32.mrf.mxu1 }
 0x180   : > { %v3968_v36 = vpop.f32.mrf.mxu0  ;;  %v3970_v43 = vpop.f32.mrf.mxu1 }
 0x182   : > { %v1757_v1 = vpop.f32.mrf.mxu0  ;;  %v2141_v12 = vpop.f32.mrf.mxu1 }
 0x183   : > { %v3404_v12 = vld [vmem:[%s3482_s25 + $0x2b0] ss:$8 sps:$4 sm:$0xff]  }
 0x184   : > { %v3978_v11 = vpop.f32.mrf.mxu0  ;;  %1951 = vmatmul.mubr.bf16.gmra.mxu0 %v3398_v50  ;;  %v3980_v31 = vpop.f32.mrf.mxu1  ;;  %2335 = vmatmul.mubr.bf16.gmra.mxu1 %v3399_v13  ;;  %v3406_v13 = vld [vmem:[%s3482_s25 + $0x2c4] ss:$8 sps:$4 sm:$0xff]  }
 0x185   : > { %3003 = vmatprep.mubr.msk.bf16.mxu0 %vm1289_vm0, %v3400_v16  ;;  %3051 = vmatprep.mubr.msk.bf16.mxu1 %vm1289_vm0, %v3402_v3 }
 0x186   : > { %v1762_v25 = vpop.f32.mrf.mxu0  ;;  %v2146_v29 = vpop.f32.mrf.mxu1 }
 0x188   : > { %v3986_v27 = vpop.f32.mrf.mxu0  ;;  %v3988_v1 = vpop.f32.mrf.mxu1 }
 0x18a   : > { %v1765_v42 = vpop.f32.mrf.mxu0  ;;  %v2149_v16 = vpop.f32.mrf.mxu1 }
 0x18b   : > { %v3410_v16 = vld [vmem:[%s3482_s25 + $0x2c0] ss:$8 sps:$4 sm:$0xff]  }
 0x18c   : > { %v3996_v3 = vpop.f32.mrf.mxu0  ;;  %1959 = vmatmul.mubr.bf16.gmra.mxu0 %v3404_v12  ;;  %v3998_v29 = vpop.f32.mrf.mxu1  ;;  %2343 = vmatmul.mubr.bf16.gmra.mxu1 %v3405_v59  ;;  %v3412_v59 = vld [vmem:[%s3482_s25 + $0x2d4] ss:$8 sps:$4 sm:$0xff]  }
 0x18d   : > { %3004 = vmatprep.mubr.msk.bf16.mxu0 %vm1289_vm0, %v3406_v13  ;;  %3052 = vmatprep.mubr.msk.bf16.mxu1 %vm1289_vm0, %v3408_v48 }
 0x18e   : > { %v1770_v50 = vpop.f32.mrf.mxu0  ;;  %v2154_v24 = vpop.f32.mrf.mxu1 }
 0x190   : > { %v4004_v37 = vpop.f32.mrf.mxu0  ;;  %v4006_v42 = vpop.f32.mrf.mxu1 }
 0x192   : > { %v1773_v25 = vpop.f32.mrf.mxu0  ;;  %v2157_v13 = vpop.f32.mrf.mxu1 }
 0x193   : > { %v3416_v13 = vld [vmem:[%s3482_s25 + $0x2d0] ss:$8 sps:$4 sm:$0xff]  }
 0x194   : > { %v4014_v48 = vpop.f32.mrf.mxu0  ;;  %1967 = vmatmul.mubr.bf16.gmra.mxu0 %v3410_v16  ;;  %v4016_v24 = vpop.f32.mrf.mxu1  ;;  %2351 = vmatmul.mubr.bf16.gmra.mxu1 %v3411_v9  ;;  %v3418_v9 = vld [vmem:[%s3482_s25 + $0x2e4] ss:$8 sps:$4 sm:$0xff]  }
 0x195   : > { %3005 = vmatprep.mubr.msk.bf16.mxu0 %vm1289_vm0, %v3412_v59  ;;  %3053 = vmatprep.mubr.msk.bf16.mxu1 %vm1289_vm0, %v3414_v38 }
 0x196   : > { %v1778_v12 = vpop.f32.mrf.mxu0  ;;  %v2162_v45 = vpop.f32.mrf.mxu1 }
 0x197   : > { %v4513_v45 = vmax.f32 %v3831_v44, %v3915_v21  ;;  %v3423_v44 = vld [vmem:[%s3482_s25 + $0x2f4] ss:$8 sps:$4 sm:$0xff]  }
 0x198   : > { %v4023_v4 = vpop.f32.mrf.mxu0  ;;  %v4025_v25 = vpop.f32.mrf.mxu1 }
 0x19a   : > { %v1781_v50 = vpop.f32.mrf.mxu0  ;;  %v2165_v59 = vpop.f32.mrf.mxu1 }
 0x19b   : > { %v3421_v59 = vld [vmem:[%s3482_s25 + $0x2e0] ss:$8 sps:$4 sm:$0xff]  }
 0x19c   : > { %v1784_v18 = vpop.f32.mrf.mxu0  ;;  %1975 = vmatmul.mubr.bf16.gmra.mxu0 %v3416_v13  ;;  %v4032_v38 = vpop.f32.mrf.mxu1  ;;  %2359 = vmatmul.mubr.bf16.gmra.mxu1 %v3417_v26  ;;  %v2948_v13 = vcombine.low %v360_v30, %v360_v30  ;;  %v4514_v26 = vmax.f32 %v3840_v22, %v3926_v17  ;;  %v3425_v17 = vld [vmem:[%s3482_s25 + $0x2f0] ss:$8 sps:$4 sm:$0xff]  }
 0x19d   : > { %v4037_v12 = vmax.f32 %v4513_v45, %v1784_v18  ;;  %3006 = vmatprep.mubr.msk.bf16.mxu0 %vm1289_vm0, %v3418_v9  ;;  %3054 = vmatprep.mubr.msk.bf16.mxu1 %vm1289_vm0, %v2949_v51 }
 0x19e   : > { %v1786_v16 = vpop.f32.mrf.mxu0  ;;  %v2170_v53 = vpop.f32.mrf.mxu1 }
 0x19f   : > { %v4515_v53 = vmax.f32 %v3851_v62, %v3939_v10  ;;  %v4517_v10 = vmax.f32 %v3871_v33, %v3962_v63  ;;  %v4519_v33 = vmax.f32 %v3891_v60, %v3980_v31  ;;  %v4521_v60 = vmax.f32 %v3911_v57, %v3998_v29 }
 0x1a0   : > { %v1787_v14 = vpop.f32.mrf.mxu0  ;;  %v4041_v50 = vpop.f32.mrf.mxu1  ;;  %v4523_v57 = vmax.f32 %v3933_v41, %v4016_v24  ;;  %v2386_v24 = vmax.f32 %v3744_v8, %v3950_v55 }
 0x1a1   : > { %v4047_v46 = vmax.f32 %v4514_v26, %v1787_v14  ;;  %v4516_v26 = vmax.f32 %v3860_v61, %v3952_v56  ;;  %v4518_v61 = vmax.f32 %v3880_v52, %v3970_v43  ;;  %v4520_v52 = vmax.f32 %v3900_v5, %v3988_v1 }
 0x1a2   : > { %v1789_v18 = vpop.f32.mrf.mxu0  ;;  %v2173_v21 = vpop.f32.mrf.mxu1  ;;  %v4522_v5 = vmax.f32 %v3920_v19, %v4006_v42 }
 0x1a4   : > { %v1792_v45 = vpop.f32.mrf.mxu0  ;;  %1983 = vmatmul.mubr.bf16.gmra.mxu0 %v3421_v59  ;;  %v4050_v9 = vpop.f32.mrf.mxu1  ;;  %2367 = vmatmul.mubr.bf16.gmra.mxu1 %v2948_v13 }
 0x1a5   : > { %v4055_v51 = vmax.f32 %v4515_v53, %v1792_v45  ;;  %3007 = vmatprep.mubr.msk.bf16.mxu0 %vm1289_vm0, %v3423_v44 }
 0x1a6   : > { %v1794_v30 = vpop.f32.mrf.mxu0  ;;  %v2178_v16 = vpop.f32.mrf.mxu1 }
 0x1a8   : > { %v1795_v22 = vpop.f32.mrf.mxu0  ;;  %v4058_v14 = vpop.f32.mrf.mxu1 }
 0x1a9   : > { %v4064_v59 = vmax.f32 %v4516_v26, %v1795_v22 }
 0x1aa   : > { %v1797_v18 = vpop.f32.mrf.mxu0  ;;  %v2181_v13 = vpop.f32.mrf.mxu1 }
 0x1ac   : > { %v1800_v21 = vpop.f32.mrf.mxu0  ;;  %1991 = vmatmul.mubr.bf16.gmra.mxu0 %v3425_v17  ;;  %v4066_v62 = vpop.f32.mrf.mxu1 }
 0x1ad   : > { %v4071_v44 = vmax.f32 %v4517_v10, %v1800_v21 }
 0x1ae   : > { %v1802_v45 = vpop.f32.mrf.mxu0  ;;  %v2186_v53 = vpop.f32.mrf.mxu1 }
 0x1b0   : > { %v1803_v30 = vpop.f32.mrf.mxu0  ;;  %v4073_v16 = vpop.f32.mrf.mxu1 }
 0x1b1   : > { %v4078_v56 = vmax.f32 %v4518_v61, %v1803_v30 }
 0x1b2   : > { %v1805_v22 = vpop.f32.mrf.mxu0  ;;  %v2189_v26 = vpop.f32.mrf.mxu1 }
 0x1b4   : > { %v1808_v17 = vpop.f32.mrf.mxu0  ;;  %v4080_v18 = vpop.f32.mrf.mxu1 }
 0x1b5   : > { %v4085_v63 = vmax.f32 %v4519_v33, %v1808_v17 }
 0x1b6   : > { %v1810_v13 = vpop.f32.mrf.mxu0  ;;  %v2194_v21 = vpop.f32.mrf.mxu1 }
 0x1b8   : > { %v1811_v10 = vpop.f32.mrf.mxu0  ;;  %v4087_v45 = vpop.f32.mrf.mxu1 }
 0x1b9   : > { %v4092_v43 = vmax.f32 %v4520_v52, %v1811_v10 }
 0x1ba   : > { %v1813_v53 = vpop.f32.mrf.mxu0  ;;  %v2197_v30 = vpop.f32.mrf.mxu1 }
 0x1bc   : > { %v1816_v61 = vpop.f32.mrf.mxu0  ;;  %v4094_v22 = vpop.f32.mrf.mxu1 }
 0x1bd   : > { %v4099_v31 = vmax.f32 %v4521_v60, %v1816_v61 }
 0x1be   : > { %v1818_v26 = vpop.f32.mrf.mxu0  ;;  %v2202_v17 = vpop.f32.mrf.mxu1 }
 0x1bf   : > { %v4524_v17 = vmax.f32 %v3944_v40, %v4025_v25  ;;  %v2387_v25 = vmax.f32 %v3752_v15, %v3960_v32 }
 0x1c0   : > { %v1819_v33 = vpop.f32.mrf.mxu0  ;;  %v4101_v13 = vpop.f32.mrf.mxu1 }
 0x1c1   : > { %v4106_v1 = vmax.f32 %v4522_v5, %v1819_v33  ;;  %v2458_v21 = vmax.f32 %v4037_v12, %v4101_v13 }
 0x1c2   : > { %v1821_v10 = vpop.f32.mrf.mxu0  ;;  %v2205_v52 = vpop.f32.mrf.mxu1 }
 0x1c4   : > { %v1824_v53 = vpop.f32.mrf.mxu0  ;;  %v4110_v30 = vpop.f32.mrf.mxu1 }
 0x1c5   : > { %v4115_v29 = vmax.f32 %v4523_v57, %v1824_v53  ;;  %v2459_v61 = vmax.f32 %v4047_v46, %v4110_v30 }
 0x1c6   : > { %v1826_v60 = vpop.f32.mrf.mxu0  ;;  %v2210_v19 = vpop.f32.mrf.mxu1 }
 0x1c8   : > { %v1827_v42 = vpop.f32.mrf.mxu0  ;;  %v4119_v26 = vpop.f32.mrf.mxu1 }
 0x1c9   : > { %v4124_v33 = vmax.f32 %v4524_v17, %v1827_v42  ;;  %v2460_v5 = vmax.f32 %v4055_v51, %v4119_v26 }
 0x1ca   : > { %v1829_v10 = vpop.f32.mrf.mxu0  ;;  %v2213_v41 = vpop.f32.mrf.mxu1 }
 0x1cc   : > { %v1832_v52 = vpop.f32.mrf.mxu0  ;;  %v4130_v53 = vpop.f32.mrf.mxu1 }
 0x1cd   : > { %v4132_v57 = vmax.f32 %v2386_v24, %v1832_v52  ;;  %v2388_v24 = vmax.f32 %v3762_v28, %v3968_v36  ;;  %v4525_v46 = vmax.f32 %v4064_v59, %v4130_v53 }
 0x1ce   : > { %v1834_v19 = vpop.f32.mrf.mxu0  ;;  %v2218_v40 = vpop.f32.mrf.mxu1 }
 0x1d0   : > { %v1835_v42 = vpop.f32.mrf.mxu0  ;;  %v4138_v17 = vpop.f32.mrf.mxu1 }
 0x1d1   : > { %v4140_v10 = vmax.f32 %v2387_v25, %v1835_v42  ;;  %v2389_v25 = vmax.f32 %v3770_v35, %v3978_v11  ;;  %v4526_v51 = vmax.f32 %v4071_v44, %v4138_v17 }
 0x1d2   : > { %v1837_v55 = vpop.f32.mrf.mxu0  ;;  %v2221_v41 = vpop.f32.mrf.mxu1 }
 0x1d4   : > { %v1840_v52 = vpop.f32.mrf.mxu0  ;;  %v4146_v60 = vpop.f32.mrf.mxu1 }
 0x1d5   : > { %v4148_v19 = vmax.f32 %v2388_v24, %v1840_v52  ;;  %v2390_v24 = vmax.f32 %v3780_v49, %v3986_v27  ;;  %v4527_v59 = vmax.f32 %v4078_v56, %v4146_v60 }
 0x1d6   : > { %v1842_v32 = vpop.f32.mrf.mxu0  ;;  %v2226_v40 = vpop.f32.mrf.mxu1 }
 0x1d8   : > { %v1843_v42 = vpop.f32.mrf.mxu0  ;;  %v4154_v8 = vpop.f32.mrf.mxu1 }
 0x1d9   : > { %v4156_v55 = vmax.f32 %v2389_v25, %v1843_v42  ;;  %v2391_v25 = vmax.f32 %v3788_v0, %v3996_v3  ;;  %v4528_v44 = vmax.f32 %v4085_v63, %v4154_v8 }
 0x1da   : > { %v1845_v36 = vpop.f32.mrf.mxu0  ;;  %v2229_v41 = vpop.f32.mrf.mxu1 }
 0x1dc   : > { %v1848_v52 = vpop.f32.mrf.mxu0  ;;  %v4162_v15 = vpop.f32.mrf.mxu1 }
 0x1dd   : > { %v4164_v32 = vmax.f32 %v2390_v24, %v1848_v52  ;;  %v2392_v24 = vmax.f32 %v3798_v23, %v4004_v37  ;;  %v4529_v56 = vmax.f32 %v4092_v43, %v4162_v15 }
 0x1de   : > { %v1850_v11 = vpop.f32.mrf.mxu0  ;;  %v2234_v40 = vpop.f32.mrf.mxu1 }
 0x1e0   : > { %v1851_v42 = vpop.f32.mrf.mxu0  ;;  %v4170_v28 = vpop.f32.mrf.mxu1 }
 0x1e1   : > { %v4172_v36 = vmax.f32 %v2391_v25, %v1851_v42  ;;  %v2393_v25 = vmax.f32 %v3806_v39, %v4014_v48  ;;  %v4530_v63 = vmax.f32 %v4099_v31, %v4170_v28 }
 0x1e2   : > { %v1853_v27 = vpop.f32.mrf.mxu0  ;;  %v2237_v41 = vpop.f32.mrf.mxu1 }
 0x1e4   : > { %v1856_v52 = vpop.f32.mrf.mxu0  ;;  %v4178_v35 = vpop.f32.mrf.mxu1 }
 0x1e5   : > { %v4180_v11 = vmax.f32 %v2392_v24, %v1856_v52  ;;  %v2394_v24 = vmax.f32 %v3816_v7, %v4023_v4  ;;  %v4531_v43 = vmax.f32 %v4106_v1, %v4178_v35 }
 0x1e6   : > { %v1858_v3 = vpop.f32.mrf.mxu0  ;;  %v2242_v40 = vpop.f32.mrf.mxu1 }
 0x1e8   : > { %v1859_v42 = vpop.f32.mrf.mxu0  ;;  %v4186_v49 = vpop.f32.mrf.mxu1 }
 0x1e9   : > { %v4188_v27 = vmax.f32 %v2393_v25, %v1859_v42  ;;  %v2468_v23 = vmax.f32 %v4115_v29, %v4186_v49 }
 0x1ea   : > { %v1861_v37 = vpop.f32.mrf.mxu0  ;;  %v2245_v41 = vpop.f32.mrf.mxu1 }
 0x1ec   : > { %v1864_v52 = vpop.f32.mrf.mxu0  ;;  %v4194_v0 = vpop.f32.mrf.mxu1 }
 0x1ed   : > { %v4196_v3 = vmax.f32 %v2394_v24, %v1864_v52  ;;  %v2469_v39 = vmax.f32 %v4124_v33, %v4194_v0 }
 0x1ee   : > { %v1866_v48 = vpop.f32.mrf.mxu0  ;;  %v2250_v40 = vpop.f32.mrf.mxu1 }
 0x1f0   : > { %v1867_v25 = vpop.f32.mrf.mxu0  ;;  %v4200_v42 = vpop.f32.mrf.mxu1 }
 0x1f1   : > { %v4205_v29 = vmax.f32 %v2458_v21, %v1867_v25 }
 0x1f2   : > { %v1869_v49 = vpop.f32.mrf.mxu0  ;;  %v2253_v7 = vpop.f32.mrf.mxu1 }
 0x1f4   : > { %v1872_v4 = vpop.f32.mrf.mxu0  ;;  %v4207_v37 = vpop.f32.mrf.mxu1 }
 0x1f5   : > { %v4212_v41 = vmax.f32 %v2459_v61, %v1872_v4 }
 0x1f6   : > { %v1874_v33 = vpop.f32.mrf.mxu0  ;;  %v2258_v0 = vpop.f32.mrf.mxu1 }
 0x1f8   : > { %v1875_v24 = vpop.f32.mrf.mxu0  ;;  %v4214_v52 = vpop.f32.mrf.mxu1 }
 0x1f9   : > { %v4219_v12 = vmax.f32 %v2460_v5, %v1875_v24 }
 0x1fa   : > { %v1877_v13 = vpop.f32.mrf.mxu0  ;;  %v2261_v21 = vpop.f32.mrf.mxu1 }
 0x1fc   : > { %v1880_v48 = vpop.f32.mrf.mxu0  ;;  %v4221_v40 = vpop.f32.mrf.mxu1 }
 0x1fd   : > { %v4226_v30 = vmax.f32 %v4525_v46, %v1880_v48 }
 0x1fe   : > { %v1882_v61 = vpop.f32.mrf.mxu0  ;;  %v2266_v25 = vpop.f32.mrf.mxu1 }
 0x200   : > { %v1883_v49 = vpop.f32.mrf.mxu0  ;;  %v4228_v7 = vpop.f32.mrf.mxu1 }
 0x201   : > { %v4233_v26 = vmax.f32 %v4526_v51, %v1883_v49 }
 0x202   : > { %v1885_v5 = vpop.f32.mrf.mxu0  ;;  %v2269_v4 = vpop.f32.mrf.mxu1 }
 0x204   : > { %v1888_v33 = vpop.f32.mrf.mxu0  ;;  %v4235_v0 = vpop.f32.mrf.mxu1 }
 0x205   : > { %v4240_v53 = vmax.f32 %v4527_v59, %v1888_v33 }
 0x206   : > { %v1890_v24 = vpop.f32.mrf.mxu0  ;;  %v2274_v13 = vpop.f32.mrf.mxu1 }
 0x208   : > { %v1891_v21 = vpop.f32.mrf.mxu0  ;;  %v4242_v48 = vpop.f32.mrf.mxu1 }
 0x209   : > { %v4247_v17 = vmax.f32 %v4528_v44, %v1891_v21 }
 0x20a   : > { %v1893_v46 = vpop.f32.mrf.mxu0  ;;  %v2277_v61 = vpop.f32.mrf.mxu1 }
 0x20c   : > { %v1896_v25 = vpop.f32.mrf.mxu0  ;;  %v4249_v49 = vpop.f32.mrf.mxu1 }
 0x20d   : > { %v4254_v60 = vmax.f32 %v4529_v56, %v1896_v25 }
 0x20e   : > { %v1898_v51 = vpop.f32.mrf.mxu0  ;;  %v2282_v5 = vpop.f32.mrf.mxu1 }
 0x210   : > { %v1899_v4 = vpop.f32.mrf.mxu0  ;;  %v4256_v33 = vpop.f32.mrf.mxu1 }
 0x211   : > { %v4261_v8 = vmax.f32 %v4530_v63, %v1899_v4 }
 0x212   : > { %v1901_v59 = vpop.f32.mrf.mxu0  ;;  %v2285_v24 = vpop.f32.mrf.mxu1 }
 0x214   : > { %v1904_v13 = vpop.f32.mrf.mxu0  ;;  %v4263_v21 = vpop.f32.mrf.mxu1 }
 0x215   : > { %v4268_v15 = vmax.f32 %v4531_v43, %v1904_v13 }
 0x216   : > { %v1906_v44 = vpop.f32.mrf.mxu0  ;;  %v2290_v46 = vpop.f32.mrf.mxu1 }
 0x218   : > { %v1907_v61 = vpop.f32.mrf.mxu0  ;;  %v4270_v25 = vpop.f32.mrf.mxu1 }
 0x219   : > { %v4272_v56 = vmax.f32 %v2468_v23, %v1907_v61 }
 0x21a   : > { %v1909_v31 = vpop.f32.mrf.mxu0  ;;  %v2293_v28 = vpop.f32.mrf.mxu1 }
 0x21c   : > { %v1912_v51 = vpop.f32.mrf.mxu0  ;;  %v4274_v5 = vpop.f32.mrf.mxu1 }
 0x21d   : > { %v4276_v4 = vmax.f32 %v2469_v39, %v1912_v51 }
 0x21e   : > { %v1914_v63 = vpop.f32.mrf.mxu0  ;;  %v2298_v59 = vpop.f32.mrf.mxu1 }
 0x220   : > { %v1915_v24 = vpop.f32.mrf.mxu0  ;;  %v4278_v1 = vpop.f32.mrf.mxu1 }
 0x221   : > { %v2428_v35 = vmax.f32 %v4132_v57, %v1915_v24 }
 0x222   : > { %v1917_v13 = vpop.f32.mrf.mxu0  ;;  %v2301_v43 = vpop.f32.mrf.mxu1 }
 0x223   : > { %v2449_v44 = vmax.f32 %v2428_v35, %v3656_v54 }
 0x224   : > { %v1920_v23 = vpop.f32.mrf.mxu0  ;;  %v4282_v46 = vpop.f32.mrf.mxu1 }
 0x225   : > { %v2470_v61 = vmax.f32 %v2449_v44, %v3824_v34  ;;  %v2429_v31 = vmax.f32 %v4140_v10, %v1920_v23 }
 0x226   : > { %v1922_v39 = vpop.f32.mrf.mxu0  ;;  %v2306_v28 = vpop.f32.mrf.mxu1 }
 0x227   : > { %v2450_v51 = vmax.f32 %v2429_v31, %v3662_v58  ;;  %v4288_v63 = vmax.f32 %v2470_v61, %v4032_v38  ;;  %v4532_v28 = vld [vmem:[#allocation7_spill] sm:$0xff] }
 0x228   : > { %v1923_v59 = vpop.f32.mrf.mxu0  ;;  %v4290_v57 = vpop.f32.mrf.mxu1 }
 0x229   : > { %v2471_v24 = vmax.f32 %v2450_v51, %v3835_v20  ;;  %v2430_v54 = vmax.f32 %v4148_v19, %v1923_v59  ;;  %v2512_v35 = vmax.f32 %v4288_v63, %v4200_v42 }
 0x22a   : > { %v1925_v34 = vpop.f32.mrf.mxu0  ;;  %v2309_v13 = vpop.f32.mrf.mxu1 }
 0x22b   : > { %v2451_v10 = vmax.f32 %v2430_v54, %v3670_v2  ;;  %v4298_v43 = vmax.f32 %v2471_v24, %v4041_v50  ;;  %v4533_v54 = vld [vmem:[#allocation2_spill] sm:$0xff] }
 0x22c   : > { %v1928_v58 = vpop.f32.mrf.mxu0  ;;  %v4300_v38 = vpop.f32.mrf.mxu1 }
 0x22d   : > { %v2472_v44 = vmax.f32 %v2451_v10, %v3844_v47  ;;  %v2431_v23 = vmax.f32 %v4156_v55, %v1928_v58  ;;  %v2513_v20 = vmax.f32 %v4298_v43, %v4207_v37  ;;  %v4534_v10 = vld [vmem:[#allocation8_spill] sm:$0xff] }
 0x22e   : > { %v1930_v19 = vpop.f32.mrf.mxu0  ;;  %v2314_v61 = vpop.f32.mrf.mxu1 }
 0x22f   : > { %v2452_v31 = vmax.f32 %v2431_v23, %v3676_v6  ;;  %v4308_v39 = vmax.f32 %v2472_v44, %v4050_v9  ;;  %v4535_v61 = vld [vmem:[#allocation3_spill] sm:$0xff] }
 0x230   : > { %v1931_v2 = vpop.f32.mrf.mxu0  ;;  %v4310_v50 = vpop.f32.mrf.mxu1 }
 0x231   : > { %v2473_v51 = vmax.f32 %v2452_v31, %v4532_v28  ;;  %v2432_v59 = vmax.f32 %v4164_v32, %v1931_v2  ;;  %v2514_v47 = vmax.f32 %v4308_v39, %v4214_v52 }
 0x232   : > { %v1933_v55 = vpop.f32.mrf.mxu0  ;;  %v2317_v24 = vpop.f32.mrf.mxu1 }
 0x233   : > { %v2453_v34 = vmax.f32 %v2432_v59, %v4533_v54  ;;  %v4318_v13 = vmax.f32 %v2473_v51, %v4058_v14  ;;  %v4536_v51 = vld [vmem:[#allocation9_spill] sm:$0xff] }
 0x234   : > { %v1936_v6 = vpop.f32.mrf.mxu0  ;;  %v4320_v9 = vpop.f32.mrf.mxu1 }
 0x235   : > { %v2474_v58 = vmax.f32 %v2453_v34, %v4534_v10  ;;  %v2433_v44 = vmax.f32 %v4172_v36, %v1936_v6  ;;  %v2515_v32 = vmax.f32 %v4318_v13, %v4221_v40  ;;  %v4537_v34 = vld [vmem:[#allocation4_spill] sm:$0xff] }
 0x236   : > { %v1938_v23 = vpop.f32.mrf.mxu0  ;;  %v2322_v19 = vpop.f32.mrf.mxu1 }
 0x237   : > { %v2454_v31 = vmax.f32 %v2433_v44, %v4535_v61  ;;  %v4328_v2 = vmax.f32 %v2474_v58, %v4066_v62  ;;  %v4538_v58 = vld [vmem:[#allocation10_spill] sm:$0xff] }
 0x238   : > { %v1939_v28 = vpop.f32.mrf.mxu0  ;;  %v4330_v14 = vpop.f32.mrf.mxu1 }
 0x239   : > { %v2475_v59 = vmax.f32 %v2454_v31, %v4536_v51  ;;  %v2434_v55 = vmax.f32 %v4180_v11, %v1939_v28  ;;  %v2516_v36 = vmax.f32 %v4328_v2, %v4228_v7  ;;  %v4539_v28 = vld [vmem:[#allocation5_spill] sm:$0xff] }
 0x23a   : > { %v1941_v24 = vpop.f32.mrf.mxu0  ;;  %v2325_v54 = vpop.f32.mrf.mxu1 }
 0x23b   : > { %v2455_v6 = vmax.f32 %v2434_v55, %v4537_v34  ;;  %v4338_v10 = vmax.f32 %v2475_v59, %v4073_v16  ;;  %v4540_v59 = vld [vmem:[#allocation11_spill] sm:$0xff] }
 0x23c   : > { %v1944_v44 = vpop.f32.mrf.mxu0  ;;  %v4340_v62 = vpop.f32.mrf.mxu1 }
 0x23d   : > { %v2476_v23 = vmax.f32 %v2455_v6, %v4538_v58  ;;  %v2435_v19 = vmax.f32 %v4188_v27, %v1944_v44  ;;  %v2517_v11 = vmax.f32 %v4338_v10, %v4235_v0  ;;  %v2500_v58 = vmax.f32 %v4205_v29, %v4263_v21 }
 0x23e   : > { %v1946_v61 = vpop.f32.mrf.mxu0  ;;  %v2330_v31 = vpop.f32.mrf.mxu1 }
 0x23f   : > { %v2456_v51 = vmax.f32 %v2435_v19, %v4539_v28  ;;  %v4348_v24 = vmax.f32 %v2476_v23, %v4080_v18  ;;  %v4541_v19 = vld [vmem:[#allocation6_spill] sm:$0xff]  ;;  %v4542_v28 = vld [vmem:[#allocation12_spill] sm:$0xff] }
 0x240   : > { %v1947_v55 = vpop.f32.mrf.mxu0  ;;  %v4350_v16 = vpop.f32.mrf.mxu1  ;;  %v4365_v31 = vld [vmem:[%s4498_s2] ss:$0 sm:$0xff] }
 0x241   : > { %v2477_v54 = vmax.f32 %v2456_v51, %v4540_v59  ;;  %v2436_v34 = vmax.f32 %v4196_v3, %v1947_v55  ;;  %v2518_v27 = vmax.f32 %v4348_v24, %v4242_v48 }
 0x242   : > { %v1949_v6 = vpop.f32.mrf.mxu0  ;;  %v2333_v44 = vpop.f32.mrf.mxu1 }
 0x243   : > { %v2457_v61 = vmax.f32 %v2436_v34, %v4541_v19  ;;  %v4360_v18 = vmax.f32 %v2477_v54, %v4087_v45  ;;  %v2501_v54 = vmax.f32 %v4212_v41, %v4270_v25 }
 0x244   : > { %v1952_v23 = vpop.f32.mrf.mxu0  ;;  %v2336_v3 = vpop.f32.mrf.mxu1 }
 0x245   : > { %v2478_v51 = vmax.f32 %v2457_v61, %v4542_v28  ;;  %v2521_v55 = vmax.f32 %v2500_v58, %v1952_v23  ;;  %v2533_v59 = vmax.f32 %v2512_v35, %v2336_v3  ;;  %v2519_v29 = vmax.f32 %v4360_v18, %v4249_v49 }
 0x246   : > { %v1954_v45 = vpop.f32.mrf.mxu0  ;;  %v2338_v21 = vpop.f32.mrf.mxu1  ;;  %v2502_v23 = vmax.f32 %v4219_v12, %v4274_v5 }
 0x247   : > { %v2549_v34 = vadd.f32 %v4365_v31, %v2521_v55  ;;  %v2561_v6 = vadd.f32 %v4365_v31, %v2533_v59  ;;  %v4379_v44 = vmax.f32 %v2478_v51, %v4094_v22  ;;  %v2503_v45 = vmax.f32 %v4226_v30, %v4278_v1 }
 0x248   : > { %v1955_v58 = vpop.f32.mrf.mxu0  ;;  %v2339_v19 = vpop.f32.mrf.mxu1  ;;  %v2504_v1 = vmax.f32 %v4233_v26, %v4282_v46  ;;  %v2505_v46 = vmax.f32 %v4240_v53, %v4290_v57  ;;  %v2506_v57 = vmax.f32 %v4247_v17, %v4300_v38  ;;  %v2507_v38 = vmax.f32 %v4254_v60, %v4310_v50 }
 0x249   : > { %v2570_v42 = vmax.f32 %v2549_v34, 0.0  ;;  %v2582_v63 = vmax.f32 %v2561_v6, 0.0  ;;  %v2522_v35 = vmax.f32 %v2501_v54, %v1955_v58  ;;  %v2534_v61 = vmax.f32 %v2513_v20, %v2339_v19 }
 0x24a   : > { %v1957_v22 = vpop.f32.mrf.mxu0  ;;  %v2341_v41 = vpop.f32.mrf.mxu1  ;;  %v2520_v25 = vmax.f32 %v4379_v44, %v4256_v33  ;;  %v2508_v50 = vmax.f32 %v4261_v8, %v4320_v9  ;;  %v2509_v9 = vmax.f32 %v4268_v15, %v4330_v14 }
 0x24b   : > { %v3079_v3 = vpack.c.bf16 %v2570_v42, %v2570_v42  ;;  %v3091_v28 = vpack.c.bf16 %v2582_v63, %v2582_v63  ;;  %v2550_v37 = vadd.f32 %v4365_v31, %v2522_v35  ;;  %v2562_v43 = vadd.f32 %v4365_v31, %v2534_v61 }
 0x24c   : > { %v1960_v12 = vpop.f32.mrf.mxu0  ;;  %v2344_v5 = vpop.f32.mrf.mxu1 }
 0x24d   : > { %2677 = vst.msk [vmem:[%s4389_s17] sm:$0xf] %vm2676_vm3, %v3079_v3  ;;  %2689 = vst.msk [vmem:[%s4389_s17 + $0x30] sm:$0xf] %vm2676_vm3, %v3091_v28  ;;  %v2571_v20 = vmax.f32 %v2550_v37, 0.0  ;;  %v2583_v51 = vmax.f32 %v2562_v43, 0.0  ;;  %v2523_v55 = vmax.f32 %v2502_v23, %v1960_v12  ;;  %v2535_v59 = vmax.f32 %v2514_v47, %v2344_v5 }
 0x24e   : > { %v1962_v21 = vpop.f32.mrf.mxu0  ;;  %v2346_v54 = vpop.f32.mrf.mxu1 }
 0x24f   : > { %v3080_v34 = vpack.c.bf16 %v2571_v20, %v2571_v20  ;;  %v3092_v6 = vpack.c.bf16 %v2583_v51, %v2583_v51  ;;  %v2551_v58 = vadd.f32 %v4365_v31, %v2523_v55  ;;  %v2563_v19 = vadd.f32 %v4365_v31, %v2535_v59 }
 0x250   : > { %v1963_v42 = vpop.f32.mrf.mxu0  ;;  %v2347_v63 = vpop.f32.mrf.mxu1 }
 0x251   : > { %2678 = vst.msk [vmem:[%s4389_s17 + $0x4] sm:$0xf] %vm2676_vm3, %v3080_v34  ;;  %2690 = vst.msk [vmem:[%s4389_s17 + $0x34] sm:$0xf] %vm2676_vm3, %v3092_v6  ;;  %v2572_v52 = vmax.f32 %v2551_v58, 0.0  ;;  %v2584_v39 = vmax.f32 %v2563_v19, 0.0  ;;  %v2524_v47 = vmax.f32 %v2503_v45, %v1963_v42  ;;  %v2536_v30 = vmax.f32 %v2515_v32, %v2347_v63 }
 0x252   : > { %v1965_v35 = vpop.f32.mrf.mxu0  ;;  %v2349_v61 = vpop.f32.mrf.mxu1 }
 0x253   : > { %v3081_v23 = vpack.c.bf16 %v2572_v52, %v2572_v52  ;;  %v3093_v22 = vpack.c.bf16 %v2584_v39, %v2584_v39  ;;  %v2552_v41 = vadd.f32 %v4365_v31, %v2524_v47  ;;  %v2564_v3 = vadd.f32 %v4365_v31, %v2536_v30 }
 0x254   : > { %v1968_v28 = vpop.f32.mrf.mxu0  ;;  %v2352_v37 = vpop.f32.mrf.mxu1 }
 0x255   : > { %2679 = vst.msk [vmem:[%s4389_s17 + $0x8] sm:$0xf] %vm2676_vm3, %v3081_v23  ;;  %2691 = vst.msk [vmem:[%s4389_s17 + $0x38] sm:$0xf] %vm2676_vm3, %v3093_v22  ;;  %v2573_v40 = vmax.f32 %v2552_v41, 0.0  ;;  %v2585_v13 = vmax.f32 %v2564_v3, 0.0  ;;  %v2525_v32 = vmax.f32 %v2504_v1, %v1968_v28  ;;  %v2537_v26 = vmax.f32 %v2516_v36, %v2352_v37 }
 0x256   : > { %v1970_v43 = vpop.f32.mrf.mxu0  ;;  %v2354_v12 = vpop.f32.mrf.mxu1 }
 0x257   : > { %v3082_v5 = vpack.c.bf16 %v2573_v40, %v2573_v40  ;;  %v3094_v20 = vpack.c.bf16 %v2585_v13, %v2585_v13  ;;  %v2553_v51 = vadd.f32 %v4365_v31, %v2525_v32  ;;  %v2565_v55 = vadd.f32 %v4365_v31, %v2537_v26 }
 0x258   : > { %v1971_v59 = vpop.f32.mrf.mxu0  ;;  %v2355_v45 = vpop.f32.mrf.mxu1 }
 0x259   : > { %2680 = vst.msk [vmem:[%s4389_s17 + $0xc] sm:$0xf] %vm2676_vm3, %v3082_v5  ;;  %2692 = vst.msk [vmem:[%s4389_s17 + $0x3c] sm:$0xf] %vm2676_vm3, %v3094_v20  ;;  %v2574_v7 = vmax.f32 %v2553_v51, 0.0  ;;  %v2586_v2 = vmax.f32 %v2565_v55, 0.0  ;;  %v2526_v36 = vmax.f32 %v2505_v46, %v1971_v59  ;;  %v2538_v53 = vmax.f32 %v2517_v11, %v2355_v45 }
 0x25a   : > { %v1973_v21 = vpop.f32.mrf.mxu0  ;;  %v2357_v54 = vpop.f32.mrf.mxu1  ;;  %v2510_v59 = vmax.f32 %v4272_v56, %v4340_v62 }
 0x25b   : > { %v3083_v34 = vpack.c.bf16 %v2574_v7, %v2574_v7  ;;  %v3095_v6 = vpack.c.bf16 %v2586_v2, %v2586_v2  ;;  %v2554_v58 = vadd.f32 %v4365_v31, %v2526_v36  ;;  %v2566_v19 = vadd.f32 %v4365_v31, %v2538_v53 }
 0x25c   : > { %v1976_v42 = vpop.f32.mrf.mxu0  ;;  %v2360_v63 = vpop.f32.mrf.mxu1  ;;  %v2511_v54 = vmax.f32 %v4276_v4, %v4350_v16 }
 0x25d   : > { %2681 = vst.msk [vmem:[%s4389_s17 + $0x10] sm:$0xf] %vm2676_vm3, %v3083_v34  ;;  %2693 = vst.msk [vmem:[%s4389_s17 + $0x40] sm:$0xf] %vm2676_vm3, %v3095_v6  ;;  %v2575_v0 = vmax.f32 %v2554_v58, 0.0  ;;  %v2587_v10 = vmax.f32 %v2566_v19, 0.0  ;;  %v2527_v11 = vmax.f32 %v2506_v57, %v1976_v42  ;;  %v2539_v17 = vmax.f32 %v2518_v27, %v2360_v63 }
 0x25e   : > { %v1978_v52 = vpop.f32.mrf.mxu0  ;;  %v2362_v39 = vpop.f32.mrf.mxu1 }
 0x25f   : > { %v3084_v47 = vpack.c.bf16 %v2575_v0, %v2575_v0  ;;  %v3096_v30 = vpack.c.bf16 %v2587_v10, %v2587_v10  ;;  %v2555_v1 = vadd.f32 %v4365_v31, %v2527_v11  ;;  %v2567_v35 = vadd.f32 %v4365_v31, %v2539_v17 }
 0x260   : > { %v1979_v61 = vpop.f32.mrf.mxu0  ;;  %v2363_v23 = vpop.f32.mrf.mxu1 }
 0x261   : > { %2682 = vst.msk [vmem:[%s4389_s17 + $0x14] sm:$0xf] %vm2676_vm3, %v3084_v47  ;;  %2694 = vst.msk [vmem:[%s4389_s17 + $0x44] sm:$0xf] %vm2676_vm3, %v3096_v30  ;;  %v2576_v48 = vmax.f32 %v2555_v1, 0.0  ;;  %v2588_v24 = vmax.f32 %v2567_v35, 0.0  ;;  %v2528_v27 = vmax.f32 %v2507_v38, %v1979_v61  ;;  %v2540_v60 = vmax.f32 %v2519_v29, %v2363_v23 }
 0x262   : > { %v1981_v22 = vpop.f32.mrf.mxu0  ;;  %v2365_v41 = vpop.f32.mrf.mxu1 }
 0x263   : > { %v3085_v3 = vpack.c.bf16 %v2576_v48, %v2576_v48  ;;  %v3097_v28 = vpack.c.bf16 %v2588_v24, %v2588_v24  ;;  %v2556_v37 = vadd.f32 %v4365_v31, %v2528_v27  ;;  %v2568_v40 = vadd.f32 %v4365_v31, %v2540_v60 }
 0x264   : > { %v1984_v13 = vpop.f32.mrf.mxu0  ;;  %v2368_v32 = vpop.f32.mrf.mxu1 }
 0x265   : > { %2683 = vst.msk [vmem:[%s4389_s17 + $0x18] sm:$0xf] %vm2676_vm3, %v3085_v3  ;;  %2695 = vst.msk [vmem:[%s4389_s17 + $0x48] sm:$0xf] %vm2676_vm3, %v3097_v28  ;;  %v2577_v49 = vmax.f32 %v2556_v37, 0.0  ;;  %v2589_v18 = vmax.f32 %v2568_v40, 0.0  ;;  %v2529_v29 = vmax.f32 %v2508_v50, %v1984_v13  ;;  %v2541_v8 = vmax.f32 %v2520_v25, %v2368_v32 }
 0x266   : > { %v1986_v26 = vpop.f32.mrf.mxu0  ;;  %v2370_v46 = vpop.f32.mrf.mxu1 }
 0x267   : > { %v3086_v43 = vpack.c.bf16 %v2577_v49, %v2577_v49  ;;  %v3098_v12 = vpack.c.bf16 %v2589_v18, %v2589_v18  ;;  %v2557_v5 = vadd.f32 %v4365_v31, %v2529_v29  ;;  %v2569_v20 = vadd.f32 %v4365_v31, %v2541_v8 }
 0x268   : > { %v1987_v51 = vpop.f32.mrf.mxu0  ;;  %v2371_v55 = vpop.f32.mrf.mxu1 }
 0x269   : > { %2684 = vst.msk [vmem:[%s4389_s17 + $0x1c] sm:$0xf] %vm2676_vm3, %v3086_v43  ;;  %2696 = vst.msk [vmem:[%s4389_s17 + $0x4c] sm:$0xf] %vm2676_vm3, %v3098_v12  ;;  %v2578_v33 = vmax.f32 %v2557_v5, 0.0  ;;  %v2590_v44 = vmax.f32 %v2569_v20, 0.0  ;;  %v2530_v25 = vmax.f32 %v2509_v9, %v1987_v51 }
 0x26a   : > { %v1989_v15 = vpop.f32.mrf.mxu0  ;;  %v2372_v14 = vpop.f32.mrf.mxu1 }
 0x26b   : > { %v3087_v45 = vpack.c.bf16 %v2578_v33, %v2578_v33  ;;  %v3099_v7 = vpack.c.bf16 %v2590_v44, %v2590_v44  ;;  %v2558_v2 = vadd.f32 %v4365_v31, %v2530_v25 }
 0x26c   : > { %v1992_v36 = vpop.f32.mrf.mxu0 }
 0x26d   : > { %2685 = vst.msk [vmem:[%s4389_s17 + $0x20] sm:$0xf] %vm2676_vm3, %v3087_v45  ;;  %2697 = vst.msk [vmem:[%s4389_s17 + $0x50] sm:$0xf] %vm2676_vm3, %v3099_v7  ;;  %v2579_v53 = vmax.f32 %v2558_v2, 0.0  ;;  %v2531_v57 = vmax.f32 %v2510_v59, %v1992_v36 }
 0x26e   : > { %v1994_v21 = vpop.f32.mrf.mxu0 }
 0x26f   : > { %v3088_v34 = vpack.c.bf16 %v2579_v53, %v2579_v53  ;;  %v2559_v56 = vadd.f32 %v4365_v31, %v2531_v57 }
 0x270   : > { %v1995_v62 = vpop.f32.mrf.mxu0 }
 0x271   : > { %2686 = vst.msk [vmem:[%s4389_s17 + $0x24] sm:$0xf] %vm2676_vm3, %v3088_v34  ;;  %v2580_v6 = vmax.f32 %v2559_v56, 0.0  ;;  %v2532_v58 = vmax.f32 %v2511_v54, %v1995_v62 }
 0x272   : > { %v1997_v19 = vpop.f32.mrf.mxu0 }
 0x273   : > { %v3089_v42 = vpack.c.bf16 %v2580_v6, %v2580_v6  ;;  %v2560_v63 = vadd.f32 %v4365_v31, %v2532_v58 }
 0x275   : > { %2687 = vst.msk [vmem:[%s4389_s17 + $0x28] sm:$0xf] %vm2676_vm3, %v3089_v42  ;;  %v2581_v0 = vmax.f32 %v2560_v63, 0.0 }
 0x277   : > { %v3090_v10 = vpack.c.bf16 %v2581_v0, %v2581_v0 }
 0x279   : > { %2688 = vst.msk [vmem:[%s4389_s17 + $0x2c] sm:$0xf] %vm2676_vm3, %v3090_v10 }
 0x27a PF: > { %s13_s12 = sadd.s32 1, %s3432_s12  }
 0x27b   : > { %p10_p4 = scmp.ge.s32.totalorder %s13_s12, 4  }
 0x27d   :  { %12 = sbr.rel (!%p10_p4) target bundleno = 1 (0x1), region = 62 }

// kernel: pretrained_resnet_forward.4
= control target key start
LH: loop header
LB: loop body
LE: loop exit
PB: predicated region body
PF: predicated region fallthrough
CT: control target
= control target key end

     0   :  { %s6079_s15 = smov 0   ;;  %s6081_s16 = smov 0   ;;  %s8668_s0 = inlined_call_operand.vmem [shape: bf16[2,10752], index: 0, kind: input, shape index: {}]   ;;  %s8669_s1 = inlined_call_operand.vmem [shape: s8[10752,1024], index: 1, kind: input, shape index: {}]   ;;  %s8670_s2 = inlined_call_operand.vmem [shape: f32[1,1024], index: 2, kind: input, shape index: {}]   ;;  %s8671_s3 = inlined_call_operand.vmem [shape: f32[1,1024], index: 3, kind: input, shape index: {}]   ;;  %s8672_s4 = inlined_call_operand.vmem [shape: f32[2,1024], index: 4, kind: output, shape index: {}]  }
   0x1   :  { %s6083_s17 = smov 0   ;;  %s6085_s18 = smov 0  }
   0x2   :  { %s6087_s19 = smov 0   ;;  %s6089_s20 = smov 0  }
   0x3   :  { %s6091_s21 = smov 0  }
   0x4 LB: > { %s23_s22 = sadd.s32 1, %s6041_s19  ;;  %s26_s23 = sadd.s32 1, %s6045_s20  ;;  %s6049_s21 = sphi %s6091_s21, %s14_s21   ;;  %s6045_s20 = sphi %s6089_s20, %s8689_s20   ;;  %s6041_s19 = sphi %s6087_s19, %s8688_s19   ;;  %s6037_s18 = sphi %s6085_s18, %s8687_s18   ;;  %s6033_s17 = sphi %s6083_s17, %s8686_s17   ;;  %s6029_s16 = sphi %s6081_s16, %s8685_s16   ;;  %s6025_s15 = sphi %s6079_s15, %s8684_s15  }
   0x5   : > { %p24_p0 = scmp.ge.s32.totalorder %s23_s22, 2  ;;  %p68_p1 = scmp.ne.s32.totalorder %s6029_s16, %s6025_s15 }
   0x6   : > { %p69_p2 = scmp.eq.s32.totalorder %s6049_s21, 0  ;;  %s61_s27 = sadd.s32 1, %s6029_s16 }
   0x7   : > { %s8691_s22 = smov (%p24_p0, %s23_s22), 0  ;;  %s8693_s23 = smov (!%p24_p0, %s26_s23), %s6045_s20 }
   0x8   : > { %p70_p3 = por %p69_p2, %p68_p1  ;;  %p28_p4 = scmp.ge.s32.totalorder %s8693_s23, 2 }
   0x9   : > { %s56_s24 = ssub.s32 %s6041_s19, %s8691_s22  ;;  %p5914_p6 = scmp.ge.s32.totalorder %s6049_s21, 4 }
   0xa   : > { %s8695_s23 = smov (%p28_p4, %s8693_s23), 0 }
   0xb   : > { %s57_s25 = ssub.s32 %s6045_s20, %s8695_s23  ;;  %172 = sbr.rel (%p5914_p6) target bundleno = 360 (0x168), region = 16 }
   0xc   : > { %s58_s26 = sor.u32 %s57_s25, %s56_s24 }
   0xd   : > { %p59_p5 = scmp.eq.s32.totalorder %s58_s26, 0 }
   0xf   : > { %s6130_s28 = scalar_select %p59_p5, %s6029_s16, %s61_s27  }
  0x10   : > { %183 = sbr.rel (!%p70_p3) target bundleno = 360 (0x168), region = 24  ;;  %s185_s29 = sand.u32 (%p70_p3), 1, %s6029_s16  }
  0x11   : > { %s5929_s30 = smul.u32 (%p70_p3), 5376, %s185_s29  ;;  %s5915_s5 = sshll.u32 (%p70_p3), %s6045_s20, 2 }
  0x12   : > { %s5928_s6 = smul.u32 (%p70_p3), 1344, %s6041_s19 }
  0x13   : > { %s6144_s12 = scalar_lea.vmem (%p70_p3), [#allocation3], %s5929_s30 }
  0x14   : > { %s191_s7 = sadd.s32 (%p70_p3), %s5928_s6, %s5915_s5 }
  0x15   : > { %s5917_s8 = sshll.u32 %s191_s7, 3 }
  0x16   : > { %s6139_s11 = scalar_lea.vmem %s8669_s1, %s5917_s8 }
  0x17   : > { %v206_v0 = vld [vmem:[%s6139_s11] sm:$0xff]  ;;  %v208_v1 = vld [vmem:[%s6139_s11 + $0x8] sm:$0xff]  ;;  %v210_v2 = vld [vmem:[%s6139_s11 + $0x10] sm:$0xff] }
  0x18   : > { %207 = vst [vmem:[%s6144_s12] sm:$0xff] %v206_v0  ;;  %209 = vst [vmem:[%s6144_s12 + $0x8] sm:$0xff] %v208_v1  ;;  %v212_v3 = vld [vmem:[%s6139_s11 + $0x18] sm:$0xff]  ;;  %v214_v4 = vld [vmem:[%s6139_s11 + $0x40] sm:$0xff] }
  0x19   : > { %211 = vst [vmem:[%s6144_s12 + $0x10] sm:$0xff] %v210_v2  ;;  %v216_v5 = vld [vmem:[%s6139_s11 + $0x48] sm:$0xff]  ;;  %213 = vst [vmem:[%s6144_s12 + $0x18] sm:$0xff] %v212_v3  ;;  %v218_v6 = vld [vmem:[%s6139_s11 + $0x50] sm:$0xff] }
  0x1a   : > { %215 = vst [vmem:[%s6144_s12 + $0x20] sm:$0xff] %v214_v4  ;;  %217 = vst [vmem:[%s6144_s12 + $0x28] sm:$0xff] %v216_v5  ;;  %v220_v7 = vld [vmem:[%s6139_s11 + $0x58] sm:$0xff]  ;;  %v222_v8 = vld [vmem:[%s6139_s11 + $0x80] sm:$0xff] }
  0x1b   : > { %219 = vst [vmem:[%s6144_s12 + $0x30] sm:$0xff] %v218_v6  ;;  %221 = vst [vmem:[%s6144_s12 + $0x38] sm:$0xff] %v220_v7  ;;  %v224_v9 = vld [vmem:[%s6139_s11 + $0x88] sm:$0xff]  ;;  %v226_v10 = vld [vmem:[%s6139_s11 + $0x90] sm:$0xff] }
  0x1c   : > { %223 = vst [vmem:[%s6144_s12 + $0x40] sm:$0xff] %v222_v8  ;;  %v228_v11 = vld [vmem:[%s6139_s11 + $0x98] sm:$0xff]  ;;  %225 = vst [vmem:[%s6144_s12 + $0x48] sm:$0xff] %v224_v9  ;;  %v230_v12 = vld [vmem:[%s6139_s11 + $0xc0] sm:$0xff] }
  0x1d   : > { %227 = vst [vmem:[%s6144_s12 + $0x50] sm:$0xff] %v226_v10  ;;  %229 = vst [vmem:[%s6144_s12 + $0x58] sm:$0xff] %v228_v11  ;;  %v232_v13 = vld [vmem:[%s6139_s11 + $0xc8] sm:$0xff]  ;;  %v234_v14 = vld [vmem:[%s6139_s11 + $0xd0] sm:$0xff] }
  0x1e   : > { %231 = vst [vmem:[%s6144_s12 + $0x60] sm:$0xff] %v230_v12  ;;  %233 = vst [vmem:[%s6144_s12 + $0x68] sm:$0xff] %v232_v13  ;;  %v236_v15 = vld [vmem:[%s6139_s11 + $0xd8] sm:$0xff]  ;;  %v238_v16 = vld [vmem:[%s6139_s11 + $0x100] sm:$0xff] }
  0x1f   : > { %235 = vst [vmem:[%s6144_s12 + $0x70] sm:$0xff] %v234_v14  ;;  %v240_v17 = vld [vmem:[%s6139_s11 + $0x108] sm:$0xff]  ;;  %237 = vst [vmem:[%s6144_s12 + $0x78] sm:$0xff] %v236_v15  ;;  %v242_v18 = vld [vmem:[%s6139_s11 + $0x110] sm:$0xff] }
  0x20   : > { %239 = vst [vmem:[%s6144_s12 + $0x80] sm:$0xff] %v238_v16  ;;  %241 = vst [vmem:[%s6144_s12 + $0x88] sm:$0xff] %v240_v17  ;;  %v244_v19 = vld [vmem:[%s6139_s11 + $0x118] sm:$0xff]  ;;  %v246_v20 = vld [vmem:[%s6139_s11 + $0x140] sm:$0xff] }
  0x21   : > { %243 = vst [vmem:[%s6144_s12 + $0x90] sm:$0xff] %v242_v18  ;;  %245 = vst [vmem:[%s6144_s12 + $0x98] sm:$0xff] %v244_v19  ;;  %v248_v21 = vld [vmem:[%s6139_s11 + $0x148] sm:$0xff]  ;;  %v250_v22 = vld [vmem:[%s6139_s11 + $0x150] sm:$0xff] }
  0x22   : > { %247 = vst [vmem:[%s6144_s12 + $0xa0] sm:$0xff] %v246_v20  ;;  %v252_v23 = vld [vmem:[%s6139_s11 + $0x158] sm:$0xff]  ;;  %249 = vst [vmem:[%s6144_s12 + $0xa8] sm:$0xff] %v248_v21  ;;  %v254_v24 = vld [vmem:[%s6139_s11 + $0x180] sm:$0xff] }
  0x23   : > { %251 = vst [vmem:[%s6144_s12 + $0xb0] sm:$0xff] %v250_v22  ;;  %253 = vst [vmem:[%s6144_s12 + $0xb8] sm:$0xff] %v252_v23  ;;  %v256_v25 = vld [vmem:[%s6139_s11 + $0x188] sm:$0xff]  ;;  %v258_v26 = vld [vmem:[%s6139_s11 + $0x190] sm:$0xff] }
  0x24   : > { %255 = vst [vmem:[%s6144_s12 + $0xc0] sm:$0xff] %v254_v24  ;;  %257 = vst [vmem:[%s6144_s12 + $0xc8] sm:$0xff] %v256_v25  ;;  %v260_v27 = vld [vmem:[%s6139_s11 + $0x198] sm:$0xff]  ;;  %v262_v28 = vld [vmem:[%s6139_s11 + $0x1c0] sm:$0xff] }
  0x25   : > { %259 = vst [vmem:[%s6144_s12 + $0xd0] sm:$0xff] %v258_v26  ;;  %v264_v29 = vld [vmem:[%s6139_s11 + $0x1c8] sm:$0xff]  ;;  %261 = vst [vmem:[%s6144_s12 + $0xd8] sm:$0xff] %v260_v27  ;;  %v266_v30 = vld [vmem:[%s6139_s11 + $0x1d0] sm:$0xff] }
  0x26   : > { %263 = vst [vmem:[%s6144_s12 + $0xe0] sm:$0xff] %v262_v28  ;;  %265 = vst [vmem:[%s6144_s12 + $0xe8] sm:$0xff] %v264_v29  ;;  %v268_v31 = vld [vmem:[%s6139_s11 + $0x1d8] sm:$0xff]  ;;  %v270_v32 = vld [vmem:[%s6139_s11 + $0x200] sm:$0xff] }
  0x27   : > { %267 = vst [vmem:[%s6144_s12 + $0xf0] sm:$0xff] %v266_v30  ;;  %269 = vst [vmem:[%s6144_s12 + $0xf8] sm:$0xff] %v268_v31  ;;  %v272_v33 = vld [vmem:[%s6139_s11 + $0x208] sm:$0xff]  ;;  %v274_v34 = vld [vmem:[%s6139_s11 + $0x210] sm:$0xff] }
  0x28   : > { %271 = vst [vmem:[%s6144_s12 + $0x100] sm:$0xff] %v270_v32  ;;  %v276_v35 = vld [vmem:[%s6139_s11 + $0x218] sm:$0xff]  ;;  %273 = vst [vmem:[%s6144_s12 + $0x108] sm:$0xff] %v272_v33  ;;  %v278_v36 = vld [vmem:[%s6139_s11 + $0x240] sm:$0xff] }
  0x29   : > { %275 = vst [vmem:[%s6144_s12 + $0x110] sm:$0xff] %v274_v34  ;;  %277 = vst [vmem:[%s6144_s12 + $0x118] sm:$0xff] %v276_v35  ;;  %v280_v37 = vld [vmem:[%s6139_s11 + $0x248] sm:$0xff]  ;;  %v282_v38 = vld [vmem:[%s6139_s11 + $0x250] sm:$0xff] }
  0x2a   : > { %279 = vst [vmem:[%s6144_s12 + $0x120] sm:$0xff] %v278_v36  ;;  %281 = vst [vmem:[%s6144_s12 + $0x128] sm:$0xff] %v280_v37  ;;  %v284_v39 = vld [vmem:[%s6139_s11 + $0x258] sm:$0xff]  ;;  %v286_v40 = vld [vmem:[%s6139_s11 + $0x280] sm:$0xff] }
  0x2b   : > { %283 = vst [vmem:[%s6144_s12 + $0x130] sm:$0xff] %v282_v38  ;;  %v288_v41 = vld [vmem:[%s6139_s11 + $0x288] sm:$0xff]  ;;  %285 = vst [vmem:[%s6144_s12 + $0x138] sm:$0xff] %v284_v39  ;;  %v290_v42 = vld [vmem:[%s6139_s11 + $0x290] sm:$0xff] }
  0x2c   : > { %287 = vst [vmem:[%s6144_s12 + $0x140] sm:$0xff] %v286_v40  ;;  %289 = vst [vmem:[%s6144_s12 + $0x148] sm:$0xff] %v288_v41  ;;  %v292_v43 = vld [vmem:[%s6139_s11 + $0x298] sm:$0xff]  ;;  %v294_v44 = vld [vmem:[%s6139_s11 + $0x2c0] sm:$0xff] }
  0x2d   : > { %291 = vst [vmem:[%s6144_s12 + $0x150] sm:$0xff] %v290_v42  ;;  %293 = vst [vmem:[%s6144_s12 + $0x158] sm:$0xff] %v292_v43  ;;  %v296_v45 = vld [vmem:[%s6139_s11 + $0x2c8] sm:$0xff]  ;;  %v298_v46 = vld [vmem:[%s6139_s11 + $0x2d0] sm:$0xff] }
  0x2e   : > { %295 = vst [vmem:[%s6144_s12 + $0x160] sm:$0xff] %v294_v44  ;;  %v300_v47 = vld [vmem:[%s6139_s11 + $0x2d8] sm:$0xff]  ;;  %297 = vst [vmem:[%s6144_s12 + $0x168] sm:$0xff] %v296_v45  ;;  %v302_v48 = vld [vmem:[%s6139_s11 + $0x300] sm:$0xff] }
  0x2f   : > { %299 = vst [vmem:[%s6144_s12 + $0x170] sm:$0xff] %v298_v46  ;;  %301 = vst [vmem:[%s6144_s12 + $0x178] sm:$0xff] %v300_v47  ;;  %v304_v49 = vld [vmem:[%s6139_s11 + $0x308] sm:$0xff]  ;;  %v306_v50 = vld [vmem:[%s6139_s11 + $0x310] sm:$0xff] }
  0x30   : > { %303 = vst [vmem:[%s6144_s12 + $0x180] sm:$0xff] %v302_v48  ;;  %305 = vst [vmem:[%s6144_s12 + $0x188] sm:$0xff] %v304_v49  ;;  %v308_v51 = vld [vmem:[%s6139_s11 + $0x318] sm:$0xff]  ;;  %v310_v52 = vld [vmem:[%s6139_s11 + $0x340] sm:$0xff] }
  0x31   : > { %307 = vst [vmem:[%s6144_s12 + $0x190] sm:$0xff] %v306_v50  ;;  %v312_v53 = vld [vmem:[%s6139_s11 + $0x348] sm:$0xff]  ;;  %309 = vst [vmem:[%s6144_s12 + $0x198] sm:$0xff] %v308_v51  ;;  %v314_v54 = vld [vmem:[%s6139_s11 + $0x350] sm:$0xff] }
  0x32   : > { %311 = vst [vmem:[%s6144_s12 + $0x1a0] sm:$0xff] %v310_v52  ;;  %313 = vst [vmem:[%s6144_s12 + $0x1a8] sm:$0xff] %v312_v53  ;;  %v316_v55 = vld [vmem:[%s6139_s11 + $0x358] sm:$0xff]  ;;  %v318_v56 = vld [vmem:[%s6139_s11 + $0x380] sm:$0xff] }
  0x33   : > { %315 = vst [vmem:[%s6144_s12 + $0x1b0] sm:$0xff] %v314_v54  ;;  %317 = vst [vmem:[%s6144_s12 + $0x1b8] sm:$0xff] %v316_v55  ;;  %v320_v57 = vld [vmem:[%s6139_s11 + $0x388] sm:$0xff]  ;;  %v322_v58 = vld [vmem:[%s6139_s11 + $0x390] sm:$0xff] }
  0x34   : > { %319 = vst [vmem:[%s6144_s12 + $0x1c0] sm:$0xff] %v318_v56  ;;  %v324_v59 = vld [vmem:[%s6139_s11 + $0x398] sm:$0xff]  ;;  %321 = vst [vmem:[%s6144_s12 + $0x1c8] sm:$0xff] %v320_v57  ;;  %v326_v60 = vld [vmem:[%s6139_s11 + $0x3c0] sm:$0xff] }
  0x35   : > { %323 = vst [vmem:[%s6144_s12 + $0x1d0] sm:$0xff] %v322_v58  ;;  %325 = vst [vmem:[%s6144_s12 + $0x1d8] sm:$0xff] %v324_v59  ;;  %v328_v61 = vld [vmem:[%s6139_s11 + $0x3c8] sm:$0xff]  ;;  %v330_v62 = vld [vmem:[%s6139_s11 + $0x3d0] sm:$0xff] }
  0x36   : > { %327 = vst [vmem:[%s6144_s12 + $0x1e0] sm:$0xff] %v326_v60  ;;  %329 = vst [vmem:[%s6144_s12 + $0x1e8] sm:$0xff] %v328_v61  ;;  %v332_v63 = vld [vmem:[%s6139_s11 + $0x3d8] sm:$0xff]  ;;  %v334_v0 = vld [vmem:[%s6139_s11 + $0x400] sm:$0xff] }
  0x37   : > { %331 = vst [vmem:[%s6144_s12 + $0x1f0] sm:$0xff] %v330_v62  ;;  %v336_v1 = vld [vmem:[%s6139_s11 + $0x408] sm:$0xff]  ;;  %333 = vst [vmem:[%s6144_s12 + $0x1f8] sm:$0xff] %v332_v63  ;;  %v338_v2 = vld [vmem:[%s6139_s11 + $0x410] sm:$0xff] }
  0x38   : > { %335 = vst [vmem:[%s6144_s12 + $0x200] sm:$0xff] %v334_v0  ;;  %337 = vst [vmem:[%s6144_s12 + $0x208] sm:$0xff] %v336_v1  ;;  %v340_v3 = vld [vmem:[%s6139_s11 + $0x418] sm:$0xff]  ;;  %v342_v4 = vld [vmem:[%s6139_s11 + $0x440] sm:$0xff] }
  0x39   : > { %339 = vst [vmem:[%s6144_s12 + $0x210] sm:$0xff] %v338_v2  ;;  %341 = vst [vmem:[%s6144_s12 + $0x218] sm:$0xff] %v340_v3  ;;  %v344_v5 = vld [vmem:[%s6139_s11 + $0x448] sm:$0xff]  ;;  %v346_v6 = vld [vmem:[%s6139_s11 + $0x450] sm:$0xff] }
  0x3a   : > { %343 = vst [vmem:[%s6144_s12 + $0x220] sm:$0xff] %v342_v4  ;;  %v348_v7 = vld [vmem:[%s6139_s11 + $0x458] sm:$0xff]  ;;  %345 = vst [vmem:[%s6144_s12 + $0x228] sm:$0xff] %v344_v5  ;;  %v350_v8 = vld [vmem:[%s6139_s11 + $0x480] sm:$0xff] }
  0x3b   : > { %347 = vst [vmem:[%s6144_s12 + $0x230] sm:$0xff] %v346_v6  ;;  %349 = vst [vmem:[%s6144_s12 + $0x238] sm:$0xff] %v348_v7  ;;  %v352_v9 = vld [vmem:[%s6139_s11 + $0x488] sm:$0xff]  ;;  %v354_v10 = vld [vmem:[%s6139_s11 + $0x490] sm:$0xff] }
  0x3c   : > { %351 = vst [vmem:[%s6144_s12 + $0x240] sm:$0xff] %v350_v8  ;;  %353 = vst [vmem:[%s6144_s12 + $0x248] sm:$0xff] %v352_v9  ;;  %v356_v11 = vld [vmem:[%s6139_s11 + $0x498] sm:$0xff]  ;;  %v358_v12 = vld [vmem:[%s6139_s11 + $0x4c0] sm:$0xff] }
  0x3d   : > { %355 = vst [vmem:[%s6144_s12 + $0x250] sm:$0xff] %v354_v10  ;;  %v360_v13 = vld [vmem:[%s6139_s11 + $0x4c8] sm:$0xff]  ;;  %357 = vst [vmem:[%s6144_s12 + $0x258] sm:$0xff] %v356_v11  ;;  %v362_v14 = vld [vmem:[%s6139_s11 + $0x4d0] sm:$0xff] }
  0x3e   : > { %359 = vst [vmem:[%s6144_s12 + $0x260] sm:$0xff] %v358_v12  ;;  %361 = vst [vmem:[%s6144_s12 + $0x268] sm:$0xff] %v360_v13  ;;  %v364_v15 = vld [vmem:[%s6139_s11 + $0x4d8] sm:$0xff]  ;;  %v366_v16 = vld [vmem:[%s6139_s11 + $0x500] sm:$0xff] }
  0x3f   : > { %363 = vst [vmem:[%s6144_s12 + $0x270] sm:$0xff] %v362_v14  ;;  %365 = vst [vmem:[%s6144_s12 + $0x278] sm:$0xff] %v364_v15  ;;  %v368_v17 = vld [vmem:[%s6139_s11 + $0x508] sm:$0xff]  ;;  %v370_v18 = vld [vmem:[%s6139_s11 + $0x510] sm:$0xff] }
  0x40   : > { %367 = vst [vmem:[%s6144_s12 + $0x280] sm:$0xff] %v366_v16  ;;  %v372_v19 = vld [vmem:[%s6139_s11 + $0x518] sm:$0xff]  ;;  %369 = vst [vmem:[%s6144_s12 + $0x288] sm:$0xff] %v368_v17  ;;  %v374_v20 = vld [vmem:[%s6139_s11 + $0x540] sm:$0xff] }
  0x41   : > { %371 = vst [vmem:[%s6144_s12 + $0x290] sm:$0xff] %v370_v18  ;;  %373 = vst [vmem:[%s6144_s12 + $0x298] sm:$0xff] %v372_v19  ;;  %v376_v21 = vld [vmem:[%s6139_s11 + $0x548] sm:$0xff]  ;;  %v378_v22 = vld [vmem:[%s6139_s11 + $0x550] sm:$0xff] }
  0x42   : > { %375 = vst [vmem:[%s6144_s12 + $0x2a0] sm:$0xff] %v374_v20  ;;  %377 = vst [vmem:[%s6144_s12 + $0x2a8] sm:$0xff] %v376_v21  ;;  %v380_v23 = vld [vmem:[%s6139_s11 + $0x558] sm:$0xff]  ;;  %v382_v24 = vld [vmem:[%s6139_s11 + $0x580] sm:$0xff] }
  0x43   : > { %379 = vst [vmem:[%s6144_s12 + $0x2b0] sm:$0xff] %v378_v22  ;;  %v384_v25 = vld [vmem:[%s6139_s11 + $0x588] sm:$0xff]  ;;  %381 = vst [vmem:[%s6144_s12 + $0x2b8] sm:$0xff] %v380_v23  ;;  %v386_v26 = vld [vmem:[%s6139_s11 + $0x590] sm:$0xff] }
  0x44   : > { %383 = vst [vmem:[%s6144_s12 + $0x2c0] sm:$0xff] %v382_v24  ;;  %385 = vst [vmem:[%s6144_s12 + $0x2c8] sm:$0xff] %v384_v25  ;;  %v388_v27 = vld [vmem:[%s6139_s11 + $0x598] sm:$0xff]  ;;  %v390_v28 = vld [vmem:[%s6139_s11 + $0x5c0] sm:$0xff] }
  0x45   : > { %387 = vst [vmem:[%s6144_s12 + $0x2d0] sm:$0xff] %v386_v26  ;;  %389 = vst [vmem:[%s6144_s12 + $0x2d8] sm:$0xff] %v388_v27  ;;  %v392_v29 = vld [vmem:[%s6139_s11 + $0x5c8] sm:$0xff]  ;;  %v394_v30 = vld [vmem:[%s6139_s11 + $0x5d0] sm:$0xff] }
  0x46   : > { %391 = vst [vmem:[%s6144_s12 + $0x2e0] sm:$0xff] %v390_v28  ;;  %v396_v31 = vld [vmem:[%s6139_s11 + $0x5d8] sm:$0xff]  ;;  %393 = vst [vmem:[%s6144_s12 + $0x2e8] sm:$0xff] %v392_v29  ;;  %v398_v32 = vld [vmem:[%s6139_s11 + $0x600] sm:$0xff] }
  0x47   : > { %395 = vst [vmem:[%s6144_s12 + $0x2f0] sm:$0xff] %v394_v30  ;;  %397 = vst [vmem:[%s6144_s12 + $0x2f8] sm:$0xff] %v396_v31  ;;  %v400_v33 = vld [vmem:[%s6139_s11 + $0x608] sm:$0xff]  ;;  %v402_v34 = vld [vmem:[%s6139_s11 + $0x610] sm:$0xff] }
  0x48   : > { %399 = vst [vmem:[%s6144_s12 + $0x300] sm:$0xff] %v398_v32  ;;  %401 = vst [vmem:[%s6144_s12 + $0x308] sm:$0xff] %v400_v33  ;;  %v404_v35 = vld [vmem:[%s6139_s11 + $0x618] sm:$0xff]  ;;  %v406_v36 = vld [vmem:[%s6139_s11 + $0x640] sm:$0xff] }
  0x49   : > { %403 = vst [vmem:[%s6144_s12 + $0x310] sm:$0xff] %v402_v34  ;;  %v408_v37 = vld [vmem:[%s6139_s11 + $0x648] sm:$0xff]  ;;  %405 = vst [vmem:[%s6144_s12 + $0x318] sm:$0xff] %v404_v35  ;;  %v410_v38 = vld [vmem:[%s6139_s11 + $0x650] sm:$0xff] }
  0x4a   : > { %407 = vst [vmem:[%s6144_s12 + $0x320] sm:$0xff] %v406_v36  ;;  %409 = vst [vmem:[%s6144_s12 + $0x328] sm:$0xff] %v408_v37  ;;  %v412_v39 = vld [vmem:[%s6139_s11 + $0x658] sm:$0xff]  ;;  %v414_v40 = vld [vmem:[%s6139_s11 + $0x680] sm:$0xff] }
  0x4b   : > { %411 = vst [vmem:[%s6144_s12 + $0x330] sm:$0xff] %v410_v38  ;;  %413 = vst [vmem:[%s6144_s12 + $0x338] sm:$0xff] %v412_v39  ;;  %v416_v41 = vld [vmem:[%s6139_s11 + $0x688] sm:$0xff]  ;;  %v418_v42 = vld [vmem:[%s6139_s11 + $0x690] sm:$0xff] }
  0x4c   : > { %415 = vst [vmem:[%s6144_s12 + $0x340] sm:$0xff] %v414_v40  ;;  %v420_v43 = vld [vmem:[%s6139_s11 + $0x698] sm:$0xff]  ;;  %417 = vst [vmem:[%s6144_s12 + $0x348] sm:$0xff] %v416_v41  ;;  %v422_v44 = vld [vmem:[%s6139_s11 + $0x6c0] sm:$0xff] }
  0x4d   : > { %419 = vst [vmem:[%s6144_s12 + $0x350] sm:$0xff] %v418_v42  ;;  %421 = vst [vmem:[%s6144_s12 + $0x358] sm:$0xff] %v420_v43  ;;  %v424_v45 = vld [vmem:[%s6139_s11 + $0x6c8] sm:$0xff]  ;;  %v426_v46 = vld [vmem:[%s6139_s11 + $0x6d0] sm:$0xff] }
  0x4e   : > { %423 = vst [vmem:[%s6144_s12 + $0x360] sm:$0xff] %v422_v44  ;;  %425 = vst [vmem:[%s6144_s12 + $0x368] sm:$0xff] %v424_v45  ;;  %v428_v47 = vld [vmem:[%s6139_s11 + $0x6d8] sm:$0xff]  ;;  %v430_v48 = vld [vmem:[%s6139_s11 + $0x700] sm:$0xff] }
  0x4f   : > { %427 = vst [vmem:[%s6144_s12 + $0x370] sm:$0xff] %v426_v46  ;;  %v432_v49 = vld [vmem:[%s6139_s11 + $0x708] sm:$0xff]  ;;  %429 = vst [vmem:[%s6144_s12 + $0x378] sm:$0xff] %v428_v47  ;;  %v434_v50 = vld [vmem:[%s6139_s11 + $0x710] sm:$0xff] }
  0x50   : > { %431 = vst [vmem:[%s6144_s12 + $0x380] sm:$0xff] %v430_v48  ;;  %433 = vst [vmem:[%s6144_s12 + $0x388] sm:$0xff] %v432_v49  ;;  %v436_v51 = vld [vmem:[%s6139_s11 + $0x718] sm:$0xff]  ;;  %v438_v52 = vld [vmem:[%s6139_s11 + $0x740] sm:$0xff] }
  0x51   : > { %435 = vst [vmem:[%s6144_s12 + $0x390] sm:$0xff] %v434_v50  ;;  %437 = vst [vmem:[%s6144_s12 + $0x398] sm:$0xff] %v436_v51  ;;  %v440_v53 = vld [vmem:[%s6139_s11 + $0x748] sm:$0xff]  ;;  %v442_v54 = vld [vmem:[%s6139_s11 + $0x750] sm:$0xff] }
  0x52   : > { %439 = vst [vmem:[%s6144_s12 + $0x3a0] sm:$0xff] %v438_v52  ;;  %v444_v55 = vld [vmem:[%s6139_s11 + $0x758] sm:$0xff]  ;;  %441 = vst [vmem:[%s6144_s12 + $0x3a8] sm:$0xff] %v440_v53  ;;  %v446_v56 = vld [vmem:[%s6139_s11 + $0x780] sm:$0xff] }
  0x53   : > { %443 = vst [vmem:[%s6144_s12 + $0x3b0] sm:$0xff] %v442_v54  ;;  %445 = vst [vmem:[%s6144_s12 + $0x3b8] sm:$0xff] %v444_v55  ;;  %v448_v57 = vld [vmem:[%s6139_s11 + $0x788] sm:$0xff]  ;;  %v450_v58 = vld [vmem:[%s6139_s11 + $0x790] sm:$0xff] }
  0x54   : > { %447 = vst [vmem:[%s6144_s12 + $0x3c0] sm:$0xff] %v446_v56  ;;  %449 = vst [vmem:[%s6144_s12 + $0x3c8] sm:$0xff] %v448_v57  ;;  %v452_v59 = vld [vmem:[%s6139_s11 + $0x798] sm:$0xff]  ;;  %v454_v60 = vld [vmem:[%s6139_s11 + $0x7c0] sm:$0xff] }
  0x55   : > { %451 = vst [vmem:[%s6144_s12 + $0x3d0] sm:$0xff] %v450_v58  ;;  %v456_v61 = vld [vmem:[%s6139_s11 + $0x7c8] sm:$0xff]  ;;  %453 = vst [vmem:[%s6144_s12 + $0x3d8] sm:$0xff] %v452_v59  ;;  %v458_v62 = vld [vmem:[%s6139_s11 + $0x7d0] sm:$0xff] }
  0x56   : > { %455 = vst [vmem:[%s6144_s12 + $0x3e0] sm:$0xff] %v454_v60  ;;  %457 = vst [vmem:[%s6144_s12 + $0x3e8] sm:$0xff] %v456_v61  ;;  %v460_v63 = vld [vmem:[%s6139_s11 + $0x7d8] sm:$0xff]  ;;  %v462_v0 = vld [vmem:[%s6139_s11 + $0x800] sm:$0xff] }
  0x57   : > { %459 = vst [vmem:[%s6144_s12 + $0x3f0] sm:$0xff] %v458_v62  ;;  %461 = vst [vmem:[%s6144_s12 + $0x3f8] sm:$0xff] %v460_v63  ;;  %v464_v1 = vld [vmem:[%s6139_s11 + $0x808] sm:$0xff]  ;;  %v466_v2 = vld [vmem:[%s6139_s11 + $0x810] sm:$0xff] }
  0x58   : > { %463 = vst [vmem:[%s6144_s12 + $0x400] sm:$0xff] %v462_v0  ;;  %v468_v3 = vld [vmem:[%s6139_s11 + $0x818] sm:$0xff]  ;;  %465 = vst [vmem:[%s6144_s12 + $0x408] sm:$0xff] %v464_v1  ;;  %v470_v4 = vld [vmem:[%s6139_s11 + $0x840] sm:$0xff] }
  0x59   : > { %467 = vst [vmem:[%s6144_s12 + $0x410] sm:$0xff] %v466_v2  ;;  %469 = vst [vmem:[%s6144_s12 + $0x418] sm:$0xff] %v468_v3  ;;  %v472_v5 = vld [vmem:[%s6139_s11 + $0x848] sm:$0xff]  ;;  %v474_v6 = vld [vmem:[%s6139_s11 + $0x850] sm:$0xff] }
  0x5a   : > { %471 = vst [vmem:[%s6144_s12 + $0x420] sm:$0xff] %v470_v4  ;;  %473 = vst [vmem:[%s6144_s12 + $0x428] sm:$0xff] %v472_v5  ;;  %v476_v7 = vld [vmem:[%s6139_s11 + $0x858] sm:$0xff]  ;;  %v478_v8 = vld [vmem:[%s6139_s11 + $0x880] sm:$0xff] }
  0x5b   : > { %475 = vst [vmem:[%s6144_s12 + $0x430] sm:$0xff] %v474_v6  ;;  %v480_v9 = vld [vmem:[%s6139_s11 + $0x888] sm:$0xff]  ;;  %477 = vst [vmem:[%s6144_s12 + $0x438] sm:$0xff] %v476_v7  ;;  %v482_v10 = vld [vmem:[%s6139_s11 + $0x890] sm:$0xff] }
  0x5c   : > { %479 = vst [vmem:[%s6144_s12 + $0x440] sm:$0xff] %v478_v8  ;;  %481 = vst [vmem:[%s6144_s12 + $0x448] sm:$0xff] %v480_v9  ;;  %v484_v11 = vld [vmem:[%s6139_s11 + $0x898] sm:$0xff]  ;;  %v486_v12 = vld [vmem:[%s6139_s11 + $0x8c0] sm:$0xff] }
  0x5d   : > { %483 = vst [vmem:[%s6144_s12 + $0x450] sm:$0xff] %v482_v10  ;;  %485 = vst [vmem:[%s6144_s12 + $0x458] sm:$0xff] %v484_v11  ;;  %v488_v13 = vld [vmem:[%s6139_s11 + $0x8c8] sm:$0xff]  ;;  %v490_v14 = vld [vmem:[%s6139_s11 + $0x8d0] sm:$0xff] }
  0x5e   : > { %487 = vst [vmem:[%s6144_s12 + $0x460] sm:$0xff] %v486_v12  ;;  %v492_v15 = vld [vmem:[%s6139_s11 + $0x8d8] sm:$0xff]  ;;  %489 = vst [vmem:[%s6144_s12 + $0x468] sm:$0xff] %v488_v13  ;;  %v494_v16 = vld [vmem:[%s6139_s11 + $0x900] sm:$0xff] }
  0x5f   : > { %491 = vst [vmem:[%s6144_s12 + $0x470] sm:$0xff] %v490_v14  ;;  %493 = vst [vmem:[%s6144_s12 + $0x478] sm:$0xff] %v492_v15  ;;  %v496_v17 = vld [vmem:[%s6139_s11 + $0x908] sm:$0xff]  ;;  %v498_v18 = vld [vmem:[%s6139_s11 + $0x910] sm:$0xff] }
  0x60   : > { %495 = vst [vmem:[%s6144_s12 + $0x480] sm:$0xff] %v494_v16  ;;  %497 = vst [vmem:[%s6144_s12 + $0x488] sm:$0xff] %v496_v17  ;;  %v500_v19 = vld [vmem:[%s6139_s11 + $0x918] sm:$0xff]  ;;  %v502_v20 = vld [vmem:[%s6139_s11 + $0x940] sm:$0xff] }
  0x61   : > { %499 = vst [vmem:[%s6144_s12 + $0x490] sm:$0xff] %v498_v18  ;;  %v504_v21 = vld [vmem:[%s6139_s11 + $0x948] sm:$0xff]  ;;  %501 = vst [vmem:[%s6144_s12 + $0x498] sm:$0xff] %v500_v19  ;;  %v506_v22 = vld [vmem:[%s6139_s11 + $0x950] sm:$0xff] }
  0x62   : > { %503 = vst [vmem:[%s6144_s12 + $0x4a0] sm:$0xff] %v502_v20  ;;  %505 = vst [vmem:[%s6144_s12 + $0x4a8] sm:$0xff] %v504_v21  ;;  %v508_v23 = vld [vmem:[%s6139_s11 + $0x958] sm:$0xff]  ;;  %v510_v24 = vld [vmem:[%s6139_s11 + $0x980] sm:$0xff] }
  0x63   : > { %507 = vst [vmem:[%s6144_s12 + $0x4b0] sm:$0xff] %v506_v22  ;;  %509 = vst [vmem:[%s6144_s12 + $0x4b8] sm:$0xff] %v508_v23  ;;  %v512_v25 = vld [vmem:[%s6139_s11 + $0x988] sm:$0xff]  ;;  %v514_v26 = vld [vmem:[%s6139_s11 + $0x990] sm:$0xff] }
  0x64   : > { %511 = vst [vmem:[%s6144_s12 + $0x4c0] sm:$0xff] %v510_v24  ;;  %v516_v27 = vld [vmem:[%s6139_s11 + $0x998] sm:$0xff]  ;;  %513 = vst [vmem:[%s6144_s12 + $0x4c8] sm:$0xff] %v512_v25  ;;  %v518_v28 = vld [vmem:[%s6139_s11 + $0x9c0] sm:$0xff] }
  0x65   : > { %515 = vst [vmem:[%s6144_s12 + $0x4d0] sm:$0xff] %v514_v26  ;;  %517 = vst [vmem:[%s6144_s12 + $0x4d8] sm:$0xff] %v516_v27  ;;  %v520_v29 = vld [vmem:[%s6139_s11 + $0x9c8] sm:$0xff]  ;;  %v522_v30 = vld [vmem:[%s6139_s11 + $0x9d0] sm:$0xff] }
  0x66   : > { %519 = vst [vmem:[%s6144_s12 + $0x4e0] sm:$0xff] %v518_v28  ;;  %521 = vst [vmem:[%s6144_s12 + $0x4e8] sm:$0xff] %v520_v29  ;;  %v524_v31 = vld [vmem:[%s6139_s11 + $0x9d8] sm:$0xff]  ;;  %v526_v32 = vld [vmem:[%s6139_s11 + $0xa00] sm:$0xff] }
  0x67   : > { %523 = vst [vmem:[%s6144_s12 + $0x4f0] sm:$0xff] %v522_v30  ;;  %v528_v33 = vld [vmem:[%s6139_s11 + $0xa08] sm:$0xff]  ;;  %525 = vst [vmem:[%s6144_s12 + $0x4f8] sm:$0xff] %v524_v31  ;;  %v530_v34 = vld [vmem:[%s6139_s11 + $0xa10] sm:$0xff] }
  0x68   : > { %527 = vst [vmem:[%s6144_s12 + $0x500] sm:$0xff] %v526_v32  ;;  %529 = vst [vmem:[%s6144_s12 + $0x508] sm:$0xff] %v528_v33  ;;  %v532_v35 = vld [vmem:[%s6139_s11 + $0xa18] sm:$0xff]  ;;  %v534_v36 = vld [vmem:[%s6139_s11 + $0xa40] sm:$0xff] }
  0x69   : > { %531 = vst [vmem:[%s6144_s12 + $0x510] sm:$0xff] %v530_v34  ;;  %533 = vst [vmem:[%s6144_s12 + $0x518] sm:$0xff] %v532_v35  ;;  %v536_v37 = vld [vmem:[%s6139_s11 + $0xa48] sm:$0xff]  ;;  %v538_v38 = vld [vmem:[%s6139_s11 + $0xa50] sm:$0xff] }
  0x6a   : > { %535 = vst [vmem:[%s6144_s12 + $0x520] sm:$0xff] %v534_v36  ;;  %v540_v39 = vld [vmem:[%s6139_s11 + $0xa58] sm:$0xff]  ;;  %537 = vst [vmem:[%s6144_s12 + $0x528] sm:$0xff] %v536_v37  ;;  %v542_v40 = vld [vmem:[%s6139_s11 + $0xa80] sm:$0xff] }
  0x6b   : > { %539 = vst [vmem:[%s6144_s12 + $0x530] sm:$0xff] %v538_v38  ;;  %541 = vst [vmem:[%s6144_s12 + $0x538] sm:$0xff] %v540_v39  ;;  %v544_v41 = vld [vmem:[%s6139_s11 + $0xa88] sm:$0xff]  ;;  %v546_v42 = vld [vmem:[%s6139_s11 + $0xa90] sm:$0xff] }
  0x6c   : > { %543 = vst [vmem:[%s6144_s12 + $0x540] sm:$0xff] %v542_v40  ;;  %545 = vst [vmem:[%s6144_s12 + $0x548] sm:$0xff] %v544_v41  ;;  %v548_v43 = vld [vmem:[%s6139_s11 + $0xa98] sm:$0xff]  ;;  %v550_v44 = vld [vmem:[%s6139_s11 + $0xac0] sm:$0xff] }
  0x6d   : > { %547 = vst [vmem:[%s6144_s12 + $0x550] sm:$0xff] %v546_v42  ;;  %v552_v45 = vld [vmem:[%s6139_s11 + $0xac8] sm:$0xff]  ;;  %549 = vst [vmem:[%s6144_s12 + $0x558] sm:$0xff] %v548_v43  ;;  %v554_v46 = vld [vmem:[%s6139_s11 + $0xad0] sm:$0xff] }
  0x6e   : > { %551 = vst [vmem:[%s6144_s12 + $0x560] sm:$0xff] %v550_v44  ;;  %553 = vst [vmem:[%s6144_s12 + $0x568] sm:$0xff] %v552_v45  ;;  %v556_v47 = vld [vmem:[%s6139_s11 + $0xad8] sm:$0xff]  ;;  %v558_v48 = vld [vmem:[%s6139_s11 + $0xb00] sm:$0xff] }
  0x6f   : > { %555 = vst [vmem:[%s6144_s12 + $0x570] sm:$0xff] %v554_v46  ;;  %557 = vst [vmem:[%s6144_s12 + $0x578] sm:$0xff] %v556_v47  ;;  %v560_v49 = vld [vmem:[%s6139_s11 + $0xb08] sm:$0xff]  ;;  %v562_v50 = vld [vmem:[%s6139_s11 + $0xb10] sm:$0xff] }
  0x70   : > { %559 = vst [vmem:[%s6144_s12 + $0x580] sm:$0xff] %v558_v48  ;;  %v564_v51 = vld [vmem:[%s6139_s11 + $0xb18] sm:$0xff]  ;;  %561 = vst [vmem:[%s6144_s12 + $0x588] sm:$0xff] %v560_v49  ;;  %v566_v52 = vld [vmem:[%s6139_s11 + $0xb40] sm:$0xff] }
  0x71   : > { %563 = vst [vmem:[%s6144_s12 + $0x590] sm:$0xff] %v562_v50  ;;  %565 = vst [vmem:[%s6144_s12 + $0x598] sm:$0xff] %v564_v51  ;;  %v568_v53 = vld [vmem:[%s6139_s11 + $0xb48] sm:$0xff]  ;;  %v570_v54 = vld [vmem:[%s6139_s11 + $0xb50] sm:$0xff] }
  0x72   : > { %567 = vst [vmem:[%s6144_s12 + $0x5a0] sm:$0xff] %v566_v52  ;;  %569 = vst [vmem:[%s6144_s12 + $0x5a8] sm:$0xff] %v568_v53  ;;  %v572_v55 = vld [vmem:[%s6139_s11 + $0xb58] sm:$0xff]  ;;  %v574_v56 = vld [vmem:[%s6139_s11 + $0xb80] sm:$0xff] }
  0x73   : > { %571 = vst [vmem:[%s6144_s12 + $0x5b0] sm:$0xff] %v570_v54  ;;  %v576_v57 = vld [vmem:[%s6139_s11 + $0xb88] sm:$0xff]  ;;  %573 = vst [vmem:[%s6144_s12 + $0x5b8] sm:$0xff] %v572_v55  ;;  %v578_v58 = vld [vmem:[%s6139_s11 + $0xb90] sm:$0xff] }
  0x74   : > { %575 = vst [vmem:[%s6144_s12 + $0x5c0] sm:$0xff] %v574_v56  ;;  %577 = vst [vmem:[%s6144_s12 + $0x5c8] sm:$0xff] %v576_v57  ;;  %v580_v59 = vld [vmem:[%s6139_s11 + $0xb98] sm:$0xff]  ;;  %v582_v60 = vld [vmem:[%s6139_s11 + $0xbc0] sm:$0xff] }
  0x75   : > { %579 = vst [vmem:[%s6144_s12 + $0x5d0] sm:$0xff] %v578_v58  ;;  %581 = vst [vmem:[%s6144_s12 + $0x5d8] sm:$0xff] %v580_v59  ;;  %v584_v61 = vld [vmem:[%s6139_s11 + $0xbc8] sm:$0xff]  ;;  %v586_v62 = vld [vmem:[%s6139_s11 + $0xbd0] sm:$0xff] }
  0x76   : > { %583 = vst [vmem:[%s6144_s12 + $0x5e0] sm:$0xff] %v582_v60  ;;  %v588_v63 = vld [vmem:[%s6139_s11 + $0xbd8] sm:$0xff]  ;;  %585 = vst [vmem:[%s6144_s12 + $0x5e8] sm:$0xff] %v584_v61  ;;  %v590_v0 = vld [vmem:[%s6139_s11 + $0xc00] sm:$0xff] }
  0x77   : > { %587 = vst [vmem:[%s6144_s12 + $0x5f0] sm:$0xff] %v586_v62  ;;  %589 = vst [vmem:[%s6144_s12 + $0x5f8] sm:$0xff] %v588_v63  ;;  %v592_v1 = vld [vmem:[%s6139_s11 + $0xc08] sm:$0xff]  ;;  %v594_v2 = vld [vmem:[%s6139_s11 + $0xc10] sm:$0xff] }
  0x78   : > { %591 = vst [vmem:[%s6144_s12 + $0x600] sm:$0xff] %v590_v0  ;;  %593 = vst [vmem:[%s6144_s12 + $0x608] sm:$0xff] %v592_v1  ;;  %v596_v3 = vld [vmem:[%s6139_s11 + $0xc18] sm:$0xff]  ;;  %v598_v4 = vld [vmem:[%s6139_s11 + $0xc40] sm:$0xff] }
  0x79   : > { %595 = vst [vmem:[%s6144_s12 + $0x610] sm:$0xff] %v594_v2  ;;  %v600_v5 = vld [vmem:[%s6139_s11 + $0xc48] sm:$0xff]  ;;  %597 = vst [vmem:[%s6144_s12 + $0x618] sm:$0xff] %v596_v3  ;;  %v602_v6 = vld [vmem:[%s6139_s11 + $0xc50] sm:$0xff] }
  0x7a   : > { %599 = vst [vmem:[%s6144_s12 + $0x620] sm:$0xff] %v598_v4  ;;  %601 = vst [vmem:[%s6144_s12 + $0x628] sm:$0xff] %v600_v5  ;;  %v604_v7 = vld [vmem:[%s6139_s11 + $0xc58] sm:$0xff]  ;;  %v606_v8 = vld [vmem:[%s6139_s11 + $0xc80] sm:$0xff] }
  0x7b   : > { %603 = vst [vmem:[%s6144_s12 + $0x630] sm:$0xff] %v602_v6  ;;  %605 = vst [vmem:[%s6144_s12 + $0x638] sm:$0xff] %v604_v7  ;;  %v608_v9 = vld [vmem:[%s6139_s11 + $0xc88] sm:$0xff]  ;;  %v610_v10 = vld [vmem:[%s6139_s11 + $0xc90] sm:$0xff] }
  0x7c   : > { %607 = vst [vmem:[%s6144_s12 + $0x640] sm:$0xff] %v606_v8  ;;  %v612_v11 = vld [vmem:[%s6139_s11 + $0xc98] sm:$0xff]  ;;  %609 = vst [vmem:[%s6144_s12 + $0x648] sm:$0xff] %v608_v9  ;;  %v614_v12 = vld [vmem:[%s6139_s11 + $0xcc0] sm:$0xff] }
  0x7d   : > { %611 = vst [vmem:[%s6144_s12 + $0x650] sm:$0xff] %v610_v10  ;;  %613 = vst [vmem:[%s6144_s12 + $0x658] sm:$0xff] %v612_v11  ;;  %v616_v13 = vld [vmem:[%s6139_s11 + $0xcc8] sm:$0xff]  ;;  %v618_v14 = vld [vmem:[%s6139_s11 + $0xcd0] sm:$0xff] }
  0x7e   : > { %615 = vst [vmem:[%s6144_s12 + $0x660] sm:$0xff] %v614_v12  ;;  %617 = vst [vmem:[%s6144_s12 + $0x668] sm:$0xff] %v616_v13  ;;  %v620_v15 = vld [vmem:[%s6139_s11 + $0xcd8] sm:$0xff]  ;;  %v622_v16 = vld [vmem:[%s6139_s11 + $0xd00] sm:$0xff] }
  0x7f   : > { %619 = vst [vmem:[%s6144_s12 + $0x670] sm:$0xff] %v618_v14  ;;  %v624_v17 = vld [vmem:[%s6139_s11 + $0xd08] sm:$0xff]  ;;  %621 = vst [vmem:[%s6144_s12 + $0x678] sm:$0xff] %v620_v15  ;;  %v626_v18 = vld [vmem:[%s6139_s11 + $0xd10] sm:$0xff] }
  0x80   : > { %623 = vst [vmem:[%s6144_s12 + $0x680] sm:$0xff] %v622_v16  ;;  %625 = vst [vmem:[%s6144_s12 + $0x688] sm:$0xff] %v624_v17  ;;  %v628_v19 = vld [vmem:[%s6139_s11 + $0xd18] sm:$0xff]  ;;  %v630_v20 = vld [vmem:[%s6139_s11 + $0xd40] sm:$0xff] }
  0x81   : > { %627 = vst [vmem:[%s6144_s12 + $0x690] sm:$0xff] %v626_v18  ;;  %629 = vst [vmem:[%s6144_s12 + $0x698] sm:$0xff] %v628_v19  ;;  %v632_v21 = vld [vmem:[%s6139_s11 + $0xd48] sm:$0xff]  ;;  %v634_v22 = vld [vmem:[%s6139_s11 + $0xd50] sm:$0xff] }
  0x82   : > { %631 = vst [vmem:[%s6144_s12 + $0x6a0] sm:$0xff] %v630_v20  ;;  %v636_v23 = vld [vmem:[%s6139_s11 + $0xd58] sm:$0xff]  ;;  %633 = vst [vmem:[%s6144_s12 + $0x6a8] sm:$0xff] %v632_v21  ;;  %v638_v24 = vld [vmem:[%s6139_s11 + $0xd80] sm:$0xff] }
  0x83   : > { %635 = vst [vmem:[%s6144_s12 + $0x6b0] sm:$0xff] %v634_v22  ;;  %637 = vst [vmem:[%s6144_s12 + $0x6b8] sm:$0xff] %v636_v23  ;;  %v640_v25 = vld [vmem:[%s6139_s11 + $0xd88] sm:$0xff]  ;;  %v642_v26 = vld [vmem:[%s6139_s11 + $0xd90] sm:$0xff] }
  0x84   : > { %639 = vst [vmem:[%s6144_s12 + $0x6c0] sm:$0xff] %v638_v24  ;;  %641 = vst [vmem:[%s6144_s12 + $0x6c8] sm:$0xff] %v640_v25  ;;  %v644_v27 = vld [vmem:[%s6139_s11 + $0xd98] sm:$0xff]  ;;  %v646_v28 = vld [vmem:[%s6139_s11 + $0xdc0] sm:$0xff] }
  0x85   : > { %643 = vst [vmem:[%s6144_s12 + $0x6d0] sm:$0xff] %v642_v26  ;;  %v648_v29 = vld [vmem:[%s6139_s11 + $0xdc8] sm:$0xff]  ;;  %645 = vst [vmem:[%s6144_s12 + $0x6d8] sm:$0xff] %v644_v27  ;;  %v650_v30 = vld [vmem:[%s6139_s11 + $0xdd0] sm:$0xff] }
  0x86   : > { %647 = vst [vmem:[%s6144_s12 + $0x6e0] sm:$0xff] %v646_v28  ;;  %649 = vst [vmem:[%s6144_s12 + $0x6e8] sm:$0xff] %v648_v29  ;;  %v652_v31 = vld [vmem:[%s6139_s11 + $0xdd8] sm:$0xff]  ;;  %v654_v32 = vld [vmem:[%s6139_s11 + $0xe00] sm:$0xff] }
  0x87   : > { %651 = vst [vmem:[%s6144_s12 + $0x6f0] sm:$0xff] %v650_v30  ;;  %653 = vst [vmem:[%s6144_s12 + $0x6f8] sm:$0xff] %v652_v31  ;;  %v656_v33 = vld [vmem:[%s6139_s11 + $0xe08] sm:$0xff]  ;;  %v658_v34 = vld [vmem:[%s6139_s11 + $0xe10] sm:$0xff] }
  0x88   : > { %655 = vst [vmem:[%s6144_s12 + $0x700] sm:$0xff] %v654_v32  ;;  %v660_v35 = vld [vmem:[%s6139_s11 + $0xe18] sm:$0xff]  ;;  %657 = vst [vmem:[%s6144_s12 + $0x708] sm:$0xff] %v656_v33  ;;  %v662_v36 = vld [vmem:[%s6139_s11 + $0xe40] sm:$0xff] }
  0x89   : > { %659 = vst [vmem:[%s6144_s12 + $0x710] sm:$0xff] %v658_v34  ;;  %661 = vst [vmem:[%s6144_s12 + $0x718] sm:$0xff] %v660_v35  ;;  %v664_v37 = vld [vmem:[%s6139_s11 + $0xe48] sm:$0xff]  ;;  %v666_v38 = vld [vmem:[%s6139_s11 + $0xe50] sm:$0xff] }
  0x8a   : > { %663 = vst [vmem:[%s6144_s12 + $0x720] sm:$0xff] %v662_v36  ;;  %665 = vst [vmem:[%s6144_s12 + $0x728] sm:$0xff] %v664_v37  ;;  %v668_v39 = vld [vmem:[%s6139_s11 + $0xe58] sm:$0xff]  ;;  %v670_v40 = vld [vmem:[%s6139_s11 + $0xe80] sm:$0xff] }
  0x8b   : > { %667 = vst [vmem:[%s6144_s12 + $0x730] sm:$0xff] %v666_v38  ;;  %v672_v41 = vld [vmem:[%s6139_s11 + $0xe88] sm:$0xff]  ;;  %669 = vst [vmem:[%s6144_s12 + $0x738] sm:$0xff] %v668_v39  ;;  %v674_v42 = vld [vmem:[%s6139_s11 + $0xe90] sm:$0xff] }
  0x8c   : > { %671 = vst [vmem:[%s6144_s12 + $0x740] sm:$0xff] %v670_v40  ;;  %673 = vst [vmem:[%s6144_s12 + $0x748] sm:$0xff] %v672_v41  ;;  %v676_v43 = vld [vmem:[%s6139_s11 + $0xe98] sm:$0xff]  ;;  %v678_v44 = vld [vmem:[%s6139_s11 + $0xec0] sm:$0xff] }
  0x8d   : > { %675 = vst [vmem:[%s6144_s12 + $0x750] sm:$0xff] %v674_v42  ;;  %677 = vst [vmem:[%s6144_s12 + $0x758] sm:$0xff] %v676_v43  ;;  %v680_v45 = vld [vmem:[%s6139_s11 + $0xec8] sm:$0xff]  ;;  %v682_v46 = vld [vmem:[%s6139_s11 + $0xed0] sm:$0xff] }
  0x8e   : > { %679 = vst [vmem:[%s6144_s12 + $0x760] sm:$0xff] %v678_v44  ;;  %v684_v47 = vld [vmem:[%s6139_s11 + $0xed8] sm:$0xff]  ;;  %681 = vst [vmem:[%s6144_s12 + $0x768] sm:$0xff] %v680_v45  ;;  %v686_v48 = vld [vmem:[%s6139_s11 + $0xf00] sm:$0xff] }
  0x8f   : > { %683 = vst [vmem:[%s6144_s12 + $0x770] sm:$0xff] %v682_v46  ;;  %685 = vst [vmem:[%s6144_s12 + $0x778] sm:$0xff] %v684_v47  ;;  %v688_v49 = vld [vmem:[%s6139_s11 + $0xf08] sm:$0xff]  ;;  %v690_v50 = vld [vmem:[%s6139_s11 + $0xf10] sm:$0xff] }
  0x90   : > { %687 = vst [vmem:[%s6144_s12 + $0x780] sm:$0xff] %v686_v48  ;;  %689 = vst [vmem:[%s6144_s12 + $0x788] sm:$0xff] %v688_v49  ;;  %v692_v51 = vld [vmem:[%s6139_s11 + $0xf18] sm:$0xff]  ;;  %v694_v52 = vld [vmem:[%s6139_s11 + $0xf40] sm:$0xff] }
  0x91   : > { %691 = vst [vmem:[%s6144_s12 + $0x790] sm:$0xff] %v690_v50  ;;  %v696_v53 = vld [vmem:[%s6139_s11 + $0xf48] sm:$0xff]  ;;  %693 = vst [vmem:[%s6144_s12 + $0x798] sm:$0xff] %v692_v51  ;;  %v698_v54 = vld [vmem:[%s6139_s11 + $0xf50] sm:$0xff] }
  0x92   : > { %695 = vst [vmem:[%s6144_s12 + $0x7a0] sm:$0xff] %v694_v52  ;;  %697 = vst [vmem:[%s6144_s12 + $0x7a8] sm:$0xff] %v696_v53  ;;  %v700_v55 = vld [vmem:[%s6139_s11 + $0xf58] sm:$0xff]  ;;  %v702_v56 = vld [vmem:[%s6139_s11 + $0xf80] sm:$0xff] }
  0x93   : > { %699 = vst [vmem:[%s6144_s12 + $0x7b0] sm:$0xff] %v698_v54  ;;  %701 = vst [vmem:[%s6144_s12 + $0x7b8] sm:$0xff] %v700_v55  ;;  %v704_v57 = vld [vmem:[%s6139_s11 + $0xf88] sm:$0xff]  ;;  %v706_v58 = vld [vmem:[%s6139_s11 + $0xf90] sm:$0xff] }
  0x94   : > { %703 = vst [vmem:[%s6144_s12 + $0x7c0] sm:$0xff] %v702_v56  ;;  %v708_v59 = vld [vmem:[%s6139_s11 + $0xf98] sm:$0xff]  ;;  %705 = vst [vmem:[%s6144_s12 + $0x7c8] sm:$0xff] %v704_v57  ;;  %v710_v60 = vld [vmem:[%s6139_s11 + $0xfc0] sm:$0xff] }
  0x95   : > { %707 = vst [vmem:[%s6144_s12 + $0x7d0] sm:$0xff] %v706_v58  ;;  %709 = vst [vmem:[%s6144_s12 + $0x7d8] sm:$0xff] %v708_v59  ;;  %v712_v61 = vld [vmem:[%s6139_s11 + $0xfc8] sm:$0xff]  ;;  %v714_v62 = vld [vmem:[%s6139_s11 + $0xfd0] sm:$0xff] }
  0x96   : > { %711 = vst [vmem:[%s6144_s12 + $0x7e0] sm:$0xff] %v710_v60  ;;  %713 = vst [vmem:[%s6144_s12 + $0x7e8] sm:$0xff] %v712_v61  ;;  %v716_v63 = vld [vmem:[%s6139_s11 + $0xfd8] sm:$0xff]  ;;  %v718_v0 = vld [vmem:[%s6139_s11 + $0x1000] sm:$0xff] }
  0x97   : > { %715 = vst [vmem:[%s6144_s12 + $0x7f0] sm:$0xff] %v714_v62  ;;  %v720_v1 = vld [vmem:[%s6139_s11 + $0x1008] sm:$0xff]  ;;  %717 = vst [vmem:[%s6144_s12 + $0x7f8] sm:$0xff] %v716_v63  ;;  %v722_v2 = vld [vmem:[%s6139_s11 + $0x1010] sm:$0xff] }
  0x98   : > { %719 = vst [vmem:[%s6144_s12 + $0x800] sm:$0xff] %v718_v0  ;;  %721 = vst [vmem:[%s6144_s12 + $0x808] sm:$0xff] %v720_v1  ;;  %v724_v3 = vld [vmem:[%s6139_s11 + $0x1018] sm:$0xff]  ;;  %v726_v4 = vld [vmem:[%s6139_s11 + $0x1040] sm:$0xff] }
  0x99   : > { %723 = vst [vmem:[%s6144_s12 + $0x810] sm:$0xff] %v722_v2  ;;  %725 = vst [vmem:[%s6144_s12 + $0x818] sm:$0xff] %v724_v3  ;;  %v728_v5 = vld [vmem:[%s6139_s11 + $0x1048] sm:$0xff]  ;;  %v730_v6 = vld [vmem:[%s6139_s11 + $0x1050] sm:$0xff] }
  0x9a   : > { %727 = vst [vmem:[%s6144_s12 + $0x820] sm:$0xff] %v726_v4  ;;  %v732_v7 = vld [vmem:[%s6139_s11 + $0x1058] sm:$0xff]  ;;  %729 = vst [vmem:[%s6144_s12 + $0x828] sm:$0xff] %v728_v5  ;;  %v734_v8 = vld [vmem:[%s6139_s11 + $0x1080] sm:$0xff] }
  0x9b   : > { %731 = vst [vmem:[%s6144_s12 + $0x830] sm:$0xff] %v730_v6  ;;  %733 = vst [vmem:[%s6144_s12 + $0x838] sm:$0xff] %v732_v7  ;;  %v736_v9 = vld [vmem:[%s6139_s11 + $0x1088] sm:$0xff]  ;;  %v738_v10 = vld [vmem:[%s6139_s11 + $0x1090] sm:$0xff] }
  0x9c   : > { %735 = vst [vmem:[%s6144_s12 + $0x840] sm:$0xff] %v734_v8  ;;  %737 = vst [vmem:[%s6144_s12 + $0x848] sm:$0xff] %v736_v9  ;;  %v740_v11 = vld [vmem:[%s6139_s11 + $0x1098] sm:$0xff]  ;;  %v742_v12 = vld [vmem:[%s6139_s11 + $0x10c0] sm:$0xff] }
  0x9d   : > { %739 = vst [vmem:[%s6144_s12 + $0x850] sm:$0xff] %v738_v10  ;;  %v744_v13 = vld [vmem:[%s6139_s11 + $0x10c8] sm:$0xff]  ;;  %741 = vst [vmem:[%s6144_s12 + $0x858] sm:$0xff] %v740_v11  ;;  %v746_v14 = vld [vmem:[%s6139_s11 + $0x10d0] sm:$0xff] }
  0x9e   : > { %743 = vst [vmem:[%s6144_s12 + $0x860] sm:$0xff] %v742_v12  ;;  %745 = vst [vmem:[%s6144_s12 + $0x868] sm:$0xff] %v744_v13  ;;  %v748_v15 = vld [vmem:[%s6139_s11 + $0x10d8] sm:$0xff]  ;;  %v750_v16 = vld [vmem:[%s6139_s11 + $0x1100] sm:$0xff] }
  0x9f   : > { %747 = vst [vmem:[%s6144_s12 + $0x870] sm:$0xff] %v746_v14  ;;  %749 = vst [vmem:[%s6144_s12 + $0x878] sm:$0xff] %v748_v15  ;;  %v752_v17 = vld [vmem:[%s6139_s11 + $0x1108] sm:$0xff]  ;;  %v754_v18 = vld [vmem:[%s6139_s11 + $0x1110] sm:$0xff] }
  0xa0   : > { %751 = vst [vmem:[%s6144_s12 + $0x880] sm:$0xff] %v750_v16  ;;  %v756_v19 = vld [vmem:[%s6139_s11 + $0x1118] sm:$0xff]  ;;  %753 = vst [vmem:[%s6144_s12 + $0x888] sm:$0xff] %v752_v17  ;;  %v758_v20 = vld [vmem:[%s6139_s11 + $0x1140] sm:$0xff] }
  0xa1   : > { %755 = vst [vmem:[%s6144_s12 + $0x890] sm:$0xff] %v754_v18  ;;  %757 = vst [vmem:[%s6144_s12 + $0x898] sm:$0xff] %v756_v19  ;;  %v760_v21 = vld [vmem:[%s6139_s11 + $0x1148] sm:$0xff]  ;;  %v762_v22 = vld [vmem:[%s6139_s11 + $0x1150] sm:$0xff] }
  0xa2   : > { %759 = vst [vmem:[%s6144_s12 + $0x8a0] sm:$0xff] %v758_v20  ;;  %761 = vst [vmem:[%s6144_s12 + $0x8a8] sm:$0xff] %v760_v21  ;;  %v764_v23 = vld [vmem:[%s6139_s11 + $0x1158] sm:$0xff]  ;;  %v766_v24 = vld [vmem:[%s6139_s11 + $0x1180] sm:$0xff] }
  0xa3   : > { %763 = vst [vmem:[%s6144_s12 + $0x8b0] sm:$0xff] %v762_v22  ;;  %v768_v25 = vld [vmem:[%s6139_s11 + $0x1188] sm:$0xff]  ;;  %765 = vst [vmem:[%s6144_s12 + $0x8b8] sm:$0xff] %v764_v23  ;;  %v770_v26 = vld [vmem:[%s6139_s11 + $0x1190] sm:$0xff] }
  0xa4   : > { %767 = vst [vmem:[%s6144_s12 + $0x8c0] sm:$0xff] %v766_v24  ;;  %769 = vst [vmem:[%s6144_s12 + $0x8c8] sm:$0xff] %v768_v25  ;;  %v772_v27 = vld [vmem:[%s6139_s11 + $0x1198] sm:$0xff]  ;;  %v774_v28 = vld [vmem:[%s6139_s11 + $0x11c0] sm:$0xff] }
  0xa5   : > { %771 = vst [vmem:[%s6144_s12 + $0x8d0] sm:$0xff] %v770_v26  ;;  %773 = vst [vmem:[%s6144_s12 + $0x8d8] sm:$0xff] %v772_v27  ;;  %v776_v29 = vld [vmem:[%s6139_s11 + $0x11c8] sm:$0xff]  ;;  %v778_v30 = vld [vmem:[%s6139_s11 + $0x11d0] sm:$0xff] }
  0xa6   : > { %775 = vst [vmem:[%s6144_s12 + $0x8e0] sm:$0xff] %v774_v28  ;;  %v780_v31 = vld [vmem:[%s6139_s11 + $0x11d8] sm:$0xff]  ;;  %777 = vst [vmem:[%s6144_s12 + $0x8e8] sm:$0xff] %v776_v29  ;;  %v782_v32 = vld [vmem:[%s6139_s11 + $0x1200] sm:$0xff] }
  0xa7   : > { %779 = vst [vmem:[%s6144_s12 + $0x8f0] sm:$0xff] %v778_v30  ;;  %781 = vst [vmem:[%s6144_s12 + $0x8f8] sm:$0xff] %v780_v31  ;;  %v784_v33 = vld [vmem:[%s6139_s11 + $0x1208] sm:$0xff]  ;;  %v786_v34 = vld [vmem:[%s6139_s11 + $0x1210] sm:$0xff] }
  0xa8   : > { %783 = vst [vmem:[%s6144_s12 + $0x900] sm:$0xff] %v782_v32  ;;  %785 = vst [vmem:[%s6144_s12 + $0x908] sm:$0xff] %v784_v33  ;;  %v788_v35 = vld [vmem:[%s6139_s11 + $0x1218] sm:$0xff]  ;;  %v790_v36 = vld [vmem:[%s6139_s11 + $0x1240] sm:$0xff] }
  0xa9   : > { %787 = vst [vmem:[%s6144_s12 + $0x910] sm:$0xff] %v786_v34  ;;  %v792_v37 = vld [vmem:[%s6139_s11 + $0x1248] sm:$0xff]  ;;  %789 = vst [vmem:[%s6144_s12 + $0x918] sm:$0xff] %v788_v35  ;;  %v794_v38 = vld [vmem:[%s6139_s11 + $0x1250] sm:$0xff] }
  0xaa   : > { %791 = vst [vmem:[%s6144_s12 + $0x920] sm:$0xff] %v790_v36  ;;  %793 = vst [vmem:[%s6144_s12 + $0x928] sm:$0xff] %v792_v37  ;;  %v796_v39 = vld [vmem:[%s6139_s11 + $0x1258] sm:$0xff]  ;;  %v798_v40 = vld [vmem:[%s6139_s11 + $0x1280] sm:$0xff] }
  0xab   : > { %795 = vst [vmem:[%s6144_s12 + $0x930] sm:$0xff] %v794_v38  ;;  %797 = vst [vmem:[%s6144_s12 + $0x938] sm:$0xff] %v796_v39  ;;  %v800_v41 = vld [vmem:[%s6139_s11 + $0x1288] sm:$0xff]  ;;  %v802_v42 = vld [vmem:[%s6139_s11 + $0x1290] sm:$0xff] }
  0xac   : > { %799 = vst [vmem:[%s6144_s12 + $0x940] sm:$0xff] %v798_v40  ;;  %v804_v43 = vld [vmem:[%s6139_s11 + $0x1298] sm:$0xff]  ;;  %801 = vst [vmem:[%s6144_s12 + $0x948] sm:$0xff] %v800_v41  ;;  %v806_v44 = vld [vmem:[%s6139_s11 + $0x12c0] sm:$0xff] }
  0xad   : > { %803 = vst [vmem:[%s6144_s12 + $0x950] sm:$0xff] %v802_v42  ;;  %805 = vst [vmem:[%s6144_s12 + $0x958] sm:$0xff] %v804_v43  ;;  %v808_v45 = vld [vmem:[%s6139_s11 + $0x12c8] sm:$0xff]  ;;  %v810_v46 = vld [vmem:[%s6139_s11 + $0x12d0] sm:$0xff] }
  0xae   : > { %807 = vst [vmem:[%s6144_s12 + $0x960] sm:$0xff] %v806_v44  ;;  %809 = vst [vmem:[%s6144_s12 + $0x968] sm:$0xff] %v808_v45  ;;  %v812_v47 = vld [vmem:[%s6139_s11 + $0x12d8] sm:$0xff]  ;;  %v814_v48 = vld [vmem:[%s6139_s11 + $0x1300] sm:$0xff] }
  0xaf   : > { %811 = vst [vmem:[%s6144_s12 + $0x970] sm:$0xff] %v810_v46  ;;  %v816_v49 = vld [vmem:[%s6139_s11 + $0x1308] sm:$0xff]  ;;  %813 = vst [vmem:[%s6144_s12 + $0x978] sm:$0xff] %v812_v47  ;;  %v818_v50 = vld [vmem:[%s6139_s11 + $0x1310] sm:$0xff] }
  0xb0   : > { %815 = vst [vmem:[%s6144_s12 + $0x980] sm:$0xff] %v814_v48  ;;  %817 = vst [vmem:[%s6144_s12 + $0x988] sm:$0xff] %v816_v49  ;;  %v820_v51 = vld [vmem:[%s6139_s11 + $0x1318] sm:$0xff]  ;;  %v822_v52 = vld [vmem:[%s6139_s11 + $0x1340] sm:$0xff] }
  0xb1   : > { %819 = vst [vmem:[%s6144_s12 + $0x990] sm:$0xff] %v818_v50  ;;  %821 = vst [vmem:[%s6144_s12 + $0x998] sm:$0xff] %v820_v51  ;;  %v824_v53 = vld [vmem:[%s6139_s11 + $0x1348] sm:$0xff]  ;;  %v826_v54 = vld [vmem:[%s6139_s11 + $0x1350] sm:$0xff] }
  0xb2   : > { %823 = vst [vmem:[%s6144_s12 + $0x9a0] sm:$0xff] %v822_v52  ;;  %v828_v55 = vld [vmem:[%s6139_s11 + $0x1358] sm:$0xff]  ;;  %825 = vst [vmem:[%s6144_s12 + $0x9a8] sm:$0xff] %v824_v53  ;;  %v830_v56 = vld [vmem:[%s6139_s11 + $0x1380] sm:$0xff] }
  0xb3   : > { %827 = vst [vmem:[%s6144_s12 + $0x9b0] sm:$0xff] %v826_v54  ;;  %829 = vst [vmem:[%s6144_s12 + $0x9b8] sm:$0xff] %v828_v55  ;;  %v832_v57 = vld [vmem:[%s6139_s11 + $0x1388] sm:$0xff]  ;;  %v834_v58 = vld [vmem:[%s6139_s11 + $0x1390] sm:$0xff] }
  0xb4   : > { %831 = vst [vmem:[%s6144_s12 + $0x9c0] sm:$0xff] %v830_v56  ;;  %833 = vst [vmem:[%s6144_s12 + $0x9c8] sm:$0xff] %v832_v57  ;;  %v836_v59 = vld [vmem:[%s6139_s11 + $0x1398] sm:$0xff]  ;;  %v838_v60 = vld [vmem:[%s6139_s11 + $0x13c0] sm:$0xff] }
  0xb5   : > { %835 = vst [vmem:[%s6144_s12 + $0x9d0] sm:$0xff] %v834_v58  ;;  %v840_v61 = vld [vmem:[%s6139_s11 + $0x13c8] sm:$0xff]  ;;  %837 = vst [vmem:[%s6144_s12 + $0x9d8] sm:$0xff] %v836_v59  ;;  %v842_v62 = vld [vmem:[%s6139_s11 + $0x13d0] sm:$0xff] }
  0xb6   : > { %839 = vst [vmem:[%s6144_s12 + $0x9e0] sm:$0xff] %v838_v60  ;;  %841 = vst [vmem:[%s6144_s12 + $0x9e8] sm:$0xff] %v840_v61  ;;  %v844_v63 = vld [vmem:[%s6139_s11 + $0x13d8] sm:$0xff]  ;;  %v846_v0 = vld [vmem:[%s6139_s11 + $0x1400] sm:$0xff] }
  0xb7   : > { %843 = vst [vmem:[%s6144_s12 + $0x9f0] sm:$0xff] %v842_v62  ;;  %845 = vst [vmem:[%s6144_s12 + $0x9f8] sm:$0xff] %v844_v63  ;;  %v848_v1 = vld [vmem:[%s6139_s11 + $0x1408] sm:$0xff]  ;;  %v850_v2 = vld [vmem:[%s6139_s11 + $0x1410] sm:$0xff] }
  0xb8   : > { %847 = vst [vmem:[%s6144_s12 + $0xa00] sm:$0xff] %v846_v0  ;;  %v852_v3 = vld [vmem:[%s6139_s11 + $0x1418] sm:$0xff]  ;;  %849 = vst [vmem:[%s6144_s12 + $0xa08] sm:$0xff] %v848_v1  ;;  %v854_v4 = vld [vmem:[%s6139_s11 + $0x1440] sm:$0xff] }
  0xb9   : > { %851 = vst [vmem:[%s6144_s12 + $0xa10] sm:$0xff] %v850_v2  ;;  %853 = vst [vmem:[%s6144_s12 + $0xa18] sm:$0xff] %v852_v3  ;;  %v856_v5 = vld [vmem:[%s6139_s11 + $0x1448] sm:$0xff]  ;;  %v858_v6 = vld [vmem:[%s6139_s11 + $0x1450] sm:$0xff] }
  0xba   : > { %855 = vst [vmem:[%s6144_s12 + $0xa20] sm:$0xff] %v854_v4  ;;  %857 = vst [vmem:[%s6144_s12 + $0xa28] sm:$0xff] %v856_v5  ;;  %v860_v7 = vld [vmem:[%s6139_s11 + $0x1458] sm:$0xff]  ;;  %v862_v8 = vld [vmem:[%s6139_s11 + $0x1480] sm:$0xff] }
  0xbb   : > { %859 = vst [vmem:[%s6144_s12 + $0xa30] sm:$0xff] %v858_v6  ;;  %v864_v9 = vld [vmem:[%s6139_s11 + $0x1488] sm:$0xff]  ;;  %861 = vst [vmem:[%s6144_s12 + $0xa38] sm:$0xff] %v860_v7  ;;  %v866_v10 = vld [vmem:[%s6139_s11 + $0x1490] sm:$0xff] }
  0xbc   : > { %863 = vst [vmem:[%s6144_s12 + $0xa40] sm:$0xff] %v862_v8  ;;  %865 = vst [vmem:[%s6144_s12 + $0xa48] sm:$0xff] %v864_v9  ;;  %v868_v11 = vld [vmem:[%s6139_s11 + $0x1498] sm:$0xff]  ;;  %v870_v12 = vld [vmem:[%s6139_s11 + $0x14c0] sm:$0xff] }
  0xbd   : > { %867 = vst [vmem:[%s6144_s12 + $0xa50] sm:$0xff] %v866_v10  ;;  %869 = vst [vmem:[%s6144_s12 + $0xa58] sm:$0xff] %v868_v11  ;;  %v872_v13 = vld [vmem:[%s6139_s11 + $0x14c8] sm:$0xff]  ;;  %v874_v14 = vld [vmem:[%s6139_s11 + $0x14d0] sm:$0xff] }
  0xbe   : > { %871 = vst [vmem:[%s6144_s12 + $0xa60] sm:$0xff] %v870_v12  ;;  %v876_v15 = vld [vmem:[%s6139_s11 + $0x14d8] sm:$0xff]  ;;  %873 = vst [vmem:[%s6144_s12 + $0xa68] sm:$0xff] %v872_v13  ;;  %v878_v16 = vld [vmem:[%s6139_s11 + $0x1500] sm:$0xff] }
  0xbf   : > { %875 = vst [vmem:[%s6144_s12 + $0xa70] sm:$0xff] %v874_v14  ;;  %877 = vst [vmem:[%s6144_s12 + $0xa78] sm:$0xff] %v876_v15  ;;  %v880_v17 = vld [vmem:[%s6139_s11 + $0x1508] sm:$0xff]  ;;  %v882_v18 = vld [vmem:[%s6139_s11 + $0x1510] sm:$0xff] }
  0xc0   : > { %879 = vst [vmem:[%s6144_s12 + $0xa80] sm:$0xff] %v878_v16  ;;  %881 = vst [vmem:[%s6144_s12 + $0xa88] sm:$0xff] %v880_v17  ;;  %v884_v19 = vld [vmem:[%s6139_s11 + $0x1518] sm:$0xff]  ;;  %v886_v20 = vld [vmem:[%s6139_s11 + $0x1540] sm:$0xff] }
  0xc1   : > { %883 = vst [vmem:[%s6144_s12 + $0xa90] sm:$0xff] %v882_v18  ;;  %v888_v21 = vld [vmem:[%s6139_s11 + $0x1548] sm:$0xff]  ;;  %885 = vst [vmem:[%s6144_s12 + $0xa98] sm:$0xff] %v884_v19  ;;  %v890_v22 = vld [vmem:[%s6139_s11 + $0x1550] sm:$0xff] }
  0xc2   : > { %887 = vst [vmem:[%s6144_s12 + $0xaa0] sm:$0xff] %v886_v20  ;;  %889 = vst [vmem:[%s6144_s12 + $0xaa8] sm:$0xff] %v888_v21  ;;  %v892_v23 = vld [vmem:[%s6139_s11 + $0x1558] sm:$0xff]  ;;  %v894_v24 = vld [vmem:[%s6139_s11 + $0x1580] sm:$0xff] }
  0xc3   : > { %891 = vst [vmem:[%s6144_s12 + $0xab0] sm:$0xff] %v890_v22  ;;  %893 = vst [vmem:[%s6144_s12 + $0xab8] sm:$0xff] %v892_v23  ;;  %v896_v25 = vld [vmem:[%s6139_s11 + $0x1588] sm:$0xff]  ;;  %v898_v26 = vld [vmem:[%s6139_s11 + $0x1590] sm:$0xff] }
  0xc4   : > { %895 = vst [vmem:[%s6144_s12 + $0xac0] sm:$0xff] %v894_v24  ;;  %v900_v27 = vld [vmem:[%s6139_s11 + $0x1598] sm:$0xff]  ;;  %897 = vst [vmem:[%s6144_s12 + $0xac8] sm:$0xff] %v896_v25  ;;  %v902_v28 = vld [vmem:[%s6139_s11 + $0x15c0] sm:$0xff] }
  0xc5   : > { %899 = vst [vmem:[%s6144_s12 + $0xad0] sm:$0xff] %v898_v26  ;;  %901 = vst [vmem:[%s6144_s12 + $0xad8] sm:$0xff] %v900_v27  ;;  %v904_v29 = vld [vmem:[%s6139_s11 + $0x15c8] sm:$0xff]  ;;  %v906_v30 = vld [vmem:[%s6139_s11 + $0x15d0] sm:$0xff] }
  0xc6   : > { %903 = vst [vmem:[%s6144_s12 + $0xae0] sm:$0xff] %v902_v28  ;;  %905 = vst [vmem:[%s6144_s12 + $0xae8] sm:$0xff] %v904_v29  ;;  %v908_v31 = vld [vmem:[%s6139_s11 + $0x15d8] sm:$0xff]  ;;  %v910_v32 = vld [vmem:[%s6139_s11 + $0x1600] sm:$0xff] }
  0xc7   : > { %907 = vst [vmem:[%s6144_s12 + $0xaf0] sm:$0xff] %v906_v30  ;;  %v912_v33 = vld [vmem:[%s6139_s11 + $0x1608] sm:$0xff]  ;;  %909 = vst [vmem:[%s6144_s12 + $0xaf8] sm:$0xff] %v908_v31  ;;  %v914_v34 = vld [vmem:[%s6139_s11 + $0x1610] sm:$0xff] }
  0xc8   : > { %911 = vst [vmem:[%s6144_s12 + $0xb00] sm:$0xff] %v910_v32  ;;  %913 = vst [vmem:[%s6144_s12 + $0xb08] sm:$0xff] %v912_v33  ;;  %v916_v35 = vld [vmem:[%s6139_s11 + $0x1618] sm:$0xff]  ;;  %v918_v36 = vld [vmem:[%s6139_s11 + $0x1640] sm:$0xff] }
  0xc9   : > { %915 = vst [vmem:[%s6144_s12 + $0xb10] sm:$0xff] %v914_v34  ;;  %917 = vst [vmem:[%s6144_s12 + $0xb18] sm:$0xff] %v916_v35  ;;  %v920_v37 = vld [vmem:[%s6139_s11 + $0x1648] sm:$0xff]  ;;  %v922_v38 = vld [vmem:[%s6139_s11 + $0x1650] sm:$0xff] }
  0xca   : > { %919 = vst [vmem:[%s6144_s12 + $0xb20] sm:$0xff] %v918_v36  ;;  %v924_v39 = vld [vmem:[%s6139_s11 + $0x1658] sm:$0xff]  ;;  %921 = vst [vmem:[%s6144_s12 + $0xb28] sm:$0xff] %v920_v37  ;;  %v926_v40 = vld [vmem:[%s6139_s11 + $0x1680] sm:$0xff] }
  0xcb   : > { %923 = vst [vmem:[%s6144_s12 + $0xb30] sm:$0xff] %v922_v38  ;;  %925 = vst [vmem:[%s6144_s12 + $0xb38] sm:$0xff] %v924_v39  ;;  %v928_v41 = vld [vmem:[%s6139_s11 + $0x1688] sm:$0xff]  ;;  %v930_v42 = vld [vmem:[%s6139_s11 + $0x1690] sm:$0xff] }
  0xcc   : > { %927 = vst [vmem:[%s6144_s12 + $0xb40] sm:$0xff] %v926_v40  ;;  %929 = vst [vmem:[%s6144_s12 + $0xb48] sm:$0xff] %v928_v41  ;;  %v932_v43 = vld [vmem:[%s6139_s11 + $0x1698] sm:$0xff]  ;;  %v934_v44 = vld [vmem:[%s6139_s11 + $0x16c0] sm:$0xff] }
  0xcd   : > { %931 = vst [vmem:[%s6144_s12 + $0xb50] sm:$0xff] %v930_v42  ;;  %v936_v45 = vld [vmem:[%s6139_s11 + $0x16c8] sm:$0xff]  ;;  %933 = vst [vmem:[%s6144_s12 + $0xb58] sm:$0xff] %v932_v43  ;;  %v938_v46 = vld [vmem:[%s6139_s11 + $0x16d0] sm:$0xff] }
  0xce   : > { %935 = vst [vmem:[%s6144_s12 + $0xb60] sm:$0xff] %v934_v44  ;;  %937 = vst [vmem:[%s6144_s12 + $0xb68] sm:$0xff] %v936_v45  ;;  %v940_v47 = vld [vmem:[%s6139_s11 + $0x16d8] sm:$0xff]  ;;  %v942_v48 = vld [vmem:[%s6139_s11 + $0x1700] sm:$0xff] }
  0xcf   : > { %939 = vst [vmem:[%s6144_s12 + $0xb70] sm:$0xff] %v938_v46  ;;  %941 = vst [vmem:[%s6144_s12 + $0xb78] sm:$0xff] %v940_v47  ;;  %v944_v49 = vld [vmem:[%s6139_s11 + $0x1708] sm:$0xff]  ;;  %v946_v50 = vld [vmem:[%s6139_s11 + $0x1710] sm:$0xff] }
  0xd0   : > { %943 = vst [vmem:[%s6144_s12 + $0xb80] sm:$0xff] %v942_v48  ;;  %v948_v51 = vld [vmem:[%s6139_s11 + $0x1718] sm:$0xff]  ;;  %945 = vst [vmem:[%s6144_s12 + $0xb88] sm:$0xff] %v944_v49  ;;  %v950_v52 = vld [vmem:[%s6139_s11 + $0x1740] sm:$0xff] }
  0xd1   : > { %947 = vst [vmem:[%s6144_s12 + $0xb90] sm:$0xff] %v946_v50  ;;  %949 = vst [vmem:[%s6144_s12 + $0xb98] sm:$0xff] %v948_v51  ;;  %v952_v53 = vld [vmem:[%s6139_s11 + $0x1748] sm:$0xff]  ;;  %v954_v54 = vld [vmem:[%s6139_s11 + $0x1750] sm:$0xff] }
  0xd2   : > { %951 = vst [vmem:[%s6144_s12 + $0xba0] sm:$0xff] %v950_v52  ;;  %953 = vst [vmem:[%s6144_s12 + $0xba8] sm:$0xff] %v952_v53  ;;  %v956_v55 = vld [vmem:[%s6139_s11 + $0x1758] sm:$0xff]  ;;  %v958_v56 = vld [vmem:[%s6139_s11 + $0x1780] sm:$0xff] }
  0xd3   : > { %955 = vst [vmem:[%s6144_s12 + $0xbb0] sm:$0xff] %v954_v54  ;;  %v960_v57 = vld [vmem:[%s6139_s11 + $0x1788] sm:$0xff]  ;;  %957 = vst [vmem:[%s6144_s12 + $0xbb8] sm:$0xff] %v956_v55  ;;  %v962_v58 = vld [vmem:[%s6139_s11 + $0x1790] sm:$0xff] }
  0xd4   : > { %959 = vst [vmem:[%s6144_s12 + $0xbc0] sm:$0xff] %v958_v56  ;;  %961 = vst [vmem:[%s6144_s12 + $0xbc8] sm:$0xff] %v960_v57  ;;  %v964_v59 = vld [vmem:[%s6139_s11 + $0x1798] sm:$0xff]  ;;  %v966_v60 = vld [vmem:[%s6139_s11 + $0x17c0] sm:$0xff] }
  0xd5   : > { %963 = vst [vmem:[%s6144_s12 + $0xbd0] sm:$0xff] %v962_v58  ;;  %965 = vst [vmem:[%s6144_s12 + $0xbd8] sm:$0xff] %v964_v59  ;;  %v968_v61 = vld [vmem:[%s6139_s11 + $0x17c8] sm:$0xff]  ;;  %v970_v62 = vld [vmem:[%s6139_s11 + $0x17d0] sm:$0xff] }
  0xd6   : > { %967 = vst [vmem:[%s6144_s12 + $0xbe0] sm:$0xff] %v966_v60  ;;  %v972_v63 = vld [vmem:[%s6139_s11 + $0x17d8] sm:$0xff]  ;;  %969 = vst [vmem:[%s6144_s12 + $0xbe8] sm:$0xff] %v968_v61  ;;  %v974_v0 = vld [vmem:[%s6139_s11 + $0x1800] sm:$0xff] }
  0xd7   : > { %971 = vst [vmem:[%s6144_s12 + $0xbf0] sm:$0xff] %v970_v62  ;;  %973 = vst [vmem:[%s6144_s12 + $0xbf8] sm:$0xff] %v972_v63  ;;  %v976_v1 = vld [vmem:[%s6139_s11 + $0x1808] sm:$0xff]  ;;  %v978_v2 = vld [vmem:[%s6139_s11 + $0x1810] sm:$0xff] }
  0xd8   : > { %975 = vst [vmem:[%s6144_s12 + $0xc00] sm:$0xff] %v974_v0  ;;  %977 = vst [vmem:[%s6144_s12 + $0xc08] sm:$0xff] %v976_v1  ;;  %v980_v3 = vld [vmem:[%s6139_s11 + $0x1818] sm:$0xff]  ;;  %v982_v4 = vld [vmem:[%s6139_s11 + $0x1840] sm:$0xff] }
  0xd9   : > { %979 = vst [vmem:[%s6144_s12 + $0xc10] sm:$0xff] %v978_v2  ;;  %v984_v5 = vld [vmem:[%s6139_s11 + $0x1848] sm:$0xff]  ;;  %981 = vst [vmem:[%s6144_s12 + $0xc18] sm:$0xff] %v980_v3  ;;  %v986_v6 = vld [vmem:[%s6139_s11 + $0x1850] sm:$0xff] }
  0xda   : > { %983 = vst [vmem:[%s6144_s12 + $0xc20] sm:$0xff] %v982_v4  ;;  %985 = vst [vmem:[%s6144_s12 + $0xc28] sm:$0xff] %v984_v5  ;;  %v988_v7 = vld [vmem:[%s6139_s11 + $0x1858] sm:$0xff]  ;;  %v990_v8 = vld [vmem:[%s6139_s11 + $0x1880] sm:$0xff] }
  0xdb   : > { %987 = vst [vmem:[%s6144_s12 + $0xc30] sm:$0xff] %v986_v6  ;;  %989 = vst [vmem:[%s6144_s12 + $0xc38] sm:$0xff] %v988_v7  ;;  %v992_v9 = vld [vmem:[%s6139_s11 + $0x1888] sm:$0xff]  ;;  %v994_v10 = vld [vmem:[%s6139_s11 + $0x1890] sm:$0xff] }
  0xdc   : > { %991 = vst [vmem:[%s6144_s12 + $0xc40] sm:$0xff] %v990_v8  ;;  %v996_v11 = vld [vmem:[%s6139_s11 + $0x1898] sm:$0xff]  ;;  %993 = vst [vmem:[%s6144_s12 + $0xc48] sm:$0xff] %v992_v9  ;;  %v998_v12 = vld [vmem:[%s6139_s11 + $0x18c0] sm:$0xff] }
  0xdd   : > { %995 = vst [vmem:[%s6144_s12 + $0xc50] sm:$0xff] %v994_v10  ;;  %997 = vst [vmem:[%s6144_s12 + $0xc58] sm:$0xff] %v996_v11  ;;  %v1000_v13 = vld [vmem:[%s6139_s11 + $0x18c8] sm:$0xff]  ;;  %v1002_v14 = vld [vmem:[%s6139_s11 + $0x18d0] sm:$0xff] }
  0xde   : > { %999 = vst [vmem:[%s6144_s12 + $0xc60] sm:$0xff] %v998_v12  ;;  %1001 = vst [vmem:[%s6144_s12 + $0xc68] sm:$0xff] %v1000_v13  ;;  %v1004_v15 = vld [vmem:[%s6139_s11 + $0x18d8] sm:$0xff]  ;;  %v1006_v16 = vld [vmem:[%s6139_s11 + $0x1900] sm:$0xff] }
  0xdf   : > { %1003 = vst [vmem:[%s6144_s12 + $0xc70] sm:$0xff] %v1002_v14  ;;  %v1008_v17 = vld [vmem:[%s6139_s11 + $0x1908] sm:$0xff]  ;;  %1005 = vst [vmem:[%s6144_s12 + $0xc78] sm:$0xff] %v1004_v15  ;;  %v1010_v18 = vld [vmem:[%s6139_s11 + $0x1910] sm:$0xff] }
  0xe0   : > { %1007 = vst [vmem:[%s6144_s12 + $0xc80] sm:$0xff] %v1006_v16  ;;  %1009 = vst [vmem:[%s6144_s12 + $0xc88] sm:$0xff] %v1008_v17  ;;  %v1012_v19 = vld [vmem:[%s6139_s11 + $0x1918] sm:$0xff]  ;;  %v1014_v20 = vld [vmem:[%s6139_s11 + $0x1940] sm:$0xff] }
  0xe1   : > { %1011 = vst [vmem:[%s6144_s12 + $0xc90] sm:$0xff] %v1010_v18  ;;  %1013 = vst [vmem:[%s6144_s12 + $0xc98] sm:$0xff] %v1012_v19  ;;  %v1016_v21 = vld [vmem:[%s6139_s11 + $0x1948] sm:$0xff]  ;;  %v1018_v22 = vld [vmem:[%s6139_s11 + $0x1950] sm:$0xff] }
  0xe2   : > { %1015 = vst [vmem:[%s6144_s12 + $0xca0] sm:$0xff] %v1014_v20  ;;  %v1020_v23 = vld [vmem:[%s6139_s11 + $0x1958] sm:$0xff]  ;;  %1017 = vst [vmem:[%s6144_s12 + $0xca8] sm:$0xff] %v1016_v21  ;;  %v1022_v24 = vld [vmem:[%s6139_s11 + $0x1980] sm:$0xff] }
  0xe3   : > { %1019 = vst [vmem:[%s6144_s12 + $0xcb0] sm:$0xff] %v1018_v22  ;;  %1021 = vst [vmem:[%s6144_s12 + $0xcb8] sm:$0xff] %v1020_v23  ;;  %v1024_v25 = vld [vmem:[%s6139_s11 + $0x1988] sm:$0xff]  ;;  %v1026_v26 = vld [vmem:[%s6139_s11 + $0x1990] sm:$0xff] }
  0xe4   : > { %1023 = vst [vmem:[%s6144_s12 + $0xcc0] sm:$0xff] %v1022_v24  ;;  %1025 = vst [vmem:[%s6144_s12 + $0xcc8] sm:$0xff] %v1024_v25  ;;  %v1028_v27 = vld [vmem:[%s6139_s11 + $0x1998] sm:$0xff]  ;;  %v1030_v28 = vld [vmem:[%s6139_s11 + $0x19c0] sm:$0xff] }
  0xe5   : > { %1027 = vst [vmem:[%s6144_s12 + $0xcd0] sm:$0xff] %v1026_v26  ;;  %v1032_v29 = vld [vmem:[%s6139_s11 + $0x19c8] sm:$0xff]  ;;  %1029 = vst [vmem:[%s6144_s12 + $0xcd8] sm:$0xff] %v1028_v27  ;;  %v1034_v30 = vld [vmem:[%s6139_s11 + $0x19d0] sm:$0xff] }
  0xe6   : > { %1031 = vst [vmem:[%s6144_s12 + $0xce0] sm:$0xff] %v1030_v28  ;;  %1033 = vst [vmem:[%s6144_s12 + $0xce8] sm:$0xff] %v1032_v29  ;;  %v1036_v31 = vld [vmem:[%s6139_s11 + $0x19d8] sm:$0xff]  ;;  %v1038_v32 = vld [vmem:[%s6139_s11 + $0x1a00] sm:$0xff] }
  0xe7   : > { %1035 = vst [vmem:[%s6144_s12 + $0xcf0] sm:$0xff] %v1034_v30  ;;  %1037 = vst [vmem:[%s6144_s12 + $0xcf8] sm:$0xff] %v1036_v31  ;;  %v1040_v33 = vld [vmem:[%s6139_s11 + $0x1a08] sm:$0xff]  ;;  %v1042_v34 = vld [vmem:[%s6139_s11 + $0x1a10] sm:$0xff] }
  0xe8   : > { %1039 = vst [vmem:[%s6144_s12 + $0xd00] sm:$0xff] %v1038_v32  ;;  %v1044_v35 = vld [vmem:[%s6139_s11 + $0x1a18] sm:$0xff]  ;;  %1041 = vst [vmem:[%s6144_s12 + $0xd08] sm:$0xff] %v1040_v33  ;;  %v1046_v36 = vld [vmem:[%s6139_s11 + $0x1a40] sm:$0xff] }
  0xe9   : > { %1043 = vst [vmem:[%s6144_s12 + $0xd10] sm:$0xff] %v1042_v34  ;;  %1045 = vst [vmem:[%s6144_s12 + $0xd18] sm:$0xff] %v1044_v35  ;;  %v1048_v37 = vld [vmem:[%s6139_s11 + $0x1a48] sm:$0xff]  ;;  %v1050_v38 = vld [vmem:[%s6139_s11 + $0x1a50] sm:$0xff] }
  0xea   : > { %1047 = vst [vmem:[%s6144_s12 + $0xd20] sm:$0xff] %v1046_v36  ;;  %1049 = vst [vmem:[%s6144_s12 + $0xd28] sm:$0xff] %v1048_v37  ;;  %v1052_v39 = vld [vmem:[%s6139_s11 + $0x1a58] sm:$0xff]  ;;  %v1054_v40 = vld [vmem:[%s6139_s11 + $0x1a80] sm:$0xff] }
  0xeb   : > { %1051 = vst [vmem:[%s6144_s12 + $0xd30] sm:$0xff] %v1050_v38  ;;  %v1056_v41 = vld [vmem:[%s6139_s11 + $0x1a88] sm:$0xff]  ;;  %1053 = vst [vmem:[%s6144_s12 + $0xd38] sm:$0xff] %v1052_v39  ;;  %v1058_v42 = vld [vmem:[%s6139_s11 + $0x1a90] sm:$0xff] }
  0xec   : > { %1055 = vst [vmem:[%s6144_s12 + $0xd40] sm:$0xff] %v1054_v40  ;;  %1057 = vst [vmem:[%s6144_s12 + $0xd48] sm:$0xff] %v1056_v41  ;;  %v1060_v43 = vld [vmem:[%s6139_s11 + $0x1a98] sm:$0xff]  ;;  %v1062_v44 = vld [vmem:[%s6139_s11 + $0x1ac0] sm:$0xff] }
  0xed   : > { %1059 = vst [vmem:[%s6144_s12 + $0xd50] sm:$0xff] %v1058_v42  ;;  %1061 = vst [vmem:[%s6144_s12 + $0xd58] sm:$0xff] %v1060_v43  ;;  %v1064_v45 = vld [vmem:[%s6139_s11 + $0x1ac8] sm:$0xff]  ;;  %v1066_v46 = vld [vmem:[%s6139_s11 + $0x1ad0] sm:$0xff] }
  0xee   : > { %1063 = vst [vmem:[%s6144_s12 + $0xd60] sm:$0xff] %v1062_v44  ;;  %v1068_v47 = vld [vmem:[%s6139_s11 + $0x1ad8] sm:$0xff]  ;;  %1065 = vst [vmem:[%s6144_s12 + $0xd68] sm:$0xff] %v1064_v45  ;;  %v1070_v48 = vld [vmem:[%s6139_s11 + $0x1b00] sm:$0xff] }
  0xef   : > { %1067 = vst [vmem:[%s6144_s12 + $0xd70] sm:$0xff] %v1066_v46  ;;  %1069 = vst [vmem:[%s6144_s12 + $0xd78] sm:$0xff] %v1068_v47  ;;  %v1072_v49 = vld [vmem:[%s6139_s11 + $0x1b08] sm:$0xff]  ;;  %v1074_v50 = vld [vmem:[%s6139_s11 + $0x1b10] sm:$0xff] }
  0xf0   : > { %1071 = vst [vmem:[%s6144_s12 + $0xd80] sm:$0xff] %v1070_v48  ;;  %1073 = vst [vmem:[%s6144_s12 + $0xd88] sm:$0xff] %v1072_v49  ;;  %v1076_v51 = vld [vmem:[%s6139_s11 + $0x1b18] sm:$0xff]  ;;  %v1078_v52 = vld [vmem:[%s6139_s11 + $0x1b40] sm:$0xff] }
  0xf1   : > { %1075 = vst [vmem:[%s6144_s12 + $0xd90] sm:$0xff] %v1074_v50  ;;  %v1080_v53 = vld [vmem:[%s6139_s11 + $0x1b48] sm:$0xff]  ;;  %1077 = vst [vmem:[%s6144_s12 + $0xd98] sm:$0xff] %v1076_v51  ;;  %v1082_v54 = vld [vmem:[%s6139_s11 + $0x1b50] sm:$0xff] }
  0xf2   : > { %1079 = vst [vmem:[%s6144_s12 + $0xda0] sm:$0xff] %v1078_v52  ;;  %1081 = vst [vmem:[%s6144_s12 + $0xda8] sm:$0xff] %v1080_v53  ;;  %v1084_v55 = vld [vmem:[%s6139_s11 + $0x1b58] sm:$0xff]  ;;  %v1086_v56 = vld [vmem:[%s6139_s11 + $0x1b80] sm:$0xff] }
  0xf3   : > { %1083 = vst [vmem:[%s6144_s12 + $0xdb0] sm:$0xff] %v1082_v54  ;;  %1085 = vst [vmem:[%s6144_s12 + $0xdb8] sm:$0xff] %v1084_v55  ;;  %v1088_v57 = vld [vmem:[%s6139_s11 + $0x1b88] sm:$0xff]  ;;  %v1090_v58 = vld [vmem:[%s6139_s11 + $0x1b90] sm:$0xff] }
  0xf4   : > { %1087 = vst [vmem:[%s6144_s12 + $0xdc0] sm:$0xff] %v1086_v56  ;;  %v1092_v59 = vld [vmem:[%s6139_s11 + $0x1b98] sm:$0xff]  ;;  %1089 = vst [vmem:[%s6144_s12 + $0xdc8] sm:$0xff] %v1088_v57  ;;  %v1094_v60 = vld [vmem:[%s6139_s11 + $0x1bc0] sm:$0xff] }
  0xf5   : > { %1091 = vst [vmem:[%s6144_s12 + $0xdd0] sm:$0xff] %v1090_v58  ;;  %1093 = vst [vmem:[%s6144_s12 + $0xdd8] sm:$0xff] %v1092_v59  ;;  %v1096_v61 = vld [vmem:[%s6139_s11 + $0x1bc8] sm:$0xff]  ;;  %v1098_v62 = vld [vmem:[%s6139_s11 + $0x1bd0] sm:$0xff] }
  0xf6   : > { %1095 = vst [vmem:[%s6144_s12 + $0xde0] sm:$0xff] %v1094_v60  ;;  %1097 = vst [vmem:[%s6144_s12 + $0xde8] sm:$0xff] %v1096_v61  ;;  %v1100_v63 = vld [vmem:[%s6139_s11 + $0x1bd8] sm:$0xff]  ;;  %v1102_v0 = vld [vmem:[%s6139_s11 + $0x1c00] sm:$0xff] }
  0xf7   : > { %1099 = vst [vmem:[%s6144_s12 + $0xdf0] sm:$0xff] %v1098_v62  ;;  %v1104_v1 = vld [vmem:[%s6139_s11 + $0x1c08] sm:$0xff]  ;;  %1101 = vst [vmem:[%s6144_s12 + $0xdf8] sm:$0xff] %v1100_v63  ;;  %v1106_v2 = vld [vmem:[%s6139_s11 + $0x1c10] sm:$0xff] }
  0xf8   : > { %1103 = vst [vmem:[%s6144_s12 + $0xe00] sm:$0xff] %v1102_v0  ;;  %1105 = vst [vmem:[%s6144_s12 + $0xe08] sm:$0xff] %v1104_v1  ;;  %v1108_v3 = vld [vmem:[%s6139_s11 + $0x1c18] sm:$0xff]  ;;  %v1110_v4 = vld [vmem:[%s6139_s11 + $0x1c40] sm:$0xff] }
  0xf9   : > { %1107 = vst [vmem:[%s6144_s12 + $0xe10] sm:$0xff] %v1106_v2  ;;  %1109 = vst [vmem:[%s6144_s12 + $0xe18] sm:$0xff] %v1108_v3  ;;  %v1112_v5 = vld [vmem:[%s6139_s11 + $0x1c48] sm:$0xff]  ;;  %v1114_v6 = vld [vmem:[%s6139_s11 + $0x1c50] sm:$0xff] }
  0xfa   : > { %1111 = vst [vmem:[%s6144_s12 + $0xe20] sm:$0xff] %v1110_v4  ;;  %v1116_v7 = vld [vmem:[%s6139_s11 + $0x1c58] sm:$0xff]  ;;  %1113 = vst [vmem:[%s6144_s12 + $0xe28] sm:$0xff] %v1112_v5  ;;  %v1118_v8 = vld [vmem:[%s6139_s11 + $0x1c80] sm:$0xff] }
  0xfb   : > { %1115 = vst [vmem:[%s6144_s12 + $0xe30] sm:$0xff] %v1114_v6  ;;  %1117 = vst [vmem:[%s6144_s12 + $0xe38] sm:$0xff] %v1116_v7  ;;  %v1120_v9 = vld [vmem:[%s6139_s11 + $0x1c88] sm:$0xff]  ;;  %v1122_v10 = vld [vmem:[%s6139_s11 + $0x1c90] sm:$0xff] }
  0xfc   : > { %1119 = vst [vmem:[%s6144_s12 + $0xe40] sm:$0xff] %v1118_v8  ;;  %1121 = vst [vmem:[%s6144_s12 + $0xe48] sm:$0xff] %v1120_v9  ;;  %v1124_v11 = vld [vmem:[%s6139_s11 + $0x1c98] sm:$0xff]  ;;  %v1126_v12 = vld [vmem:[%s6139_s11 + $0x1cc0] sm:$0xff] }
  0xfd   : > { %1123 = vst [vmem:[%s6144_s12 + $0xe50] sm:$0xff] %v1122_v10  ;;  %v1128_v13 = vld [vmem:[%s6139_s11 + $0x1cc8] sm:$0xff]  ;;  %1125 = vst [vmem:[%s6144_s12 + $0xe58] sm:$0xff] %v1124_v11  ;;  %v1130_v14 = vld [vmem:[%s6139_s11 + $0x1cd0] sm:$0xff] }
  0xfe   : > { %1127 = vst [vmem:[%s6144_s12 + $0xe60] sm:$0xff] %v1126_v12  ;;  %1129 = vst [vmem:[%s6144_s12 + $0xe68] sm:$0xff] %v1128_v13  ;;  %v1132_v15 = vld [vmem:[%s6139_s11 + $0x1cd8] sm:$0xff]  ;;  %v1134_v16 = vld [vmem:[%s6139_s11 + $0x1d00] sm:$0xff] }
  0xff   : > { %1131 = vst [vmem:[%s6144_s12 + $0xe70] sm:$0xff] %v1130_v14  ;;  %1133 = vst [vmem:[%s6144_s12 + $0xe78] sm:$0xff] %v1132_v15  ;;  %v1136_v17 = vld [vmem:[%s6139_s11 + $0x1d08] sm:$0xff]  ;;  %v1138_v18 = vld [vmem:[%s6139_s11 + $0x1d10] sm:$0xff] }
 0x100   : > { %1135 = vst [vmem:[%s6144_s12 + $0xe80] sm:$0xff] %v1134_v16  ;;  %v1140_v19 = vld [vmem:[%s6139_s11 + $0x1d18] sm:$0xff]  ;;  %1137 = vst [vmem:[%s6144_s12 + $0xe88] sm:$0xff] %v1136_v17  ;;  %v1142_v20 = vld [vmem:[%s6139_s11 + $0x1d40] sm:$0xff] }
 0x101   : > { %1139 = vst [vmem:[%s6144_s12 + $0xe90] sm:$0xff] %v1138_v18  ;;  %1141 = vst [vmem:[%s6144_s12 + $0xe98] sm:$0xff] %v1140_v19  ;;  %v1144_v21 = vld [vmem:[%s6139_s11 + $0x1d48] sm:$0xff]  ;;  %v1146_v22 = vld [vmem:[%s6139_s11 + $0x1d50] sm:$0xff] }
 0x102   : > { %1143 = vst [vmem:[%s6144_s12 + $0xea0] sm:$0xff] %v1142_v20  ;;  %1145 = vst [vmem:[%s6144_s12 + $0xea8] sm:$0xff] %v1144_v21  ;;  %v1148_v23 = vld [vmem:[%s6139_s11 + $0x1d58] sm:$0xff]  ;;  %v1150_v24 = vld [vmem:[%s6139_s11 + $0x1d80] sm:$0xff] }
 0x103   : > { %1147 = vst [vmem:[%s6144_s12 + $0xeb0] sm:$0xff] %v1146_v22  ;;  %v1152_v25 = vld [vmem:[%s6139_s11 + $0x1d88] sm:$0xff]  ;;  %1149 = vst [vmem:[%s6144_s12 + $0xeb8] sm:$0xff] %v1148_v23  ;;  %v1154_v26 = vld [vmem:[%s6139_s11 + $0x1d90] sm:$0xff] }
 0x104   : > { %1151 = vst [vmem:[%s6144_s12 + $0xec0] sm:$0xff] %v1150_v24  ;;  %1153 = vst [vmem:[%s6144_s12 + $0xec8] sm:$0xff] %v1152_v25  ;;  %v1156_v27 = vld [vmem:[%s6139_s11 + $0x1d98] sm:$0xff]  ;;  %v1158_v28 = vld [vmem:[%s6139_s11 + $0x1dc0] sm:$0xff] }
 0x105   : > { %1155 = vst [vmem:[%s6144_s12 + $0xed0] sm:$0xff] %v1154_v26  ;;  %1157 = vst [vmem:[%s6144_s12 + $0xed8] sm:$0xff] %v1156_v27  ;;  %v1160_v29 = vld [vmem:[%s6139_s11 + $0x1dc8] sm:$0xff]  ;;  %v1162_v30 = vld [vmem:[%s6139_s11 + $0x1dd0] sm:$0xff] }
 0x106   : > { %1159 = vst [vmem:[%s6144_s12 + $0xee0] sm:$0xff] %v1158_v28  ;;  %v1164_v31 = vld [vmem:[%s6139_s11 + $0x1dd8] sm:$0xff]  ;;  %1161 = vst [vmem:[%s6144_s12 + $0xee8] sm:$0xff] %v1160_v29  ;;  %v1166_v32 = vld [vmem:[%s6139_s11 + $0x1e00] sm:$0xff] }
 0x107   : > { %1163 = vst [vmem:[%s6144_s12 + $0xef0] sm:$0xff] %v1162_v30  ;;  %1165 = vst [vmem:[%s6144_s12 + $0xef8] sm:$0xff] %v1164_v31  ;;  %v1168_v33 = vld [vmem:[%s6139_s11 + $0x1e08] sm:$0xff]  ;;  %v1170_v34 = vld [vmem:[%s6139_s11 + $0x1e10] sm:$0xff] }
 0x108   : > { %1167 = vst [vmem:[%s6144_s12 + $0xf00] sm:$0xff] %v1166_v32  ;;  %1169 = vst [vmem:[%s6144_s12 + $0xf08] sm:$0xff] %v1168_v33  ;;  %v1172_v35 = vld [vmem:[%s6139_s11 + $0x1e18] sm:$0xff]  ;;  %v1174_v36 = vld [vmem:[%s6139_s11 + $0x1e40] sm:$0xff] }
 0x109   : > { %1171 = vst [vmem:[%s6144_s12 + $0xf10] sm:$0xff] %v1170_v34  ;;  %v1176_v37 = vld [vmem:[%s6139_s11 + $0x1e48] sm:$0xff]  ;;  %1173 = vst [vmem:[%s6144_s12 + $0xf18] sm:$0xff] %v1172_v35  ;;  %v1178_v38 = vld [vmem:[%s6139_s11 + $0x1e50] sm:$0xff] }
 0x10a   : > { %1175 = vst [vmem:[%s6144_s12 + $0xf20] sm:$0xff] %v1174_v36  ;;  %1177 = vst [vmem:[%s6144_s12 + $0xf28] sm:$0xff] %v1176_v37  ;;  %v1180_v39 = vld [vmem:[%s6139_s11 + $0x1e58] sm:$0xff]  ;;  %v1182_v40 = vld [vmem:[%s6139_s11 + $0x1e80] sm:$0xff] }
 0x10b   : > { %1179 = vst [vmem:[%s6144_s12 + $0xf30] sm:$0xff] %v1178_v38  ;;  %1181 = vst [vmem:[%s6144_s12 + $0xf38] sm:$0xff] %v1180_v39  ;;  %v1184_v41 = vld [vmem:[%s6139_s11 + $0x1e88] sm:$0xff]  ;;  %v1186_v42 = vld [vmem:[%s6139_s11 + $0x1e90] sm:$0xff] }
 0x10c   : > { %1183 = vst [vmem:[%s6144_s12 + $0xf40] sm:$0xff] %v1182_v40  ;;  %v1188_v43 = vld [vmem:[%s6139_s11 + $0x1e98] sm:$0xff]  ;;  %1185 = vst [vmem:[%s6144_s12 + $0xf48] sm:$0xff] %v1184_v41  ;;  %v1190_v44 = vld [vmem:[%s6139_s11 + $0x1ec0] sm:$0xff] }
 0x10d   : > { %1187 = vst [vmem:[%s6144_s12 + $0xf50] sm:$0xff] %v1186_v42  ;;  %1189 = vst [vmem:[%s6144_s12 + $0xf58] sm:$0xff] %v1188_v43  ;;  %v1192_v45 = vld [vmem:[%s6139_s11 + $0x1ec8] sm:$0xff]  ;;  %v1194_v46 = vld [vmem:[%s6139_s11 + $0x1ed0] sm:$0xff] }
 0x10e   : > { %1191 = vst [vmem:[%s6144_s12 + $0xf60] sm:$0xff] %v1190_v44  ;;  %1193 = vst [vmem:[%s6144_s12 + $0xf68] sm:$0xff] %v1192_v45  ;;  %v1196_v47 = vld [vmem:[%s6139_s11 + $0x1ed8] sm:$0xff]  ;;  %v1198_v48 = vld [vmem:[%s6139_s11 + $0x1f00] sm:$0xff] }
 0x10f   : > { %1195 = vst [vmem:[%s6144_s12 + $0xf70] sm:$0xff] %v1194_v46  ;;  %v1200_v49 = vld [vmem:[%s6139_s11 + $0x1f08] sm:$0xff]  ;;  %1197 = vst [vmem:[%s6144_s12 + $0xf78] sm:$0xff] %v1196_v47  ;;  %v1202_v50 = vld [vmem:[%s6139_s11 + $0x1f10] sm:$0xff] }
 0x110   : > { %1199 = vst [vmem:[%s6144_s12 + $0xf80] sm:$0xff] %v1198_v48  ;;  %1201 = vst [vmem:[%s6144_s12 + $0xf88] sm:$0xff] %v1200_v49  ;;  %v1204_v51 = vld [vmem:[%s6139_s11 + $0x1f18] sm:$0xff]  ;;  %v1206_v52 = vld [vmem:[%s6139_s11 + $0x1f40] sm:$0xff] }
 0x111   : > { %1203 = vst [vmem:[%s6144_s12 + $0xf90] sm:$0xff] %v1202_v50  ;;  %1205 = vst [vmem:[%s6144_s12 + $0xf98] sm:$0xff] %v1204_v51  ;;  %v1208_v53 = vld [vmem:[%s6139_s11 + $0x1f48] sm:$0xff]  ;;  %v1210_v54 = vld [vmem:[%s6139_s11 + $0x1f50] sm:$0xff] }
 0x112   : > { %1207 = vst [vmem:[%s6144_s12 + $0xfa0] sm:$0xff] %v1206_v52  ;;  %v1212_v55 = vld [vmem:[%s6139_s11 + $0x1f58] sm:$0xff]  ;;  %1209 = vst [vmem:[%s6144_s12 + $0xfa8] sm:$0xff] %v1208_v53  ;;  %v1214_v56 = vld [vmem:[%s6139_s11 + $0x1f80] sm:$0xff] }
 0x113   : > { %1211 = vst [vmem:[%s6144_s12 + $0xfb0] sm:$0xff] %v1210_v54  ;;  %1213 = vst [vmem:[%s6144_s12 + $0xfb8] sm:$0xff] %v1212_v55  ;;  %v1216_v57 = vld [vmem:[%s6139_s11 + $0x1f88] sm:$0xff]  ;;  %v1218_v58 = vld [vmem:[%s6139_s11 + $0x1f90] sm:$0xff] }
 0x114   : > { %1215 = vst [vmem:[%s6144_s12 + $0xfc0] sm:$0xff] %v1214_v56  ;;  %1217 = vst [vmem:[%s6144_s12 + $0xfc8] sm:$0xff] %v1216_v57  ;;  %v1220_v59 = vld [vmem:[%s6139_s11 + $0x1f98] sm:$0xff]  ;;  %v1222_v60 = vld [vmem:[%s6139_s11 + $0x1fc0] sm:$0xff] }
 0x115   : > { %1219 = vst [vmem:[%s6144_s12 + $0xfd0] sm:$0xff] %v1218_v58  ;;  %v1224_v61 = vld [vmem:[%s6139_s11 + $0x1fc8] sm:$0xff]  ;;  %1221 = vst [vmem:[%s6144_s12 + $0xfd8] sm:$0xff] %v1220_v59  ;;  %v1226_v62 = vld [vmem:[%s6139_s11 + $0x1fd0] sm:$0xff] }
 0x116   : > { %1223 = vst [vmem:[%s6144_s12 + $0xfe0] sm:$0xff] %v1222_v60  ;;  %1225 = vst [vmem:[%s6144_s12 + $0xfe8] sm:$0xff] %v1224_v61  ;;  %v1228_v63 = vld [vmem:[%s6139_s11 + $0x1fd8] sm:$0xff]  ;;  %v1230_v0 = vld [vmem:[%s6139_s11 + $0x2000] sm:$0xff] }
 0x117   : > { %1227 = vst [vmem:[%s6144_s12 + $0xff0] sm:$0xff] %v1226_v62  ;;  %1229 = vst [vmem:[%s6144_s12 + $0xff8] sm:$0xff] %v1228_v63  ;;  %v1232_v1 = vld [vmem:[%s6139_s11 + $0x2008] sm:$0xff]  ;;  %v1234_v2 = vld [vmem:[%s6139_s11 + $0x2010] sm:$0xff] }
 0x118   : > { %1231 = vst [vmem:[%s6144_s12 + $0x1000] sm:$0xff] %v1230_v0  ;;  %v1236_v3 = vld [vmem:[%s6139_s11 + $0x2018] sm:$0xff]  ;;  %1233 = vst [vmem:[%s6144_s12 + $0x1008] sm:$0xff] %v1232_v1  ;;  %v1238_v4 = vld [vmem:[%s6139_s11 + $0x2040] sm:$0xff] }
 0x119   : > { %1235 = vst [vmem:[%s6144_s12 + $0x1010] sm:$0xff] %v1234_v2  ;;  %1237 = vst [vmem:[%s6144_s12 + $0x1018] sm:$0xff] %v1236_v3  ;;  %v1240_v5 = vld [vmem:[%s6139_s11 + $0x2048] sm:$0xff]  ;;  %v1242_v6 = vld [vmem:[%s6139_s11 + $0x2050] sm:$0xff] }
 0x11a   : > { %1239 = vst [vmem:[%s6144_s12 + $0x1020] sm:$0xff] %v1238_v4  ;;  %1241 = vst [vmem:[%s6144_s12 + $0x1028] sm:$0xff] %v1240_v5  ;;  %v1244_v7 = vld [vmem:[%s6139_s11 + $0x2058] sm:$0xff]  ;;  %v1246_v8 = vld [vmem:[%s6139_s11 + $0x2080] sm:$0xff] }
 0x11b   : > { %1243 = vst [vmem:[%s6144_s12 + $0x1030] sm:$0xff] %v1242_v6  ;;  %v1248_v9 = vld [vmem:[%s6139_s11 + $0x2088] sm:$0xff]  ;;  %1245 = vst [vmem:[%s6144_s12 + $0x1038] sm:$0xff] %v1244_v7  ;;  %v1250_v10 = vld [vmem:[%s6139_s11 + $0x2090] sm:$0xff] }
 0x11c   : > { %1247 = vst [vmem:[%s6144_s12 + $0x1040] sm:$0xff] %v1246_v8  ;;  %1249 = vst [vmem:[%s6144_s12 + $0x1048] sm:$0xff] %v1248_v9  ;;  %v1252_v11 = vld [vmem:[%s6139_s11 + $0x2098] sm:$0xff]  ;;  %v1254_v12 = vld [vmem:[%s6139_s11 + $0x20c0] sm:$0xff] }
 0x11d   : > { %1251 = vst [vmem:[%s6144_s12 + $0x1050] sm:$0xff] %v1250_v10  ;;  %1253 = vst [vmem:[%s6144_s12 + $0x1058] sm:$0xff] %v1252_v11  ;;  %v1256_v13 = vld [vmem:[%s6139_s11 + $0x20c8] sm:$0xff]  ;;  %v1258_v14 = vld [vmem:[%s6139_s11 + $0x20d0] sm:$0xff] }
 0x11e   : > { %1255 = vst [vmem:[%s6144_s12 + $0x1060] sm:$0xff] %v1254_v12  ;;  %v1260_v15 = vld [vmem:[%s6139_s11 + $0x20d8] sm:$0xff]  ;;  %1257 = vst [vmem:[%s6144_s12 + $0x1068] sm:$0xff] %v1256_v13  ;;  %v1262_v16 = vld [vmem:[%s6139_s11 + $0x2100] sm:$0xff] }
 0x11f   : > { %1259 = vst [vmem:[%s6144_s12 + $0x1070] sm:$0xff] %v1258_v14  ;;  %1261 = vst [vmem:[%s6144_s12 + $0x1078] sm:$0xff] %v1260_v15  ;;  %v1264_v17 = vld [vmem:[%s6139_s11 + $0x2108] sm:$0xff]  ;;  %v1266_v18 = vld [vmem:[%s6139_s11 + $0x2110] sm:$0xff] }
 0x120   : > { %1263 = vst [vmem:[%s6144_s12 + $0x1080] sm:$0xff] %v1262_v16  ;;  %1265 = vst [vmem:[%s6144_s12 + $0x1088] sm:$0xff] %v1264_v17  ;;  %v1268_v19 = vld [vmem:[%s6139_s11 + $0x2118] sm:$0xff]  ;;  %v1270_v20 = vld [vmem:[%s6139_s11 + $0x2140] sm:$0xff] }
 0x121   : > { %1267 = vst [vmem:[%s6144_s12 + $0x1090] sm:$0xff] %v1266_v18  ;;  %v1272_v21 = vld [vmem:[%s6139_s11 + $0x2148] sm:$0xff]  ;;  %1269 = vst [vmem:[%s6144_s12 + $0x1098] sm:$0xff] %v1268_v19  ;;  %v1274_v22 = vld [vmem:[%s6139_s11 + $0x2150] sm:$0xff] }
 0x122   : > { %1271 = vst [vmem:[%s6144_s12 + $0x10a0] sm:$0xff] %v1270_v20  ;;  %1273 = vst [vmem:[%s6144_s12 + $0x10a8] sm:$0xff] %v1272_v21  ;;  %v1276_v23 = vld [vmem:[%s6139_s11 + $0x2158] sm:$0xff]  ;;  %v1278_v24 = vld [vmem:[%s6139_s11 + $0x2180] sm:$0xff] }
 0x123   : > { %1275 = vst [vmem:[%s6144_s12 + $0x10b0] sm:$0xff] %v1274_v22  ;;  %1277 = vst [vmem:[%s6144_s12 + $0x10b8] sm:$0xff] %v1276_v23  ;;  %v1280_v25 = vld [vmem:[%s6139_s11 + $0x2188] sm:$0xff]  ;;  %v1282_v26 = vld [vmem:[%s6139_s11 + $0x2190] sm:$0xff] }
 0x124   : > { %1279 = vst [vmem:[%s6144_s12 + $0x10c0] sm:$0xff] %v1278_v24  ;;  %v1284_v27 = vld [vmem:[%s6139_s11 + $0x2198] sm:$0xff]  ;;  %1281 = vst [vmem:[%s6144_s12 + $0x10c8] sm:$0xff] %v1280_v25  ;;  %v1286_v28 = vld [vmem:[%s6139_s11 + $0x21c0] sm:$0xff] }
 0x125   : > { %1283 = vst [vmem:[%s6144_s12 + $0x10d0] sm:$0xff] %v1282_v26  ;;  %1285 = vst [vmem:[%s6144_s12 + $0x10d8] sm:$0xff] %v1284_v27  ;;  %v1288_v29 = vld [vmem:[%s6139_s11 + $0x21c8] sm:$0xff]  ;;  %v1290_v30 = vld [vmem:[%s6139_s11 + $0x21d0] sm:$0xff] }
 0x126   : > { %1287 = vst [vmem:[%s6144_s12 + $0x10e0] sm:$0xff] %v1286_v28  ;;  %1289 = vst [vmem:[%s6144_s12 + $0x10e8] sm:$0xff] %v1288_v29  ;;  %v1292_v31 = vld [vmem:[%s6139_s11 + $0x21d8] sm:$0xff]  ;;  %v1294_v32 = vld [vmem:[%s6139_s11 + $0x2200] sm:$0xff] }
 0x127   : > { %1291 = vst [vmem:[%s6144_s12 + $0x10f0] sm:$0xff] %v1290_v30  ;;  %v1296_v33 = vld [vmem:[%s6139_s11 + $0x2208] sm:$0xff]  ;;  %1293 = vst [vmem:[%s6144_s12 + $0x10f8] sm:$0xff] %v1292_v31  ;;  %v1298_v34 = vld [vmem:[%s6139_s11 + $0x2210] sm:$0xff] }
 0x128   : > { %1295 = vst [vmem:[%s6144_s12 + $0x1100] sm:$0xff] %v1294_v32  ;;  %1297 = vst [vmem:[%s6144_s12 + $0x1108] sm:$0xff] %v1296_v33  ;;  %v1300_v35 = vld [vmem:[%s6139_s11 + $0x2218] sm:$0xff]  ;;  %v1302_v36 = vld [vmem:[%s6139_s11 + $0x2240] sm:$0xff] }
 0x129   : > { %1299 = vst [vmem:[%s6144_s12 + $0x1110] sm:$0xff] %v1298_v34  ;;  %1301 = vst [vmem:[%s6144_s12 + $0x1118] sm:$0xff] %v1300_v35  ;;  %v1304_v37 = vld [vmem:[%s6139_s11 + $0x2248] sm:$0xff]  ;;  %v1306_v38 = vld [vmem:[%s6139_s11 + $0x2250] sm:$0xff] }
 0x12a   : > { %1303 = vst [vmem:[%s6144_s12 + $0x1120] sm:$0xff] %v1302_v36  ;;  %v1308_v39 = vld [vmem:[%s6139_s11 + $0x2258] sm:$0xff]  ;;  %1305 = vst [vmem:[%s6144_s12 + $0x1128] sm:$0xff] %v1304_v37  ;;  %v1310_v40 = vld [vmem:[%s6139_s11 + $0x2280] sm:$0xff] }
 0x12b   : > { %1307 = vst [vmem:[%s6144_s12 + $0x1130] sm:$0xff] %v1306_v38  ;;  %1309 = vst [vmem:[%s6144_s12 + $0x1138] sm:$0xff] %v1308_v39  ;;  %v1312_v41 = vld [vmem:[%s6139_s11 + $0x2288] sm:$0xff]  ;;  %v1314_v42 = vld [vmem:[%s6139_s11 + $0x2290] sm:$0xff] }
 0x12c   : > { %1311 = vst [vmem:[%s6144_s12 + $0x1140] sm:$0xff] %v1310_v40  ;;  %1313 = vst [vmem:[%s6144_s12 + $0x1148] sm:$0xff] %v1312_v41  ;;  %v1316_v43 = vld [vmem:[%s6139_s11 + $0x2298] sm:$0xff]  ;;  %v1318_v44 = vld [vmem:[%s6139_s11 + $0x22c0] sm:$0xff] }
 0x12d   : > { %1315 = vst [vmem:[%s6144_s12 + $0x1150] sm:$0xff] %v1314_v42  ;;  %v1320_v45 = vld [vmem:[%s6139_s11 + $0x22c8] sm:$0xff]  ;;  %1317 = vst [vmem:[%s6144_s12 + $0x1158] sm:$0xff] %v1316_v43  ;;  %v1322_v46 = vld [vmem:[%s6139_s11 + $0x22d0] sm:$0xff] }
 0x12e   : > { %1319 = vst [vmem:[%s6144_s12 + $0x1160] sm:$0xff] %v1318_v44  ;;  %1321 = vst [vmem:[%s6144_s12 + $0x1168] sm:$0xff] %v1320_v45  ;;  %v1324_v47 = vld [vmem:[%s6139_s11 + $0x22d8] sm:$0xff]  ;;  %v1326_v48 = vld [vmem:[%s6139_s11 + $0x2300] sm:$0xff] }
 0x12f   : > { %1323 = vst [vmem:[%s6144_s12 + $0x1170] sm:$0xff] %v1322_v46  ;;  %1325 = vst [vmem:[%s6144_s12 + $0x1178] sm:$0xff] %v1324_v47  ;;  %v1328_v49 = vld [vmem:[%s6139_s11 + $0x2308] sm:$0xff]  ;;  %v1330_v50 = vld [vmem:[%s6139_s11 + $0x2310] sm:$0xff] }
 0x130   : > { %1327 = vst [vmem:[%s6144_s12 + $0x1180] sm:$0xff] %v1326_v48  ;;  %v1332_v51 = vld [vmem:[%s6139_s11 + $0x2318] sm:$0xff]  ;;  %1329 = vst [vmem:[%s6144_s12 + $0x1188] sm:$0xff] %v1328_v49  ;;  %v1334_v52 = vld [vmem:[%s6139_s11 + $0x2340] sm:$0xff] }
 0x131   : > { %1331 = vst [vmem:[%s6144_s12 + $0x1190] sm:$0xff] %v1330_v50  ;;  %1333 = vst [vmem:[%s6144_s12 + $0x1198] sm:$0xff] %v1332_v51  ;;  %v1336_v53 = vld [vmem:[%s6139_s11 + $0x2348] sm:$0xff]  ;;  %v1338_v54 = vld [vmem:[%s6139_s11 + $0x2350] sm:$0xff] }
 0x132   : > { %1335 = vst [vmem:[%s6144_s12 + $0x11a0] sm:$0xff] %v1334_v52  ;;  %1337 = vst [vmem:[%s6144_s12 + $0x11a8] sm:$0xff] %v1336_v53  ;;  %v1340_v55 = vld [vmem:[%s6139_s11 + $0x2358] sm:$0xff]  ;;  %v1342_v56 = vld [vmem:[%s6139_s11 + $0x2380] sm:$0xff] }
 0x133   : > { %1339 = vst [vmem:[%s6144_s12 + $0x11b0] sm:$0xff] %v1338_v54  ;;  %v1344_v57 = vld [vmem:[%s6139_s11 + $0x2388] sm:$0xff]  ;;  %1341 = vst [vmem:[%s6144_s12 + $0x11b8] sm:$0xff] %v1340_v55  ;;  %v1346_v58 = vld [vmem:[%s6139_s11 + $0x2390] sm:$0xff] }
 0x134   : > { %1343 = vst [vmem:[%s6144_s12 + $0x11c0] sm:$0xff] %v1342_v56  ;;  %1345 = vst [vmem:[%s6144_s12 + $0x11c8] sm:$0xff] %v1344_v57  ;;  %v1348_v59 = vld [vmem:[%s6139_s11 + $0x2398] sm:$0xff]  ;;  %v1350_v60 = vld [vmem:[%s6139_s11 + $0x23c0] sm:$0xff] }
 0x135   : > { %1347 = vst [vmem:[%s6144_s12 + $0x11d0] sm:$0xff] %v1346_v58  ;;  %1349 = vst [vmem:[%s6144_s12 + $0x11d8] sm:$0xff] %v1348_v59  ;;  %v1352_v61 = vld [vmem:[%s6139_s11 + $0x23c8] sm:$0xff]  ;;  %v1354_v62 = vld [vmem:[%s6139_s11 + $0x23d0] sm:$0xff] }
 0x136   : > { %1351 = vst [vmem:[%s6144_s12 + $0x11e0] sm:$0xff] %v1350_v60  ;;  %v1356_v63 = vld [vmem:[%s6139_s11 + $0x23d8] sm:$0xff]  ;;  %1353 = vst [vmem:[%s6144_s12 + $0x11e8] sm:$0xff] %v1352_v61  ;;  %v1358_v0 = vld [vmem:[%s6139_s11 + $0x2400] sm:$0xff] }
 0x137   : > { %1355 = vst [vmem:[%s6144_s12 + $0x11f0] sm:$0xff] %v1354_v62  ;;  %1357 = vst [vmem:[%s6144_s12 + $0x11f8] sm:$0xff] %v1356_v63  ;;  %v1360_v1 = vld [vmem:[%s6139_s11 + $0x2408] sm:$0xff]  ;;  %v1362_v2 = vld [vmem:[%s6139_s11 + $0x2410] sm:$0xff] }
 0x138   : > { %1359 = vst [vmem:[%s6144_s12 + $0x1200] sm:$0xff] %v1358_v0  ;;  %1361 = vst [vmem:[%s6144_s12 + $0x1208] sm:$0xff] %v1360_v1  ;;  %v1364_v3 = vld [vmem:[%s6139_s11 + $0x2418] sm:$0xff]  ;;  %v1366_v4 = vld [vmem:[%s6139_s11 + $0x2440] sm:$0xff] }
 0x139   : > { %1363 = vst [vmem:[%s6144_s12 + $0x1210] sm:$0xff] %v1362_v2  ;;  %v1368_v5 = vld [vmem:[%s6139_s11 + $0x2448] sm:$0xff]  ;;  %1365 = vst [vmem:[%s6144_s12 + $0x1218] sm:$0xff] %v1364_v3  ;;  %v1370_v6 = vld [vmem:[%s6139_s11 + $0x2450] sm:$0xff] }
 0x13a   : > { %1367 = vst [vmem:[%s6144_s12 + $0x1220] sm:$0xff] %v1366_v4  ;;  %1369 = vst [vmem:[%s6144_s12 + $0x1228] sm:$0xff] %v1368_v5  ;;  %v1372_v7 = vld [vmem:[%s6139_s11 + $0x2458] sm:$0xff]  ;;  %v1374_v8 = vld [vmem:[%s6139_s11 + $0x2480] sm:$0xff] }
 0x13b   : > { %1371 = vst [vmem:[%s6144_s12 + $0x1230] sm:$0xff] %v1370_v6  ;;  %1373 = vst [vmem:[%s6144_s12 + $0x1238] sm:$0xff] %v1372_v7  ;;  %v1376_v9 = vld [vmem:[%s6139_s11 + $0x2488] sm:$0xff]  ;;  %v1378_v10 = vld [vmem:[%s6139_s11 + $0x2490] sm:$0xff] }
 0x13c   : > { %1375 = vst [vmem:[%s6144_s12 + $0x1240] sm:$0xff] %v1374_v8  ;;  %v1380_v11 = vld [vmem:[%s6139_s11 + $0x2498] sm:$0xff]  ;;  %1377 = vst [vmem:[%s6144_s12 + $0x1248] sm:$0xff] %v1376_v9  ;;  %v1382_v12 = vld [vmem:[%s6139_s11 + $0x24c0] sm:$0xff] }
 0x13d   : > { %1379 = vst [vmem:[%s6144_s12 + $0x1250] sm:$0xff] %v1378_v10  ;;  %1381 = vst [vmem:[%s6144_s12 + $0x1258] sm:$0xff] %v1380_v11  ;;  %v1384_v13 = vld [vmem:[%s6139_s11 + $0x24c8] sm:$0xff]  ;;  %v1386_v14 = vld [vmem:[%s6139_s11 + $0x24d0] sm:$0xff] }
 0x13e   : > { %1383 = vst [vmem:[%s6144_s12 + $0x1260] sm:$0xff] %v1382_v12  ;;  %1385 = vst [vmem:[%s6144_s12 + $0x1268] sm:$0xff] %v1384_v13  ;;  %v1388_v15 = vld [vmem:[%s6139_s11 + $0x24d8] sm:$0xff]  ;;  %v1390_v16 = vld [vmem:[%s6139_s11 + $0x2500] sm:$0xff] }
 0x13f   : > { %1387 = vst [vmem:[%s6144_s12 + $0x1270] sm:$0xff] %v1386_v14  ;;  %v1392_v17 = vld [vmem:[%s6139_s11 + $0x2508] sm:$0xff]  ;;  %1389 = vst [vmem:[%s6144_s12 + $0x1278] sm:$0xff] %v1388_v15  ;;  %v1394_v18 = vld [vmem:[%s6139_s11 + $0x2510] sm:$0xff] }
 0x140   : > { %1391 = vst [vmem:[%s6144_s12 + $0x1280] sm:$0xff] %v1390_v16  ;;  %1393 = vst [vmem:[%s6144_s12 + $0x1288] sm:$0xff] %v1392_v17  ;;  %v1396_v19 = vld [vmem:[%s6139_s11 + $0x2518] sm:$0xff]  ;;  %v1398_v20 = vld [vmem:[%s6139_s11 + $0x2540] sm:$0xff] }
 0x141   : > { %1395 = vst [vmem:[%s6144_s12 + $0x1290] sm:$0xff] %v1394_v18  ;;  %1397 = vst [vmem:[%s6144_s12 + $0x1298] sm:$0xff] %v1396_v19  ;;  %v1400_v21 = vld [vmem:[%s6139_s11 + $0x2548] sm:$0xff]  ;;  %v1402_v22 = vld [vmem:[%s6139_s11 + $0x2550] sm:$0xff] }
 0x142   : > { %1399 = vst [vmem:[%s6144_s12 + $0x12a0] sm:$0xff] %v1398_v20  ;;  %v1404_v23 = vld [vmem:[%s6139_s11 + $0x2558] sm:$0xff]  ;;  %1401 = vst [vmem:[%s6144_s12 + $0x12a8] sm:$0xff] %v1400_v21  ;;  %v1406_v24 = vld [vmem:[%s6139_s11 + $0x2580] sm:$0xff] }
 0x143   : > { %1403 = vst [vmem:[%s6144_s12 + $0x12b0] sm:$0xff] %v1402_v22  ;;  %1405 = vst [vmem:[%s6144_s12 + $0x12b8] sm:$0xff] %v1404_v23  ;;  %v1408_v25 = vld [vmem:[%s6139_s11 + $0x2588] sm:$0xff]  ;;  %v1410_v26 = vld [vmem:[%s6139_s11 + $0x2590] sm:$0xff] }
 0x144   : > { %1407 = vst [vmem:[%s6144_s12 + $0x12c0] sm:$0xff] %v1406_v24  ;;  %1409 = vst [vmem:[%s6144_s12 + $0x12c8] sm:$0xff] %v1408_v25  ;;  %v1412_v27 = vld [vmem:[%s6139_s11 + $0x2598] sm:$0xff]  ;;  %v1414_v28 = vld [vmem:[%s6139_s11 + $0x25c0] sm:$0xff] }
 0x145   : > { %1411 = vst [vmem:[%s6144_s12 + $0x12d0] sm:$0xff] %v1410_v26  ;;  %v1416_v29 = vld [vmem:[%s6139_s11 + $0x25c8] sm:$0xff]  ;;  %1413 = vst [vmem:[%s6144_s12 + $0x12d8] sm:$0xff] %v1412_v27  ;;  %v1418_v30 = vld [vmem:[%s6139_s11 + $0x25d0] sm:$0xff] }
 0x146   : > { %1415 = vst [vmem:[%s6144_s12 + $0x12e0] sm:$0xff] %v1414_v28  ;;  %1417 = vst [vmem:[%s6144_s12 + $0x12e8] sm:$0xff] %v1416_v29  ;;  %v1420_v31 = vld [vmem:[%s6139_s11 + $0x25d8] sm:$0xff]  ;;  %v1422_v32 = vld [vmem:[%s6139_s11 + $0x2600] sm:$0xff] }
 0x147   : > { %1419 = vst [vmem:[%s6144_s12 + $0x12f0] sm:$0xff] %v1418_v30  ;;  %1421 = vst [vmem:[%s6144_s12 + $0x12f8] sm:$0xff] %v1420_v31  ;;  %v1424_v33 = vld [vmem:[%s6139_s11 + $0x2608] sm:$0xff]  ;;  %v1426_v34 = vld [vmem:[%s6139_s11 + $0x2610] sm:$0xff] }
 0x148   : > { %1423 = vst [vmem:[%s6144_s12 + $0x1300] sm:$0xff] %v1422_v32  ;;  %v1428_v35 = vld [vmem:[%s6139_s11 + $0x2618] sm:$0xff]  ;;  %1425 = vst [vmem:[%s6144_s12 + $0x1308] sm:$0xff] %v1424_v33  ;;  %v1430_v36 = vld [vmem:[%s6139_s11 + $0x2640] sm:$0xff] }
 0x149   : > { %1427 = vst [vmem:[%s6144_s12 + $0x1310] sm:$0xff] %v1426_v34  ;;  %1429 = vst [vmem:[%s6144_s12 + $0x1318] sm:$0xff] %v1428_v35  ;;  %v1432_v37 = vld [vmem:[%s6139_s11 + $0x2648] sm:$0xff]  ;;  %v1434_v38 = vld [vmem:[%s6139_s11 + $0x2650] sm:$0xff] }
 0x14a   : > { %1431 = vst [vmem:[%s6144_s12 + $0x1320] sm:$0xff] %v1430_v36  ;;  %1433 = vst [vmem:[%s6144_s12 + $0x1328] sm:$0xff] %v1432_v37  ;;  %v1436_v39 = vld [vmem:[%s6139_s11 + $0x2658] sm:$0xff]  ;;  %v1438_v40 = vld [vmem:[%s6139_s11 + $0x2680] sm:$0xff] }
 0x14b   : > { %1435 = vst [vmem:[%s6144_s12 + $0x1330] sm:$0xff] %v1434_v38  ;;  %v1440_v41 = vld [vmem:[%s6139_s11 + $0x2688] sm:$0xff]  ;;  %1437 = vst [vmem:[%s6144_s12 + $0x1338] sm:$0xff] %v1436_v39  ;;  %v1442_v42 = vld [vmem:[%s6139_s11 + $0x2690] sm:$0xff] }
 0x14c   : > { %1439 = vst [vmem:[%s6144_s12 + $0x1340] sm:$0xff] %v1438_v40  ;;  %1441 = vst [vmem:[%s6144_s12 + $0x1348] sm:$0xff] %v1440_v41  ;;  %v1444_v43 = vld [vmem:[%s6139_s11 + $0x2698] sm:$0xff]  ;;  %v1446_v44 = vld [vmem:[%s6139_s11 + $0x26c0] sm:$0xff] }
 0x14d   : > { %1443 = vst [vmem:[%s6144_s12 + $0x1350] sm:$0xff] %v1442_v42  ;;  %1445 = vst [vmem:[%s6144_s12 + $0x1358] sm:$0xff] %v1444_v43  ;;  %v1448_v45 = vld [vmem:[%s6139_s11 + $0x26c8] sm:$0xff]  ;;  %v1450_v46 = vld [vmem:[%s6139_s11 + $0x26d0] sm:$0xff] }
 0x14e   : > { %1447 = vst [vmem:[%s6144_s12 + $0x1360] sm:$0xff] %v1446_v44  ;;  %v1452_v47 = vld [vmem:[%s6139_s11 + $0x26d8] sm:$0xff]  ;;  %1449 = vst [vmem:[%s6144_s12 + $0x1368] sm:$0xff] %v1448_v45  ;;  %v1454_v48 = vld [vmem:[%s6139_s11 + $0x2700] sm:$0xff] }
 0x14f   : > { %1451 = vst [vmem:[%s6144_s12 + $0x1370] sm:$0xff] %v1450_v46  ;;  %1453 = vst [vmem:[%s6144_s12 + $0x1378] sm:$0xff] %v1452_v47  ;;  %v1456_v49 = vld [vmem:[%s6139_s11 + $0x2708] sm:$0xff]  ;;  %v1458_v50 = vld [vmem:[%s6139_s11 + $0x2710] sm:$0xff] }
 0x150   : > { %1455 = vst [vmem:[%s6144_s12 + $0x1380] sm:$0xff] %v1454_v48  ;;  %1457 = vst [vmem:[%s6144_s12 + $0x1388] sm:$0xff] %v1456_v49  ;;  %v1460_v51 = vld [vmem:[%s6139_s11 + $0x2718] sm:$0xff]  ;;  %v1462_v52 = vld [vmem:[%s6139_s11 + $0x2740] sm:$0xff] }
 0x151   : > { %1459 = vst [vmem:[%s6144_s12 + $0x1390] sm:$0xff] %v1458_v50  ;;  %v1464_v53 = vld [vmem:[%s6139_s11 + $0x2748] sm:$0xff]  ;;  %1461 = vst [vmem:[%s6144_s12 + $0x1398] sm:$0xff] %v1460_v51  ;;  %v1466_v54 = vld [vmem:[%s6139_s11 + $0x2750] sm:$0xff] }
 0x152   : > { %1463 = vst [vmem:[%s6144_s12 + $0x13a0] sm:$0xff] %v1462_v52  ;;  %1465 = vst [vmem:[%s6144_s12 + $0x13a8] sm:$0xff] %v1464_v53  ;;  %v1468_v55 = vld [vmem:[%s6139_s11 + $0x2758] sm:$0xff]  ;;  %v1470_v56 = vld [vmem:[%s6139_s11 + $0x2780] sm:$0xff] }
 0x153   : > { %1467 = vst [vmem:[%s6144_s12 + $0x13b0] sm:$0xff] %v1466_v54  ;;  %1469 = vst [vmem:[%s6144_s12 + $0x13b8] sm:$0xff] %v1468_v55  ;;  %v1472_v57 = vld [vmem:[%s6139_s11 + $0x2788] sm:$0xff]  ;;  %v1474_v58 = vld [vmem:[%s6139_s11 + $0x2790] sm:$0xff] }
 0x154   : > { %1471 = vst [vmem:[%s6144_s12 + $0x13c0] sm:$0xff] %v1470_v56  ;;  %v1476_v59 = vld [vmem:[%s6139_s11 + $0x2798] sm:$0xff]  ;;  %1473 = vst [vmem:[%s6144_s12 + $0x13c8] sm:$0xff] %v1472_v57  ;;  %v1478_v60 = vld [vmem:[%s6139_s11 + $0x27c0] sm:$0xff] }
 0x155   : > { %1475 = vst [vmem:[%s6144_s12 + $0x13d0] sm:$0xff] %v1474_v58  ;;  %1477 = vst [vmem:[%s6144_s12 + $0x13d8] sm:$0xff] %v1476_v59  ;;  %v1480_v61 = vld [vmem:[%s6139_s11 + $0x27c8] sm:$0xff]  ;;  %v1482_v62 = vld [vmem:[%s6139_s11 + $0x27d0] sm:$0xff] }
 0x156   : > { %1479 = vst [vmem:[%s6144_s12 + $0x13e0] sm:$0xff] %v1478_v60  ;;  %1481 = vst [vmem:[%s6144_s12 + $0x13e8] sm:$0xff] %v1480_v61  ;;  %v1484_v63 = vld [vmem:[%s6139_s11 + $0x27d8] sm:$0xff]  ;;  %v1486_v0 = vld [vmem:[%s6139_s11 + $0x2800] sm:$0xff] }
 0x157   : > { %1483 = vst [vmem:[%s6144_s12 + $0x13f0] sm:$0xff] %v1482_v62  ;;  %v1488_v1 = vld [vmem:[%s6139_s11 + $0x2808] sm:$0xff]  ;;  %1485 = vst [vmem:[%s6144_s12 + $0x13f8] sm:$0xff] %v1484_v63  ;;  %v1490_v2 = vld [vmem:[%s6139_s11 + $0x2810] sm:$0xff] }
 0x158   : > { %1487 = vst [vmem:[%s6144_s12 + $0x1400] sm:$0xff] %v1486_v0  ;;  %1489 = vst [vmem:[%s6144_s12 + $0x1408] sm:$0xff] %v1488_v1  ;;  %v1492_v3 = vld [vmem:[%s6139_s11 + $0x2818] sm:$0xff]  ;;  %v1494_v4 = vld [vmem:[%s6139_s11 + $0x2840] sm:$0xff] }
 0x159   : > { %1491 = vst [vmem:[%s6144_s12 + $0x1410] sm:$0xff] %v1490_v2  ;;  %1493 = vst [vmem:[%s6144_s12 + $0x1418] sm:$0xff] %v1492_v3  ;;  %v1496_v5 = vld [vmem:[%s6139_s11 + $0x2848] sm:$0xff]  ;;  %v1498_v6 = vld [vmem:[%s6139_s11 + $0x2850] sm:$0xff] }
 0x15a   : > { %1495 = vst [vmem:[%s6144_s12 + $0x1420] sm:$0xff] %v1494_v4  ;;  %v1500_v7 = vld [vmem:[%s6139_s11 + $0x2858] sm:$0xff]  ;;  %1497 = vst [vmem:[%s6144_s12 + $0x1428] sm:$0xff] %v1496_v5  ;;  %v1502_v8 = vld [vmem:[%s6139_s11 + $0x2880] sm:$0xff] }
 0x15b   : > { %1499 = vst [vmem:[%s6144_s12 + $0x1430] sm:$0xff] %v1498_v6  ;;  %1501 = vst [vmem:[%s6144_s12 + $0x1438] sm:$0xff] %v1500_v7  ;;  %v1504_v9 = vld [vmem:[%s6139_s11 + $0x2888] sm:$0xff]  ;;  %v1506_v10 = vld [vmem:[%s6139_s11 + $0x2890] sm:$0xff] }
 0x15c   : > { %1503 = vst [vmem:[%s6144_s12 + $0x1440] sm:$0xff] %v1502_v8  ;;  %1505 = vst [vmem:[%s6144_s12 + $0x1448] sm:$0xff] %v1504_v9  ;;  %v1508_v11 = vld [vmem:[%s6139_s11 + $0x2898] sm:$0xff]  ;;  %v1510_v12 = vld [vmem:[%s6139_s11 + $0x28c0] sm:$0xff] }
 0x15d   : > { %1507 = vst [vmem:[%s6144_s12 + $0x1450] sm:$0xff] %v1506_v10  ;;  %v1512_v13 = vld [vmem:[%s6139_s11 + $0x28c8] sm:$0xff]  ;;  %1509 = vst [vmem:[%s6144_s12 + $0x1458] sm:$0xff] %v1508_v11  ;;  %v1514_v14 = vld [vmem:[%s6139_s11 + $0x28d0] sm:$0xff] }
 0x15e   : > { %1511 = vst [vmem:[%s6144_s12 + $0x1460] sm:$0xff] %v1510_v12  ;;  %1513 = vst [vmem:[%s6144_s12 + $0x1468] sm:$0xff] %v1512_v13  ;;  %v1516_v15 = vld [vmem:[%s6139_s11 + $0x28d8] sm:$0xff]  ;;  %v1518_v16 = vld [vmem:[%s6139_s11 + $0x2900] sm:$0xff] }
 0x15f   : > { %1515 = vst [vmem:[%s6144_s12 + $0x1470] sm:$0xff] %v1514_v14  ;;  %1517 = vst [vmem:[%s6144_s12 + $0x1478] sm:$0xff] %v1516_v15  ;;  %v1520_v17 = vld [vmem:[%s6139_s11 + $0x2908] sm:$0xff]  ;;  %v1522_v18 = vld [vmem:[%s6139_s11 + $0x2910] sm:$0xff] }
 0x160   : > { %1519 = vst [vmem:[%s6144_s12 + $0x1480] sm:$0xff] %v1518_v16  ;;  %v1524_v19 = vld [vmem:[%s6139_s11 + $0x2918] sm:$0xff]  ;;  %1521 = vst [vmem:[%s6144_s12 + $0x1488] sm:$0xff] %v1520_v17  ;;  %v1526_v20 = vld [vmem:[%s6139_s11 + $0x2940] sm:$0xff] }
 0x161   : > { %1523 = vst [vmem:[%s6144_s12 + $0x1490] sm:$0xff] %v1522_v18  ;;  %1525 = vst [vmem:[%s6144_s12 + $0x1498] sm:$0xff] %v1524_v19  ;;  %v1528_v21 = vld [vmem:[%s6139_s11 + $0x2948] sm:$0xff]  ;;  %v1530_v22 = vld [vmem:[%s6139_s11 + $0x2950] sm:$0xff] }
 0x162   : > { %1527 = vst [vmem:[%s6144_s12 + $0x14a0] sm:$0xff] %v1526_v20  ;;  %1529 = vst [vmem:[%s6144_s12 + $0x14a8] sm:$0xff] %v1528_v21  ;;  %v1532_v23 = vld [vmem:[%s6139_s11 + $0x2958] sm:$0xff]  ;;  %v1534_v24 = vld [vmem:[%s6139_s11 + $0x2980] sm:$0xff] }
 0x163   : > { %1531 = vst [vmem:[%s6144_s12 + $0x14b0] sm:$0xff] %v1530_v22  ;;  %v1536_v25 = vld [vmem:[%s6139_s11 + $0x2988] sm:$0xff]  ;;  %1533 = vst [vmem:[%s6144_s12 + $0x14b8] sm:$0xff] %v1532_v23  ;;  %v1538_v26 = vld [vmem:[%s6139_s11 + $0x2990] sm:$0xff] }
 0x164   : > { %1535 = vst [vmem:[%s6144_s12 + $0x14c0] sm:$0xff] %v1534_v24  ;;  %1537 = vst [vmem:[%s6144_s12 + $0x14c8] sm:$0xff] %v1536_v25  ;;  %v1540_v27 = vld [vmem:[%s6139_s11 + $0x2998] sm:$0xff]  ;;  %v1542_v28 = vld [vmem:[%s6139_s11 + $0x29c0] sm:$0xff] }
 0x165   : > { %1539 = vst [vmem:[%s6144_s12 + $0x14d0] sm:$0xff] %v1538_v26  ;;  %1541 = vst [vmem:[%s6144_s12 + $0x14d8] sm:$0xff] %v1540_v27  ;;  %v1544_v29 = vld [vmem:[%s6139_s11 + $0x29c8] sm:$0xff]  ;;  %v1546_v30 = vld [vmem:[%s6139_s11 + $0x29d0] sm:$0xff] }
 0x166   : > { %1543 = vst [vmem:[%s6144_s12 + $0x14e0] sm:$0xff] %v1542_v28  ;;  %v1548_v31 = vld [vmem:[%s6139_s11 + $0x29d8] sm:$0xff]  ;;  %1545 = vst [vmem:[%s6144_s12 + $0x14e8] sm:$0xff] %v1544_v29 }
 0x167   : > { %1547 = vst [vmem:[%s6144_s12 + $0x14f0] sm:$0xff] %v1546_v30  ;;  %1549 = vst [vmem:[%s6144_s12 + $0x14f8] sm:$0xff] %v1548_v31 }
 0x168 PF: > { %p5918_p7 = scmp.ge.s32.totalorder %s6049_s21, 1  ;;  %p1570_p8 = scmp.lt.s32.totalorder %s6049_s21, 5 }
 0x16a   : > { %p1571_p9 = pnand %p5918_p7, %p1570_p8 }
 0x16c   : > { %1574 = sbr.rel (%p1571_p9) target bundleno = 1957 (0x7a5), region = 55 }
 0x171   : > { %s1577_s13 = sand.u32 1, %s6025_s15   ;;  %s1614_s14 = smul.u32 42, %s6033_s17 }
 0x172   : > { %s5930_s24 = smul.u32 5376, %s1577_s13  ;;  %s5919_s25 = sshll.u32 %s6037_s18, 2 }
 0x173   : > { %p1615_p10 = scmp.lt.s32.totalorder %s1614_s14, 83  ;;  %p1622_p11 = scmp.lt.s32.totalorder %s5919_s25, 7 }
 0x174   : > { %s7513_s12 = scalar_lea.vmem [#allocation3], %s5930_s24  ;;  %p5923_p12 = scmp.ne.s32.totalorder %s6033_s17, 0 }
 0x175   : > { %s8697_s14 = smov (!%p1615_p10, %s1614_s14), 83  ;;  %s8699_s25 = smov (!%p1622_p11, %s5919_s25), 7 }
 0x176   : > { %s7497_s29 = scalar_lea.vmem %s8668_s0, %s8697_s14  ;;  %s1624_s15 = scalar_lea.vmem %s8670_s2, %s8699_s25 }
 0x177   : > { %s1629_s18 = scalar_lea.vmem %s8671_s3, %s8699_s25  ;;  %s5922_s8 = sshll.u32 %s8699_s25, 1 }
 0x178   : > { %s7511_s11 = scalar_lea.vmem %s8672_s4, %s5922_s8  ;;  %1640 = sbr.rel (%p5923_p12) target bundleno = 383 (0x17f), region = 63 }
 0x17d   : > { %v6051_v32 = vmov 0.0  }
 0x17e   : > { %1641 = vst [vmem:[#allocation2] sm:$0xff] %v6051_v32 }
 0x17f PF: > { %v1655_v33 = vld [vmem:[%s7513_s12 + $0x68] sm:$0xff]  ;;  %v1654_v35 = vld [vmem:[%s7513_s12 + $0x60] sm:$0xff]  ;;  %v3675_v63 = vlaneseq  ;;  %v6052_v4 = vmov 1966171168   ;;  %v7533_v12 = vld [vmem:[%s7497_s29] sm:$0xff]  ;;  %p5925_p13 = scmp.ne.s32.totalorder %s6033_s17, 1 }
 0x180   : > { %v1687_v34 = vld [vmem:[%s7513_s12 + $0x168] sm:$0xff]  ;;  %v2339_v36 = vunpack.c.l.s8.bf16 %v1655_v33  ;;  %v2343_v37 = vunpack.c.h.s8.bf16 %v1655_v33  ;;  %v1686_v40 = vld [vmem:[%s7513_s12 + $0x160] sm:$0xff]  ;;  %v2342_v41 = vunpack.c.h.s8.bf16 %v1654_v35  ;;  %v2338_v45 = vunpack.c.l.s8.bf16 %v1654_v35 }
 0x181   : > { %v2403_v38 = vunpack.c.l.s8.bf16 %v1687_v34  ;;  %v2407_v39 = vunpack.c.h.s8.bf16 %v1687_v34  ;;  %v2406_v42 = vunpack.c.h.s8.bf16 %v1686_v40  ;;  %v1651_v43 = vld [vmem:[%s7513_s12 + $0x48] sm:$0xff]  ;;  %v2402_v46 = vunpack.c.l.s8.bf16 %v1686_v40  ;;  %v1650_v49 = vld [vmem:[%s7513_s12 + $0x40] sm:$0xff] }
 0x182   : > { %v1683_v44 = vld [vmem:[%s7513_s12 + $0x148] sm:$0xff]  ;;  %3980 = vmatprep.subr.bf16.mxu0 %v2343_v37  ;;  %v2335_v47 = vunpack.c.h.s8.bf16 %v1651_v43  ;;  %v1682_v50 = vld [vmem:[%s7513_s12 + $0x140] sm:$0xff]  ;;  %v2334_v51 = vunpack.c.h.s8.bf16 %v1650_v49  ;;  %v2331_v53 = vunpack.c.l.s8.bf16 %v1651_v43  ;;  %v2330_v57 = vunpack.c.l.s8.bf16 %v1650_v49 }
 0x183   : > { %4021 = vmatprep.subr.bf16.mxu1 %v2407_v39  ;;  %3981 = vmatpush1.bf16.msra.mxu0 %v2342_v41  ;;  %v2399_v48 = vunpack.c.h.s8.bf16 %v1683_v44  ;;  %v2398_v52 = vunpack.c.h.s8.bf16 %v1682_v50  ;;  %v2395_v54 = vunpack.c.l.s8.bf16 %v1683_v44  ;;  %v1647_v55 = vld [vmem:[%s7513_s12 + $0x28] sm:$0xff]  ;;  %v2394_v58 = vunpack.c.l.s8.bf16 %v1682_v50  ;;  %v1646_v61 = vld [vmem:[%s7513_s12 + $0x20] sm:$0xff] }
 0x184   : > { %4022 = vmatpush1.bf16.msra.mxu1 %v2406_v42  ;;  %3982 = vmatprep.subr.bf16.mxu0 %v2339_v36  ;;  %v1679_v56 = vld [vmem:[%s7513_s12 + $0x128] sm:$0xff]  ;;  %v2327_v59 = vunpack.c.h.s8.bf16 %v1647_v55  ;;  %v1678_v62 = vld [vmem:[%s7513_s12 + $0x120] sm:$0xff]  ;;  %v2326_v0 = vunpack.c.h.s8.bf16 %v1646_v61  ;;  %v2323_v2 = vunpack.c.l.s8.bf16 %v1647_v55  ;;  %v3673_v5 = vunpack.c.l.s4 %v6052_v4 }
 0x185   : > { %4023 = vmatprep.subr.bf16.mxu1 %v2403_v38  ;;  %v2391_v60 = vunpack.c.h.s8.bf16 %v1679_v56  ;;  %v2390_v1 = vunpack.c.h.s8.bf16 %v1678_v62  ;;  %v2387_v3 = vunpack.c.l.s8.bf16 %v1679_v56  ;;  %v7528_v6 = vshrl.u32 %v3675_v63, 7  ;;  %v1643_v7 = vld [vmem:[%s7513_s12 + $0x8] sm:$0xff]  ;;  %v1642_v15 = vld [vmem:[%s7513_s12] sm:$0xff] }
 0x186   : > { %v1675_v8 = vld [vmem:[%s7513_s12 + $0x108] sm:$0xff]  ;;  %v3674_v9 = vunpack.c.0.s8 %v3673_v5  ;;  %v2322_v10 = vunpack.c.l.s8.bf16 %v1646_v61  ;;  %v2386_v11 = vunpack.c.l.s8.bf16 %v1678_v62  ;;  %v2319_v13 = vunpack.c.h.s8.bf16 %v1643_v7  ;;  %v1674_v16 = vld [vmem:[%s7513_s12 + $0x100] sm:$0xff] }
 0x187   : > { %3983 = vmatpush1.bf16.msra.mxu0 %v2338_v45  ;;  %8677 = vst [vmem:[#allocation4_spill] sm:$0xff] %v7528_v6  ;;  %v2383_v14 = vunpack.c.h.s8.bf16 %v1675_v8  ;;  %v2318_v19 = vunpack.c.h.s8.bf16 %v1642_v15  ;;  %v2382_v20 = vunpack.c.h.s8.bf16 %v1674_v16  ;;  %v2315_v21 = vunpack.c.l.s8.bf16 %v1643_v7  ;;  %v1671_v24 = vld [vmem:[%s7513_s12 + $0xe8] sm:$0xff]  ;;  %v1670_v31 = vld [vmem:[%s7513_s12 + $0xe0] sm:$0xff] }
 0x188   : > { %4024 = vmatpush1.bf16.msra.mxu1 %v2402_v46  ;;  %3984 = vmatprep.subr.bf16.mxu0 %v2335_v47  ;;  %v7538_v17 = vsub.s32 %v3674_v9, %v7528_v6  ;;  %v2379_v22 = vunpack.c.l.s8.bf16 %v1675_v8  ;;  %v1703_v25 = vld [vmem:[%s7513_s12 + $0x1e8] sm:$0xff]  ;;  %v2314_v27 = vunpack.c.l.s8.bf16 %v1642_v15  ;;  %v2378_v28 = vunpack.c.l.s8.bf16 %v1674_v16  ;;  %v1702_v32 = vld [vmem:[%s7513_s12 + $0x1e0] sm:$0xff]  ;;  %v1652_v6 = vld [vmem:[%s7513_s12 + $0x50] sm:$0xff] }
 0x189   : > { %4025 = vmatprep.subr.bf16.mxu1 %v2399_v48  ;;  %v2375_v29 = vunpack.c.h.s8.bf16 %v1671_v24  ;;  %v2439_v30 = vunpack.c.h.s8.bf16 %v1703_v25  ;;  %v2374_v34 = vunpack.c.h.s8.bf16 %v1670_v31  ;;  %v2438_v35 = vunpack.c.h.s8.bf16 %v1702_v32  ;;  %v1667_v38 = vld [vmem:[%s7513_s12 + $0xc8] sm:$0xff]  ;;  %v1666_v44 = vld [vmem:[%s7513_s12 + $0xc0] sm:$0xff] }
 0x18a   : > { %v7542_v18 = vrot.slane %v7533_v12, %v7538_v17  ;;  %v2371_v36 = vunpack.c.l.s8.bf16 %v1671_v24  ;;  %v2435_v37 = vunpack.c.l.s8.bf16 %v1703_v25  ;;  %v1699_v39 = vld [vmem:[%s7513_s12 + $0x1c8] sm:$0xff]  ;;  %v2370_v40 = vunpack.c.l.s8.bf16 %v1670_v31  ;;  %v1698_v45 = vld [vmem:[%s7513_s12 + $0x1c0] sm:$0xff] }
 0x18b   : > { %3985 = vmatpush1.bf16.msra.mxu0 %v2334_v51  ;;  %v2434_v41 = vunpack.c.l.s8.bf16 %v1702_v32  ;;  %v2367_v42 = vunpack.c.h.s8.bf16 %v1667_v38  ;;  %v2431_v43 = vunpack.c.h.s8.bf16 %v1699_v39  ;;  %v2366_v46 = vunpack.c.h.s8.bf16 %v1666_v44  ;;  %v1663_v50 = vld [vmem:[%s7513_s12 + $0xa8] sm:$0xff]  ;;  %v1662_v56 = vld [vmem:[%s7513_s12 + $0xa0] sm:$0xff] }
 0x18c   : > { %4026 = vmatpush1.bf16.msra.mxu1 %v2398_v52  ;;  %3986 = vmatprep.subr.bf16.mxu0 %v2331_v53  ;;  %v3686_v23 = vcombine.high %v7542_v18, %v7542_v18  ;;  %v2430_v47 = vunpack.c.h.s8.bf16 %v1698_v45  ;;  %v2363_v48 = vunpack.c.l.s8.bf16 %v1667_v38  ;;  %v2427_v49 = vunpack.c.l.s8.bf16 %v1699_v39  ;;  %v1695_v51 = vld [vmem:[%s7513_s12 + $0x1a8] sm:$0xff]  ;;  %v1658_v5 = vld [vmem:[%s7513_s12 + $0x80] sm:$0xff] }
 0x18d   : > { %4027 = vmatprep.subr.bf16.mxu1 %v2395_v54  ;;  %v2362_v52 = vunpack.c.l.s8.bf16 %v1666_v44  ;;  %v2426_v53 = vunpack.c.l.s8.bf16 %v1698_v45  ;;  %v2359_v54 = vunpack.c.h.s8.bf16 %v1663_v50  ;;  %v2423_v55 = vunpack.c.h.s8.bf16 %v1695_v51  ;;  %v1659_v62 = vld [vmem:[%s7513_s12 + $0x88] sm:$0xff]  ;;  %v1690_v7 = vld [vmem:[%s7513_s12 + $0x180] sm:$0xff] }
 0x18e   : > { %v7549_v26 = vrot.slane %v3686_v23, %v7538_v17  ;;  %v2419_v61 = vunpack.c.l.s8.bf16 %v1695_v51  ;;  %v1691_v63 = vld [vmem:[%s7513_s12 + $0x188] sm:$0xff]  ;;  %v2350_v9 = vunpack.c.h.s8.bf16 %v1658_v5  ;;  %v7582_v16 = vrot.slane %v7542_v18, %v7538_v17  ;;  %v1718_v23 = vld [vmem:[%s7513_s12 + $0x260] sm:$0xff] }
 0x18f   : > { %3987 = vmatpush1.bf16.msra.mxu0 %v2330_v57  ;;  %v1694_v57 = vld [vmem:[%s7513_s12 + $0x1a0] sm:$0xff]  ;;  %v2415_v4 = vunpack.c.h.s8.bf16 %v1691_v63  ;;  %v2470_v18 = vunpack.c.h.s8.bf16 %v1718_v23  ;;  %v1715_v31 = vld [vmem:[%s7513_s12 + $0x248] sm:$0xff] }
 0x190   : > { %4028 = vmatpush1.bf16.msra.mxu1 %v2394_v58  ;;  %3988 = vmatprep.subr.bf16.mxu0 %v2327_v59  ;;  %v7555_v33 = vcombine.high %v7549_v26, %v7549_v26  ;;  %v2358_v58 = vunpack.c.h.s8.bf16 %v1662_v56  ;;  %v2422_v59 = vunpack.c.h.s8.bf16 %v1694_v57  ;;  %v1750_v24 = vld [vmem:[%s7513_s12 + $0x360] sm:$0xff]  ;;  %v1747_v32 = vld [vmem:[%s7513_s12 + $0x348] sm:$0xff] }
 0x191   : > { %4029 = vmatprep.subr.bf16.mxu1 %v2391_v60  ;;  %4012 = vmatprep.mubr.bf16.mxu0 %v7549_v26  ;;  %v2355_v60 = vunpack.c.l.s8.bf16 %v1663_v50  ;;  %v2527_v38 = vunpack.c.h.s8.bf16 %v1747_v32  ;;  %v1714_v39 = vld [vmem:[%s7513_s12 + $0x240] sm:$0xff]  ;;  %v2523_v44 = vunpack.c.l.s8.bf16 %v1747_v32  ;;  %v1711_v45 = vld [vmem:[%s7513_s12 + $0x228] sm:$0xff] }
 0x192   : > { %4053 = vmatprep.mubr.bf16.mxu1 %v7555_v33  ;;  %v1710_v51 = vld [vmem:[%s7513_s12 + $0x220] sm:$0xff] }
 0x193   : > { %3989 = vmatpush1.bf16.msra.mxu0 %v2326_v0  ;;  %v3671_v0 = vcombine.high %v7533_v12, %v7533_v12  ;;  %v2411_v12 = vunpack.c.l.s8.bf16 %v1691_v63  ;;  %v1706_v63 = vld [vmem:[%s7513_s12 + $0x200] sm:$0xff] }
 0x194   : > { %4030 = vmatpush1.bf16.msra.mxu1 %v2390_v1  ;;  %3990 = vmatprep.subr.bf16.mxu0 %v2323_v2  ;;  %v2354_v1 = vunpack.c.l.s8.bf16 %v1662_v56  ;;  %v2418_v2 = vunpack.c.l.s8.bf16 %v1694_v57  ;;  %v1707_v57 = vld [vmem:[%s7513_s12 + $0x208] sm:$0xff] }
 0x195   : > { %4031 = vmatprep.subr.bf16.mxu1 %v2387_v3  ;;  %v2351_v3 = vunpack.c.h.s8.bf16 %v1659_v62  ;;  %v7574_v8 = vrot.slane %v3671_v0, %v7538_v17  ;;  %v1738_v0 = vld [vmem:[%s7513_s12 + $0x300] sm:$0xff] }
 0x197   : > { %3991 = vmatpush1.bf16.msra.mxu0 %v2322_v10  ;;  %v2414_v10 = vunpack.c.h.s8.bf16 %v1690_v7  ;;  %v3687_v15 = vcombine.high %v7574_v8, %v7574_v8 }
 0x198   : > { %4032 = vmatpush1.bf16.msra.mxu1 %v2386_v11  ;;  %3992 = vmatprep.subr.bf16.mxu0 %v2319_v13  ;;  %v2347_v11 = vunpack.c.l.s8.bf16 %v1659_v62  ;;  %v1719_v13 = vld [vmem:[%s7513_s12 + $0x268] sm:$0xff] }
 0x199   : > { %4033 = vmatprep.subr.bf16.mxu1 %v2383_v14  ;;  %v1751_v14 = vld [vmem:[%s7513_s12 + $0x368] sm:$0xff]  ;;  %v7587_v25 = vrot.slane %v3687_v15, %v7538_v17 }
 0x19b   : > { %3993 = vmatpush1.bf16.msra.mxu0 %v2318_v19  ;;  %v2346_v19 = vunpack.c.l.s8.bf16 %v1658_v5  ;;  %v1735_v5 = vld [vmem:[%s7513_s12 + $0x2e8] sm:$0xff] }
 0x19c   : > { %4034 = vmatpush1.bf16.msra.mxu1 %v2382_v20  ;;  %3994 = vmatprep.subr.bf16.mxu0 %v2315_v21  ;;  %v2410_v20 = vunpack.c.l.s8.bf16 %v1690_v7  ;;  %v2471_v21 = vunpack.c.h.s8.bf16 %v1719_v13  ;;  %v1767_v7 = vld [vmem:[%s7513_s12 + $0x3e8] sm:$0xff] }
 0x19d   : > { %4035 = vmatprep.subr.bf16.mxu1 %v2379_v22  ;;  %v2535_v22 = vunpack.c.h.s8.bf16 %v1751_v14 }
 0x19f   : > { %3995 = vmatpush1.bf16.msra.mxu0 %v2314_v27  ;;  %v7591_v27 = vcombine.high %v7582_v16, %v7582_v16 }
 0x1a0   : > { %4036 = vmatpush1.bf16.msra.mxu1 %v2378_v28  ;;  %3996 = vmatprep.subr.bf16.mxu0 %v2375_v29  ;;  %v2534_v28 = vunpack.c.h.s8.bf16 %v1750_v24  ;;  %v2467_v29 = vunpack.c.l.s8.bf16 %v1719_v13  ;;  %v1734_v13 = vld [vmem:[%s7513_s12 + $0x2e0] sm:$0xff] }
 0x1a1   : > { %4037 = vmatprep.subr.bf16.mxu1 %v2439_v30  ;;  %v2531_v30 = vunpack.c.l.s8.bf16 %v1751_v14  ;;  %v1766_v14 = vld [vmem:[%s7513_s12 + $0x3e0] sm:$0xff]  ;;  %v2502_v15 = vunpack.c.h.s8.bf16 %v1734_v13 }
 0x1a3   : > { %3997 = vmatpush2.bf16.msra.mxu0 %v2374_v34  ;;  %v7597_v34 = vcombine.high %v7587_v25, %v7587_v25 }
 0x1a4   : > { %4038 = vmatpush2.bf16.msra.mxu1 %v2438_v35  ;;  %3998 = vmatprep.subr.bf16.mxu0 %v2371_v36  ;;  %v2466_v35 = vunpack.c.l.s8.bf16 %v1718_v23  ;;  %v2530_v36 = vunpack.c.l.s8.bf16 %v1750_v24  ;;  %v1763_v23 = vld [vmem:[%s7513_s12 + $0x3c8] sm:$0xff]  ;;  %v2498_v24 = vunpack.c.l.s8.bf16 %v1734_v13 }
 0x1a5   : > { %4039 = vmatprep.subr.bf16.mxu1 %v2435_v37  ;;  %v2463_v37 = vunpack.c.h.s8.bf16 %v1715_v31 }
 0x1a7   : > { %3999 = vmatpush2.bf16.msra.mxu0 %v2370_v40  ;;  %v1746_v40 = vld [vmem:[%s7513_s12 + $0x340] sm:$0xff] }
 0x1a8   : > { %4040 = vmatpush2.bf16.msra.mxu1 %v2434_v41  ;;  %4000 = vmatprep.subr.bf16.mxu0 %v2367_v42  ;;  %v2462_v41 = vunpack.c.h.s8.bf16 %v1714_v39  ;;  %v2526_v42 = vunpack.c.h.s8.bf16 %v1746_v40 }
 0x1a9   : > { %4041 = vmatprep.subr.bf16.mxu1 %v2431_v43  ;;  %v2459_v43 = vunpack.c.l.s8.bf16 %v1715_v31  ;;  %v1762_v31 = vld [vmem:[%s7513_s12 + $0x3c0] sm:$0xff] }
 0x1ab   : > { %4001 = vmatpush2.bf16.msra.mxu0 %v2366_v46  ;;  %v1743_v46 = vld [vmem:[%s7513_s12 + $0x328] sm:$0xff] }
 0x1ac   : > { %4042 = vmatpush2.bf16.msra.mxu1 %v2430_v47  ;;  %4002 = vmatprep.subr.bf16.mxu0 %v2363_v48  ;;  %v2458_v47 = vunpack.c.l.s8.bf16 %v1714_v39  ;;  %v2522_v48 = vunpack.c.l.s8.bf16 %v1746_v40  ;;  %v2519_v50 = vunpack.c.h.s8.bf16 %v1743_v46  ;;  %v2515_v56 = vunpack.c.l.s8.bf16 %v1743_v46  ;;  %v1759_v39 = vld [vmem:[%s7513_s12 + $0x3a8] sm:$0xff] }
 0x1ad   : > { %4043 = vmatprep.subr.bf16.mxu1 %v2427_v49  ;;  %v2455_v49 = vunpack.c.h.s8.bf16 %v1711_v45 }
 0x1af   : > { %4003 = vmatpush2.bf16.msra.mxu0 %v2362_v52  ;;  %v1742_v52 = vld [vmem:[%s7513_s12 + $0x320] sm:$0xff] }
 0x1b0   : > { %4044 = vmatpush2.bf16.msra.mxu1 %v2426_v53  ;;  %4004 = vmatprep.subr.bf16.mxu0 %v2359_v54  ;;  %v2454_v53 = vunpack.c.h.s8.bf16 %v1710_v51  ;;  %v2518_v54 = vunpack.c.h.s8.bf16 %v1742_v52 }
 0x1b1   : > { %4045 = vmatprep.subr.bf16.mxu1 %v2423_v55  ;;  %v2451_v55 = vunpack.c.l.s8.bf16 %v1711_v45  ;;  %v1758_v45 = vld [vmem:[%s7513_s12 + $0x3a0] sm:$0xff] }
 0x1b3   : > { %4005 = vmatpush2.bf16.msra.mxu0 %v2358_v58  ;;  %v1739_v58 = vld [vmem:[%s7513_s12 + $0x308] sm:$0xff] }
 0x1b4   : > { %4046 = vmatpush2.bf16.msra.mxu1 %v2422_v59  ;;  %4006 = vmatprep.subr.bf16.mxu0 %v2355_v60  ;;  %v2450_v59 = vunpack.c.l.s8.bf16 %v1710_v51  ;;  %v2514_v60 = vunpack.c.l.s8.bf16 %v1742_v52  ;;  %v2511_v62 = vunpack.c.h.s8.bf16 %v1739_v58  ;;  %v1755_v51 = vld [vmem:[%s7513_s12 + $0x388] sm:$0xff]  ;;  %v7628_v52 = vld [vmem:[%s7497_s29 + $0x8] sm:$0xff] }
 0x1b5   : > { %4047 = vmatprep.subr.bf16.mxu1 %v2419_v61  ;;  %v2447_v61 = vunpack.c.h.s8.bf16 %v1707_v57 }
 0x1b7   : > { %4007 = vmatpush2.bf16.msra.mxu0 %v2354_v1  ;;  %v2446_v1 = vunpack.c.h.s8.bf16 %v1706_v63 }
 0x1b8   : > { %4048 = vmatpush2.bf16.msra.mxu1 %v2418_v2  ;;  %4008 = vmatprep.subr.bf16.mxu0 %v2351_v3  ;;  %v2510_v2 = vunpack.c.h.s8.bf16 %v1738_v0  ;;  %v2443_v3 = vunpack.c.l.s8.bf16 %v1707_v57  ;;  %v1722_v57 = vld [vmem:[%s7513_s12 + $0x280] sm:$0xff] }
 0x1b9   : > { %4049 = vmatprep.subr.bf16.mxu1 %v2415_v4  ;;  %v2507_v4 = vunpack.c.l.s8.bf16 %v1739_v58  ;;  %v1754_v58 = vld [vmem:[%s7513_s12 + $0x380] sm:$0xff] }
 0x1bb   : > { %4009 = vmatpush2.bf16.msra.mxu0 %v2350_v9  ;;  %v2442_v9 = vunpack.c.l.s8.bf16 %v1706_v63  ;;  %v2539_v63 = vunpack.c.l.s8.bf16 %v1755_v51 }
 0x1bc   : > { %4050 = vmatpush2.bf16.msra.mxu1 %v2414_v10  ;;  %4010 = vmatprep.subr.bf16.mxu0 %v2347_v11  ;;  %v2506_v10 = vunpack.c.l.s8.bf16 %v1738_v0  ;;  %v2503_v11 = vunpack.c.h.s8.bf16 %v1735_v5  ;;  %v1783_v0 = vld [vmem:[%s7513_s12 + $0x468] sm:$0xff] }
 0x1bd   : > { %4051 = vmatprep.subr.bf16.mxu1 %v2411_v12  ;;  %v2567_v12 = vunpack.c.h.s8.bf16 %v1767_v7 }
 0x1bf   : > { %4011 = vmatpush2.bf16.msra.mxu0 %v2346_v19  ;;  %v2566_v19 = vunpack.c.h.s8.bf16 %v1766_v14 }
 0x1c0   : > { %4052 = vmatpush2.bf16.msra.mxu1 %v2410_v20  ;;  %4062 = vmatprep.subr.bf16.mxu0 %v2471_v21  ;;  %v2499_v20 = vunpack.c.l.s8.bf16 %v1735_v5  ;;  %v2563_v21 = vunpack.c.l.s8.bf16 %v1767_v7  ;;  %v2538_v5 = vunpack.c.l.s8.bf16 %v1754_v58  ;;  %v2599_v7 = vunpack.c.h.s8.bf16 %v1783_v0 }
 0x1c1   : > { %4103 = vmatprep.subr.bf16.mxu1 %v2535_v22  ;;  %v1731_v22 = vld [vmem:[%s7513_s12 + $0x2c8] sm:$0xff] }
 0x1c2   : > { %4013 = vmatmul.mubr.bf16.vlgmr.msra.gmra.mxu0 %v7582_v16 }
 0x1c3   : > { %4054 = vmatmul.mubr.bf16.vlgmr.msra.gmra.mxu1 %v7591_v27  ;;  %4063 = vmatpush1.bf16.msra.mxu0 %v2470_v18  ;;  %v2562_v18 = vunpack.c.l.s8.bf16 %v1766_v14 }
 0x1c4   : > { %4104 = vmatpush1.bf16.msra.mxu1 %v2534_v28  ;;  %4064 = vmatprep.subr.bf16.mxu0 %v2467_v29  ;;  %v2495_v28 = vunpack.c.h.s8.bf16 %v1731_v22  ;;  %v2559_v29 = vunpack.c.h.s8.bf16 %v1763_v23 }
 0x1c5   : > { %4105 = vmatprep.subr.bf16.mxu1 %v2531_v30  ;;  %4094 = vmatprep.mubr.bf16.mxu0 %v7587_v25  ;;  %v1730_v30 = vld [vmem:[%s7513_s12 + $0x2c0] sm:$0xff] }
 0x1c6   : > { %4135 = vmatprep.mubr.bf16.mxu1 %v7597_v34  ;;  %v2494_v32 = vunpack.c.h.s8.bf16 %v1730_v30  ;;  %v2490_v40 = vunpack.c.l.s8.bf16 %v1730_v30  ;;  %v1810_v30 = vld [vmem:[%s7513_s12 + $0x540] sm:$0xff] }
 0x1c7   : > { %4065 = vmatpush1.bf16.msra.mxu0 %v2466_v35  ;;  %v2558_v35 = vunpack.c.h.s8.bf16 %v1762_v31 }
 0x1c8   : > { %4106 = vmatpush1.bf16.msra.mxu1 %v2530_v36  ;;  %4066 = vmatprep.subr.bf16.mxu0 %v2463_v37  ;;  %v2491_v36 = vunpack.c.l.s8.bf16 %v1731_v22  ;;  %v2555_v37 = vunpack.c.l.s8.bf16 %v1763_v23 }
 0x1c9   : > { %4107 = vmatprep.subr.bf16.mxu1 %v2527_v38  ;;  %v1727_v38 = vld [vmem:[%s7513_s12 + $0x2a8] sm:$0xff] }
 0x1cb   : > { %4067 = vmatpush1.bf16.msra.mxu0 %v2462_v41  ;;  %v2554_v41 = vunpack.c.l.s8.bf16 %v1762_v31 }
 0x1cc   : > { %4108 = vmatpush1.bf16.msra.mxu1 %v2526_v42  ;;  %4068 = vmatprep.subr.bf16.mxu0 %v2459_v43  ;;  %v2487_v42 = vunpack.c.h.s8.bf16 %v1727_v38  ;;  %v2551_v43 = vunpack.c.h.s8.bf16 %v1759_v39 }
 0x1cd   : > { %4109 = vmatprep.subr.bf16.mxu1 %v2523_v44  ;;  %v1726_v44 = vld [vmem:[%s7513_s12 + $0x2a0] sm:$0xff] }
 0x1ce   : > { %v2486_v46 = vunpack.c.h.s8.bf16 %v1726_v44 }
 0x1cf   : > { %4069 = vmatpush1.bf16.msra.mxu0 %v2458_v47  ;;  %v2550_v47 = vunpack.c.h.s8.bf16 %v1758_v45 }
 0x1d0   : > { %4110 = vmatpush1.bf16.msra.mxu1 %v2522_v48  ;;  %4070 = vmatprep.subr.bf16.mxu0 %v2455_v49  ;;  %v2483_v48 = vunpack.c.l.s8.bf16 %v1727_v38  ;;  %v2547_v49 = vunpack.c.l.s8.bf16 %v1759_v39  ;;  %v1807_v38 = vld [vmem:[%s7513_s12 + $0x528] sm:$0xff] }
 0x1d1   : > { %4111 = vmatprep.subr.bf16.mxu1 %v2519_v50  ;;  %v1723_v50 = vld [vmem:[%s7513_s12 + $0x288] sm:$0xff] }
 0x1d3   : > { %4071 = vmatpush1.bf16.msra.mxu0 %v2454_v53  ;;  %v2482_v53 = vunpack.c.l.s8.bf16 %v1726_v44  ;;  %v1806_v44 = vld [vmem:[%s7513_s12 + $0x520] sm:$0xff] }
 0x1d4   : > { %4112 = vmatpush1.bf16.msra.mxu1 %v2518_v54  ;;  %4072 = vmatprep.subr.bf16.mxu0 %v2451_v55  ;;  %v2546_v54 = vunpack.c.l.s8.bf16 %v1758_v45  ;;  %v2479_v55 = vunpack.c.h.s8.bf16 %v1723_v50 }
 0x1d5   : > { %4113 = vmatprep.subr.bf16.mxu1 %v2515_v56  ;;  %v2543_v56 = vunpack.c.h.s8.bf16 %v1755_v51 }
 0x1d7   : > { %4073 = vmatpush1.bf16.msra.mxu0 %v2450_v59  ;;  %v7634_v59 = vrot.slane %v7628_v52, %v7538_v17 }
 0x1d8   : > { %4114 = vmatpush1.bf16.msra.mxu1 %v2514_v60  ;;  %4074 = vmatprep.subr.bf16.mxu0 %v2447_v61  ;;  %v2478_v60 = vunpack.c.h.s8.bf16 %v1722_v57  ;;  %v2542_v61 = vunpack.c.h.s8.bf16 %v1754_v58 }
 0x1d9   : > { %4115 = vmatprep.subr.bf16.mxu1 %v2511_v62  ;;  %v2475_v62 = vunpack.c.l.s8.bf16 %v1723_v50  ;;  %v1803_v50 = vld [vmem:[%s7513_s12 + $0x508] sm:$0xff] }
 0x1db   : > { %4075 = vmatpush1.bf16.msra.mxu0 %v2446_v1  ;;  %v1815_v1 = vld [vmem:[%s7513_s12 + $0x568] sm:$0xff] }
 0x1dc   : > { %4116 = vmatpush1.bf16.msra.mxu1 %v2510_v2  ;;  %4076 = vmatprep.subr.bf16.mxu0 %v2443_v3  ;;  %v3735_v2 = vcombine.high %v7634_v59, %v7634_v59  ;;  %v7642_v3 = vrot.slane %v7574_v8, %v7538_v17 }
 0x1dd   : > { %4117 = vmatprep.subr.bf16.mxu1 %v2507_v4  ;;  %v2474_v4 = vunpack.c.l.s8.bf16 %v1722_v57  ;;  %v1802_v57 = vld [vmem:[%s7513_s12 + $0x500] sm:$0xff] }
 0x1de   : > { %v7651_v13 = vcombine.high %v7642_v3, %v7642_v3 }
 0x1df   : > { %4077 = vmatpush1.bf16.msra.mxu0 %v2442_v9  ;;  %v2663_v9 = vunpack.c.h.s8.bf16 %v1815_v1 }
 0x1e0   : > { %4118 = vmatpush1.bf16.msra.mxu1 %v2506_v10  ;;  %4078 = vmatprep.subr.bf16.mxu0 %v2503_v11  ;;  %v1782_v10 = vld [vmem:[%s7513_s12 + $0x460] sm:$0xff] }
 0x1e1   : > { %4119 = vmatprep.subr.bf16.mxu1 %v2567_v12  ;;  %v1814_v11 = vld [vmem:[%s7513_s12 + $0x560] sm:$0xff]  ;;  %v7647_v12 = vrot.slane %v3735_v2, %v7538_v17  ;;  %v2598_v8 = vunpack.c.h.s8.bf16 %v1782_v10  ;;  %v2594_v23 = vunpack.c.l.s8.bf16 %v1782_v10  ;;  %v2634_v2 = vunpack.c.l.s8.bf16 %v1802_v57 }
 0x1e2   : > { %v2662_v14 = vunpack.c.h.s8.bf16 %v1814_v11 }
 0x1e3   : > { %4079 = vmatpush2.bf16.msra.mxu0 %v2502_v15  ;;  %v2595_v15 = vunpack.c.l.s8.bf16 %v1783_v0  ;;  %v7657_v22 = vcombine.high %v7647_v12, %v7647_v12  ;;  %v1831_v0 = vld [vmem:[%s7513_s12 + $0x5e8] sm:$0xff] }
 0x1e4   : > { %4120 = vmatpush2.bf16.msra.mxu1 %v2566_v19  ;;  %4080 = vmatprep.subr.bf16.mxu0 %v2499_v20  ;;  %v2659_v19 = vunpack.c.l.s8.bf16 %v1815_v1  ;;  %v1779_v20 = vld [vmem:[%s7513_s12 + $0x448] sm:$0xff] }
 0x1e5   : > { %4121 = vmatprep.subr.bf16.mxu1 %v2563_v21  ;;  %v1811_v21 = vld [vmem:[%s7513_s12 + $0x548] sm:$0xff] }
 0x1e7   : > { %4081 = vmatpush2.bf16.msra.mxu0 %v2498_v24  ;;  %v2658_v24 = vunpack.c.l.s8.bf16 %v1814_v11 }
 0x1e8   : > { %4122 = vmatpush2.bf16.msra.mxu1 %v2562_v18  ;;  %4082 = vmatprep.subr.bf16.mxu0 %v2495_v28  ;;  %v2591_v18 = vunpack.c.h.s8.bf16 %v1779_v20  ;;  %v2655_v28 = vunpack.c.h.s8.bf16 %v1811_v21 }
 0x1e9   : > { %4123 = vmatprep.subr.bf16.mxu1 %v2559_v29  ;;  %v1778_v29 = vld [vmem:[%s7513_s12 + $0x440] sm:$0xff] }
 0x1ea   : > { %v2590_v31 = vunpack.c.h.s8.bf16 %v1778_v29  ;;  %v2586_v39 = vunpack.c.l.s8.bf16 %v1778_v29 }
 0x1eb   : > { %4083 = vmatpush2.bf16.msra.mxu0 %v2494_v32  ;;  %v2654_v32 = vunpack.c.h.s8.bf16 %v1810_v30 }
 0x1ec   : > { %4124 = vmatpush2.bf16.msra.mxu1 %v2558_v35  ;;  %4084 = vmatprep.subr.bf16.mxu0 %v2491_v36  ;;  %v2587_v35 = vunpack.c.l.s8.bf16 %v1779_v20  ;;  %v2651_v36 = vunpack.c.l.s8.bf16 %v1811_v21 }
 0x1ed   : > { %4125 = vmatprep.subr.bf16.mxu1 %v2555_v37  ;;  %v1775_v37 = vld [vmem:[%s7513_s12 + $0x428] sm:$0xff] }
 0x1ef   : > { %4085 = vmatpush2.bf16.msra.mxu0 %v2490_v40  ;;  %v2650_v40 = vunpack.c.l.s8.bf16 %v1810_v30 }
 0x1f0   : > { %4126 = vmatpush2.bf16.msra.mxu1 %v2554_v41  ;;  %4086 = vmatprep.subr.bf16.mxu0 %v2487_v42  ;;  %v2583_v41 = vunpack.c.h.s8.bf16 %v1775_v37  ;;  %v2647_v42 = vunpack.c.h.s8.bf16 %v1807_v38 }
 0x1f1   : > { %4127 = vmatprep.subr.bf16.mxu1 %v2551_v43  ;;  %v1774_v43 = vld [vmem:[%s7513_s12 + $0x420] sm:$0xff] }
 0x1f2   : > { %v2582_v45 = vunpack.c.h.s8.bf16 %v1774_v43  ;;  %v2578_v51 = vunpack.c.l.s8.bf16 %v1774_v43 }
 0x1f3   : > { %4087 = vmatpush2.bf16.msra.mxu0 %v2486_v46  ;;  %v2646_v46 = vunpack.c.h.s8.bf16 %v1806_v44 }
 0x1f4   : > { %4128 = vmatpush2.bf16.msra.mxu1 %v2550_v47  ;;  %4088 = vmatprep.subr.bf16.mxu0 %v2483_v48  ;;  %v2579_v47 = vunpack.c.l.s8.bf16 %v1775_v37  ;;  %v2643_v48 = vunpack.c.l.s8.bf16 %v1807_v38 }
 0x1f5   : > { %4129 = vmatprep.subr.bf16.mxu1 %v2547_v49  ;;  %v1771_v49 = vld [vmem:[%s7513_s12 + $0x408] sm:$0xff] }
 0x1f7   : > { %4089 = vmatpush2.bf16.msra.mxu0 %v2482_v53  ;;  %v2642_v53 = vunpack.c.l.s8.bf16 %v1806_v44 }
 0x1f8   : > { %4130 = vmatpush2.bf16.msra.mxu1 %v2546_v54  ;;  %4090 = vmatprep.subr.bf16.mxu0 %v2479_v55  ;;  %v2575_v54 = vunpack.c.h.s8.bf16 %v1771_v49  ;;  %v2639_v55 = vunpack.c.h.s8.bf16 %v1803_v50 }
 0x1f9   : > { %4131 = vmatprep.subr.bf16.mxu1 %v2543_v56  ;;  %v1770_v56 = vld [vmem:[%s7513_s12 + $0x400] sm:$0xff] }
 0x1fa   : > { %v2574_v58 = vunpack.c.h.s8.bf16 %v1770_v56  ;;  %v2570_v1 = vunpack.c.l.s8.bf16 %v1770_v56  ;;  %v1818_v56 = vld [vmem:[%s7513_s12 + $0x580] sm:$0xff] }
 0x1fb   : > { %4091 = vmatpush2.bf16.msra.mxu0 %v2478_v60  ;;  %v2638_v60 = vunpack.c.h.s8.bf16 %v1802_v57 }
 0x1fc   : > { %4132 = vmatpush2.bf16.msra.mxu1 %v2542_v61  ;;  %4092 = vmatprep.subr.bf16.mxu0 %v2475_v62  ;;  %v2571_v61 = vunpack.c.l.s8.bf16 %v1771_v49  ;;  %v2635_v62 = vunpack.c.l.s8.bf16 %v1803_v50  ;;  %v3720_v49 = vcombine.high %v7628_v52, %v7628_v52 }
 0x1fd   : > { %4133 = vmatprep.subr.bf16.mxu1 %v2539_v63  ;;  %v1799_v63 = vld [vmem:[%s7513_s12 + $0x4e8] sm:$0xff] }
 0x1fe   : > { %v7692_v57 = vrot.slane %v3720_v49, %v7538_v17 }
 0x1ff   : > { %4093 = vmatpush2.bf16.msra.mxu0 %v2474_v4  ;;  %v2631_v4 = vunpack.c.h.s8.bf16 %v1799_v63 }
 0x200   : > { %4134 = vmatpush2.bf16.msra.mxu1 %v2538_v5  ;;  %4144 = vmatprep.subr.bf16.mxu0 %v2599_v7  ;;  %v2695_v5 = vunpack.c.h.s8.bf16 %v1831_v0  ;;  %v1798_v7 = vld [vmem:[%s7513_s12 + $0x4e0] sm:$0xff] }
 0x201   : > { %4185 = vmatprep.subr.bf16.mxu1 %v2663_v9  ;;  %v1830_v9 = vld [vmem:[%s7513_s12 + $0x5e0] sm:$0xff]  ;;  %v2630_v10 = vunpack.c.h.s8.bf16 %v1798_v7  ;;  %v2626_v20 = vunpack.c.l.s8.bf16 %v1798_v7 }
 0x202   : > { %4095 = vmatmul.mubr.bf16.vlgmr.msra.gmra.mxu0 %v7642_v3  ;;  %v2694_v11 = vunpack.c.h.s8.bf16 %v1830_v9  ;;  %v2690_v21 = vunpack.c.l.s8.bf16 %v1830_v9  ;;  %v1846_v9 = vld [vmem:[%s7513_s12 + $0x660] sm:$0xff] }
 0x203   : > { %4136 = vmatmul.mubr.bf16.vlgmr.msra.gmra.mxu1 %v7651_v13  ;;  %4145 = vmatpush1.bf16.msra.mxu0 %v2598_v8  ;;  %v2627_v8 = vunpack.c.l.s8.bf16 %v1799_v63  ;;  %v1879_v63 = vld [vmem:[%s7513_s12 + $0x768] sm:$0xff] }
 0x204   : > { %4186 = vmatpush1.bf16.msra.mxu1 %v2662_v14  ;;  %4146 = vmatprep.subr.bf16.mxu0 %v2595_v15  ;;  %v2691_v14 = vunpack.c.l.s8.bf16 %v1831_v0  ;;  %v1795_v15 = vld [vmem:[%s7513_s12 + $0x4c8] sm:$0xff]  ;;  %v3736_v0 = vcombine.high %v7692_v57, %v7692_v57  ;;  %v2791_v7 = vunpack.c.h.s8.bf16 %v1879_v63 }
 0x205   : > { %4187 = vmatprep.subr.bf16.mxu1 %v2659_v19  ;;  %4176 = vmatprep.mubr.bf16.mxu0 %v7647_v12  ;;  %v1827_v19 = vld [vmem:[%s7513_s12 + $0x5c8] sm:$0xff] }
 0x206   : > { %4217 = vmatprep.mubr.bf16.mxu1 %v7657_v22 }
 0x207   : > { %4147 = vmatpush1.bf16.msra.mxu0 %v2594_v23  ;;  %v2623_v23 = vunpack.c.h.s8.bf16 %v1795_v15 }
 0x208   : > { %4188 = vmatpush1.bf16.msra.mxu1 %v2658_v24  ;;  %4148 = vmatprep.subr.bf16.mxu0 %v2591_v18  ;;  %v2687_v24 = vunpack.c.h.s8.bf16 %v1827_v19  ;;  %v1794_v18 = vld [vmem:[%s7513_s12 + $0x4c0] sm:$0xff] }
 0x209   : > { %4189 = vmatprep.subr.bf16.mxu1 %v2655_v28  ;;  %v1826_v28 = vld [vmem:[%s7513_s12 + $0x5c0] sm:$0xff]  ;;  %v2622_v29 = vunpack.c.h.s8.bf16 %v1794_v18  ;;  %v2618_v37 = vunpack.c.l.s8.bf16 %v1794_v18 }
 0x20a   : > { %v2686_v30 = vunpack.c.h.s8.bf16 %v1826_v28  ;;  %v2682_v38 = vunpack.c.l.s8.bf16 %v1826_v28 }
 0x20b   : > { %4149 = vmatpush1.bf16.msra.mxu0 %v2590_v31  ;;  %v2619_v31 = vunpack.c.l.s8.bf16 %v1795_v15 }
 0x20c   : > { %4190 = vmatpush1.bf16.msra.mxu1 %v2654_v32  ;;  %4150 = vmatprep.subr.bf16.mxu0 %v2587_v35  ;;  %v2683_v32 = vunpack.c.l.s8.bf16 %v1827_v19  ;;  %v1791_v35 = vld [vmem:[%s7513_s12 + $0x4a8] sm:$0xff]  ;;  %v2787_v19 = vunpack.c.l.s8.bf16 %v1879_v63 }
 0x20d   : > { %4191 = vmatprep.subr.bf16.mxu1 %v2651_v36  ;;  %v1823_v36 = vld [vmem:[%s7513_s12 + $0x5a8] sm:$0xff] }
 0x20f   : > { %4151 = vmatpush1.bf16.msra.mxu0 %v2586_v39  ;;  %v2615_v39 = vunpack.c.h.s8.bf16 %v1791_v35 }
 0x210   : > { %4192 = vmatpush1.bf16.msra.mxu1 %v2650_v40  ;;  %4152 = vmatprep.subr.bf16.mxu0 %v2583_v41  ;;  %v2679_v40 = vunpack.c.h.s8.bf16 %v1823_v36  ;;  %v1790_v41 = vld [vmem:[%s7513_s12 + $0x4a0] sm:$0xff] }
 0x211   : > { %4193 = vmatprep.subr.bf16.mxu1 %v2647_v42  ;;  %v1822_v42 = vld [vmem:[%s7513_s12 + $0x5a0] sm:$0xff]  ;;  %v2614_v43 = vunpack.c.h.s8.bf16 %v1790_v41  ;;  %v2610_v50 = vunpack.c.l.s8.bf16 %v1790_v41 }
 0x212   : > { %v2678_v44 = vunpack.c.h.s8.bf16 %v1822_v42 }
 0x213   : > { %4153 = vmatpush1.bf16.msra.mxu0 %v2582_v45  ;;  %v2611_v45 = vunpack.c.l.s8.bf16 %v1791_v35 }
 0x214   : > { %4194 = vmatpush1.bf16.msra.mxu1 %v2646_v46  ;;  %4154 = vmatprep.subr.bf16.mxu0 %v2579_v47  ;;  %v2675_v46 = vunpack.c.l.s8.bf16 %v1823_v36  ;;  %v1787_v47 = vld [vmem:[%s7513_s12 + $0x488] sm:$0xff] }
 0x215   : > { %4195 = vmatprep.subr.bf16.mxu1 %v2643_v48  ;;  %v1819_v48 = vld [vmem:[%s7513_s12 + $0x588] sm:$0xff]  ;;  %v2603_v52 = vunpack.c.l.s8.bf16 %v1787_v47 }
 0x217   : > { %4155 = vmatpush1.bf16.msra.mxu0 %v2578_v51  ;;  %v2674_v51 = vunpack.c.l.s8.bf16 %v1822_v42 }
 0x218   : > { %4196 = vmatpush1.bf16.msra.mxu1 %v2642_v53  ;;  %4156 = vmatprep.subr.bf16.mxu0 %v2575_v54  ;;  %v2607_v53 = vunpack.c.h.s8.bf16 %v1787_v47  ;;  %v2671_v54 = vunpack.c.h.s8.bf16 %v1819_v48 }
 0x219   : > { %4197 = vmatprep.subr.bf16.mxu1 %v2639_v55  ;;  %v1786_v55 = vld [vmem:[%s7513_s12 + $0x480] sm:$0xff] }
 0x21b   : > { %4157 = vmatpush1.bf16.msra.mxu0 %v2574_v58  ;;  %v2606_v58 = vunpack.c.h.s8.bf16 %v1786_v55 }
 0x21c   : > { %4198 = vmatpush1.bf16.msra.mxu1 %v2638_v60  ;;  %4158 = vmatprep.subr.bf16.mxu0 %v2571_v61  ;;  %v2670_v60 = vunpack.c.h.s8.bf16 %v1818_v56  ;;  %v2667_v61 = vunpack.c.l.s8.bf16 %v1819_v48 }
 0x21d   : > { %4199 = vmatprep.subr.bf16.mxu1 %v2635_v62  ;;  %v1847_v62 = vld [vmem:[%s7513_s12 + $0x668] sm:$0xff] }
 0x21e   : > { %v2723_v15 = vunpack.c.l.s8.bf16 %v1847_v62 }
 0x21f   : > { %4159 = vmatpush1.bf16.msra.mxu0 %v2570_v1  ;;  %v7700_v1 = vrot.slane %v7634_v59, %v7538_v17  ;;  %v2726_v59 = vunpack.c.h.s8.bf16 %v1846_v9 }
 0x220   : > { %4200 = vmatpush1.bf16.msra.mxu1 %v2634_v2  ;;  %4160 = vmatprep.subr.bf16.mxu0 %v2631_v4  ;;  %v2602_v2 = vunpack.c.l.s8.bf16 %v1786_v55  ;;  %v2666_v4 = vunpack.c.l.s8.bf16 %v1818_v56 }
 0x221   : > { %4201 = vmatprep.subr.bf16.mxu1 %v2695_v5  ;;  %v2727_v5 = vunpack.c.h.s8.bf16 %v1847_v62 }
 0x223   : > { %4161 = vmatpush2.bf16.msra.mxu0 %v2630_v10  ;;  %v1878_v10 = vld [vmem:[%s7513_s12 + $0x760] sm:$0xff] }
 0x224   : > { %4202 = vmatpush2.bf16.msra.mxu1 %v2694_v11  ;;  %4162 = vmatprep.subr.bf16.mxu0 %v2627_v8  ;;  %v7705_v11 = vrot.slane %v3736_v0, %v7538_v17  ;;  %v7709_v8 = vcombine.high %v7700_v1, %v7700_v1  ;;  %v2786_v18 = vunpack.c.l.s8.bf16 %v1878_v10  ;;  %v1863_v0 = vld [vmem:[%s7513_s12 + $0x6e8] sm:$0xff] }
 0x225   : > { %4203 = vmatprep.subr.bf16.mxu1 %v2691_v14  ;;  %v2790_v14 = vunpack.c.h.s8.bf16 %v1878_v10  ;;  %v1862_v10 = vld [vmem:[%s7513_s12 + $0x6e0] sm:$0xff] }
 0x227   : > { %4163 = vmatpush2.bf16.msra.mxu0 %v2626_v20  ;;  %v1843_v20 = vld [vmem:[%s7513_s12 + $0x648] sm:$0xff] }
 0x228   : > { %4204 = vmatpush2.bf16.msra.mxu1 %v2690_v21  ;;  %4164 = vmatprep.subr.bf16.mxu0 %v2623_v23  ;;  %v1875_v21 = vld [vmem:[%s7513_s12 + $0x748] sm:$0xff]  ;;  %v7715_v23 = vcombine.high %v7705_v11, %v7705_v11  ;;  %v2719_v28 = vunpack.c.h.s8.bf16 %v1843_v20  ;;  %v2715_v36 = vunpack.c.l.s8.bf16 %v1843_v20 }
 0x229   : > { %4205 = vmatprep.subr.bf16.mxu1 %v2687_v24  ;;  %v2722_v24 = vunpack.c.l.s8.bf16 %v1846_v9 }
 0x22b   : > { %4165 = vmatpush2.bf16.msra.mxu0 %v2622_v29  ;;  %v2783_v29 = vunpack.c.h.s8.bf16 %v1875_v21 }
 0x22c   : > { %4206 = vmatpush2.bf16.msra.mxu1 %v2686_v30  ;;  %4166 = vmatprep.subr.bf16.mxu0 %v2619_v31  ;;  %v1842_v30 = vld [vmem:[%s7513_s12 + $0x640] sm:$0xff] }
 0x22d   : > { %4207 = vmatprep.subr.bf16.mxu1 %v2683_v32  ;;  %v1874_v31 = vld [vmem:[%s7513_s12 + $0x740] sm:$0xff]  ;;  %v2718_v32 = vunpack.c.h.s8.bf16 %v1842_v30 }
 0x22e   : > { %v2782_v35 = vunpack.c.h.s8.bf16 %v1874_v31  ;;  %v2778_v41 = vunpack.c.l.s8.bf16 %v1874_v31  ;;  %v1858_v31 = vld [vmem:[%s7513_s12 + $0x6c0] sm:$0xff] }
 0x22f   : > { %4167 = vmatpush2.bf16.msra.mxu0 %v2618_v37  ;;  %v2779_v37 = vunpack.c.l.s8.bf16 %v1875_v21  ;;  %v1859_v21 = vld [vmem:[%s7513_s12 + $0x6c8] sm:$0xff] }
 0x230   : > { %4208 = vmatpush2.bf16.msra.mxu1 %v2682_v38  ;;  %4168 = vmatprep.subr.bf16.mxu0 %v2615_v39  ;;  %v1839_v38 = vld [vmem:[%s7513_s12 + $0x628] sm:$0xff] }
 0x231   : > { %4209 = vmatprep.subr.bf16.mxu1 %v2679_v40  ;;  %v1871_v39 = vld [vmem:[%s7513_s12 + $0x728] sm:$0xff]  ;;  %v2714_v40 = vunpack.c.l.s8.bf16 %v1842_v30  ;;  %v2711_v42 = vunpack.c.h.s8.bf16 %v1839_v38  ;;  %v2707_v48 = vunpack.c.l.s8.bf16 %v1839_v38 }
 0x232   : > { %v2771_v49 = vunpack.c.l.s8.bf16 %v1871_v39 }
 0x233   : > { %4169 = vmatpush2.bf16.msra.mxu0 %v2614_v43  ;;  %v2775_v43 = vunpack.c.h.s8.bf16 %v1871_v39  ;;  %v1855_v39 = vld [vmem:[%s7513_s12 + $0x6a8] sm:$0xff] }
 0x234   : > { %4210 = vmatpush2.bf16.msra.mxu1 %v2678_v44  ;;  %4170 = vmatprep.subr.bf16.mxu0 %v2611_v45  ;;  %v1838_v44 = vld [vmem:[%s7513_s12 + $0x620] sm:$0xff] }
 0x235   : > { %4211 = vmatprep.subr.bf16.mxu1 %v2675_v46  ;;  %v1870_v45 = vld [vmem:[%s7513_s12 + $0x720] sm:$0xff]  ;;  %v2710_v46 = vunpack.c.h.s8.bf16 %v1838_v44 }
 0x236   : > { %v2774_v47 = vunpack.c.h.s8.bf16 %v1870_v45 }
 0x237   : > { %4171 = vmatpush2.bf16.msra.mxu0 %v2610_v50  ;;  %v1835_v50 = vld [vmem:[%s7513_s12 + $0x608] sm:$0xff] }
 0x238   : > { %4212 = vmatpush2.bf16.msra.mxu1 %v2674_v51  ;;  %4172 = vmatprep.subr.bf16.mxu0 %v2607_v53  ;;  %v1867_v51 = vld [vmem:[%s7513_s12 + $0x708] sm:$0xff]  ;;  %v2706_v53 = vunpack.c.l.s8.bf16 %v1838_v44  ;;  %v2703_v55 = vunpack.c.h.s8.bf16 %v1835_v50  ;;  %v2699_v62 = vunpack.c.l.s8.bf16 %v1835_v50 }
 0x239   : > { %4213 = vmatprep.subr.bf16.mxu1 %v2671_v54  ;;  %v2770_v54 = vunpack.c.l.s8.bf16 %v1870_v45  ;;  %v2767_v56 = vunpack.c.h.s8.bf16 %v1867_v51  ;;  %v2763_v63 = vunpack.c.l.s8.bf16 %v1867_v51  ;;  %v1854_v45 = vld [vmem:[%s7513_s12 + $0x6a0] sm:$0xff]  ;;  %v1851_v51 = vld [vmem:[%s7513_s12 + $0x688] sm:$0xff] }
 0x23b   : > { %4173 = vmatpush2.bf16.msra.mxu0 %v2606_v58  ;;  %v1834_v58 = vld [vmem:[%s7513_s12 + $0x600] sm:$0xff] }
 0x23c   : > { %4214 = vmatpush2.bf16.msra.mxu1 %v2670_v60  ;;  %4174 = vmatprep.subr.bf16.mxu0 %v2603_v52  ;;  %v1866_v60 = vld [vmem:[%s7513_s12 + $0x700] sm:$0xff]  ;;  %v2702_v52 = vunpack.c.h.s8.bf16 %v1834_v58 }
 0x23d   : > { %4215 = vmatprep.subr.bf16.mxu1 %v2667_v61  ;;  %v2766_v61 = vunpack.c.h.s8.bf16 %v1866_v60 }
 0x23f   : > { %4175 = vmatpush2.bf16.msra.mxu0 %v2602_v2  ;;  %v1895_v2 = vld [vmem:[%s7513_s12 + $0x7e8] sm:$0xff] }
 0x240   : > { %4216 = vmatpush2.bf16.msra.mxu1 %v2666_v4  ;;  %4226 = vmatprep.subr.bf16.mxu0 %v2727_v5  ;;  %v2698_v4 = vunpack.c.l.s8.bf16 %v1834_v58  ;;  %v2762_v5 = vunpack.c.l.s8.bf16 %v1866_v60  ;;  %v2823_v9 = vunpack.c.h.s8.bf16 %v1895_v2  ;;  %v2819_v20 = vunpack.c.l.s8.bf16 %v1895_v2 }
 0x241   : > { %4267 = vmatprep.subr.bf16.mxu1 %v2791_v7  ;;  %v2759_v7 = vunpack.c.h.s8.bf16 %v1863_v0  ;;  %v2735_v58 = vunpack.c.h.s8.bf16 %v1851_v51  ;;  %v2731_v2 = vunpack.c.l.s8.bf16 %v1851_v51 }
 0x242   : > { %4177 = vmatmul.mubr.bf16.vlgmr.msra.gmra.mxu0 %v7700_v1 }
 0x243   : > { %4218 = vmatmul.mubr.bf16.vlgmr.msra.gmra.mxu1 %v7709_v8  ;;  %4227 = vmatpush1.bf16.msra.mxu0 %v2726_v59  ;;  %v1894_v59 = vld [vmem:[%s7513_s12 + $0x7e0] sm:$0xff] }
 0x244   : > { %4268 = vmatpush1.bf16.msra.mxu1 %v2790_v14  ;;  %4228 = vmatprep.subr.bf16.mxu0 %v2723_v15  ;;  %v2758_v14 = vunpack.c.h.s8.bf16 %v1862_v10  ;;  %v2822_v15 = vunpack.c.h.s8.bf16 %v1894_v59 }
 0x245   : > { %4269 = vmatprep.subr.bf16.mxu1 %v2787_v19  ;;  %4258 = vmatprep.mubr.bf16.mxu0 %v7705_v11  ;;  %v2755_v19 = vunpack.c.l.s8.bf16 %v1863_v0 }
 0x246   : > { %4299 = vmatprep.mubr.bf16.mxu1 %v7715_v23 }
 0x247   : > { %4229 = vmatpush1.bf16.msra.mxu0 %v2722_v24  ;;  %v1891_v24 = vld [vmem:[%s7513_s12 + $0x7c8] sm:$0xff] }
 0x248   : > { %4270 = vmatpush1.bf16.msra.mxu1 %v2786_v18  ;;  %4230 = vmatprep.subr.bf16.mxu0 %v2719_v28  ;;  %v2754_v18 = vunpack.c.l.s8.bf16 %v1862_v10  ;;  %v2818_v28 = vunpack.c.l.s8.bf16 %v1894_v59  ;;  %v2815_v30 = vunpack.c.h.s8.bf16 %v1891_v24  ;;  %v2811_v38 = vunpack.c.l.s8.bf16 %v1891_v24 }
 0x249   : > { %4271 = vmatprep.subr.bf16.mxu1 %v2783_v29  ;;  %v2751_v29 = vunpack.c.h.s8.bf16 %v1859_v21  ;;  %v7760_v10 = vrot.slane %v7692_v57, %v7538_v17 }
 0x24b   : > { %4231 = vmatpush1.bf16.msra.mxu0 %v2718_v32  ;;  %v1890_v32 = vld [vmem:[%s7513_s12 + $0x7c0] sm:$0xff] }
 0x24c   : > { %4272 = vmatpush1.bf16.msra.mxu1 %v2782_v35  ;;  %4232 = vmatprep.subr.bf16.mxu0 %v2715_v36  ;;  %v2750_v35 = vunpack.c.h.s8.bf16 %v1858_v31  ;;  %v2814_v36 = vunpack.c.h.s8.bf16 %v1890_v32 }
 0x24d   : > { %4273 = vmatprep.subr.bf16.mxu1 %v2779_v37  ;;  %v2747_v37 = vunpack.c.l.s8.bf16 %v1859_v21  ;;  %v1942_v21 = vld [vmem:[%s7513_s12 + $0x960] sm:$0xff] }
 0x24f   : > { %4233 = vmatpush1.bf16.msra.mxu0 %v2714_v40  ;;  %v1887_v40 = vld [vmem:[%s7513_s12 + $0x7a8] sm:$0xff] }
 0x250   : > { %4274 = vmatpush1.bf16.msra.mxu1 %v2778_v41  ;;  %4234 = vmatprep.subr.bf16.mxu0 %v2711_v42  ;;  %v2746_v41 = vunpack.c.l.s8.bf16 %v1858_v31  ;;  %v2810_v42 = vunpack.c.l.s8.bf16 %v1890_v32  ;;  %v2807_v44 = vunpack.c.h.s8.bf16 %v1887_v40  ;;  %v2803_v50 = vunpack.c.l.s8.bf16 %v1887_v40  ;;  %v1907_v31 = vld [vmem:[%s7513_s12 + $0x848] sm:$0xff] }
 0x251   : > { %4275 = vmatprep.subr.bf16.mxu1 %v2775_v43  ;;  %v2743_v43 = vunpack.c.h.s8.bf16 %v1855_v39  ;;  %v1939_v32 = vld [vmem:[%s7513_s12 + $0x948] sm:$0xff]  ;;  %v2914_v40 = vunpack.c.l.s8.bf16 %v1942_v21 }
 0x253   : > { %4235 = vmatpush1.bf16.msra.mxu0 %v2710_v46  ;;  %v1886_v46 = vld [vmem:[%s7513_s12 + $0x7a0] sm:$0xff] }
 0x254   : > { %4276 = vmatpush1.bf16.msra.mxu1 %v2774_v47  ;;  %4236 = vmatprep.subr.bf16.mxu0 %v2707_v48  ;;  %v2742_v47 = vunpack.c.h.s8.bf16 %v1854_v45  ;;  %v2806_v48 = vunpack.c.h.s8.bf16 %v1886_v46 }
 0x255   : > { %4277 = vmatprep.subr.bf16.mxu1 %v2771_v49  ;;  %v2739_v49 = vunpack.c.l.s8.bf16 %v1855_v39 }
 0x257   : > { %4237 = vmatpush1.bf16.msra.mxu0 %v2706_v53  ;;  %v1883_v53 = vld [vmem:[%s7513_s12 + $0x788] sm:$0xff] }
 0x258   : > { %4278 = vmatpush1.bf16.msra.mxu1 %v2770_v54  ;;  %4238 = vmatprep.subr.bf16.mxu0 %v2703_v55  ;;  %v7746_v54 = vld [vmem:[%s7497_s29 + $0x10] sm:$0xff]  ;;  %v2738_v55 = vunpack.c.l.s8.bf16 %v1854_v45  ;;  %v2799_v60 = vunpack.c.h.s8.bf16 %v1883_v53  ;;  %v1906_v45 = vld [vmem:[%s7513_s12 + $0x840] sm:$0xff] }
 0x259   : > { %4279 = vmatprep.subr.bf16.mxu1 %v2767_v56  ;;  %v2802_v56 = vunpack.c.l.s8.bf16 %v1886_v46  ;;  %v1938_v46 = vld [vmem:[%s7513_s12 + $0x940] sm:$0xff] }
 0x25a   : > { %v2910_v51 = vunpack.c.h.s8.bf16 %v1938_v46 }
 0x25b   : > { %4239 = vmatpush1.bf16.msra.mxu0 %v2702_v52  ;;  %v1850_v52 = vld [vmem:[%s7513_s12 + $0x680] sm:$0xff] }
 0x25c   : > { %4280 = vmatpush1.bf16.msra.mxu1 %v2766_v61  ;;  %4240 = vmatprep.subr.bf16.mxu0 %v2699_v62  ;;  %v1882_v61 = vld [vmem:[%s7513_s12 + $0x780] sm:$0xff]  ;;  %v7752_v62 = vrot.slane %v7746_v54, %v7538_v17  ;;  %v2730_v59 = vunpack.c.l.s8.bf16 %v1850_v52 }
 0x25d   : > { %4281 = vmatprep.subr.bf16.mxu1 %v2763_v63  ;;  %v2734_v63 = vunpack.c.h.s8.bf16 %v1850_v52  ;;  %v2798_v0 = vunpack.c.h.s8.bf16 %v1882_v61  ;;  %v1935_v52 = vld [vmem:[%s7513_s12 + $0x928] sm:$0xff] }
 0x25f   : > { %4241 = vmatpush1.bf16.msra.mxu0 %v2698_v4  ;;  %v2795_v4 = vunpack.c.l.s8.bf16 %v1883_v53 }
 0x260   : > { %4282 = vmatpush1.bf16.msra.mxu1 %v2762_v5  ;;  %4242 = vmatprep.subr.bf16.mxu0 %v2759_v7  ;;  %v1911_v5 = vld [vmem:[%s7513_s12 + $0x868] sm:$0xff] }
 0x261   : > { %4283 = vmatprep.subr.bf16.mxu1 %v2823_v9  ;;  %v1943_v7 = vld [vmem:[%s7513_s12 + $0x968] sm:$0xff]  ;;  %v3784_v9 = vcombine.high %v7752_v62, %v7752_v62 }
 0x263   : > { %4243 = vmatpush2.bf16.msra.mxu0 %v2758_v14  ;;  %v2794_v14 = vunpack.c.l.s8.bf16 %v1882_v61  ;;  %v7765_v24 = vrot.slane %v3784_v9, %v7538_v17  ;;  %v2842_v61 = vunpack.c.l.s8.bf16 %v1906_v45 }
 0x264   : > { %4284 = vmatpush2.bf16.msra.mxu1 %v2822_v15  ;;  %4244 = vmatprep.subr.bf16.mxu0 %v2755_v19  ;;  %v2855_v15 = vunpack.c.h.s8.bf16 %v1911_v5  ;;  %v2919_v19 = vunpack.c.h.s8.bf16 %v1943_v7 }
 0x265   : > { %4285 = vmatprep.subr.bf16.mxu1 %v2819_v20  ;;  %v1910_v20 = vld [vmem:[%s7513_s12 + $0x860] sm:$0xff] }
 0x266   : > { %v2854_v57 = vunpack.c.h.s8.bf16 %v1910_v20  ;;  %v2850_v39 = vunpack.c.l.s8.bf16 %v1910_v20 }
 0x267   : > { %4245 = vmatpush2.bf16.msra.mxu0 %v2754_v18  ;;  %v7769_v18 = vcombine.high %v7760_v10, %v7760_v10 }
 0x268   : > { %4286 = vmatpush2.bf16.msra.mxu1 %v2818_v28  ;;  %4246 = vmatprep.subr.bf16.mxu0 %v2751_v29  ;;  %v2918_v28 = vunpack.c.h.s8.bf16 %v1942_v21  ;;  %v2851_v29 = vunpack.c.l.s8.bf16 %v1911_v5  ;;  %v1934_v5 = vld [vmem:[%s7513_s12 + $0x920] sm:$0xff] }
 0x269   : > { %4287 = vmatprep.subr.bf16.mxu1 %v2815_v30  ;;  %v2915_v30 = vunpack.c.l.s8.bf16 %v1943_v7  ;;  %v2902_v9 = vunpack.c.h.s8.bf16 %v1934_v5  ;;  %v2898_v21 = vunpack.c.l.s8.bf16 %v1934_v5 }
 0x26b   : > { %4247 = vmatpush2.bf16.msra.mxu0 %v2750_v35  ;;  %v7775_v35 = vcombine.high %v7765_v24, %v7765_v24 }
 0x26c   : > { %4288 = vmatpush2.bf16.msra.mxu1 %v2814_v36  ;;  %4248 = vmatprep.subr.bf16.mxu0 %v2747_v37 }
 0x26d   : > { %4289 = vmatprep.subr.bf16.mxu1 %v2811_v38 }
 0x26f   : > { %4249 = vmatpush2.bf16.msra.mxu0 %v2746_v41 }
 0x270   : > { %4290 = vmatpush2.bf16.msra.mxu1 %v2810_v42  ;;  %4250 = vmatprep.subr.bf16.mxu0 %v2743_v43  ;;  %v2847_v43 = vunpack.c.h.s8.bf16 %v1907_v31 }
 0x271   : > { %4291 = vmatprep.subr.bf16.mxu1 %v2807_v44  ;;  %v2911_v44 = vunpack.c.h.s8.bf16 %v1939_v32 }
 0x273   : > { %4251 = vmatpush2.bf16.msra.mxu0 %v2742_v47 }
 0x274   : > { %4292 = vmatpush2.bf16.msra.mxu1 %v2806_v48  ;;  %4252 = vmatprep.subr.bf16.mxu0 %v2739_v49 }
 0x275   : > { %4293 = vmatprep.subr.bf16.mxu1 %v2803_v50  ;;  %v2846_v50 = vunpack.c.h.s8.bf16 %v1906_v45  ;;  %v1926_v45 = vld [vmem:[%s7513_s12 + $0x8e0] sm:$0xff] }
 0x277   : > { %4253 = vmatpush2.bf16.msra.mxu0 %v2738_v55 }
 0x278   : > { %4294 = vmatpush2.bf16.msra.mxu1 %v2802_v56  ;;  %4254 = vmatprep.subr.bf16.mxu0 %v2735_v58  ;;  %v2843_v56 = vunpack.c.l.s8.bf16 %v1907_v31  ;;  %v2907_v58 = vunpack.c.l.s8.bf16 %v1939_v32 }
 0x279   : > { %4295 = vmatprep.subr.bf16.mxu1 %v2799_v60  ;;  %v1903_v60 = vld [vmem:[%s7513_s12 + $0x828] sm:$0xff] }
 0x27b   : > { %4255 = vmatpush2.bf16.msra.mxu0 %v2734_v63  ;;  %v2906_v63 = vunpack.c.l.s8.bf16 %v1938_v46  ;;  %v1958_v46 = vld [vmem:[%s7513_s12 + $0x9e0] sm:$0xff] }
 0x27c   : > { %4296 = vmatpush2.bf16.msra.mxu1 %v2798_v0  ;;  %4256 = vmatprep.subr.bf16.mxu0 %v2731_v2  ;;  %v2839_v0 = vunpack.c.h.s8.bf16 %v1903_v60  ;;  %v2903_v2 = vunpack.c.h.s8.bf16 %v1935_v52 }
 0x27d   : > { %4297 = vmatprep.subr.bf16.mxu1 %v2795_v4  ;;  %v1902_v4 = vld [vmem:[%s7513_s12 + $0x820] sm:$0xff] }
 0x27e   : > { %v2838_v7 = vunpack.c.h.s8.bf16 %v1902_v4  ;;  %v2834_v20 = vunpack.c.l.s8.bf16 %v1902_v4 }
 0x27f   : > { %4257 = vmatpush2.bf16.msra.mxu0 %v2730_v59  ;;  %v2835_v59 = vunpack.c.l.s8.bf16 %v1903_v60 }
 0x280   : > { %4298 = vmatpush2.bf16.msra.mxu1 %v2794_v14  ;;  %4308 = vmatprep.subr.bf16.mxu0 %v2855_v15  ;;  %v2899_v14 = vunpack.c.l.s8.bf16 %v1935_v52  ;;  %v1899_v15 = vld [vmem:[%s7513_s12 + $0x808] sm:$0xff] }
 0x281   : > { %4349 = vmatprep.subr.bf16.mxu1 %v2919_v19  ;;  %v1931_v19 = vld [vmem:[%s7513_s12 + $0x908] sm:$0xff] }
 0x282   : > { %v4014_v36 = vpop.f32.mrf.mxu0  ;;  %4259 = vmatmul.mubr.bf16.vlgmr.msra.gmra.mxu0 %v7760_v10 }
 0x283   : > { %v4055_v37 = vpop.f32.mrf.mxu1  ;;  %4300 = vmatmul.mubr.bf16.vlgmr.msra.gmra.mxu1 %v7769_v18  ;;  %4309 = vmatpush1.bf16.msra.mxu0 %v2854_v57  ;;  %v2831_v57 = vunpack.c.h.s8.bf16 %v1899_v15 }
 0x284   : > { %v7779_v38 = vadd.f32 %v4055_v37, %v4014_v36  ;;  %4350 = vmatpush1.bf16.msra.mxu1 %v2918_v28  ;;  %v4016_v41 = vpop.f32.mrf.mxu0  ;;  %4310 = vmatprep.subr.bf16.mxu0 %v2851_v29  ;;  %v2895_v28 = vunpack.c.h.s8.bf16 %v1931_v19  ;;  %v1898_v29 = vld [vmem:[%s7513_s12 + $0x800] sm:$0xff]  ;;  %v2827_v36 = vunpack.c.l.s8.bf16 %v1899_v15  ;;  %v2891_v37 = vunpack.c.l.s8.bf16 %v1931_v19 }
 0x285   : > { %v4057_v42 = vpop.f32.mrf.mxu1  ;;  %4351 = vmatprep.subr.bf16.mxu1 %v2915_v30  ;;  %4340 = vmatprep.mubr.bf16.mxu0 %v7765_v24  ;;  %v1930_v30 = vld [vmem:[%s7513_s12 + $0x900] sm:$0xff]  ;;  %v2830_v31 = vunpack.c.h.s8.bf16 %v1898_v29 }
 0x286   : > { %v7783_v47 = vadd.f32 %v4057_v42, %v4016_v41  ;;  %4381 = vmatprep.mubr.bf16.mxu1 %v7775_v35  ;;  %v4018_v48 = vpop.f32.mrf.mxu0  ;;  %v2894_v32 = vunpack.c.h.s8.bf16 %v1930_v30  ;;  %v2826_v41 = vunpack.c.l.s8.bf16 %v1898_v29  ;;  %v2890_v42 = vunpack.c.l.s8.bf16 %v1930_v30 }
 0x287   : > { %v4059_v49 = vpop.f32.mrf.mxu1  ;;  %4311 = vmatpush1.bf16.msra.mxu0 %v2850_v39  ;;  %v1927_v39 = vld [vmem:[%s7513_s12 + $0x8e8] sm:$0xff]  ;;  %v2886_v48 = vunpack.c.h.s8.bf16 %v1926_v45 }
 0x288   : > { %4352 = vmatpush1.bf16.msra.mxu1 %v2914_v40  ;;  %v4019_v53 = vpop.f32.mrf.mxu0  ;;  %4312 = vmatprep.subr.bf16.mxu0 %v2847_v43  ;;  %v1959_v40 = vld [vmem:[%s7513_s12 + $0x9e8] sm:$0xff]  ;;  %v2887_v43 = vunpack.c.h.s8.bf16 %v1927_v39  ;;  %v2950_v49 = vunpack.c.h.s8.bf16 %v1958_v46 }
 0x289   : > { %v4060_v55 = vpop.f32.mrf.mxu1  ;;  %4353 = vmatprep.subr.bf16.mxu1 %v2911_v44  ;;  %v2951_v44 = vunpack.c.h.s8.bf16 %v1959_v40  ;;  %v1923_v53 = vld [vmem:[%s7513_s12 + $0x8c8] sm:$0xff] }
 0x28a   : > { %v1955_v55 = vld [vmem:[%s7513_s12 + $0x9c8] sm:$0xff]  ;;  %v2879_v60 = vunpack.c.h.s8.bf16 %v1923_v53  ;;  %v2875_v4 = vunpack.c.l.s8.bf16 %v1923_v53  ;;  %v7822_v53 = vrot.slane %v7752_v62, %v7538_v17 }
 0x28b   : > { %4313 = vmatpush1.bf16.msra.mxu0 %v2846_v50  ;;  %v2883_v50 = vunpack.c.l.s8.bf16 %v1927_v39  ;;  %v2943_v52 = vunpack.c.h.s8.bf16 %v1955_v55  ;;  %v2939_v5 = vunpack.c.l.s8.bf16 %v1955_v55 }
 0x28c   : > { %4354 = vmatpush1.bf16.msra.mxu1 %v2910_v51  ;;  %4314 = vmatprep.subr.bf16.mxu0 %v2843_v56  ;;  %v2947_v51 = vunpack.c.l.s8.bf16 %v1959_v40  ;;  %v2882_v56 = vunpack.c.l.s8.bf16 %v1926_v45 }
 0x28d   : > { %4355 = vmatprep.subr.bf16.mxu1 %v2907_v58  ;;  %v2946_v58 = vunpack.c.l.s8.bf16 %v1958_v46 }
 0x28f   : > { %4315 = vmatpush1.bf16.msra.mxu0 %v2842_v61  ;;  %v1922_v61 = vld [vmem:[%s7513_s12 + $0x8c0] sm:$0xff] }
 0x290   : > { %4356 = vmatpush1.bf16.msra.mxu1 %v2906_v63  ;;  %4316 = vmatprep.subr.bf16.mxu0 %v2839_v0  ;;  %v1954_v63 = vld [vmem:[%s7513_s12 + $0x9c0] sm:$0xff]  ;;  %v2878_v0 = vunpack.c.h.s8.bf16 %v1922_v61 }
 0x291   : > { %4357 = vmatprep.subr.bf16.mxu1 %v2903_v2  ;;  %v2942_v2 = vunpack.c.h.s8.bf16 %v1954_v63 }
 0x293   : > { %4317 = vmatpush1.bf16.msra.mxu0 %v2838_v7  ;;  %v1919_v7 = vld [vmem:[%s7513_s12 + $0x8a8] sm:$0xff] }
 0x294   : > { %4358 = vmatpush1.bf16.msra.mxu1 %v2902_v9  ;;  %4318 = vmatprep.subr.bf16.mxu0 %v2835_v59  ;;  %v1951_v9 = vld [vmem:[%s7513_s12 + $0x9a8] sm:$0xff]  ;;  %v2874_v59 = vunpack.c.l.s8.bf16 %v1922_v61  ;;  %v2871_v15 = vunpack.c.h.s8.bf16 %v1919_v7  ;;  %v2867_v29 = vunpack.c.l.s8.bf16 %v1919_v7  ;;  %v2006_v61 = vld [vmem:[%s7513_s12 + $0xb60] sm:$0xff] }
 0x295   : > { %4359 = vmatprep.subr.bf16.mxu1 %v2899_v14  ;;  %v2938_v14 = vunpack.c.l.s8.bf16 %v1954_v63  ;;  %v2935_v19 = vunpack.c.h.s8.bf16 %v1951_v9  ;;  %v2931_v30 = vunpack.c.l.s8.bf16 %v1951_v9  ;;  %v1971_v7 = vld [vmem:[%s7513_s12 + $0xa48] sm:$0xff] }
 0x296   : > { %v2003_v9 = vld [vmem:[%s7513_s12 + $0xb48] sm:$0xff] }
 0x297   : > { %4319 = vmatpush1.bf16.msra.mxu0 %v2834_v20  ;;  %v1918_v20 = vld [vmem:[%s7513_s12 + $0x8a0] sm:$0xff] }
 0x298   : > { %4360 = vmatpush1.bf16.msra.mxu1 %v2898_v21  ;;  %4320 = vmatprep.subr.bf16.mxu0 %v2831_v57  ;;  %v1950_v21 = vld [vmem:[%s7513_s12 + $0x9a0] sm:$0xff]  ;;  %v2870_v57 = vunpack.c.h.s8.bf16 %v1918_v20 }
 0x299   : > { %4361 = vmatprep.subr.bf16.mxu1 %v2895_v28  ;;  %v2934_v28 = vunpack.c.h.s8.bf16 %v1950_v21  ;;  %v2930_v39 = vunpack.c.l.s8.bf16 %v1950_v21  ;;  %v3042_v21 = vunpack.c.l.s8.bf16 %v2006_v61 }
 0x29b   : > { %4321 = vmatpush1.bf16.msra.mxu0 %v2830_v31  ;;  %v1915_v31 = vld [vmem:[%s7513_s12 + $0x888] sm:$0xff] }
 0x29c   : > { %4362 = vmatpush1.bf16.msra.mxu1 %v2894_v32  ;;  %4322 = vmatprep.subr.bf16.mxu0 %v2827_v36  ;;  %v1947_v32 = vld [vmem:[%s7513_s12 + $0x988] sm:$0xff]  ;;  %v3769_v36 = vcombine.high %v7746_v54, %v7746_v54  ;;  %v2863_v40 = vunpack.c.h.s8.bf16 %v1915_v31  ;;  %v2859_v54 = vunpack.c.l.s8.bf16 %v1915_v31  ;;  %v1970_v31 = vld [vmem:[%s7513_s12 + $0xa40] sm:$0xff] }
 0x29d   : > { %4363 = vmatprep.subr.bf16.mxu1 %v2891_v37  ;;  %v2866_v37 = vunpack.c.l.s8.bf16 %v1918_v20 }
 0x29f   : > { %4323 = vmatpush1.bf16.msra.mxu0 %v2826_v41  ;;  %v2927_v41 = vunpack.c.h.s8.bf16 %v1947_v32 }
 0x2a0   : > { %4364 = vmatpush1.bf16.msra.mxu1 %v2890_v42  ;;  %4324 = vmatprep.subr.bf16.mxu0 %v2887_v43  ;;  %v1914_v42 = vld [vmem:[%s7513_s12 + $0x880] sm:$0xff] }
 0x2a1   : > { %4365 = vmatprep.subr.bf16.mxu1 %v2951_v44  ;;  %v1946_v43 = vld [vmem:[%s7513_s12 + $0x980] sm:$0xff]  ;;  %v7814_v44 = vrot.slane %v3769_v36, %v7538_v17  ;;  %v2862_v45 = vunpack.c.h.s8.bf16 %v1914_v42  ;;  %v2858_v55 = vunpack.c.l.s8.bf16 %v1914_v42 }
 0x2a2   : > { %v2926_v46 = vunpack.c.h.s8.bf16 %v1946_v43 }
 0x2a3   : > { %4325 = vmatpush2.bf16.msra.mxu0 %v2886_v48  ;;  %v2923_v48 = vunpack.c.l.s8.bf16 %v1947_v32  ;;  %v2002_v32 = vld [vmem:[%s7513_s12 + $0xb40] sm:$0xff] }
 0x2a4   : > { %4366 = vmatpush2.bf16.msra.mxu1 %v2950_v49  ;;  %4326 = vmatprep.subr.bf16.mxu0 %v2883_v50  ;;  %v1975_v49 = vld [vmem:[%s7513_s12 + $0xa68] sm:$0xff]  ;;  %v3038_v42 = vunpack.c.h.s8.bf16 %v2002_v32 }
 0x2a5   : > { %4367 = vmatprep.subr.bf16.mxu1 %v2947_v51  ;;  %v2007_v50 = vld [vmem:[%s7513_s12 + $0xb68] sm:$0xff]  ;;  %v3785_v51 = vcombine.high %v7814_v44, %v7814_v44 }
 0x2a7   : > { %4327 = vmatpush2.bf16.msra.mxu0 %v2882_v56  ;;  %v2922_v56 = vunpack.c.l.s8.bf16 %v1946_v43  ;;  %v7827_v63 = vrot.slane %v3785_v51, %v7538_v17 }
 0x2a8   : > { %4368 = vmatpush2.bf16.msra.mxu1 %v2946_v58  ;;  %4328 = vmatprep.subr.bf16.mxu0 %v2879_v60  ;;  %v2983_v58 = vunpack.c.h.s8.bf16 %v1975_v49  ;;  %v3047_v60 = vunpack.c.h.s8.bf16 %v2007_v50 }
 0x2a9   : > { %4369 = vmatprep.subr.bf16.mxu1 %v2943_v52  ;;  %v1974_v52 = vld [vmem:[%s7513_s12 + $0xa60] sm:$0xff] }
 0x2aa   : > { %v2982_v62 = vunpack.c.h.s8.bf16 %v1974_v52  ;;  %v2978_v20 = vunpack.c.l.s8.bf16 %v1974_v52 }
 0x2ab   : > { %4329 = vmatpush2.bf16.msra.mxu0 %v2878_v0  ;;  %v7831_v0 = vcombine.high %v7822_v53, %v7822_v53 }
 0x2ac   : > { %4370 = vmatpush2.bf16.msra.mxu1 %v2942_v2  ;;  %4330 = vmatprep.subr.bf16.mxu0 %v2875_v4  ;;  %v3046_v2 = vunpack.c.h.s8.bf16 %v2006_v61  ;;  %v2979_v4 = vunpack.c.l.s8.bf16 %v1975_v49  ;;  %v2970_v49 = vunpack.c.l.s8.bf16 %v1970_v31 }
 0x2ad   : > { %4371 = vmatprep.subr.bf16.mxu1 %v2939_v5  ;;  %v3043_v5 = vunpack.c.l.s8.bf16 %v2007_v50  ;;  %v3034_v50 = vunpack.c.l.s8.bf16 %v2002_v32 }
 0x2af   : > { %4331 = vmatpush2.bf16.msra.mxu0 %v2874_v59  ;;  %v7837_v59 = vcombine.high %v7827_v63, %v7827_v63 }
 0x2b0   : > { %4372 = vmatpush2.bf16.msra.mxu1 %v2938_v14  ;;  %4332 = vmatprep.subr.bf16.mxu0 %v2871_v15 }
 0x2b1   : > { %4373 = vmatprep.subr.bf16.mxu1 %v2935_v19 }
 0x2b3   : > { %4333 = vmatpush2.bf16.msra.mxu0 %v2870_v57 }
 0x2b4   : > { %4374 = vmatpush2.bf16.msra.mxu1 %v2934_v28  ;;  %4334 = vmatprep.subr.bf16.mxu0 %v2867_v29  ;;  %v2975_v29 = vunpack.c.h.s8.bf16 %v1971_v7 }
 0x2b5   : > { %4375 = vmatprep.subr.bf16.mxu1 %v2931_v30  ;;  %v3039_v30 = vunpack.c.h.s8.bf16 %v2003_v9 }
 0x2b7   : > { %4335 = vmatpush2.bf16.msra.mxu0 %v2866_v37 }
 0x2b8   : > { %4376 = vmatpush2.bf16.msra.mxu1 %v2930_v39  ;;  %4336 = vmatprep.subr.bf16.mxu0 %v2863_v40 }
 0x2b9   : > { %4377 = vmatprep.subr.bf16.mxu1 %v2927_v41  ;;  %v2974_v41 = vunpack.c.h.s8.bf16 %v1970_v31 }
 0x2bb   : > { %4337 = vmatpush2.bf16.msra.mxu0 %v2862_v45 }
 0x2bc   : > { %4378 = vmatpush2.bf16.msra.mxu1 %v2926_v46  ;;  %4338 = vmatprep.subr.bf16.mxu0 %v2859_v54  ;;  %v3035_v46 = vunpack.c.l.s8.bf16 %v2003_v9  ;;  %v1967_v54 = vld [vmem:[%s7513_s12 + $0xa28] sm:$0xff] }
 0x2bd   : > { %4379 = vmatprep.subr.bf16.mxu1 %v2923_v48  ;;  %v1999_v48 = vld [vmem:[%s7513_s12 + $0xb28] sm:$0xff]  ;;  %v2967_v51 = vunpack.c.h.s8.bf16 %v1967_v54  ;;  %v2963_v61 = vunpack.c.l.s8.bf16 %v1967_v54 }
 0x2be   : > { %v2019_v54 = vld [vmem:[%s7513_s12 + $0xbc8] sm:$0xff] }
 0x2bf   : > { %4339 = vmatpush2.bf16.msra.mxu0 %v2858_v55  ;;  %v3031_v55 = vunpack.c.h.s8.bf16 %v1999_v48 }
 0x2c0   : > { %4380 = vmatpush2.bf16.msra.mxu1 %v2922_v56  ;;  %4390 = vmatprep.subr.bf16.mxu0 %v2983_v58  ;;  %v1966_v56 = vld [vmem:[%s7513_s12 + $0xa20] sm:$0xff] }
 0x2c1   : > { %4431 = vmatprep.subr.bf16.mxu1 %v3047_v60  ;;  %v1998_v58 = vld [vmem:[%s7513_s12 + $0xb20] sm:$0xff]  ;;  %v2966_v60 = vunpack.c.h.s8.bf16 %v1966_v56 }
 0x2c2   : > { %v4096_v14 = vpop.f32.mrf.mxu0  ;;  %4341 = vmatmul.mubr.bf16.vlgmr.msra.gmra.mxu0 %v7822_v53  ;;  %v3030_v52 = vunpack.c.h.s8.bf16 %v1998_v58 }
 0x2c3   : > { %v4137_v15 = vpop.f32.mrf.mxu1  ;;  %4382 = vmatmul.mubr.bf16.vlgmr.msra.gmra.mxu1 %v7831_v0  ;;  %v4097_v19 = vadd.f32 %v4096_v14, %v7779_v38  ;;  %4391 = vmatpush1.bf16.msra.mxu0 %v2982_v62  ;;  %v3027_v62 = vunpack.c.l.s8.bf16 %v1999_v48 }
 0x2c4   : > { %4432 = vmatpush1.bf16.msra.mxu1 %v3046_v2  ;;  %v4098_v57 = vpop.f32.mrf.mxu0  ;;  %4392 = vmatprep.subr.bf16.mxu0 %v2979_v4  ;;  %v1963_v2 = vld [vmem:[%s7513_s12 + $0xa08] sm:$0xff] }
 0x2c5   : > { %v4139_v28 = vpop.f32.mrf.mxu1  ;;  %4433 = vmatprep.subr.bf16.mxu1 %v3043_v5  ;;  %v7844_v36 = vadd.f32 %v4137_v15, %v4097_v19  ;;  %v4099_v37 = vadd.f32 %v4098_v57, %v7783_v47  ;;  %4422 = vmatprep.mubr.bf16.mxu0 %v7827_v63  ;;  %v2971_v47 = vunpack.c.l.s8.bf16 %v1971_v7  ;;  %v1995_v4 = vld [vmem:[%s7513_s12 + $0xb08] sm:$0xff]  ;;  %v2962_v5 = vunpack.c.l.s8.bf16 %v1966_v56  ;;  %v1962_v15 = vld [vmem:[%s7513_s12 + $0xa00] sm:$0xff] }
 0x2c6   : > { %4463 = vmatprep.mubr.bf16.mxu1 %v7837_v59  ;;  %v4100_v38 = vpop.f32.mrf.mxu0  ;;  %v3026_v7 = vunpack.c.l.s8.bf16 %v1998_v58  ;;  %v2959_v9 = vunpack.c.h.s8.bf16 %v1963_v2  ;;  %v3023_v14 = vunpack.c.h.s8.bf16 %v1995_v4  ;;  %v1994_v19 = vld [vmem:[%s7513_s12 + $0xb00] sm:$0xff]  ;;  %v2955_v57 = vunpack.c.l.s8.bf16 %v1963_v2  ;;  %v2015_v2 = vld [vmem:[%s7513_s12 + $0xba8] sm:$0xff] }
 0x2c7   : > { %v4141_v39 = vpop.f32.mrf.mxu1  ;;  %v7849_v40 = vadd.f32 %v4139_v28, %v4099_v37  ;;  %4393 = vmatpush1.bf16.msra.mxu0 %v2978_v20  ;;  %v2958_v20 = vunpack.c.h.s8.bf16 %v1962_v15  ;;  %v3019_v28 = vunpack.c.l.s8.bf16 %v1995_v4  ;;  %v2954_v31 = vunpack.c.l.s8.bf16 %v1962_v15  ;;  %v2018_v56 = vld [vmem:[%s7513_s12 + $0xbc0] sm:$0xff] }
 0x2c8   : > { %4434 = vmatpush1.bf16.msra.mxu1 %v3042_v21  ;;  %v4101_v43 = vpop.f32.mrf.mxu0  ;;  %4394 = vmatprep.subr.bf16.mxu0 %v2975_v29  ;;  %v3022_v21 = vunpack.c.h.s8.bf16 %v1994_v19  ;;  %v1991_v29 = vld [vmem:[%s7513_s12 + $0xae8] sm:$0xff]  ;;  %v3018_v32 = vunpack.c.l.s8.bf16 %v1994_v19  ;;  %v1990_v39 = vld [vmem:[%s7513_s12 + $0xae0] sm:$0xff] }
 0x2c9   : > { %v4142_v45 = vpop.f32.mrf.mxu1  ;;  %4435 = vmatprep.subr.bf16.mxu1 %v3039_v30  ;;  %v2023_v30 = vld [vmem:[%s7513_s12 + $0xbe8] sm:$0xff]  ;;  %v3015_v37 = vunpack.c.h.s8.bf16 %v1991_v29  ;;  %v3010_v48 = vunpack.c.l.s8.bf16 %v1990_v39  ;;  %v2014_v15 = vld [vmem:[%s7513_s12 + $0xba0] sm:$0xff] }
 0x2ca   : > { %v3079_v38 = vunpack.c.h.s8.bf16 %v2023_v30  ;;  %v3011_v45 = vunpack.c.l.s8.bf16 %v1991_v29  ;;  %v2011_v29 = vld [vmem:[%s7513_s12 + $0xb88] sm:$0xff] }
 0x2cb   : > { %4395 = vmatpush1.bf16.msra.mxu0 %v2974_v41  ;;  %v2022_v41 = vld [vmem:[%s7513_s12 + $0xbe0] sm:$0xff] }
 0x2cc   : > { %4436 = vmatpush1.bf16.msra.mxu1 %v3038_v42  ;;  %4396 = vmatprep.subr.bf16.mxu0 %v2971_v47  ;;  %v3014_v42 = vunpack.c.h.s8.bf16 %v1990_v39  ;;  %v3078_v43 = vunpack.c.h.s8.bf16 %v2022_v41  ;;  %v3075_v47 = vunpack.c.l.s8.bf16 %v2023_v30  ;;  %v7874_v30 = vld [vmem:[%s7497_s29 + $0x18] sm:$0xff]  ;;  %v1978_v39 = vld [vmem:[%s7513_s12 + $0xa80] sm:$0xff] }
 0x2cd   : > { %4437 = vmatprep.subr.bf16.mxu1 %v3035_v46  ;;  %v1987_v46 = vld [vmem:[%s7513_s12 + $0xac8] sm:$0xff] }
 0x2cf   : > { %4397 = vmatpush1.bf16.msra.mxu0 %v2970_v49  ;;  %v3074_v49 = vunpack.c.l.s8.bf16 %v2022_v41  ;;  %v2010_v41 = vld [vmem:[%s7513_s12 + $0xb80] sm:$0xff] }
 0x2d0   : > { %4438 = vmatpush1.bf16.msra.mxu1 %v3034_v50  ;;  %4398 = vmatprep.subr.bf16.mxu0 %v2967_v51  ;;  %v3007_v50 = vunpack.c.h.s8.bf16 %v1987_v46  ;;  %v3071_v51 = vunpack.c.h.s8.bf16 %v2019_v54 }
 0x2d1   : > { %4439 = vmatprep.subr.bf16.mxu1 %v3031_v55  ;;  %v1986_v55 = vld [vmem:[%s7513_s12 + $0xac0] sm:$0xff] }
 0x2d2   : > { %v3006_v58 = vunpack.c.h.s8.bf16 %v1986_v55  ;;  %v3002_v4 = vunpack.c.l.s8.bf16 %v1986_v55  ;;  %v3050_v55 = vunpack.c.l.s8.bf16 %v2010_v41 }
 0x2d3   : > { %4399 = vmatpush1.bf16.msra.mxu0 %v2966_v60  ;;  %v3070_v60 = vunpack.c.h.s8.bf16 %v2018_v56 }
 0x2d4   : > { %4440 = vmatpush1.bf16.msra.mxu1 %v3030_v52  ;;  %4400 = vmatprep.subr.bf16.mxu0 %v2963_v61  ;;  %v3003_v52 = vunpack.c.l.s8.bf16 %v1987_v46  ;;  %v3067_v61 = vunpack.c.l.s8.bf16 %v2019_v54  ;;  %v3051_v46 = vunpack.c.l.s8.bf16 %v2011_v29  ;;  %v2039_v54 = vld [vmem:[%s7513_s12 + $0xc68] sm:$0xff] }
 0x2d5   : > { %4441 = vmatprep.subr.bf16.mxu1 %v3027_v62  ;;  %v1983_v62 = vld [vmem:[%s7513_s12 + $0xaa8] sm:$0xff] }
 0x2d7   : > { %4401 = vmatpush1.bf16.msra.mxu0 %v2962_v5  ;;  %v3066_v5 = vunpack.c.l.s8.bf16 %v2018_v56  ;;  %v3111_v56 = vunpack.c.h.s8.bf16 %v2039_v54 }
 0x2d8   : > { %4442 = vmatpush1.bf16.msra.mxu1 %v3026_v7  ;;  %4402 = vmatprep.subr.bf16.mxu0 %v2959_v9  ;;  %v2999_v7 = vunpack.c.h.s8.bf16 %v1983_v62  ;;  %v3063_v9 = vunpack.c.h.s8.bf16 %v2015_v2 }
 0x2d9   : > { %4443 = vmatprep.subr.bf16.mxu1 %v3023_v14  ;;  %v1982_v14 = vld [vmem:[%s7513_s12 + $0xaa0] sm:$0xff] }
 0x2da   : > { %v2998_v19 = vunpack.c.h.s8.bf16 %v1982_v14 }
 0x2db   : > { %4403 = vmatpush1.bf16.msra.mxu0 %v2958_v20  ;;  %v3062_v20 = vunpack.c.h.s8.bf16 %v2014_v15 }
 0x2dc   : > { %4444 = vmatpush1.bf16.msra.mxu1 %v3022_v21  ;;  %4404 = vmatprep.subr.bf16.mxu0 %v2955_v57  ;;  %v2995_v21 = vunpack.c.l.s8.bf16 %v1983_v62  ;;  %v3059_v57 = vunpack.c.l.s8.bf16 %v2015_v2 }
 0x2dd   : > { %4445 = vmatprep.subr.bf16.mxu1 %v3019_v28  ;;  %v1979_v28 = vld [vmem:[%s7513_s12 + $0xa88] sm:$0xff] }
 0x2df   : > { %4405 = vmatpush1.bf16.msra.mxu0 %v2954_v31  ;;  %v2994_v31 = vunpack.c.l.s8.bf16 %v1982_v14 }
 0x2e0   : > { %4446 = vmatpush1.bf16.msra.mxu1 %v3018_v32  ;;  %4406 = vmatprep.subr.bf16.mxu0 %v3015_v37  ;;  %v3058_v32 = vunpack.c.l.s8.bf16 %v2014_v15  ;;  %v2991_v37 = vunpack.c.h.s8.bf16 %v1979_v28 }
 0x2e1   : > { %4447 = vmatprep.subr.bf16.mxu1 %v3079_v38  ;;  %v3055_v38 = vunpack.c.h.s8.bf16 %v2011_v29 }
 0x2e3   : > { %4407 = vmatpush2.bf16.msra.mxu0 %v3014_v42  ;;  %v7880_v42 = vrot.slane %v7874_v30, %v7538_v17 }
 0x2e4   : > { %4448 = vmatpush2.bf16.msra.mxu1 %v3078_v43  ;;  %4408 = vmatprep.subr.bf16.mxu0 %v3011_v45  ;;  %v2990_v43 = vunpack.c.h.s8.bf16 %v1978_v39  ;;  %v3054_v45 = vunpack.c.h.s8.bf16 %v2010_v41 }
 0x2e5   : > { %4449 = vmatprep.subr.bf16.mxu1 %v3075_v47  ;;  %v2987_v47 = vunpack.c.l.s8.bf16 %v1979_v28 }
 0x2e7   : > { %4409 = vmatpush2.bf16.msra.mxu0 %v3010_v48  ;;  %v2071_v48 = vld [vmem:[%s7513_s12 + $0xd68] sm:$0xff] }
 0x2e8   : > { %4450 = vmatpush2.bf16.msra.mxu1 %v3074_v49  ;;  %4410 = vmatprep.subr.bf16.mxu0 %v3007_v50  ;;  %v3833_v49 = vcombine.high %v7880_v42, %v7880_v42  ;;  %v7888_v50 = vrot.slane %v7814_v44, %v7538_v17 }
 0x2e9   : > { %4451 = vmatprep.subr.bf16.mxu1 %v3071_v51  ;;  %v2986_v51 = vunpack.c.l.s8.bf16 %v1978_v39 }
 0x2ea   : > { %v7897_v62 = vcombine.high %v7888_v50, %v7888_v50 }
 0x2eb   : > { %4411 = vmatpush2.bf16.msra.mxu0 %v3006_v58  ;;  %v3175_v58 = vunpack.c.h.s8.bf16 %v2071_v48 }
 0x2ec   : > { %4452 = vmatpush2.bf16.msra.mxu1 %v3070_v60  ;;  %4412 = vmatprep.subr.bf16.mxu0 %v3003_v52  ;;  %v2038_v60 = vld [vmem:[%s7513_s12 + $0xc60] sm:$0xff] }
 0x2ed   : > { %4453 = vmatprep.subr.bf16.mxu1 %v3067_v61  ;;  %v2070_v52 = vld [vmem:[%s7513_s12 + $0xd60] sm:$0xff]  ;;  %v7893_v61 = vrot.slane %v3833_v49, %v7538_v17  ;;  %v3110_v44 = vunpack.c.h.s8.bf16 %v2038_v60 }
 0x2ee   : > { %v3174_v2 = vunpack.c.h.s8.bf16 %v2070_v52 }
 0x2ef   : > { %4413 = vmatpush2.bf16.msra.mxu0 %v3002_v4  ;;  %v3107_v4 = vunpack.c.l.s8.bf16 %v2039_v54  ;;  %v7903_v14 = vcombine.high %v7893_v61, %v7893_v61 }
 0x2f0   : > { %4454 = vmatpush2.bf16.msra.mxu1 %v3066_v5  ;;  %4414 = vmatprep.subr.bf16.mxu0 %v2999_v7  ;;  %v3171_v5 = vunpack.c.l.s8.bf16 %v2071_v48  ;;  %v2035_v7 = vld [vmem:[%s7513_s12 + $0xc48] sm:$0xff] }
 0x2f1   : > { %4455 = vmatprep.subr.bf16.mxu1 %v3063_v9  ;;  %v2067_v9 = vld [vmem:[%s7513_s12 + $0xd48] sm:$0xff] }
 0x2f2   : > { %v3163_v49 = vunpack.c.l.s8.bf16 %v2067_v9 }
 0x2f3   : > { %4415 = vmatpush2.bf16.msra.mxu0 %v2998_v19 }
 0x2f4   : > { %4456 = vmatpush2.bf16.msra.mxu1 %v3062_v20  ;;  %4416 = vmatprep.subr.bf16.mxu0 %v2995_v21  ;;  %v3106_v21 = vunpack.c.l.s8.bf16 %v2038_v60 }
 0x2f5   : > { %4457 = vmatprep.subr.bf16.mxu1 %v3059_v57  ;;  %v3170_v57 = vunpack.c.l.s8.bf16 %v2070_v52 }
 0x2f7   : > { %4417 = vmatpush2.bf16.msra.mxu0 %v2994_v31  ;;  %v3103_v31 = vunpack.c.h.s8.bf16 %v2035_v7 }
 0x2f8   : > { %4458 = vmatpush2.bf16.msra.mxu1 %v3058_v32  ;;  %4418 = vmatprep.subr.bf16.mxu0 %v2991_v37  ;;  %v3167_v32 = vunpack.c.h.s8.bf16 %v2067_v9  ;;  %v2034_v37 = vld [vmem:[%s7513_s12 + $0xc40] sm:$0xff] }
 0x2f9   : > { %4459 = vmatprep.subr.bf16.mxu1 %v3055_v38  ;;  %v2066_v38 = vld [vmem:[%s7513_s12 + $0xd40] sm:$0xff] }
 0x2fb   : > { %4419 = vmatpush2.bf16.msra.mxu0 %v2990_v43 }
 0x2fc   : > { %4460 = vmatpush2.bf16.msra.mxu1 %v3054_v45  ;;  %4420 = vmatprep.subr.bf16.mxu0 %v2987_v47  ;;  %v3102_v47 = vunpack.c.h.s8.bf16 %v2034_v37 }
 0x2fd   : > { %4461 = vmatprep.subr.bf16.mxu1 %v3051_v46  ;;  %v3166_v46 = vunpack.c.h.s8.bf16 %v2066_v38 }
 0x2ff   : > { %4421 = vmatpush2.bf16.msra.mxu0 %v2986_v51  ;;  %v2031_v51 = vld [vmem:[%s7513_s12 + $0xc28] sm:$0xff] }
 0x300   : > { %4462 = vmatpush2.bf16.msra.mxu1 %v3050_v55  ;;  %4472 = vmatprep.subr.bf16.mxu0 %v3111_v56  ;;  %v2063_v55 = vld [vmem:[%s7513_s12 + $0xd28] sm:$0xff]  ;;  %v3098_v56 = vunpack.c.l.s8.bf16 %v2034_v37  ;;  %v3095_v60 = vunpack.c.h.s8.bf16 %v2031_v51 }
 0x301   : > { %4513 = vmatprep.subr.bf16.mxu1 %v3175_v58  ;;  %v3162_v58 = vunpack.c.l.s8.bf16 %v2066_v38  ;;  %v3159_v52 = vunpack.c.h.s8.bf16 %v2063_v55  ;;  %v3155_v9 = vunpack.c.l.s8.bf16 %v2063_v55 }
 0x302   : > { %v4178_v15 = vpop.f32.mrf.mxu0  ;;  %4423 = vmatmul.mubr.bf16.vlgmr.msra.gmra.mxu0 %v7888_v50 }
 0x303   : > { %v4219_v19 = vpop.f32.mrf.mxu1  ;;  %4464 = vmatmul.mubr.bf16.vlgmr.msra.gmra.mxu1 %v7897_v62  ;;  %v4179_v20 = vadd.f32 %v4178_v15, %v7844_v36  ;;  %4473 = vmatpush1.bf16.msra.mxu0 %v3110_v44  ;;  %v2030_v44 = vld [vmem:[%s7513_s12 + $0xc20] sm:$0xff]  ;;  %v2027_v15 = vld [vmem:[%s7513_s12 + $0xc08] sm:$0xff] }
 0x304   : > { %4514 = vmatpush1.bf16.msra.mxu1 %v3174_v2  ;;  %v4180_v28 = vpop.f32.mrf.mxu0  ;;  %4474 = vmatprep.subr.bf16.mxu0 %v3107_v4  ;;  %v2062_v2 = vld [vmem:[%s7513_s12 + $0xd20] sm:$0xff]  ;;  %v3094_v4 = vunpack.c.h.s8.bf16 %v2030_v44  ;;  %v3083_v38 = vunpack.c.l.s8.bf16 %v2027_v15 }
 0x305   : > { %v4221_v29 = vpop.f32.mrf.mxu1  ;;  %4515 = vmatprep.subr.bf16.mxu1 %v3171_v5  ;;  %v7910_v39 = vadd.f32 %v4219_v19, %v4179_v20  ;;  %v4181_v41 = vadd.f32 %v4180_v28, %v7849_v40  ;;  %4504 = vmatprep.mubr.bf16.mxu0 %v7893_v61  ;;  %v3099_v40 = vunpack.c.l.s8.bf16 %v2035_v7  ;;  %v3158_v5 = vunpack.c.h.s8.bf16 %v2062_v2  ;;  %v2059_v19 = vld [vmem:[%s7513_s12 + $0xd08] sm:$0xff] }
 0x306   : > { %4545 = vmatprep.mubr.bf16.mxu1 %v7903_v14  ;;  %v4182_v36 = vpop.f32.mrf.mxu0  ;;  %v3091_v7 = vunpack.c.l.s8.bf16 %v2031_v51  ;;  %v3090_v20 = vunpack.c.l.s8.bf16 %v2030_v44  ;;  %v3151_v28 = vunpack.c.h.s8.bf16 %v2059_v19 }
 0x307   : > { %v4223_v43 = vpop.f32.mrf.mxu1  ;;  %v7915_v45 = vadd.f32 %v4221_v29, %v4181_v41  ;;  %4475 = vmatpush1.bf16.msra.mxu0 %v3106_v21  ;;  %v3154_v21 = vunpack.c.l.s8.bf16 %v2062_v2  ;;  %v2026_v29 = vld [vmem:[%s7513_s12 + $0xc00] sm:$0xff]  ;;  %v3147_v41 = vunpack.c.l.s8.bf16 %v2059_v19  ;;  %v2055_v36 = vld [vmem:[%s7513_s12 + $0xce8] sm:$0xff] }
 0x308   : > { %4516 = vmatpush1.bf16.msra.mxu1 %v3170_v57  ;;  %v4183_v54 = vpop.f32.mrf.mxu0  ;;  %4476 = vmatprep.subr.bf16.mxu0 %v3103_v31  ;;  %v3087_v57 = vunpack.c.h.s8.bf16 %v2027_v15  ;;  %v2058_v31 = vld [vmem:[%s7513_s12 + $0xd00] sm:$0xff]  ;;  %v2087_v43 = vld [vmem:[%s7513_s12 + $0xde8] sm:$0xff] }
 0x309   : > { %v4224_v48 = vpop.f32.mrf.mxu1  ;;  %4517 = vmatprep.subr.bf16.mxu1 %v3167_v32  ;;  %v3086_v32 = vunpack.c.h.s8.bf16 %v2026_v29  ;;  %v3150_v37 = vunpack.c.h.s8.bf16 %v2058_v31  ;;  %v3143_v54 = vunpack.c.h.s8.bf16 %v2055_v36 }
 0x30a   : > { %v3207_v48 = vunpack.c.h.s8.bf16 %v2087_v43 }
 0x30b   : > { %4477 = vmatpush1.bf16.msra.mxu0 %v3102_v47  ;;  %v3082_v47 = vunpack.c.l.s8.bf16 %v2026_v29 }
 0x30c   : > { %4518 = vmatpush1.bf16.msra.mxu1 %v3166_v46  ;;  %4478 = vmatprep.subr.bf16.mxu0 %v3099_v40  ;;  %v3146_v46 = vunpack.c.l.s8.bf16 %v2058_v31  ;;  %v2054_v40 = vld [vmem:[%s7513_s12 + $0xce0] sm:$0xff] }
 0x30d   : > { %4519 = vmatprep.subr.bf16.mxu1 %v3163_v49  ;;  %v2086_v49 = vld [vmem:[%s7513_s12 + $0xde0] sm:$0xff]  ;;  %v3142_v51 = vunpack.c.h.s8.bf16 %v2054_v40  ;;  %v3138_v44 = vunpack.c.l.s8.bf16 %v2054_v40  ;;  %v3818_v40 = vcombine.high %v7874_v30, %v7874_v30 }
 0x30e   : > { %v3206_v55 = vunpack.c.h.s8.bf16 %v2086_v49  ;;  %v3202_v2 = vunpack.c.l.s8.bf16 %v2086_v49 }
 0x30f   : > { %4479 = vmatpush1.bf16.msra.mxu0 %v3098_v56  ;;  %v3139_v56 = vunpack.c.l.s8.bf16 %v2055_v36 }
 0x310   : > { %4520 = vmatpush1.bf16.msra.mxu1 %v3162_v58  ;;  %4480 = vmatprep.subr.bf16.mxu0 %v3095_v60  ;;  %v3203_v58 = vunpack.c.l.s8.bf16 %v2087_v43  ;;  %v2051_v60 = vld [vmem:[%s7513_s12 + $0xcc8] sm:$0xff] }
 0x311   : > { %4521 = vmatprep.subr.bf16.mxu1 %v3159_v52  ;;  %v2083_v52 = vld [vmem:[%s7513_s12 + $0xdc8] sm:$0xff] }
 0x313   : > { %4481 = vmatpush1.bf16.msra.mxu0 %v3094_v4  ;;  %v3135_v4 = vunpack.c.h.s8.bf16 %v2051_v60 }
 0x314   : > { %4522 = vmatpush1.bf16.msra.mxu1 %v3158_v5  ;;  %4482 = vmatprep.subr.bf16.mxu0 %v3091_v7  ;;  %v3199_v5 = vunpack.c.h.s8.bf16 %v2083_v52  ;;  %v2050_v7 = vld [vmem:[%s7513_s12 + $0xcc0] sm:$0xff] }
 0x315   : > { %4523 = vmatprep.subr.bf16.mxu1 %v3155_v9  ;;  %v2082_v9 = vld [vmem:[%s7513_s12 + $0xdc0] sm:$0xff]  ;;  %v3134_v15 = vunpack.c.h.s8.bf16 %v2050_v7  ;;  %v3130_v29 = vunpack.c.l.s8.bf16 %v2050_v7  ;;  %v2135_v7 = vld [vmem:[%s7513_s12 + $0xf68] sm:$0xff] }
 0x316   : > { %v3198_v19 = vunpack.c.h.s8.bf16 %v2082_v9  ;;  %v3194_v31 = vunpack.c.l.s8.bf16 %v2082_v9 }
 0x317   : > { %4483 = vmatpush1.bf16.msra.mxu0 %v3090_v20  ;;  %v3131_v20 = vunpack.c.l.s8.bf16 %v2051_v60  ;;  %v2074_v60 = vld [vmem:[%s7513_s12 + $0xd80] sm:$0xff] }
 0x318   : > { %4524 = vmatpush1.bf16.msra.mxu1 %v3154_v21  ;;  %4484 = vmatprep.subr.bf16.mxu0 %v3087_v57  ;;  %v3195_v21 = vunpack.c.l.s8.bf16 %v2083_v52  ;;  %v2047_v57 = vld [vmem:[%s7513_s12 + $0xca8] sm:$0xff]  ;;  %v7944_v52 = vrot.slane %v3818_v40, %v7538_v17 }
 0x319   : > { %4525 = vmatprep.subr.bf16.mxu1 %v3151_v28  ;;  %v2079_v28 = vld [vmem:[%s7513_s12 + $0xda8] sm:$0xff] }
 0x31a   : > { %v3834_v9 = vcombine.high %v7944_v52, %v7944_v52 }
 0x31b   : > { %4485 = vmatpush1.bf16.msra.mxu0 %v3086_v32  ;;  %v3127_v32 = vunpack.c.h.s8.bf16 %v2047_v57 }
 0x31c   : > { %4526 = vmatpush1.bf16.msra.mxu1 %v3150_v37  ;;  %4486 = vmatprep.subr.bf16.mxu0 %v3083_v38  ;;  %v3191_v37 = vunpack.c.h.s8.bf16 %v2079_v28  ;;  %v2046_v38 = vld [vmem:[%s7513_s12 + $0xca0] sm:$0xff] }
 0x31d   : > { %4527 = vmatprep.subr.bf16.mxu1 %v3147_v41  ;;  %v2078_v41 = vld [vmem:[%s7513_s12 + $0xda0] sm:$0xff]  ;;  %v3126_v36 = vunpack.c.h.s8.bf16 %v2046_v38  ;;  %v3122_v49 = vunpack.c.l.s8.bf16 %v2046_v38 }
 0x31e   : > { %v3190_v43 = vunpack.c.h.s8.bf16 %v2078_v41 }
 0x31f   : > { %4487 = vmatpush1.bf16.msra.mxu0 %v3082_v47  ;;  %v3123_v47 = vunpack.c.l.s8.bf16 %v2047_v57  ;;  %v3303_v57 = vunpack.c.h.s8.bf16 %v2135_v7 }
 0x320   : > { %4528 = vmatpush1.bf16.msra.mxu1 %v3146_v46  ;;  %4488 = vmatprep.subr.bf16.mxu0 %v3143_v54  ;;  %v3187_v46 = vunpack.c.l.s8.bf16 %v2079_v28  ;;  %v2043_v54 = vld [vmem:[%s7513_s12 + $0xc88] sm:$0xff]  ;;  %v2102_v28 = vld [vmem:[%s7513_s12 + $0xe60] sm:$0xff] }
 0x321   : > { %4529 = vmatprep.subr.bf16.mxu1 %v3207_v48  ;;  %v2075_v48 = vld [vmem:[%s7513_s12 + $0xd88] sm:$0xff]  ;;  %v3115_v30 = vunpack.c.l.s8.bf16 %v2043_v54  ;;  %v3234_v40 = vunpack.c.l.s8.bf16 %v2102_v28 }
 0x323   : > { %4489 = vmatpush2.bf16.msra.mxu0 %v3142_v51  ;;  %v3186_v51 = vunpack.c.l.s8.bf16 %v2078_v41  ;;  %v3299_v41 = vunpack.c.l.s8.bf16 %v2135_v7 }
 0x324   : > { %4530 = vmatpush2.bf16.msra.mxu1 %v3206_v55  ;;  %4490 = vmatprep.subr.bf16.mxu0 %v3139_v56  ;;  %v3119_v55 = vunpack.c.h.s8.bf16 %v2043_v54  ;;  %v3183_v56 = vunpack.c.h.s8.bf16 %v2075_v48 }
 0x325   : > { %4531 = vmatprep.subr.bf16.mxu1 %v3203_v58  ;;  %v2042_v58 = vld [vmem:[%s7513_s12 + $0xc80] sm:$0xff] }
 0x327   : > { %4491 = vmatpush2.bf16.msra.mxu0 %v3138_v44  ;;  %v3118_v44 = vunpack.c.h.s8.bf16 %v2042_v58 }
 0x328   : > { %4532 = vmatpush2.bf16.msra.mxu1 %v3202_v2  ;;  %4492 = vmatprep.subr.bf16.mxu0 %v3135_v4  ;;  %v3182_v2 = vunpack.c.h.s8.bf16 %v2074_v60  ;;  %v3179_v4 = vunpack.c.l.s8.bf16 %v2075_v48 }
 0x329   : > { %4533 = vmatprep.subr.bf16.mxu1 %v3199_v5  ;;  %v2103_v5 = vld [vmem:[%s7513_s12 + $0xe68] sm:$0xff] }
 0x32a   : > { %v3235_v38 = vunpack.c.l.s8.bf16 %v2103_v5 }
 0x32b   : > { %4493 = vmatpush2.bf16.msra.mxu0 %v3134_v15  ;;  %v7952_v15 = vrot.slane %v7880_v42, %v7538_v17  ;;  %v3238_v42 = vunpack.c.h.s8.bf16 %v2102_v28  ;;  %v2127_v28 = vld [vmem:[%s7513_s12 + $0xf28] sm:$0xff] }
 0x32c   : > { %4534 = vmatpush2.bf16.msra.mxu1 %v3198_v19  ;;  %4494 = vmatprep.subr.bf16.mxu0 %v3131_v20  ;;  %v3114_v19 = vunpack.c.l.s8.bf16 %v2042_v58  ;;  %v3178_v20 = vunpack.c.l.s8.bf16 %v2074_v60  ;;  %v2098_v60 = vld [vmem:[%s7513_s12 + $0xe40] sm:$0xff] }
 0x32d   : > { %4535 = vmatprep.subr.bf16.mxu1 %v3195_v21  ;;  %v3239_v21 = vunpack.c.h.s8.bf16 %v2103_v5  ;;  %v3230_v7 = vunpack.c.h.s8.bf16 %v2098_v60 }
 0x32f   : > { %4495 = vmatpush2.bf16.msra.mxu0 %v3130_v29  ;;  %v2134_v29 = vld [vmem:[%s7513_s12 + $0xf60] sm:$0xff] }
 0x330   : > { %4536 = vmatpush2.bf16.msra.mxu1 %v3194_v31  ;;  %4496 = vmatprep.subr.bf16.mxu0 %v3127_v32  ;;  %v7957_v31 = vrot.slane %v3834_v9, %v7538_v17  ;;  %v7961_v32 = vcombine.high %v7952_v15, %v7952_v15 }
 0x331   : > { %4537 = vmatprep.subr.bf16.mxu1 %v3191_v37  ;;  %v3302_v37 = vunpack.c.h.s8.bf16 %v2134_v29 }
 0x333   : > { %4497 = vmatpush2.bf16.msra.mxu0 %v3126_v36  ;;  %v2099_v36 = vld [vmem:[%s7513_s12 + $0xe48] sm:$0xff] }
 0x334   : > { %4538 = vmatpush2.bf16.msra.mxu1 %v3190_v43  ;;  %4498 = vmatprep.subr.bf16.mxu0 %v3123_v47  ;;  %v2131_v43 = vld [vmem:[%s7513_s12 + $0xf48] sm:$0xff]  ;;  %v7967_v47 = vcombine.high %v7957_v31, %v7957_v31 }
 0x335   : > { %4539 = vmatprep.subr.bf16.mxu1 %v3187_v46  ;;  %v3295_v58 = vunpack.c.h.s8.bf16 %v2131_v43 }
 0x337   : > { %4499 = vmatpush2.bf16.msra.mxu0 %v3122_v49  ;;  %v3298_v49 = vunpack.c.l.s8.bf16 %v2134_v29  ;;  %v3226_v29 = vunpack.c.l.s8.bf16 %v2098_v60  ;;  %v2090_v60 = vld [vmem:[%s7513_s12 + $0xe00] sm:$0xff] }
 0x338   : > { %4540 = vmatpush2.bf16.msra.mxu1 %v3186_v51  ;;  %4500 = vmatprep.subr.bf16.mxu0 %v3119_v55 }
 0x339   : > { %4541 = vmatprep.subr.bf16.mxu1 %v3183_v56  ;;  %v3231_v56 = vunpack.c.h.s8.bf16 %v2099_v36 }
 0x33b   : > { %4501 = vmatpush2.bf16.msra.mxu0 %v3118_v44  ;;  %v2130_v44 = vld [vmem:[%s7513_s12 + $0xf40] sm:$0xff] }
 0x33c   : > { %4542 = vmatpush2.bf16.msra.mxu1 %v3182_v2  ;;  %4502 = vmatprep.subr.bf16.mxu0 %v3115_v30  ;;  %v3294_v9 = vunpack.c.h.s8.bf16 %v2130_v44 }
 0x33d   : > { %4543 = vmatprep.subr.bf16.mxu1 %v3179_v4 }
 0x33f   : > { %4503 = vmatpush2.bf16.msra.mxu0 %v3114_v19 }
 0x340   : > { %4544 = vmatpush2.bf16.msra.mxu1 %v3178_v20  ;;  %4554 = vmatprep.subr.bf16.mxu0 %v3239_v21  ;;  %v3291_v21 = vunpack.c.l.s8.bf16 %v2131_v43 }
 0x341   : > { %4595 = vmatprep.subr.bf16.mxu1 %v3303_v57  ;;  %v2095_v57 = vld [vmem:[%s7513_s12 + $0xe28] sm:$0xff] }
 0x342   : > { %v4260_v46 = vpop.f32.mrf.mxu0  ;;  %4505 = vmatmul.mubr.bf16.vlgmr.msra.gmra.mxu0 %v7952_v15  ;;  %v3219_v43 = vunpack.c.l.s8.bf16 %v2095_v57 }
 0x343   : > { %v4301_v54 = vpop.f32.mrf.mxu1  ;;  %4546 = vmatmul.mubr.bf16.vlgmr.msra.gmra.mxu1 %v7961_v32  ;;  %v4261_v48 = vadd.f32 %v4260_v46, %v7910_v39  ;;  %4555 = vmatpush1.bf16.msra.mxu0 %v3238_v42  ;;  %v3290_v42 = vunpack.c.l.s8.bf16 %v2130_v44  ;;  %v2126_v46 = vld [vmem:[%s7513_s12 + $0xf20] sm:$0xff] }
 0x344   : > { %4596 = vmatpush1.bf16.msra.mxu1 %v3302_v37  ;;  %v4262_v51 = vpop.f32.mrf.mxu0  ;;  %4556 = vmatprep.subr.bf16.mxu0 %v3235_v38  ;;  %v3223_v37 = vunpack.c.h.s8.bf16 %v2095_v57  ;;  %v3287_v38 = vunpack.c.h.s8.bf16 %v2127_v28  ;;  %v2122_v44 = vld [vmem:[%s7513_s12 + $0xf00] sm:$0xff] }
 0x345   : > { %v4303_v55 = vpop.f32.mrf.mxu1  ;;  %4597 = vmatprep.subr.bf16.mxu1 %v3299_v41  ;;  %v7974_v2 = vadd.f32 %v4301_v54, %v4261_v48  ;;  %v4263_v30 = vadd.f32 %v4262_v51, %v7915_v45  ;;  %4586 = vmatprep.mubr.bf16.mxu0 %v7957_v31  ;;  %v3227_v45 = vunpack.c.l.s8.bf16 %v2099_v36  ;;  %v2094_v41 = vld [vmem:[%s7513_s12 + $0xe20] sm:$0xff]  ;;  %v3286_v36 = vunpack.c.h.s8.bf16 %v2126_v46 }
 0x346   : > { %4627 = vmatprep.mubr.bf16.mxu1 %v7967_v47  ;;  %v4264_v39 = vpop.f32.mrf.mxu0  ;;  %v3222_v54 = vunpack.c.h.s8.bf16 %v2094_v41  ;;  %v3283_v48 = vunpack.c.l.s8.bf16 %v2127_v28  ;;  %v3218_v51 = vunpack.c.l.s8.bf16 %v2094_v41  ;;  %v2118_v28 = vld [vmem:[%s7513_s12 + $0xee0] sm:$0xff] }
 0x347   : > { %v4305_v4 = vpop.f32.mrf.mxu1  ;;  %v7979_v5 = vadd.f32 %v4303_v55, %v4263_v30  ;;  %4557 = vmatpush1.bf16.msra.mxu0 %v3234_v40  ;;  %v2091_v40 = vld [vmem:[%s7513_s12 + $0xe08] sm:$0xff]  ;;  %v3282_v55 = vunpack.c.l.s8.bf16 %v2126_v46  ;;  %v3214_v30 = vunpack.c.h.s8.bf16 %v2090_v60  ;;  %v3278_v39 = vunpack.c.h.s8.bf16 %v2122_v44 }
 0x348   : > { %4598 = vmatpush1.bf16.msra.mxu1 %v3298_v49  ;;  %v4265_v19 = vpop.f32.mrf.mxu0  ;;  %4558 = vmatprep.subr.bf16.mxu0 %v3231_v56  ;;  %v2123_v49 = vld [vmem:[%s7513_s12 + $0xf08] sm:$0xff]  ;;  %v3215_v56 = vunpack.c.h.s8.bf16 %v2091_v40  ;;  %v3211_v4 = vunpack.c.l.s8.bf16 %v2091_v40 }
 0x349   : > { %v4306_v20 = vpop.f32.mrf.mxu1  ;;  %4599 = vmatprep.subr.bf16.mxu1 %v3295_v58  ;;  %v3279_v58 = vunpack.c.h.s8.bf16 %v2123_v49  ;;  %v2151_v19 = vld [vmem:[%s7513_s12 + $0xfe8] sm:$0xff] }
 0x34a   : > { %v3210_v20 = vunpack.c.l.s8.bf16 %v2090_v60  ;;  %v3335_v57 = vunpack.c.h.s8.bf16 %v2151_v19  ;;  %v3331_v41 = vunpack.c.l.s8.bf16 %v2151_v19  ;;  %v2115_v46 = vld [vmem:[%s7513_s12 + $0xec8] sm:$0xff]  ;;  %v2110_v19 = vld [vmem:[%s7513_s12 + $0xea0] sm:$0xff] }
 0x34b   : > { %4559 = vmatpush1.bf16.msra.mxu0 %v3230_v7  ;;  %v3275_v7 = vunpack.c.l.s8.bf16 %v2123_v49  ;;  %v2114_v49 = vld [vmem:[%s7513_s12 + $0xec0] sm:$0xff] }
 0x34c   : > { %4600 = vmatpush1.bf16.msra.mxu1 %v3294_v9  ;;  %4560 = vmatprep.subr.bf16.mxu0 %v3227_v45  ;;  %v2119_v9 = vld [vmem:[%s7513_s12 + $0xee8] sm:$0xff]  ;;  %v3274_v45 = vunpack.c.l.s8.bf16 %v2122_v44 }
 0x34d   : > { %4601 = vmatprep.subr.bf16.mxu1 %v3291_v21  ;;  %v3271_v21 = vunpack.c.h.s8.bf16 %v2119_v9  ;;  %v2111_v44 = vld [vmem:[%s7513_s12 + $0xea8] sm:$0xff] }
 0x34f   : > { %4561 = vmatpush1.bf16.msra.mxu0 %v3226_v29  ;;  %v2150_v29 = vld [vmem:[%s7513_s12 + $0xfe0] sm:$0xff] }
 0x350   : > { %4602 = vmatpush1.bf16.msra.mxu1 %v3290_v42  ;;  %4562 = vmatprep.subr.bf16.mxu0 %v3223_v37  ;;  %v3270_v42 = vunpack.c.h.s8.bf16 %v2118_v28  ;;  %v3334_v37 = vunpack.c.h.s8.bf16 %v2150_v29 }
 0x351   : > { %4603 = vmatprep.subr.bf16.mxu1 %v3287_v38  ;;  %v3267_v38 = vunpack.c.l.s8.bf16 %v2119_v9 }
 0x353   : > { %4563 = vmatpush1.bf16.msra.mxu0 %v3222_v54  ;;  %v2147_v54 = vld [vmem:[%s7513_s12 + $0xfc8] sm:$0xff] }
 0x354   : > { %4604 = vmatpush1.bf16.msra.mxu1 %v3286_v36  ;;  %4564 = vmatprep.subr.bf16.mxu0 %v3219_v43  ;;  %v3266_v36 = vunpack.c.l.s8.bf16 %v2118_v28  ;;  %v3330_v43 = vunpack.c.l.s8.bf16 %v2150_v29  ;;  %v3327_v40 = vunpack.c.h.s8.bf16 %v2147_v54  ;;  %v3323_v60 = vunpack.c.l.s8.bf16 %v2147_v54  ;;  %v2107_v29 = vld [vmem:[%s7513_s12 + $0xe88] sm:$0xff] }
 0x355   : > { %4605 = vmatprep.subr.bf16.mxu1 %v3283_v48  ;;  %v3263_v48 = vunpack.c.h.s8.bf16 %v2115_v46 }
 0x357   : > { %4565 = vmatpush1.bf16.msra.mxu0 %v3218_v51  ;;  %v2146_v51 = vld [vmem:[%s7513_s12 + $0xfc0] sm:$0xff] }
 0x358   : > { %4606 = vmatpush1.bf16.msra.mxu1 %v3282_v55  ;;  %4566 = vmatprep.subr.bf16.mxu0 %v3215_v56  ;;  %v3262_v55 = vunpack.c.h.s8.bf16 %v2114_v49  ;;  %v3326_v56 = vunpack.c.h.s8.bf16 %v2146_v51 }
 0x359   : > { %4607 = vmatprep.subr.bf16.mxu1 %v3279_v58  ;;  %v3259_v58 = vunpack.c.l.s8.bf16 %v2115_v46  ;;  %v3247_v46 = vunpack.c.h.s8.bf16 %v2107_v29 }
 0x35b   : > { %4567 = vmatpush1.bf16.msra.mxu0 %v3214_v30  ;;  %v2143_v30 = vld [vmem:[%s7513_s12 + $0xfa8] sm:$0xff] }
 0x35c   : > { %4608 = vmatpush1.bf16.msra.mxu1 %v3278_v39  ;;  %4568 = vmatprep.subr.bf16.mxu0 %v3211_v4  ;;  %v3258_v39 = vunpack.c.l.s8.bf16 %v2114_v49  ;;  %v3322_v4 = vunpack.c.l.s8.bf16 %v2146_v51  ;;  %v3319_v9 = vunpack.c.h.s8.bf16 %v2143_v30  ;;  %v3315_v28 = vunpack.c.l.s8.bf16 %v2143_v30 }
 0x35d   : > { %4609 = vmatprep.subr.bf16.mxu1 %v3275_v7  ;;  %v3255_v7 = vunpack.c.h.s8.bf16 %v2111_v44  ;;  %v3243_v51 = vunpack.c.l.s8.bf16 %v2107_v29  ;;  %v2163_v29 = vld [vmem:[%s7513_s12 + $0x1048] sm:$0xff] }
 0x35f   : > { %4569 = vmatpush1.bf16.msra.mxu0 %v3210_v20  ;;  %v2142_v20 = vld [vmem:[%s7513_s12 + $0xfa0] sm:$0xff] }
 0x360   : > { %4610 = vmatpush1.bf16.msra.mxu1 %v3274_v45  ;;  %4570 = vmatprep.subr.bf16.mxu0 %v3271_v21  ;;  %v3254_v45 = vunpack.c.h.s8.bf16 %v2110_v19  ;;  %v3318_v21 = vunpack.c.h.s8.bf16 %v2142_v20 }
 0x361   : > { %4611 = vmatprep.subr.bf16.mxu1 %v3335_v57  ;;  %v3251_v57 = vunpack.c.l.s8.bf16 %v2111_v44  ;;  %v8018_v44 = vrot.slane %v7944_v52, %v7538_v17 }
 0x363   : > { %4571 = vmatpush2.bf16.msra.mxu0 %v3270_v42  ;;  %v2139_v42 = vld [vmem:[%s7513_s12 + $0xf88] sm:$0xff] }
 0x364   : > { %4612 = vmatpush2.bf16.msra.mxu1 %v3334_v37  ;;  %4572 = vmatprep.subr.bf16.mxu0 %v3267_v38  ;;  %v8004_v37 = vld [vmem:[%s7497_s29 + $0x20] sm:$0xff]  ;;  %v3250_v38 = vunpack.c.l.s8.bf16 %v2110_v19  ;;  %v3311_v54 = vunpack.c.h.s8.bf16 %v2139_v42  ;;  %v2198_v19 = vld [vmem:[%s7513_s12 + $0x1160] sm:$0xff] }
 0x365   : > { %4613 = vmatprep.subr.bf16.mxu1 %v3331_v41  ;;  %v3314_v41 = vunpack.c.l.s8.bf16 %v2142_v20 }
 0x367   : > { %4573 = vmatpush2.bf16.msra.mxu0 %v3266_v36  ;;  %v2106_v36 = vld [vmem:[%s7513_s12 + $0xe80] sm:$0xff] }
 0x368   : > { %4614 = vmatpush2.bf16.msra.mxu1 %v3330_v43  ;;  %4574 = vmatprep.subr.bf16.mxu0 %v3263_v48  ;;  %v2138_v43 = vld [vmem:[%s7513_s12 + $0xf80] sm:$0xff]  ;;  %v8010_v48 = vrot.slane %v8004_v37, %v7538_v17  ;;  %v3242_v30 = vunpack.c.l.s8.bf16 %v2106_v36 }
 0x369   : > { %4615 = vmatprep.subr.bf16.mxu1 %v3327_v40  ;;  %v3246_v40 = vunpack.c.h.s8.bf16 %v2106_v36  ;;  %v3310_v49 = vunpack.c.h.s8.bf16 %v2138_v43 }
 0x36b   : > { %4575 = vmatpush2.bf16.msra.mxu0 %v3262_v55  ;;  %v3307_v55 = vunpack.c.l.s8.bf16 %v2139_v42  ;;  %v2195_v42 = vld [vmem:[%s7513_s12 + $0x1148] sm:$0xff] }
 0x36c   : > { %4616 = vmatpush2.bf16.msra.mxu1 %v3326_v56  ;;  %4576 = vmatprep.subr.bf16.mxu0 %v3259_v58  ;;  %v2167_v56 = vld [vmem:[%s7513_s12 + $0x1068] sm:$0xff] }
 0x36d   : > { %4617 = vmatprep.subr.bf16.mxu1 %v3323_v60  ;;  %v2199_v58 = vld [vmem:[%s7513_s12 + $0x1168] sm:$0xff]  ;;  %v3882_v60 = vcombine.high %v8010_v48, %v8010_v48 }
 0x36f   : > { %4577 = vmatpush2.bf16.msra.mxu0 %v3258_v39  ;;  %v3306_v39 = vunpack.c.l.s8.bf16 %v2138_v43  ;;  %v8023_v20 = vrot.slane %v3882_v60, %v7538_v17  ;;  %v3426_v43 = vunpack.c.l.s8.bf16 %v2198_v19 }
 0x370   : > { %4618 = vmatpush2.bf16.msra.mxu1 %v3322_v4  ;;  %4578 = vmatprep.subr.bf16.mxu0 %v3255_v7  ;;  %v3367_v4 = vunpack.c.h.s8.bf16 %v2167_v56  ;;  %v3431_v7 = vunpack.c.h.s8.bf16 %v2199_v58 }
 0x371   : > { %4619 = vmatprep.subr.bf16.mxu1 %v3319_v9  ;;  %v2166_v9 = vld [vmem:[%s7513_s12 + $0x1060] sm:$0xff] }
 0x372   : > { %v3366_v52 = vunpack.c.h.s8.bf16 %v2166_v9  ;;  %v3362_v36 = vunpack.c.l.s8.bf16 %v2166_v9 }
 0x373   : > { %4579 = vmatpush2.bf16.msra.mxu0 %v3254_v45  ;;  %v8027_v45 = vcombine.high %v8018_v44, %v8018_v44 }
 0x374   : > { %4620 = vmatpush2.bf16.msra.mxu1 %v3318_v21  ;;  %4580 = vmatprep.subr.bf16.mxu0 %v3251_v57  ;;  %v3430_v21 = vunpack.c.h.s8.bf16 %v2198_v19  ;;  %v3363_v57 = vunpack.c.l.s8.bf16 %v2167_v56  ;;  %v2162_v56 = vld [vmem:[%s7513_s12 + $0x1040] sm:$0xff] }
 0x375   : > { %4621 = vmatprep.subr.bf16.mxu1 %v3315_v28  ;;  %v3427_v28 = vunpack.c.l.s8.bf16 %v2199_v58  ;;  %v2194_v58 = vld [vmem:[%s7513_s12 + $0x1140] sm:$0xff] }
 0x376   : > { %v3422_v9 = vunpack.c.h.s8.bf16 %v2194_v58 }
 0x377   : > { %4581 = vmatpush2.bf16.msra.mxu0 %v3250_v38  ;;  %v8033_v38 = vcombine.high %v8023_v20, %v8023_v20 }
 0x378   : > { %4622 = vmatpush2.bf16.msra.mxu1 %v3314_v41  ;;  %4582 = vmatprep.subr.bf16.mxu0 %v3247_v46 }
 0x379   : > { %4623 = vmatprep.subr.bf16.mxu1 %v3311_v54 }
 0x37b   : > { %4583 = vmatpush2.bf16.msra.mxu0 %v3246_v40 }
 0x37c   : > { %4624 = vmatpush2.bf16.msra.mxu1 %v3310_v49  ;;  %4584 = vmatprep.subr.bf16.mxu0 %v3243_v51  ;;  %v3359_v51 = vunpack.c.h.s8.bf16 %v2163_v29 }
 0x37d   : > { %4625 = vmatprep.subr.bf16.mxu1 %v3307_v55  ;;  %v3423_v55 = vunpack.c.h.s8.bf16 %v2195_v42 }
 0x37f   : > { %4585 = vmatpush2.bf16.msra.mxu0 %v3242_v30 }
 0x380   : > { %4626 = vmatpush2.bf16.msra.mxu1 %v3306_v39  ;;  %4636 = vmatprep.subr.bf16.mxu0 %v3367_v4 }
 0x381   : > { %4677 = vmatprep.subr.bf16.mxu1 %v3431_v7  ;;  %v3358_v7 = vunpack.c.h.s8.bf16 %v2162_v56 }
 0x382   : > { %v4342_v41 = vpop.f32.mrf.mxu0  ;;  %4587 = vmatmul.mubr.bf16.vlgmr.msra.gmra.mxu0 %v8018_v44 }
 0x383   : > { %v4383_v46 = vpop.f32.mrf.mxu1  ;;  %4628 = vmatmul.mubr.bf16.vlgmr.msra.gmra.mxu1 %v8027_v45  ;;  %v4343_v54 = vadd.f32 %v4342_v41, %v7974_v2  ;;  %4637 = vmatpush1.bf16.msra.mxu0 %v3366_v52  ;;  %v3354_v41 = vunpack.c.l.s8.bf16 %v2162_v56  ;;  %v2187_v56 = vld [vmem:[%s7513_s12 + $0x1108] sm:$0xff] }
 0x384   : > { %4678 = vmatpush1.bf16.msra.mxu1 %v3430_v21  ;;  %v4344_v40 = vpop.f32.mrf.mxu0  ;;  %4638 = vmatprep.subr.bf16.mxu0 %v3363_v57  ;;  %v3419_v21 = vunpack.c.l.s8.bf16 %v2195_v42  ;;  %v2159_v57 = vld [vmem:[%s7513_s12 + $0x1028] sm:$0xff] }
 0x385   : > { %v4385_v49 = vpop.f32.mrf.mxu1  ;;  %4679 = vmatprep.subr.bf16.mxu1 %v3427_v28  ;;  %v8040_v60 = vadd.f32 %v4383_v46, %v4343_v54  ;;  %v4345_v30 = vadd.f32 %v4344_v40, %v7979_v5  ;;  %4668 = vmatprep.mubr.bf16.mxu0 %v8023_v20  ;;  %v3355_v5 = vunpack.c.l.s8.bf16 %v2163_v29  ;;  %v2191_v28 = vld [vmem:[%s7513_s12 + $0x1128] sm:$0xff]  ;;  %v3418_v46 = vunpack.c.l.s8.bf16 %v2194_v58  ;;  %v2190_v40 = vld [vmem:[%s7513_s12 + $0x1120] sm:$0xff] }
 0x386   : > { %4709 = vmatprep.mubr.bf16.mxu1 %v8033_v38  ;;  %v4346_v2 = vpop.f32.mrf.mxu0  ;;  %v3351_v54 = vunpack.c.h.s8.bf16 %v2159_v57  ;;  %v3414_v29 = vunpack.c.h.s8.bf16 %v2190_v40  ;;  %v3347_v42 = vunpack.c.l.s8.bf16 %v2159_v57  ;;  %v2183_v57 = vld [vmem:[%s7513_s12 + $0x10e8] sm:$0xff] }
 0x387   : > { %v4387_v39 = vpop.f32.mrf.mxu1  ;;  %v8045_v4 = vadd.f32 %v4385_v49, %v4345_v30  ;;  %4639 = vmatpush1.bf16.msra.mxu0 %v3362_v36  ;;  %v3415_v36 = vunpack.c.h.s8.bf16 %v2191_v28  ;;  %v3410_v30 = vunpack.c.l.s8.bf16 %v2190_v40  ;;  %v2214_v40 = vld [vmem:[%s7513_s12 + $0x11e0] sm:$0xff] }
 0x388   : > { %4680 = vmatpush1.bf16.msra.mxu1 %v3426_v43  ;;  %v4347_v19 = vpop.f32.mrf.mxu0  ;;  %4640 = vmatprep.subr.bf16.mxu0 %v3359_v51  ;;  %v2158_v43 = vld [vmem:[%s7513_s12 + $0x1020] sm:$0xff]  ;;  %v3411_v51 = vunpack.c.l.s8.bf16 %v2191_v28  ;;  %v3407_v39 = vunpack.c.h.s8.bf16 %v2187_v56  ;;  %v2215_v28 = vld [vmem:[%s7513_s12 + $0x11e8] sm:$0xff] }
 0x389   : > { %v4388_v52 = vpop.f32.mrf.mxu1  ;;  %4681 = vmatprep.subr.bf16.mxu1 %v3423_v55  ;;  %v3350_v49 = vunpack.c.h.s8.bf16 %v2158_v43  ;;  %v2155_v55 = vld [vmem:[%s7513_s12 + $0x1008] sm:$0xff]  ;;  %v3346_v58 = vunpack.c.l.s8.bf16 %v2158_v43  ;;  %v2182_v43 = vld [vmem:[%s7513_s12 + $0x10e0] sm:$0xff] }
 0x38a   : > { %v3343_v2 = vunpack.c.h.s8.bf16 %v2155_v55 }
 0x38b   : > { %4641 = vmatpush1.bf16.msra.mxu0 %v3358_v7  ;;  %v2154_v7 = vld [vmem:[%s7513_s12 + $0x1000] sm:$0xff] }
 0x38c   : > { %4682 = vmatpush1.bf16.msra.mxu1 %v3422_v9  ;;  %4642 = vmatprep.subr.bf16.mxu0 %v3355_v5  ;;  %v2186_v9 = vld [vmem:[%s7513_s12 + $0x1100] sm:$0xff]  ;;  %v3342_v19 = vunpack.c.h.s8.bf16 %v2154_v7  ;;  %v3339_v5 = vunpack.c.l.s8.bf16 %v2155_v55  ;;  %v2179_v55 = vld [vmem:[%s7513_s12 + $0x10c8] sm:$0xff] }
 0x38d   : > { %4683 = vmatprep.subr.bf16.mxu1 %v3419_v21  ;;  %v3406_v52 = vunpack.c.h.s8.bf16 %v2186_v9  ;;  %v3403_v21 = vunpack.c.l.s8.bf16 %v2187_v56  ;;  %v2211_v56 = vld [vmem:[%s7513_s12 + $0x11c8] sm:$0xff] }
 0x38f   : > { %4643 = vmatpush1.bf16.msra.mxu0 %v3354_v41  ;;  %v3338_v41 = vunpack.c.l.s8.bf16 %v2154_v7  ;;  %v2178_v7 = vld [vmem:[%s7513_s12 + $0x10c0] sm:$0xff] }
 0x390   : > { %4684 = vmatpush1.bf16.msra.mxu1 %v3418_v46  ;;  %4644 = vmatprep.subr.bf16.mxu0 %v3351_v54  ;;  %v3402_v46 = vunpack.c.l.s8.bf16 %v2186_v9  ;;  %v3399_v54 = vunpack.c.h.s8.bf16 %v2183_v57  ;;  %v2210_v9 = vld [vmem:[%s7513_s12 + $0x11c0] sm:$0xff] }
 0x391   : > { %4685 = vmatprep.subr.bf16.mxu1 %v3415_v36  ;;  %v3463_v36 = vunpack.c.h.s8.bf16 %v2215_v28 }
 0x393   : > { %4645 = vmatpush1.bf16.msra.mxu0 %v3350_v49  ;;  %v3398_v49 = vunpack.c.h.s8.bf16 %v2182_v43 }
 0x394   : > { %4686 = vmatpush1.bf16.msra.mxu1 %v3414_v29  ;;  %4646 = vmatprep.subr.bf16.mxu0 %v3347_v42  ;;  %v3462_v29 = vunpack.c.h.s8.bf16 %v2214_v40  ;;  %v3395_v42 = vunpack.c.l.s8.bf16 %v2183_v57  ;;  %v2175_v57 = vld [vmem:[%s7513_s12 + $0x10a8] sm:$0xff] }
 0x395   : > { %4687 = vmatprep.subr.bf16.mxu1 %v3411_v51  ;;  %v3459_v51 = vunpack.c.l.s8.bf16 %v2215_v28  ;;  %v2207_v28 = vld [vmem:[%s7513_s12 + $0x11a8] sm:$0xff] }
 0x397   : > { %4647 = vmatpush1.bf16.msra.mxu0 %v3346_v58  ;;  %v3394_v58 = vunpack.c.l.s8.bf16 %v2182_v43  ;;  %v2174_v43 = vld [vmem:[%s7513_s12 + $0x10a0] sm:$0xff] }
 0x398   : > { %4688 = vmatpush1.bf16.msra.mxu1 %v3410_v30  ;;  %4648 = vmatprep.subr.bf16.mxu0 %v3343_v2  ;;  %v3458_v30 = vunpack.c.l.s8.bf16 %v2214_v40  ;;  %v3391_v2 = vunpack.c.h.s8.bf16 %v2179_v55  ;;  %v2206_v40 = vld [vmem:[%s7513_s12 + $0x11a0] sm:$0xff] }
 0x399   : > { %4689 = vmatprep.subr.bf16.mxu1 %v3407_v39  ;;  %v3455_v39 = vunpack.c.h.s8.bf16 %v2211_v56 }
 0x39b   : > { %4649 = vmatpush1.bf16.msra.mxu0 %v3342_v19  ;;  %v3390_v19 = vunpack.c.h.s8.bf16 %v2178_v7 }
 0x39c   : > { %4690 = vmatpush1.bf16.msra.mxu1 %v3406_v52  ;;  %4650 = vmatprep.subr.bf16.mxu0 %v3339_v5  ;;  %v3454_v52 = vunpack.c.h.s8.bf16 %v2210_v9  ;;  %v3387_v5 = vunpack.c.l.s8.bf16 %v2179_v55  ;;  %v2171_v55 = vld [vmem:[%s7513_s12 + $0x1088] sm:$0xff] }
 0x39d   : > { %4691 = vmatprep.subr.bf16.mxu1 %v3403_v21  ;;  %v3451_v21 = vunpack.c.l.s8.bf16 %v2211_v56  ;;  %v2203_v56 = vld [vmem:[%s7513_s12 + $0x1188] sm:$0xff] }
 0x39f   : > { %4651 = vmatpush1.bf16.msra.mxu0 %v3338_v41  ;;  %v3386_v41 = vunpack.c.l.s8.bf16 %v2178_v7  ;;  %v3439_v7 = vunpack.c.h.s8.bf16 %v2203_v56 }
 0x3a0   : > { %4692 = vmatpush1.bf16.msra.mxu1 %v3402_v46  ;;  %4652 = vmatprep.subr.bf16.mxu0 %v3399_v54  ;;  %v3450_v46 = vunpack.c.l.s8.bf16 %v2210_v9  ;;  %v3383_v54 = vunpack.c.h.s8.bf16 %v2175_v57  ;;  %v2170_v9 = vld [vmem:[%s7513_s12 + $0x1080] sm:$0xff] }
 0x3a1   : > { %4693 = vmatprep.subr.bf16.mxu1 %v3463_v36  ;;  %v3447_v36 = vunpack.c.h.s8.bf16 %v2207_v28 }
 0x3a3   : > { %4653 = vmatpush2.bf16.msra.mxu0 %v3398_v49  ;;  %v3382_v49 = vunpack.c.h.s8.bf16 %v2174_v43 }
 0x3a4   : > { %4694 = vmatpush2.bf16.msra.mxu1 %v3462_v29  ;;  %4654 = vmatprep.subr.bf16.mxu0 %v3395_v42  ;;  %v3446_v29 = vunpack.c.h.s8.bf16 %v2206_v40  ;;  %v3379_v42 = vunpack.c.l.s8.bf16 %v2175_v57  ;;  %v3435_v57 = vunpack.c.l.s8.bf16 %v2203_v56 }
 0x3a5   : > { %4695 = vmatprep.subr.bf16.mxu1 %v3459_v51  ;;  %v3443_v51 = vunpack.c.l.s8.bf16 %v2207_v28  ;;  %v2231_v28 = vld [vmem:[%s7513_s12 + $0x1268] sm:$0xff] }
 0x3a7   : > { %4655 = vmatpush2.bf16.msra.mxu0 %v3394_v58  ;;  %v3867_v58 = vcombine.high %v8004_v37, %v8004_v37  ;;  %v3371_v37 = vunpack.c.l.s8.bf16 %v2171_v55 }
 0x3a8   : > { %4696 = vmatpush2.bf16.msra.mxu1 %v3458_v30  ;;  %4656 = vmatprep.subr.bf16.mxu0 %v3391_v2  ;;  %v3378_v30 = vunpack.c.l.s8.bf16 %v2174_v43  ;;  %v3442_v2 = vunpack.c.l.s8.bf16 %v2206_v40  ;;  %v3495_v40 = vunpack.c.h.s8.bf16 %v2231_v28 }
 0x3a9   : > { %4697 = vmatprep.subr.bf16.mxu1 %v3455_v39  ;;  %v3375_v39 = vunpack.c.h.s8.bf16 %v2171_v55 }
 0x3ab   : > { %4657 = vmatpush2.bf16.msra.mxu0 %v3390_v19  ;;  %v2202_v19 = vld [vmem:[%s7513_s12 + $0x1180] sm:$0xff] }
 0x3ac   : > { %4698 = vmatpush2.bf16.msra.mxu1 %v3454_v52  ;;  %4658 = vmatprep.subr.bf16.mxu0 %v3387_v5  ;;  %v8074_v52 = vrot.slane %v3867_v58, %v7538_v17  ;;  %v3374_v5 = vunpack.c.h.s8.bf16 %v2170_v9  ;;  %v3434_v43 = vunpack.c.l.s8.bf16 %v2202_v19  ;;  %v3491_v58 = vunpack.c.l.s8.bf16 %v2231_v28 }
 0x3ad   : > { %4699 = vmatprep.subr.bf16.mxu1 %v3451_v21  ;;  %v3438_v21 = vunpack.c.h.s8.bf16 %v2202_v19 }
 0x3af   : > { %4659 = vmatpush2.bf16.msra.mxu0 %v3386_v41  ;;  %v2263_v41 = vld [vmem:[%s7513_s12 + $0x1368] sm:$0xff] }
 0x3b0   : > { %4700 = vmatpush2.bf16.msra.mxu1 %v3450_v46  ;;  %4660 = vmatprep.subr.bf16.mxu0 %v3383_v54  ;;  %v3883_v46 = vcombine.high %v8074_v52, %v8074_v52  ;;  %v8082_v54 = vrot.slane %v8010_v48, %v7538_v17 }
 0x3b1   : > { %4701 = vmatprep.subr.bf16.mxu1 %v3447_v36  ;;  %v3370_v36 = vunpack.c.l.s8.bf16 %v2170_v9 }
 0x3b2   : > { %v8091_v55 = vcombine.high %v8082_v54, %v8082_v54 }
 0x3b3   : > { %4661 = vmatpush2.bf16.msra.mxu0 %v3382_v49  ;;  %v3559_v49 = vunpack.c.h.s8.bf16 %v2263_v41 }
 0x3b4   : > { %4702 = vmatpush2.bf16.msra.mxu1 %v3446_v29  ;;  %4662 = vmatprep.subr.bf16.mxu0 %v3379_v42  ;;  %v2230_v29 = vld [vmem:[%s7513_s12 + $0x1260] sm:$0xff] }
 0x3b5   : > { %4703 = vmatprep.subr.bf16.mxu1 %v3443_v51  ;;  %v2262_v42 = vld [vmem:[%s7513_s12 + $0x1360] sm:$0xff]  ;;  %v8087_v51 = vrot.slane %v3883_v46, %v7538_v17  ;;  %v3494_v48 = vunpack.c.h.s8.bf16 %v2230_v29 }
 0x3b6   : > { %v3558_v56 = vunpack.c.h.s8.bf16 %v2262_v42 }
 0x3b7   : > { %4663 = vmatpush2.bf16.msra.mxu0 %v3378_v30  ;;  %v3555_v30 = vunpack.c.l.s8.bf16 %v2263_v41 }
 0x3b8   : > { %4704 = vmatpush2.bf16.msra.mxu1 %v3442_v2  ;;  %4664 = vmatprep.subr.bf16.mxu0 %v3375_v39  ;;  %v2227_v2 = vld [vmem:[%s7513_s12 + $0x1248] sm:$0xff] }
 0x3b9   : > { %4705 = vmatprep.subr.bf16.mxu1 %v3439_v7  ;;  %v2259_v39 = vld [vmem:[%s7513_s12 + $0x1348] sm:$0xff]  ;;  %v8097_v7 = vcombine.high %v8087_v51, %v8087_v51  ;;  %v3487_v41 = vunpack.c.h.s8.bf16 %v2227_v2 }
 0x3ba   : > { %v3551_v46 = vunpack.c.h.s8.bf16 %v2259_v39 }
 0x3bb   : > { %4665 = vmatpush2.bf16.msra.mxu0 %v3374_v5  ;;  %8678 = vst [vmem:[#allocation5_spill] sm:$0xff] %v8097_v7 }
 0x3bc   : > { %4706 = vmatpush2.bf16.msra.mxu1 %v3438_v21  ;;  %4666 = vmatprep.subr.bf16.mxu0 %v3371_v37  ;;  %v3490_v21 = vunpack.c.l.s8.bf16 %v2230_v29  ;;  %v3554_v37 = vunpack.c.l.s8.bf16 %v2262_v42 }
 0x3bd   : > { %4707 = vmatprep.subr.bf16.mxu1 %v3435_v57 }
 0x3bf   : > { %4667 = vmatpush2.bf16.msra.mxu0 %v3370_v36  ;;  %v2226_v36 = vld [vmem:[%s7513_s12 + $0x1240] sm:$0xff] }
 0x3c0   : > { %4708 = vmatpush2.bf16.msra.mxu1 %v3434_v43  ;;  %4718 = vmatprep.subr.bf16.mxu0 %v3495_v40  ;;  %v2258_v43 = vld [vmem:[%s7513_s12 + $0x1340] sm:$0xff] }
 0x3c1   : > { %4759 = vmatprep.subr.bf16.mxu1 %v3559_v49 }
 0x3c2   : > { %v4424_v9 = vpop.f32.mrf.mxu0  ;;  %4669 = vmatmul.mubr.bf16.vlgmr.msra.gmra.mxu0 %v8082_v54 }
 0x3c3   : > { %v4465_v19 = vpop.f32.mrf.mxu1  ;;  %4710 = vmatmul.mubr.bf16.vlgmr.msra.gmra.mxu1 %v8091_v55  ;;  %v4425_v5 = vadd.f32 %v4424_v9, %v8040_v60  ;;  %4719 = vmatpush1.bf16.msra.mxu0 %v3494_v48  ;;  %v3486_v48 = vunpack.c.h.s8.bf16 %v2226_v36  ;;  %v3547_v9 = vunpack.c.l.s8.bf16 %v2259_v39 }
 0x3c4   : > { %4760 = vmatpush1.bf16.msra.mxu1 %v3558_v56  ;;  %v4426_v57 = vpop.f32.mrf.mxu0  ;;  %4720 = vmatprep.subr.bf16.mxu0 %v3491_v58  ;;  %v3550_v56 = vunpack.c.h.s8.bf16 %v2258_v43 }
 0x3c5   : > { %v4467_v28 = vpop.f32.mrf.mxu1  ;;  %4761 = vmatprep.subr.bf16.mxu1 %v3555_v30  ;;  %v8104_v40 = vadd.f32 %v4465_v19, %v4425_v5  ;;  %v4427_v49 = vadd.f32 %v4426_v57, %v8045_v4  ;;  %4750 = vmatprep.mubr.bf16.mxu0 %v8087_v51  ;;  %v3483_v4 = vunpack.c.l.s8.bf16 %v2227_v2  ;;  %v2223_v19 = vld [vmem:[%s7513_s12 + $0x1228] sm:$0xff]  ;;  %v3482_v57 = vunpack.c.l.s8.bf16 %v2226_v36 }
 0x3c6   : > { %4791 = vmatprep.mubr.bf16.mxu1 %v8097_v7  ;;  %v4428_v60 = vpop.f32.mrf.mxu0  ;;  %v2255_v5 = vld [vmem:[%s7513_s12 + $0x1328] sm:$0xff]  ;;  %v3475_v39 = vunpack.c.l.s8.bf16 %v2223_v19 }
 0x3c7   : > { %v4469_v29 = vpop.f32.mrf.mxu1  ;;  %v8109_v42 = vadd.f32 %v4467_v28, %v4427_v49  ;;  %4721 = vmatpush1.bf16.msra.mxu0 %v3490_v21  ;;  %v3546_v28 = vunpack.c.l.s8.bf16 %v2258_v43  ;;  %v3479_v21 = vunpack.c.h.s8.bf16 %v2223_v19  ;;  %v2222_v49 = vld [vmem:[%s7513_s12 + $0x1220] sm:$0xff]  ;;  %v2219_v36 = vld [vmem:[%s7513_s12 + $0x1208] sm:$0xff] }
 0x3c8   : > { %4762 = vmatpush1.bf16.msra.mxu1 %v3554_v37  ;;  %v4429_v58 = vpop.f32.mrf.mxu0  ;;  %4722 = vmatprep.subr.bf16.mxu0 %v3487_v41  ;;  %v3543_v37 = vunpack.c.h.s8.bf16 %v2255_v5  ;;  %v2254_v60 = vld [vmem:[%s7513_s12 + $0x1320] sm:$0xff]  ;;  %v3478_v41 = vunpack.c.h.s8.bf16 %v2222_v49  ;;  %v2251_v29 = vld [vmem:[%s7513_s12 + $0x1308] sm:$0xff]  ;;  %v3474_v43 = vunpack.c.l.s8.bf16 %v2222_v49 }
 0x3c9   : > { %v4470_v30 = vpop.f32.mrf.mxu1  ;;  %4763 = vmatprep.subr.bf16.mxu1 %v3551_v46  ;;  %v3542_v2 = vunpack.c.h.s8.bf16 %v2254_v60  ;;  %v3539_v46 = vunpack.c.l.s8.bf16 %v2255_v5  ;;  %v3535_v58 = vunpack.c.h.s8.bf16 %v2251_v29  ;;  %v3467_v5 = vunpack.c.l.s8.bf16 %v2219_v36 }
 0x3ca   : > { %v2218_v30 = vld [vmem:[%s7513_s12 + $0x1200] sm:$0xff] }
 0x3cb   : > { %4723 = vmatpush1.bf16.msra.mxu0 %v3486_v48  ;;  %v3538_v48 = vunpack.c.l.s8.bf16 %v2254_v60 }
 0x3cc   : > { %4764 = vmatpush1.bf16.msra.mxu1 %v3550_v56  ;;  %4724 = vmatprep.subr.bf16.mxu0 %v3483_v4  ;;  %v3471_v56 = vunpack.c.h.s8.bf16 %v2219_v36  ;;  %v2250_v4 = vld [vmem:[%s7513_s12 + $0x1300] sm:$0xff] }
 0x3cd   : > { %4765 = vmatprep.subr.bf16.mxu1 %v3547_v9  ;;  %v3470_v9 = vunpack.c.h.s8.bf16 %v2218_v30  ;;  %v3534_v19 = vunpack.c.h.s8.bf16 %v2250_v4  ;;  %v3530_v49 = vunpack.c.l.s8.bf16 %v2250_v4 }
 0x3cf   : > { %4725 = vmatpush1.bf16.msra.mxu0 %v3482_v57  ;;  %v3531_v57 = vunpack.c.l.s8.bf16 %v2251_v29 }
 0x3d0   : > { %4766 = vmatpush1.bf16.msra.mxu1 %v3546_v28  ;;  %4726 = vmatprep.subr.bf16.mxu0 %v3479_v21  ;;  %v2247_v28 = vld [vmem:[%s7513_s12 + $0x12e8] sm:$0xff] }
 0x3d1   : > { %4767 = vmatprep.subr.bf16.mxu1 %v3543_v37  ;;  %v2279_v21 = vld [vmem:[%s7513_s12 + $0x13e8] sm:$0xff]  ;;  %v3466_v37 = vunpack.c.l.s8.bf16 %v2218_v30  ;;  %v3527_v60 = vunpack.c.h.s8.bf16 %v2247_v28  ;;  %v3523_v29 = vunpack.c.l.s8.bf16 %v2247_v28 }
 0x3d3   : > { %4727 = vmatpush1.bf16.msra.mxu0 %v3478_v41  ;;  %v3591_v41 = vunpack.c.h.s8.bf16 %v2279_v21 }
 0x3d4   : > { %4768 = vmatpush1.bf16.msra.mxu1 %v3542_v2  ;;  %4728 = vmatprep.subr.bf16.mxu0 %v3475_v39  ;;  %v2246_v2 = vld [vmem:[%s7513_s12 + $0x12e0] sm:$0xff] }
 0x3d5   : > { %4769 = vmatprep.subr.bf16.mxu1 %v3539_v46  ;;  %v2278_v39 = vld [vmem:[%s7513_s12 + $0x13e0] sm:$0xff]  ;;  %v3526_v46 = vunpack.c.h.s8.bf16 %v2246_v2 }
 0x3d6   : > { %v3590_v36 = vunpack.c.h.s8.bf16 %v2278_v39  ;;  %v3586_v30 = vunpack.c.l.s8.bf16 %v2278_v39 }
 0x3d7   : > { %4729 = vmatpush1.bf16.msra.mxu0 %v3474_v43  ;;  %v3587_v43 = vunpack.c.l.s8.bf16 %v2279_v21 }
 0x3d8   : > { %4770 = vmatpush1.bf16.msra.mxu1 %v3538_v48  ;;  %4730 = vmatprep.subr.bf16.mxu0 %v3471_v56  ;;  %v2243_v48 = vld [vmem:[%s7513_s12 + $0x12c8] sm:$0xff] }
 0x3d9   : > { %4771 = vmatprep.subr.bf16.mxu1 %v3535_v58  ;;  %v2275_v56 = vld [vmem:[%s7513_s12 + $0x13c8] sm:$0xff]  ;;  %v3522_v58 = vunpack.c.l.s8.bf16 %v2246_v2  ;;  %v3519_v4 = vunpack.c.h.s8.bf16 %v2243_v48  ;;  %v3515_v21 = vunpack.c.l.s8.bf16 %v2243_v48 }
 0x3db   : > { %4731 = vmatpush1.bf16.msra.mxu0 %v3470_v9  ;;  %v3583_v9 = vunpack.c.h.s8.bf16 %v2275_v56 }
 0x3dc   : > { %4772 = vmatpush1.bf16.msra.mxu1 %v3534_v19  ;;  %4732 = vmatprep.subr.bf16.mxu0 %v3467_v5  ;;  %v2242_v19 = vld [vmem:[%s7513_s12 + $0x12c0] sm:$0xff] }
 0x3dd   : > { %4773 = vmatprep.subr.bf16.mxu1 %v3531_v57  ;;  %v2274_v5 = vld [vmem:[%s7513_s12 + $0x13c0] sm:$0xff]  ;;  %v3518_v57 = vunpack.c.h.s8.bf16 %v2242_v19 }
 0x3de   : > { %v3582_v28 = vunpack.c.h.s8.bf16 %v2274_v5  ;;  %v3578_v2 = vunpack.c.l.s8.bf16 %v2274_v5 }
 0x3df   : > { %4733 = vmatpush1.bf16.msra.mxu0 %v3466_v37  ;;  %v3579_v37 = vunpack.c.l.s8.bf16 %v2275_v56 }
 0x3e0   : > { %4774 = vmatpush1.bf16.msra.mxu1 %v3530_v49  ;;  %4734 = vmatprep.subr.bf16.mxu0 %v3527_v60  ;;  %v2239_v49 = vld [vmem:[%s7513_s12 + $0x12a8] sm:$0xff] }
 0x3e1   : > { %4775 = vmatprep.subr.bf16.mxu1 %v3591_v41  ;;  %v2271_v60 = vld [vmem:[%s7513_s12 + $0x13a8] sm:$0xff]  ;;  %v3514_v41 = vunpack.c.l.s8.bf16 %v2242_v19  ;;  %v3511_v39 = vunpack.c.h.s8.bf16 %v2239_v49  ;;  %v3507_v56 = vunpack.c.l.s8.bf16 %v2239_v49 }
 0x3e3   : > { %4735 = vmatpush2.bf16.msra.mxu0 %v3526_v46  ;;  %v3575_v46 = vunpack.c.h.s8.bf16 %v2271_v60 }
 0x3e4   : > { %4776 = vmatpush2.bf16.msra.mxu1 %v3590_v36  ;;  %4736 = vmatprep.subr.bf16.mxu0 %v3523_v29  ;;  %v2238_v36 = vld [vmem:[%s7513_s12 + $0x12a0] sm:$0xff] }
 0x3e5   : > { %4777 = vmatprep.subr.bf16.mxu1 %v3587_v43  ;;  %v2270_v29 = vld [vmem:[%s7513_s12 + $0x13a0] sm:$0xff]  ;;  %v3510_v43 = vunpack.c.h.s8.bf16 %v2238_v36 }
 0x3e6   : > { %v3574_v48 = vunpack.c.h.s8.bf16 %v2270_v29  ;;  %v3570_v19 = vunpack.c.l.s8.bf16 %v2270_v29 }
 0x3e7   : > { %4737 = vmatpush2.bf16.msra.mxu0 %v3522_v58  ;;  %v3571_v58 = vunpack.c.l.s8.bf16 %v2271_v60 }
 0x3e8   : > { %4778 = vmatpush2.bf16.msra.mxu1 %v3586_v30  ;;  %4738 = vmatprep.subr.bf16.mxu0 %v3519_v4  ;;  %v2235_v30 = vld [vmem:[%s7513_s12 + $0x1288] sm:$0xff] }
 0x3e9   : > { %4779 = vmatprep.subr.bf16.mxu1 %v3583_v9  ;;  %v2267_v4 = vld [vmem:[%s7513_s12 + $0x1388] sm:$0xff]  ;;  %v3506_v9 = vunpack.c.l.s8.bf16 %v2238_v36  ;;  %v3503_v5 = vunpack.c.h.s8.bf16 %v2235_v30  ;;  %v3499_v60 = vunpack.c.l.s8.bf16 %v2235_v30  ;;  %v8142_v36 = vld.sshfl [vmem:[%s7497_s29 + $0x28] sm:$0x11 pattern:$0x75316420]  ;;  %v1656_v30 = vld [vmem:[%s7513_s12 + $0x70] sm:$0xff] }
 0x3eb   : > { %4739 = vmatpush2.bf16.msra.mxu0 %v3518_v57  ;;  %v3567_v57 = vunpack.c.h.s8.bf16 %v2267_v4 }
 0x3ec   : > { %4780 = vmatpush2.bf16.msra.mxu1 %v3582_v28  ;;  %4740 = vmatprep.subr.bf16.mxu0 %v3515_v21  ;;  %v2234_v28 = vld [vmem:[%s7513_s12 + $0x1280] sm:$0xff] }
 0x3ed   : > { %4781 = vmatprep.subr.bf16.mxu1 %v3579_v37  ;;  %v2266_v21 = vld [vmem:[%s7513_s12 + $0x1380] sm:$0xff]  ;;  %v3502_v37 = vunpack.c.h.s8.bf16 %v2234_v28  ;;  %v3498_v29 = vunpack.c.l.s8.bf16 %v2234_v28  ;;  %v2291_v28 = vld [vmem:[%s7513_s12 + $0x1448] sm:$0xff] }
 0x3ee   : > { %v3566_v49 = vunpack.c.h.s8.bf16 %v2266_v21 }
 0x3ef   : > { %4741 = vmatpush2.bf16.msra.mxu0 %v3514_v41  ;;  %v3563_v41 = vunpack.c.l.s8.bf16 %v2267_v4  ;;  %v3923_v4 = vcombine.high %v8142_v36, %v8142_v36 }
 0x3f0   : > { %4782 = vmatpush2.bf16.msra.mxu1 %v3578_v2  ;;  %4742 = vmatprep.subr.bf16.mxu0 %v3511_v39  ;;  %v2295_v2 = vld [vmem:[%s7513_s12 + $0x1468] sm:$0xff]  ;;  %v1657_v39 = vld [vmem:[%s7513_s12 + $0x78] sm:$0xff] }
 0x3f1   : > { %4783 = vmatprep.subr.bf16.mxu1 %v3575_v46  ;;  %v8139_v46 = vrot.slane %v8074_v52, %v7538_v17 }
 0x3f3   : > { %4743 = vmatpush2.bf16.msra.mxu0 %v3510_v43  ;;  %8679 = vst [vmem:[#allocation6_spill] sm:$0xff] %v8139_v46  ;;  %v3562_v43 = vunpack.c.l.s8.bf16 %v2266_v21  ;;  %v8150_v52 = vcombine.high %v8139_v46, %v8139_v46  ;;  %v1653_v21 = vld [vmem:[%s7513_s12 + $0x58] sm:$0xff] }
 0x3f4   : > { %4784 = vmatpush2.bf16.msra.mxu1 %v3574_v48  ;;  %4744 = vmatprep.subr.bf16.mxu0 %v3507_v56  ;;  %v3623_v48 = vunpack.c.h.s8.bf16 %v2295_v2  ;;  %v2345_v56 = vunpack.c.h.s8.bf16 %v1657_v39 }
 0x3f5   : > { %4785 = vmatprep.subr.bf16.mxu1 %v3571_v58  ;;  %v2294_v58 = vld [vmem:[%s7513_s12 + $0x1460] sm:$0xff] }
 0x3f7   : > { %4745 = vmatpush2.bf16.msra.mxu0 %v3506_v9  ;;  %v3622_v9 = vunpack.c.h.s8.bf16 %v2294_v58 }
 0x3f8   : > { %4786 = vmatpush2.bf16.msra.mxu1 %v3570_v19  ;;  %4746 = vmatprep.subr.bf16.mxu0 %v3503_v5  ;;  %v2344_v19 = vunpack.c.h.s8.bf16 %v1656_v30  ;;  %v3619_v5 = vunpack.c.l.s8.bf16 %v2295_v2  ;;  %v2340_v2 = vunpack.c.l.s8.bf16 %v1656_v30 }
 0x3f9   : > { %4787 = vmatprep.subr.bf16.mxu1 %v3567_v57  ;;  %v2341_v57 = vunpack.c.l.s8.bf16 %v1657_v39 }
 0x3fb   : > { %4747 = vmatpush2.bf16.msra.mxu0 %v3502_v37  ;;  %v8155_v37 = vrot.slane %v3923_v4, %v7538_v17  ;;  %v2290_v4 = vld [vmem:[%s7513_s12 + $0x1440] sm:$0xff] }
 0x3fc   : > { %4788 = vmatpush2.bf16.msra.mxu1 %v3566_v49  ;;  %4748 = vmatprep.subr.bf16.mxu0 %v3499_v60 }
 0x3fd   : > { %4789 = vmatprep.subr.bf16.mxu1 %v3563_v41 }
 0x3ff   : > { %4749 = vmatpush2.bf16.msra.mxu0 %v3498_v29  ;;  %v3618_v29 = vunpack.c.l.s8.bf16 %v2294_v58 }
 0x400   : > { %4790 = vmatpush2.bf16.msra.mxu1 %v3562_v43  ;;  %4800 = vmatprep.subr.bf16.mxu0 %v3623_v48  ;;  %v3615_v48 = vunpack.c.h.s8.bf16 %v2291_v28 }
 0x401   : > { %4841 = vmatprep.subr.bf16.mxu1 %v2345_v56  ;;  %v2337_v56 = vunpack.c.h.s8.bf16 %v1653_v21 }
 0x402   : > { %v4506_v49 = vpop.f32.mrf.mxu0  ;;  %4751 = vmatmul.mubr.bf16.vlgmr.msra.gmra.mxu0 %v8139_v46 }
 0x403   : > { %v4547_v60 = vpop.f32.mrf.mxu1  ;;  %4792 = vmatmul.mubr.bf16.vlgmr.msra.gmra.mxu1 %v8150_v52  ;;  %v4507_v41 = vadd.f32 %v4506_v49, %v8104_v40  ;;  %4801 = vmatpush1.bf16.msra.mxu0 %v3622_v9  ;;  %v3614_v9 = vunpack.c.h.s8.bf16 %v2290_v4  ;;  %v2333_v49 = vunpack.c.l.s8.bf16 %v1653_v21 }
 0x404   : > { %4842 = vmatpush1.bf16.msra.mxu1 %v2344_v19  ;;  %v4508_v39 = vpop.f32.mrf.mxu0  ;;  %4802 = vmatprep.subr.bf16.mxu0 %v3619_v5  ;;  %v2336_v19 = vunpack.c.h.s8.bf16 %v1652_v6 }
 0x405   : > { %v4549_v43 = vpop.f32.mrf.mxu1  ;;  %4843 = vmatprep.subr.bf16.mxu1 %v2341_v57  ;;  %v8162_v7 = vadd.f32 %v4547_v60, %v4507_v41  ;;  %v4509_v46 = vadd.f32 %v4508_v39, %v8109_v42  ;;  %4832 = vmatprep.mubr.bf16.mxu0 %v8155_v37  ;;  %v3611_v42 = vunpack.c.l.s8.bf16 %v2291_v28  ;;  %v2287_v60 = vld [vmem:[%s7513_s12 + $0x1428] sm:$0xff]  ;;  %v1649_v41 = vld [vmem:[%s7513_s12 + $0x38] sm:$0xff]  ;;  %v2286_v39 = vld [vmem:[%s7513_s12 + $0x1420] sm:$0xff] }
 0x406   : > { %4873 = vmatprep.mubr.bf16.mxu1 %v7549_v26  ;;  %v4510_v40 = vpop.f32.mrf.mxu0  ;;  %v3610_v26 = vunpack.c.l.s8.bf16 %v2290_v4  ;;  %v3603_v21 = vunpack.c.l.s8.bf16 %v2287_v60  ;;  %v2283_v4 = vld [vmem:[%s7513_s12 + $0x1408] sm:$0xff] }
 0x407   : > { %v4551_v58 = vpop.f32.mrf.mxu1  ;;  %v8167_v30 = vadd.f32 %v4549_v43, %v4509_v46  ;;  %4803 = vmatpush1.bf16.msra.mxu0 %v3618_v29  ;;  %v2332_v46 = vunpack.c.l.s8.bf16 %v1652_v6  ;;  %v3607_v29 = vunpack.c.h.s8.bf16 %v2287_v60  ;;  %v1648_v43 = vld [vmem:[%s7513_s12 + $0x30] sm:$0xff]  ;;  %v1645_v40 = vld [vmem:[%s7513_s12 + $0x18] sm:$0xff]  ;;  %v3602_v6 = vunpack.c.l.s8.bf16 %v2286_v39 }
 0x408   : > { %4844 = vmatpush1.bf16.msra.mxu1 %v2340_v2  ;;  %v4511_v5 = vpop.f32.mrf.mxu0  ;;  %4804 = vmatprep.subr.bf16.mxu0 %v3615_v48  ;;  %v2329_v2 = vunpack.c.h.s8.bf16 %v1649_v41  ;;  %v3606_v48 = vunpack.c.h.s8.bf16 %v2286_v39  ;;  %v2328_v28 = vunpack.c.h.s8.bf16 %v1648_v43  ;;  %v2324_v58 = vunpack.c.l.s8.bf16 %v1648_v43 }
 0x409   : > { %v4552_v57 = vpop.f32.mrf.mxu1  ;;  %4845 = vmatprep.subr.bf16.mxu1 %v2337_v56  ;;  %v2325_v56 = vunpack.c.l.s8.bf16 %v1649_v41  ;;  %v2282_v5 = vld [vmem:[%s7513_s12 + $0x1400] sm:$0xff]  ;;  %v3595_v60 = vunpack.c.l.s8.bf16 %v2283_v4  ;;  %v2317_v41 = vunpack.c.l.s8.bf16 %v1645_v40 }
 0x40a   : > { %v1644_v57 = vld [vmem:[%s7513_s12 + $0x10] sm:$0xff] }
 0x40b   : > { %4805 = vmatpush1.bf16.msra.mxu0 %v3614_v9  ;;  %v3599_v9 = vunpack.c.h.s8.bf16 %v2283_v4 }
 0x40c   : > { %4846 = vmatpush1.bf16.msra.mxu1 %v2336_v19  ;;  %4806 = vmatprep.subr.bf16.mxu0 %v3611_v42  ;;  %v2321_v19 = vunpack.c.h.s8.bf16 %v1645_v40  ;;  %v3598_v42 = vunpack.c.h.s8.bf16 %v2282_v5 }
 0x40d   : > { %4847 = vmatprep.subr.bf16.mxu1 %v2333_v49  ;;  %v2320_v49 = vunpack.c.h.s8.bf16 %v1644_v57 }
 0x40f   : > { %4807 = vmatpush1.bf16.msra.mxu0 %v3610_v26  ;;  %v2311_v26 = vld [vmem:[%s7513_s12 + $0x14e8] sm:$0xff] }
 0x410   : > { %4848 = vmatpush1.bf16.msra.mxu1 %v2332_v46  ;;  %4808 = vmatprep.subr.bf16.mxu0 %v3607_v29  ;;  %v1673_v46 = vld [vmem:[%s7513_s12 + $0xf8] sm:$0xff]  ;;  %v3594_v29 = vunpack.c.l.s8.bf16 %v2282_v5  ;;  %v3655_v39 = vunpack.c.h.s8.bf16 %v2311_v26  ;;  %v3651_v4 = vunpack.c.l.s8.bf16 %v2311_v26 }
 0x411   : > { %4849 = vmatprep.subr.bf16.mxu1 %v2329_v2  ;;  %v2316_v2 = vunpack.c.l.s8.bf16 %v1644_v57  ;;  %v2377_v43 = vunpack.c.h.s8.bf16 %v1673_v46  ;;  %v2373_v40 = vunpack.c.l.s8.bf16 %v1673_v46 }
 0x413   : > { %4809 = vmatpush1.bf16.msra.mxu0 %v3606_v48  ;;  %v2310_v48 = vld [vmem:[%s7513_s12 + $0x14e0] sm:$0xff] }
 0x414   : > { %4850 = vmatpush1.bf16.msra.mxu1 %v2328_v28  ;;  %4810 = vmatprep.subr.bf16.mxu0 %v3603_v21  ;;  %v1672_v28 = vld [vmem:[%s7513_s12 + $0xf0] sm:$0xff]  ;;  %v3654_v21 = vunpack.c.h.s8.bf16 %v2310_v48 }
 0x415   : > { %4851 = vmatprep.subr.bf16.mxu1 %v2325_v56  ;;  %v2376_v56 = vunpack.c.h.s8.bf16 %v1672_v28 }
 0x417   : > { %4811 = vmatpush1.bf16.msra.mxu0 %v3602_v6  ;;  %v2307_v6 = vld [vmem:[%s7513_s12 + $0x14c8] sm:$0xff] }
 0x418   : > { %4852 = vmatpush1.bf16.msra.mxu1 %v2324_v58  ;;  %4812 = vmatprep.subr.bf16.mxu0 %v3599_v9  ;;  %v1669_v58 = vld [vmem:[%s7513_s12 + $0xd8] sm:$0xff]  ;;  %v3650_v9 = vunpack.c.l.s8.bf16 %v2310_v48  ;;  %v3647_v5 = vunpack.c.h.s8.bf16 %v2307_v6  ;;  %v3643_v26 = vunpack.c.l.s8.bf16 %v2307_v6 }
 0x419   : > { %4853 = vmatprep.subr.bf16.mxu1 %v2321_v19  ;;  %v2372_v19 = vunpack.c.l.s8.bf16 %v1672_v28  ;;  %v2369_v57 = vunpack.c.h.s8.bf16 %v1669_v58  ;;  %v2365_v46 = vunpack.c.l.s8.bf16 %v1669_v58 }
 0x41b   : > { %4813 = vmatpush1.bf16.msra.mxu0 %v3598_v42  ;;  %v2306_v42 = vld [vmem:[%s7513_s12 + $0x14c0] sm:$0xff] }
 0x41c   : > { %4854 = vmatpush1.bf16.msra.mxu1 %v2320_v49  ;;  %4814 = vmatprep.subr.bf16.mxu0 %v3595_v60  ;;  %v1668_v49 = vld [vmem:[%s7513_s12 + $0xd0] sm:$0xff]  ;;  %v3646_v60 = vunpack.c.h.s8.bf16 %v2306_v42 }
 0x41d   : > { %4855 = vmatprep.subr.bf16.mxu1 %v2317_v41  ;;  %v2368_v41 = vunpack.c.h.s8.bf16 %v1668_v49 }
 0x41f   : > { %4815 = vmatpush1.bf16.msra.mxu0 %v3594_v29  ;;  %v2303_v29 = vld [vmem:[%s7513_s12 + $0x14a8] sm:$0xff] }
 0x420   : > { %4856 = vmatpush1.bf16.msra.mxu1 %v2316_v2  ;;  %4816 = vmatprep.subr.bf16.mxu0 %v3655_v39  ;;  %v1665_v2 = vld [vmem:[%s7513_s12 + $0xb8] sm:$0xff]  ;;  %v3642_v39 = vunpack.c.l.s8.bf16 %v2306_v42  ;;  %v3639_v48 = vunpack.c.h.s8.bf16 %v2303_v29  ;;  %v3635_v6 = vunpack.c.l.s8.bf16 %v2303_v29 }
 0x421   : > { %4857 = vmatprep.subr.bf16.mxu1 %v2377_v43  ;;  %v2364_v43 = vunpack.c.l.s8.bf16 %v1668_v49  ;;  %v2361_v28 = vunpack.c.h.s8.bf16 %v1665_v2  ;;  %v2357_v58 = vunpack.c.l.s8.bf16 %v1665_v2 }
 0x423   : > { %4817 = vmatpush2.bf16.msra.mxu0 %v3654_v21  ;;  %v2302_v21 = vld [vmem:[%s7513_s12 + $0x14a0] sm:$0xff] }
 0x424   : > { %4858 = vmatpush2.bf16.msra.mxu1 %v2376_v56  ;;  %4818 = vmatprep.subr.bf16.mxu0 %v3651_v4  ;;  %v1664_v56 = vld [vmem:[%s7513_s12 + $0xb0] sm:$0xff]  ;;  %v3638_v4 = vunpack.c.h.s8.bf16 %v2302_v21 }
 0x425   : > { %4859 = vmatprep.subr.bf16.mxu1 %v2373_v40  ;;  %v2360_v40 = vunpack.c.h.s8.bf16 %v1664_v56 }
 0x427   : > { %4819 = vmatpush2.bf16.msra.mxu0 %v3650_v9  ;;  %v2299_v9 = vld [vmem:[%s7513_s12 + $0x1488] sm:$0xff] }
 0x428   : > { %4860 = vmatpush2.bf16.msra.mxu1 %v2372_v19  ;;  %4820 = vmatprep.subr.bf16.mxu0 %v3647_v5  ;;  %v1661_v19 = vld [vmem:[%s7513_s12 + $0x98] sm:$0xff]  ;;  %v3634_v5 = vunpack.c.l.s8.bf16 %v2302_v21  ;;  %v3631_v42 = vunpack.c.h.s8.bf16 %v2299_v9  ;;  %v3627_v29 = vunpack.c.l.s8.bf16 %v2299_v9 }
 0x429   : > { %4861 = vmatprep.subr.bf16.mxu1 %v2369_v57  ;;  %v2356_v57 = vunpack.c.l.s8.bf16 %v1664_v56  ;;  %v2353_v49 = vunpack.c.h.s8.bf16 %v1661_v19  ;;  %v2349_v2 = vunpack.c.l.s8.bf16 %v1661_v19 }
 0x42b   : > { %4821 = vmatpush2.bf16.msra.mxu0 %v3646_v60  ;;  %v2298_v60 = vld [vmem:[%s7513_s12 + $0x1480] sm:$0xff] }
 0x42c   : > { %4862 = vmatpush2.bf16.msra.mxu1 %v2368_v41  ;;  %4822 = vmatprep.subr.bf16.mxu0 %v3643_v26  ;;  %v1660_v41 = vld [vmem:[%s7513_s12 + $0x90] sm:$0xff]  ;;  %v3630_v26 = vunpack.c.h.s8.bf16 %v2298_v60 }
 0x42d   : > { %4863 = vmatprep.subr.bf16.mxu1 %v2365_v46  ;;  %v2352_v46 = vunpack.c.h.s8.bf16 %v1660_v41 }
 0x42f   : > { %4823 = vmatpush2.bf16.msra.mxu0 %v3642_v39  ;;  %v1689_v39 = vld [vmem:[%s7513_s12 + $0x178] sm:$0xff] }
 0x430   : > { %4864 = vmatpush2.bf16.msra.mxu1 %v2364_v43  ;;  %4824 = vmatprep.subr.bf16.mxu0 %v3639_v48  ;;  %v1721_v43 = vld [vmem:[%s7513_s12 + $0x278] sm:$0xff]  ;;  %v3626_v48 = vunpack.c.l.s8.bf16 %v2298_v60  ;;  %v2409_v21 = vunpack.c.h.s8.bf16 %v1689_v39  ;;  %v2405_v19 = vunpack.c.l.s8.bf16 %v1689_v39  ;;  %v1684_v39 = vld [vmem:[%s7513_s12 + $0x150] sm:$0xff] }
 0x431   : > { %4865 = vmatprep.subr.bf16.mxu1 %v2361_v28  ;;  %v2348_v28 = vunpack.c.l.s8.bf16 %v1660_v41  ;;  %v2473_v56 = vunpack.c.h.s8.bf16 %v1721_v43 }
 0x433   : > { %4825 = vmatpush2.bf16.msra.mxu0 %v3638_v4  ;;  %v1688_v4 = vld [vmem:[%s7513_s12 + $0x170] sm:$0xff] }
 0x434   : > { %4866 = vmatpush2.bf16.msra.mxu1 %v2360_v40  ;;  %4826 = vmatprep.subr.bf16.mxu0 %v3635_v6  ;;  %v1720_v40 = vld [vmem:[%s7513_s12 + $0x270] sm:$0xff]  ;;  %v8199_v6 = vrot.slane %v8142_v36, %v7538_v17  ;;  %v2404_v36 = vunpack.c.l.s8.bf16 %v1688_v4 }
 0x435   : > { %4867 = vmatprep.subr.bf16.mxu1 %v2357_v58  ;;  %v2408_v58 = vunpack.c.h.s8.bf16 %v1688_v4  ;;  %v2472_v9 = vunpack.c.h.s8.bf16 %v1720_v40  ;;  %v2468_v41 = vunpack.c.l.s8.bf16 %v1720_v40 }
 0x437   : > { %4827 = vmatpush2.bf16.msra.mxu0 %v3634_v5  ;;  %v2469_v5 = vunpack.c.l.s8.bf16 %v1721_v43  ;;  %v1716_v43 = vld [vmem:[%s7513_s12 + $0x250] sm:$0xff] }
 0x438   : > { %4868 = vmatpush2.bf16.msra.mxu1 %v2356_v57  ;;  %4828 = vmatprep.subr.bf16.mxu0 %v3631_v42  ;;  %v1685_v57 = vld [vmem:[%s7513_s12 + $0x158] sm:$0xff]  ;;  %v2464_v4 = vunpack.c.h.s8.bf16 %v1716_v43 }
 0x439   : > { %4869 = vmatprep.subr.bf16.mxu1 %v2353_v49  ;;  %v1717_v42 = vld [vmem:[%s7513_s12 + $0x258] sm:$0xff] }
 0x43b   : > { %4829 = vmatpush2.bf16.msra.mxu0 %v3630_v26 }
 0x43c   : > { %4870 = vmatpush2.bf16.msra.mxu1 %v2352_v46  ;;  %4830 = vmatprep.subr.bf16.mxu0 %v3627_v29  ;;  %v2401_v29 = vunpack.c.h.s8.bf16 %v1685_v57 }
 0x43d   : > { %4871 = vmatprep.subr.bf16.mxu1 %v2349_v2  ;;  %v2465_v2 = vunpack.c.h.s8.bf16 %v1717_v42 }
 0x43f   : > { %4831 = vmatpush2.bf16.msra.mxu0 %v3626_v48 }
 0x440   : > { %4872 = vmatpush2.bf16.msra.mxu1 %v2348_v28  ;;  %4882 = vmatprep.subr.bf16.mxu0 %v2409_v21 }
 0x441   : > { %4923 = vmatprep.subr.bf16.mxu1 %v2473_v56  ;;  %v2400_v56 = vunpack.c.h.s8.bf16 %v1684_v39 }
 0x442   : > { %v4588_v49 = vpop.f32.mrf.mxu0  ;;  %4833 = vmatmul.mubr.bf16.vlgmr.msra.gmra.mxu0 %v8199_v6 }
 0x443   : > { %v4629_v60 = vpop.f32.mrf.mxu1  ;;  %4874 = vmatmul.mubr.bf16.vlgmr.msra.gmra.mxu1 %v7582_v16  ;;  %v4589_v17 = vadd.f32 %v4588_v49, %v8162_v7  ;;  %4883 = vmatpush1.bf16.msra.mxu0 %v2408_v58 }
 0x444   : > { %4924 = vmatpush1.bf16.msra.mxu1 %v2472_v9  ;;  %v4590_v26 = vpop.f32.mrf.mxu0  ;;  %4884 = vmatprep.subr.bf16.mxu0 %v2405_v19  ;;  %v2461_v9 = vunpack.c.l.s8.bf16 %v1717_v42  ;;  %v1713_v19 = vld [vmem:[%s7513_s12 + $0x238] sm:$0xff] }
 0x445   : > { %v4631_v46 = vpop.f32.mrf.mxu1  ;;  %4925 = vmatprep.subr.bf16.mxu1 %v2469_v5  ;;  %v8208_v48 = vadd.f32 %v4629_v60, %v4589_v17  ;;  %v4591_v28 = vadd.f32 %v4590_v26, %v8167_v30  ;;  %4914 = vmatprep.mubr.bf16.mxu0 %v7555_v33  ;;  %v2397_v30 = vunpack.c.l.s8.bf16 %v1685_v57  ;;  %v1681_v33 = vld [vmem:[%s7513_s12 + $0x138] sm:$0xff]  ;;  %v2460_v5 = vunpack.c.l.s8.bf16 %v1716_v43  ;;  %v1680_v17 = vld [vmem:[%s7513_s12 + $0x130] sm:$0xff] }
 0x446   : > { %4955 = vmatprep.mubr.bf16.mxu1 %v7587_v25  ;;  %v4592_v16 = vpop.f32.mrf.mxu0  ;;  %v2396_v25 = vunpack.c.l.s8.bf16 %v1684_v39  ;;  %v2393_v49 = vunpack.c.h.s8.bf16 %v1681_v33  ;;  %v2457_v60 = vunpack.c.h.s8.bf16 %v1713_v19  ;;  %v2389_v42 = vunpack.c.l.s8.bf16 %v1681_v33 }
 0x447   : > { %v4633_v7 = vpop.f32.mrf.mxu1  ;;  %v8213_v21 = vadd.f32 %v4631_v46, %v4591_v28  ;;  %4885 = vmatpush1.bf16.msra.mxu0 %v2404_v36  ;;  %v1712_v36 = vld [vmem:[%s7513_s12 + $0x230] sm:$0xff]  ;;  %v2453_v26 = vunpack.c.l.s8.bf16 %v1713_v19  ;;  %v1677_v46 = vld [vmem:[%s7513_s12 + $0x118] sm:$0xff] }
 0x448   : > { %4926 = vmatpush1.bf16.msra.mxu1 %v2468_v41  ;;  %v4593_v40 = vpop.f32.mrf.mxu0  ;;  %4886 = vmatprep.subr.bf16.mxu0 %v2401_v29  ;;  %v2392_v41 = vunpack.c.h.s8.bf16 %v1680_v17  ;;  %v2456_v57 = vunpack.c.h.s8.bf16 %v1712_v36  ;;  %v1709_v29 = vld [vmem:[%s7513_s12 + $0x218] sm:$0xff]  ;;  %v2452_v39 = vunpack.c.l.s8.bf16 %v1712_v36  ;;  %v2385_v43 = vunpack.c.h.s8.bf16 %v1677_v46  ;;  %v1676_v16 = vld [vmem:[%s7513_s12 + $0x110] sm:$0xff] }
 0x449   : > { %v4634_v58 = vpop.f32.mrf.mxu1  ;;  %4927 = vmatprep.subr.bf16.mxu1 %v2465_v2  ;;  %v2388_v2 = vunpack.c.l.s8.bf16 %v1680_v17  ;;  %v2449_v28 = vunpack.c.h.s8.bf16 %v1709_v29  ;;  %v1708_v7 = vld [vmem:[%s7513_s12 + $0x210] sm:$0xff]  ;;  %v2381_v40 = vunpack.c.l.s8.bf16 %v1677_v46  ;;  %v2380_v33 = vunpack.c.l.s8.bf16 %v1676_v16 }
 0x44a   : > { %v2445_v58 = vunpack.c.l.s8.bf16 %v1709_v29  ;;  %v2444_v19 = vunpack.c.l.s8.bf16 %v1708_v7 }
 0x44b   : > { %4887 = vmatpush1.bf16.msra.mxu0 %v2400_v56  ;;  %v2384_v56 = vunpack.c.h.s8.bf16 %v1676_v16 }
 0x44c   : > { %4928 = vmatpush1.bf16.msra.mxu1 %v2464_v4  ;;  %4888 = vmatprep.subr.bf16.mxu0 %v2397_v30  ;;  %v2448_v4 = vunpack.c.h.s8.bf16 %v1708_v7  ;;  %v1705_v30 = vld [vmem:[%s7513_s12 + $0x1f8] sm:$0xff] }
 0x44d   : > { %4929 = vmatprep.subr.bf16.mxu1 %v2461_v9  ;;  %v1737_v9 = vld [vmem:[%s7513_s12 + $0x2f8] sm:$0xff] }
 0x44f   : > { %4889 = vmatpush1.bf16.msra.mxu0 %v2396_v25  ;;  %v2441_v25 = vunpack.c.h.s8.bf16 %v1705_v30 }
 0x450   : > { %4930 = vmatpush1.bf16.msra.mxu1 %v2460_v5  ;;  %4890 = vmatprep.subr.bf16.mxu0 %v2393_v49  ;;  %v2505_v5 = vunpack.c.h.s8.bf16 %v1737_v9  ;;  %v1704_v49 = vld [vmem:[%s7513_s12 + $0x1f0] sm:$0xff] }
 0x451   : > { %4931 = vmatprep.subr.bf16.mxu1 %v2457_v60  ;;  %v1736_v60 = vld [vmem:[%s7513_s12 + $0x2f0] sm:$0xff]  ;;  %v2440_v17 = vunpack.c.h.s8.bf16 %v1704_v49  ;;  %v2436_v46 = vunpack.c.l.s8.bf16 %v1704_v49 }
 0x452   : > { %v2504_v36 = vunpack.c.h.s8.bf16 %v1736_v60  ;;  %v2500_v29 = vunpack.c.l.s8.bf16 %v1736_v60 }
 0x453   : > { %4891 = vmatpush1.bf16.msra.mxu0 %v2392_v41  ;;  %v2437_v41 = vunpack.c.l.s8.bf16 %v1705_v30 }
 0x454   : > { %4932 = vmatpush1.bf16.msra.mxu1 %v2456_v57  ;;  %4892 = vmatprep.subr.bf16.mxu0 %v2389_v42  ;;  %v2501_v57 = vunpack.c.l.s8.bf16 %v1737_v9  ;;  %v1701_v42 = vld [vmem:[%s7513_s12 + $0x1d8] sm:$0xff] }
 0x455   : > { %4933 = vmatprep.subr.bf16.mxu1 %v2453_v26  ;;  %v1733_v26 = vld [vmem:[%s7513_s12 + $0x2d8] sm:$0xff] }
 0x457   : > { %4893 = vmatpush1.bf16.msra.mxu0 %v2388_v2  ;;  %v2433_v2 = vunpack.c.h.s8.bf16 %v1701_v42 }
 0x458   : > { %4934 = vmatpush1.bf16.msra.mxu1 %v2452_v39  ;;  %4894 = vmatprep.subr.bf16.mxu0 %v2385_v43  ;;  %v2497_v39 = vunpack.c.h.s8.bf16 %v1733_v26  ;;  %v1700_v43 = vld [vmem:[%s7513_s12 + $0x1d0] sm:$0xff] }
 0x459   : > { %4935 = vmatprep.subr.bf16.mxu1 %v2449_v28  ;;  %v1732_v28 = vld [vmem:[%s7513_s12 + $0x2d0] sm:$0xff]  ;;  %v2432_v16 = vunpack.c.h.s8.bf16 %v1700_v43  ;;  %v2428_v30 = vunpack.c.l.s8.bf16 %v1700_v43 }
 0x45a   : > { %v2496_v7 = vunpack.c.h.s8.bf16 %v1732_v28  ;;  %v2492_v9 = vunpack.c.l.s8.bf16 %v1732_v28 }
 0x45b   : > { %4895 = vmatpush1.bf16.msra.mxu0 %v2384_v56  ;;  %v2429_v56 = vunpack.c.l.s8.bf16 %v1701_v42 }
 0x45c   : > { %4936 = vmatpush1.bf16.msra.mxu1 %v2448_v4  ;;  %4896 = vmatprep.subr.bf16.mxu0 %v2381_v40  ;;  %v2493_v4 = vunpack.c.l.s8.bf16 %v1733_v26  ;;  %v1697_v40 = vld [vmem:[%s7513_s12 + $0x1b8] sm:$0xff] }
 0x45d   : > { %4937 = vmatprep.subr.bf16.mxu1 %v2445_v58  ;;  %v1729_v58 = vld [vmem:[%s7513_s12 + $0x2b8] sm:$0xff] }
 0x45f   : > { %4897 = vmatpush1.bf16.msra.mxu0 %v2380_v33  ;;  %v2425_v33 = vunpack.c.h.s8.bf16 %v1697_v40 }
 0x460   : > { %4938 = vmatpush1.bf16.msra.mxu1 %v2444_v19  ;;  %4898 = vmatprep.subr.bf16.mxu0 %v2441_v25  ;;  %v2489_v19 = vunpack.c.h.s8.bf16 %v1729_v58  ;;  %v1696_v25 = vld [vmem:[%s7513_s12 + $0x1b0] sm:$0xff] }
 0x461   : > { %4939 = vmatprep.subr.bf16.mxu1 %v2505_v5  ;;  %v1728_v5 = vld [vmem:[%s7513_s12 + $0x2b0] sm:$0xff]  ;;  %v2424_v49 = vunpack.c.h.s8.bf16 %v1696_v25  ;;  %v2420_v42 = vunpack.c.l.s8.bf16 %v1696_v25 }
 0x462   : > { %v2488_v60 = vunpack.c.h.s8.bf16 %v1728_v5  ;;  %v2484_v26 = vunpack.c.l.s8.bf16 %v1728_v5 }
 0x463   : > { %4899 = vmatpush2.bf16.msra.mxu0 %v2440_v17  ;;  %v2421_v17 = vunpack.c.l.s8.bf16 %v1697_v40 }
 0x464   : > { %4940 = vmatpush2.bf16.msra.mxu1 %v2504_v36  ;;  %4900 = vmatprep.subr.bf16.mxu0 %v2437_v41  ;;  %v2485_v36 = vunpack.c.l.s8.bf16 %v1729_v58  ;;  %v1693_v41 = vld [vmem:[%s7513_s12 + $0x198] sm:$0xff] }
 0x465   : > { %4941 = vmatprep.subr.bf16.mxu1 %v2501_v57  ;;  %v1725_v57 = vld [vmem:[%s7513_s12 + $0x298] sm:$0xff] }
 0x467   : > { %4901 = vmatpush2.bf16.msra.mxu0 %v2436_v46  ;;  %v2417_v46 = vunpack.c.h.s8.bf16 %v1693_v41 }
 0x468   : > { %4942 = vmatpush2.bf16.msra.mxu1 %v2500_v29  ;;  %4902 = vmatprep.subr.bf16.mxu0 %v2433_v2  ;;  %v2481_v29 = vunpack.c.h.s8.bf16 %v1725_v57  ;;  %v1692_v2 = vld [vmem:[%s7513_s12 + $0x190] sm:$0xff] }
 0x469   : > { %4943 = vmatprep.subr.bf16.mxu1 %v2497_v39  ;;  %v1724_v39 = vld [vmem:[%s7513_s12 + $0x290] sm:$0xff]  ;;  %v2416_v43 = vunpack.c.h.s8.bf16 %v1692_v2  ;;  %v2412_v40 = vunpack.c.l.s8.bf16 %v1692_v2 }
 0x46a   : > { %v2480_v28 = vunpack.c.h.s8.bf16 %v1724_v39  ;;  %v2476_v58 = vunpack.c.l.s8.bf16 %v1724_v39 }
 0x46b   : > { %4903 = vmatpush2.bf16.msra.mxu0 %v2432_v16  ;;  %v2413_v16 = vunpack.c.l.s8.bf16 %v1693_v41 }
 0x46c   : > { %4944 = vmatpush2.bf16.msra.mxu1 %v2496_v7  ;;  %4904 = vmatprep.subr.bf16.mxu0 %v2429_v56  ;;  %v2477_v7 = vunpack.c.l.s8.bf16 %v1725_v57  ;;  %v1753_v56 = vld [vmem:[%s7513_s12 + $0x378] sm:$0xff] }
 0x46d   : > { %4945 = vmatprep.subr.bf16.mxu1 %v2493_v4  ;;  %v1785_v4 = vld [vmem:[%s7513_s12 + $0x478] sm:$0xff] }
 0x46f   : > { %4905 = vmatpush2.bf16.msra.mxu0 %v2428_v30  ;;  %v2537_v30 = vunpack.c.h.s8.bf16 %v1753_v56 }
 0x470   : > { %4946 = vmatpush2.bf16.msra.mxu1 %v2492_v9  ;;  %4906 = vmatprep.subr.bf16.mxu0 %v2425_v33  ;;  %v2601_v9 = vunpack.c.h.s8.bf16 %v1785_v4  ;;  %v1752_v33 = vld [vmem:[%s7513_s12 + $0x370] sm:$0xff] }
 0x471   : > { %4947 = vmatprep.subr.bf16.mxu1 %v2489_v19  ;;  %v1784_v19 = vld [vmem:[%s7513_s12 + $0x470] sm:$0xff]  ;;  %v2536_v25 = vunpack.c.h.s8.bf16 %v1752_v33 }
 0x472   : > { %v2600_v5 = vunpack.c.h.s8.bf16 %v1784_v19 }
 0x473   : > { %4907 = vmatpush2.bf16.msra.mxu0 %v2424_v49  ;;  %v2533_v49 = vunpack.c.l.s8.bf16 %v1753_v56 }
 0x474   : > { %4948 = vmatpush2.bf16.msra.mxu1 %v2488_v60  ;;  %4908 = vmatprep.subr.bf16.mxu0 %v2421_v17  ;;  %v2597_v60 = vunpack.c.l.s8.bf16 %v1785_v4  ;;  %v1749_v17 = vld [vmem:[%s7513_s12 + $0x358] sm:$0xff] }
 0x475   : > { %4949 = vmatprep.subr.bf16.mxu1 %v2485_v36  ;;  %v1781_v36 = vld [vmem:[%s7513_s12 + $0x458] sm:$0xff]  ;;  %v2529_v39 = vunpack.c.h.s8.bf16 %v1749_v17 }
 0x477   : > { %4909 = vmatpush2.bf16.msra.mxu0 %v2420_v42 }
 0x478   : > { %4950 = vmatpush2.bf16.msra.mxu1 %v2484_v26  ;;  %4910 = vmatprep.subr.bf16.mxu0 %v2417_v46  ;;  %v2532_v26 = vunpack.c.l.s8.bf16 %v1752_v33  ;;  %v2596_v46 = vunpack.c.l.s8.bf16 %v1784_v19  ;;  %v1777_v33 = vld [vmem:[%s7513_s12 + $0x438] sm:$0xff] }
 0x479   : > { %4951 = vmatprep.subr.bf16.mxu1 %v2481_v29 }
 0x47b   : > { %4911 = vmatpush2.bf16.msra.mxu0 %v2416_v43  ;;  %v2593_v43 = vunpack.c.h.s8.bf16 %v1781_v36 }
 0x47c   : > { %4952 = vmatpush2.bf16.msra.mxu1 %v2480_v28  ;;  %4912 = vmatprep.subr.bf16.mxu0 %v2413_v16  ;;  %v1748_v28 = vld [vmem:[%s7513_s12 + $0x350] sm:$0xff] }
 0x47d   : > { %4953 = vmatprep.subr.bf16.mxu1 %v2477_v7  ;;  %v1780_v16 = vld [vmem:[%s7513_s12 + $0x450] sm:$0xff]  ;;  %v2528_v4 = vunpack.c.h.s8.bf16 %v1748_v28 }
 0x47e   : > { %v2588_v19 = vunpack.c.l.s8.bf16 %v1780_v16 }
 0x47f   : > { %4913 = vmatpush2.bf16.msra.mxu0 %v2412_v40  ;;  %v2592_v40 = vunpack.c.h.s8.bf16 %v1780_v16 }
 0x480   : > { %4954 = vmatpush2.bf16.msra.mxu1 %v2476_v58  ;;  %4964 = vmatprep.subr.bf16.mxu0 %v2537_v30 }
 0x481   : > { %5005 = vmatprep.subr.bf16.mxu1 %v2601_v9  ;;  %v2589_v9 = vunpack.c.l.s8.bf16 %v1781_v36 }
 0x482   : > { %v4670_v41 = vpop.f32.mrf.mxu0  ;;  %4915 = vmatmul.mubr.bf16.vlgmr.msra.gmra.mxu0 %v7591_v27 }
 0x483   : > { %v4711_v57 = vpop.f32.mrf.mxu1  ;;  %4956 = vmatmul.mubr.bf16.vlgmr.msra.gmra.mxu1 %v7642_v3  ;;  %v4671_v42 = vadd.f32 %v4670_v41, %v8208_v48  ;;  %4965 = vmatpush1.bf16.msra.mxu0 %v2536_v25 }
 0x484   : > { %5006 = vmatpush1.bf16.msra.mxu1 %v2600_v5  ;;  %v4672_v29 = vpop.f32.mrf.mxu0  ;;  %4966 = vmatprep.subr.bf16.mxu0 %v2533_v49  ;;  %v2585_v5 = vunpack.c.h.s8.bf16 %v1777_v33  ;;  %v1744_v49 = vld [vmem:[%s7513_s12 + $0x330] sm:$0xff] }
 0x485   : > { %v4713_v2 = vpop.f32.mrf.mxu1  ;;  %5007 = vmatprep.subr.bf16.mxu1 %v2597_v60  ;;  %v8250_v7 = vadd.f32 %v4711_v57, %v4671_v42  ;;  %v4673_v27 = vadd.f32 %v4672_v29, %v8213_v21  ;;  %4996 = vmatprep.mubr.bf16.mxu0 %v7597_v34  ;;  %v2525_v21 = vunpack.c.l.s8.bf16 %v1749_v17  ;;  %v1745_v34 = vld [vmem:[%s7513_s12 + $0x338] sm:$0xff]  ;;  %v1776_v60 = vld [vmem:[%s7513_s12 + $0x430] sm:$0xff]  ;;  %v2520_v41 = vunpack.c.h.s8.bf16 %v1744_v49 }
 0x486   : > { %5037 = vmatprep.mubr.bf16.mxu1 %v7647_v12  ;;  %v4674_v3 = vpop.f32.mrf.mxu0  ;;  %v2524_v12 = vunpack.c.l.s8.bf16 %v1748_v28  ;;  %v2521_v25 = vunpack.c.h.s8.bf16 %v1745_v34  ;;  %v2584_v17 = vunpack.c.h.s8.bf16 %v1776_v60  ;;  %v2517_v36 = vunpack.c.l.s8.bf16 %v1745_v34  ;;  %v1741_v42 = vld [vmem:[%s7513_s12 + $0x318] sm:$0xff]  ;;  %v1772_v28 = vld [vmem:[%s7513_s12 + $0x410] sm:$0xff] }
 0x487   : > { %v4715_v48 = vpop.f32.mrf.mxu1  ;;  %v8255_v56 = vadd.f32 %v4713_v2, %v4673_v27  ;;  %4967 = vmatpush1.bf16.msra.mxu0 %v2532_v26  ;;  %v2581_v57 = vunpack.c.l.s8.bf16 %v1777_v33  ;;  %v1773_v26 = vld [vmem:[%s7513_s12 + $0x418] sm:$0xff]  ;;  %v2580_v29 = vunpack.c.l.s8.bf16 %v1776_v60  ;;  %v2513_v2 = vunpack.c.h.s8.bf16 %v1741_v42  ;;  %v1768_v34 = vld [vmem:[%s7513_s12 + $0x3f0] sm:$0xff] }
 0x488   : > { %5008 = vmatpush1.bf16.msra.mxu1 %v2596_v46  ;;  %v4675_v58 = vpop.f32.mrf.mxu0  ;;  %4968 = vmatprep.subr.bf16.mxu0 %v2529_v39  ;;  %v2516_v46 = vunpack.c.l.s8.bf16 %v1744_v49  ;;  %v2577_v39 = vunpack.c.h.s8.bf16 %v1773_v26  ;;  %v2576_v27 = vunpack.c.h.s8.bf16 %v1772_v28  ;;  %v2509_v3 = vunpack.c.l.s8.bf16 %v1741_v42  ;;  %v1800_v33 = vld [vmem:[%s7513_s12 + $0x4f0] sm:$0xff]  ;;  %v1765_v49 = vld [vmem:[%s7513_s12 + $0x3d8] sm:$0xff] }
 0x489   : > { %v4716_v30 = vpop.f32.mrf.mxu1  ;;  %5009 = vmatprep.subr.bf16.mxu1 %v2593_v43  ;;  %v1740_v43 = vld [vmem:[%s7513_s12 + $0x310] sm:$0xff]  ;;  %v2573_v48 = vunpack.c.l.s8.bf16 %v1773_v26  ;;  %v1797_v60 = vld [vmem:[%s7513_s12 + $0x4d8] sm:$0xff] }
 0x48a   : > { %v2512_v16 = vunpack.c.h.s8.bf16 %v1740_v43  ;;  %v2508_v58 = vunpack.c.l.s8.bf16 %v1740_v43  ;;  %v2572_v30 = vunpack.c.l.s8.bf16 %v1772_v28  ;;  %v1764_v42 = vld [vmem:[%s7513_s12 + $0x3d0] sm:$0xff]  ;;  %v1761_v43 = vld [vmem:[%s7513_s12 + $0x3b8] sm:$0xff] }
 0x48b   : > { %4969 = vmatpush1.bf16.msra.mxu0 %v2528_v4  ;;  %v1769_v4 = vld [vmem:[%s7513_s12 + $0x3f8] sm:$0xff]  ;;  %v1796_v26 = vld [vmem:[%s7513_s12 + $0x4d0] sm:$0xff] }
 0x48c   : > { %5010 = vmatpush1.bf16.msra.mxu1 %v2592_v40  ;;  %4970 = vmatprep.subr.bf16.mxu0 %v2525_v21  ;;  %v1801_v40 = vld [vmem:[%s7513_s12 + $0x4f8] sm:$0xff]  ;;  %v2569_v21 = vunpack.c.h.s8.bf16 %v1769_v4 }
 0x48d   : > { %5011 = vmatprep.subr.bf16.mxu1 %v2589_v9  ;;  %v2633_v9 = vunpack.c.h.s8.bf16 %v1801_v40  ;;  %v1793_v28 = vld [vmem:[%s7513_s12 + $0x4b8] sm:$0xff] }
 0x48f   : > { %4971 = vmatpush1.bf16.msra.mxu0 %v2524_v12  ;;  %v2568_v12 = vunpack.c.h.s8.bf16 %v1768_v34 }
 0x490   : > { %5012 = vmatpush1.bf16.msra.mxu1 %v2588_v19  ;;  %4972 = vmatprep.subr.bf16.mxu0 %v2521_v25  ;;  %v2632_v19 = vunpack.c.h.s8.bf16 %v1800_v33  ;;  %v2565_v25 = vunpack.c.l.s8.bf16 %v1769_v4  ;;  %v1760_v4 = vld [vmem:[%s7513_s12 + $0x3b0] sm:$0xff] }
 0x491   : > { %5013 = vmatprep.subr.bf16.mxu1 %v2585_v5  ;;  %v2629_v5 = vunpack.c.l.s8.bf16 %v1801_v40  ;;  %v1792_v40 = vld [vmem:[%s7513_s12 + $0x4b0] sm:$0xff] }
 0x493   : > { %4973 = vmatpush1.bf16.msra.mxu0 %v2520_v41  ;;  %v2564_v41 = vunpack.c.l.s8.bf16 %v1768_v34  ;;  %v1757_v34 = vld [vmem:[%s7513_s12 + $0x398] sm:$0xff] }
 0x494   : > { %5014 = vmatpush1.bf16.msra.mxu1 %v2584_v17  ;;  %4974 = vmatprep.subr.bf16.mxu0 %v2517_v36  ;;  %v2628_v17 = vunpack.c.l.s8.bf16 %v1800_v33  ;;  %v2561_v36 = vunpack.c.h.s8.bf16 %v1765_v49  ;;  %v1789_v33 = vld [vmem:[%s7513_s12 + $0x498] sm:$0xff] }
 0x495   : > { %5015 = vmatprep.subr.bf16.mxu1 %v2581_v57  ;;  %v2625_v57 = vunpack.c.h.s8.bf16 %v1797_v60 }
 0x497   : > { %4975 = vmatpush1.bf16.msra.mxu0 %v2516_v46  ;;  %v2560_v46 = vunpack.c.h.s8.bf16 %v1764_v42 }
 0x498   : > { %5016 = vmatpush1.bf16.msra.mxu1 %v2580_v29  ;;  %4976 = vmatprep.subr.bf16.mxu0 %v2513_v2  ;;  %v2624_v29 = vunpack.c.h.s8.bf16 %v1796_v26  ;;  %v2557_v2 = vunpack.c.l.s8.bf16 %v1765_v49  ;;  %v1756_v49 = vld [vmem:[%s7513_s12 + $0x390] sm:$0xff] }
 0x499   : > { %5017 = vmatprep.subr.bf16.mxu1 %v2577_v39  ;;  %v2621_v39 = vunpack.c.l.s8.bf16 %v1797_v60  ;;  %v1788_v60 = vld [vmem:[%s7513_s12 + $0x490] sm:$0xff] }
 0x49b   : > { %4977 = vmatpush1.bf16.msra.mxu0 %v2512_v16  ;;  %v2556_v16 = vunpack.c.l.s8.bf16 %v1764_v42  ;;  %v1817_v42 = vld [vmem:[%s7513_s12 + $0x578] sm:$0xff] }
 0x49c   : > { %5018 = vmatpush1.bf16.msra.mxu1 %v2576_v27  ;;  %4978 = vmatprep.subr.bf16.mxu0 %v2509_v3  ;;  %v2620_v27 = vunpack.c.l.s8.bf16 %v1796_v26  ;;  %v2553_v3 = vunpack.c.h.s8.bf16 %v1761_v43  ;;  %v1849_v26 = vld [vmem:[%s7513_s12 + $0x678] sm:$0xff] }
 0x49d   : > { %5019 = vmatprep.subr.bf16.mxu1 %v2573_v48  ;;  %v2617_v48 = vunpack.c.h.s8.bf16 %v1793_v28 }
 0x49f   : > { %4979 = vmatpush1.bf16.msra.mxu0 %v2508_v58  ;;  %v2552_v58 = vunpack.c.h.s8.bf16 %v1760_v4 }
 0x4a0   : > { %5020 = vmatpush1.bf16.msra.mxu1 %v2572_v30  ;;  %4980 = vmatprep.subr.bf16.mxu0 %v2569_v21  ;;  %v2616_v30 = vunpack.c.h.s8.bf16 %v1792_v40  ;;  %v2549_v21 = vunpack.c.l.s8.bf16 %v1761_v43  ;;  %v1816_v43 = vld [vmem:[%s7513_s12 + $0x570] sm:$0xff] }
 0x4a1   : > { %5021 = vmatprep.subr.bf16.mxu1 %v2633_v9  ;;  %v2613_v9 = vunpack.c.l.s8.bf16 %v1793_v28  ;;  %v1848_v28 = vld [vmem:[%s7513_s12 + $0x670] sm:$0xff] }
 0x4a3   : > { %4981 = vmatpush2.bf16.msra.mxu0 %v2568_v12  ;;  %v2548_v12 = vunpack.c.l.s8.bf16 %v1760_v4  ;;  %v1813_v4 = vld [vmem:[%s7513_s12 + $0x558] sm:$0xff] }
 0x4a4   : > { %5022 = vmatpush2.bf16.msra.mxu1 %v2632_v19  ;;  %4982 = vmatprep.subr.bf16.mxu0 %v2565_v25  ;;  %v2612_v19 = vunpack.c.l.s8.bf16 %v1792_v40  ;;  %v2545_v25 = vunpack.c.h.s8.bf16 %v1757_v34  ;;  %v1845_v40 = vld [vmem:[%s7513_s12 + $0x658] sm:$0xff] }
 0x4a5   : > { %5023 = vmatprep.subr.bf16.mxu1 %v2629_v5  ;;  %v2609_v5 = vunpack.c.h.s8.bf16 %v1789_v33 }
 0x4a7   : > { %4983 = vmatpush2.bf16.msra.mxu0 %v2564_v41  ;;  %v2544_v41 = vunpack.c.h.s8.bf16 %v1756_v49 }
 0x4a8   : > { %5024 = vmatpush2.bf16.msra.mxu1 %v2628_v17  ;;  %4984 = vmatprep.subr.bf16.mxu0 %v2561_v36  ;;  %v2608_v17 = vunpack.c.h.s8.bf16 %v1788_v60  ;;  %v2541_v36 = vunpack.c.l.s8.bf16 %v1757_v34  ;;  %v2724_v34 = vunpack.c.l.s8.bf16 %v1848_v28 }
 0x4a9   : > { %5025 = vmatprep.subr.bf16.mxu1 %v2625_v57  ;;  %v2605_v57 = vunpack.c.l.s8.bf16 %v1789_v33 }
 0x4ab   : > { %4985 = vmatpush2.bf16.msra.mxu0 %v2560_v46  ;;  %v2540_v46 = vunpack.c.l.s8.bf16 %v1756_v49  ;;  %v1844_v49 = vld [vmem:[%s7513_s12 + $0x650] sm:$0xff] }
 0x4ac   : > { %5026 = vmatpush2.bf16.msra.mxu1 %v2624_v29  ;;  %4986 = vmatprep.subr.bf16.mxu0 %v2557_v2  ;;  %v2604_v29 = vunpack.c.l.s8.bf16 %v1788_v60  ;;  %v2665_v2 = vunpack.c.h.s8.bf16 %v1817_v42 }
 0x4ad   : > { %5027 = vmatprep.subr.bf16.mxu1 %v2621_v39  ;;  %v2729_v39 = vunpack.c.h.s8.bf16 %v1849_v26 }
 0x4af   : > { %4987 = vmatpush2.bf16.msra.mxu0 %v2556_v16  ;;  %v2664_v16 = vunpack.c.h.s8.bf16 %v1816_v43 }
 0x4b0   : > { %5028 = vmatpush2.bf16.msra.mxu1 %v2620_v27  ;;  %4988 = vmatprep.subr.bf16.mxu0 %v2553_v3  ;;  %v2728_v27 = vunpack.c.h.s8.bf16 %v1848_v28  ;;  %v2661_v3 = vunpack.c.l.s8.bf16 %v1817_v42  ;;  %v1840_v28 = vld [vmem:[%s7513_s12 + $0x630] sm:$0xff] }
 0x4b1   : > { %5029 = vmatprep.subr.bf16.mxu1 %v2617_v48  ;;  %v2725_v48 = vunpack.c.l.s8.bf16 %v1849_v26  ;;  %v2717_v26 = vunpack.c.l.s8.bf16 %v1845_v40 }
 0x4b3   : > { %4989 = vmatpush2.bf16.msra.mxu0 %v2552_v58 }
 0x4b4   : > { %5030 = vmatpush2.bf16.msra.mxu1 %v2616_v30  ;;  %4990 = vmatprep.subr.bf16.mxu0 %v2549_v21 }
 0x4b5   : > { %5031 = vmatprep.subr.bf16.mxu1 %v2613_v9  ;;  %v2660_v9 = vunpack.c.l.s8.bf16 %v1816_v43  ;;  %v1808_v43 = vld [vmem:[%s7513_s12 + $0x530] sm:$0xff] }
 0x4b7   : > { %4991 = vmatpush2.bf16.msra.mxu0 %v2548_v12 }
 0x4b8   : > { %5032 = vmatpush2.bf16.msra.mxu1 %v2612_v19  ;;  %4992 = vmatprep.subr.bf16.mxu0 %v2545_v25  ;;  %v2657_v19 = vunpack.c.h.s8.bf16 %v1813_v4  ;;  %v2721_v25 = vunpack.c.h.s8.bf16 %v1845_v40  ;;  %v1837_v40 = vld [vmem:[%s7513_s12 + $0x618] sm:$0xff] }
 0x4b9   : > { %5033 = vmatprep.subr.bf16.mxu1 %v2609_v5  ;;  %v1812_v5 = vld [vmem:[%s7513_s12 + $0x550] sm:$0xff] }
 0x4bb   : > { %4993 = vmatpush2.bf16.msra.mxu0 %v2544_v41 }
 0x4bc   : > { %5034 = vmatpush2.bf16.msra.mxu1 %v2608_v17  ;;  %4994 = vmatprep.subr.bf16.mxu0 %v2541_v36  ;;  %v2656_v17 = vunpack.c.h.s8.bf16 %v1812_v5  ;;  %v2720_v36 = vunpack.c.h.s8.bf16 %v1844_v49 }
 0x4bd   : > { %5035 = vmatprep.subr.bf16.mxu1 %v2605_v57 }
 0x4bf   : > { %4995 = vmatpush2.bf16.msra.mxu0 %v2540_v46  ;;  %v1841_v46 = vld [vmem:[%s7513_s12 + $0x638] sm:$0xff] }
 0x4c0   : > { %5036 = vmatpush2.bf16.msra.mxu1 %v2604_v29  ;;  %5046 = vmatprep.subr.bf16.mxu0 %v2665_v2  ;;  %v2716_v29 = vunpack.c.l.s8.bf16 %v1844_v49  ;;  %v1833_v49 = vld [vmem:[%s7513_s12 + $0x5f8] sm:$0xff] }
 0x4c1   : > { %5087 = vmatprep.subr.bf16.mxu1 %v2729_v39  ;;  %v2713_v39 = vunpack.c.h.s8.bf16 %v1841_v46 }
 0x4c2   : > { %v4752_v58 = vpop.f32.mrf.mxu0  ;;  %4997 = vmatmul.mubr.bf16.vlgmr.msra.gmra.mxu0 %v7651_v13 }
 0x4c3   : > { %v4793_v30 = vpop.f32.mrf.mxu1  ;;  %5038 = vmatmul.mubr.bf16.vlgmr.msra.gmra.mxu1 %v7700_v1  ;;  %v4753_v21 = vadd.f32 %v4752_v58, %v8250_v7  ;;  %5047 = vmatpush1.bf16.msra.mxu0 %v2664_v16  ;;  %v2648_v16 = vunpack.c.h.s8.bf16 %v1808_v43  ;;  %v2644_v58 = vunpack.c.l.s8.bf16 %v1808_v43 }
 0x4c4   : > { %5088 = vmatpush1.bf16.msra.mxu1 %v2728_v27  ;;  %v4754_v33 = vpop.f32.mrf.mxu0  ;;  %5048 = vmatprep.subr.bf16.mxu0 %v2661_v3  ;;  %v2712_v27 = vunpack.c.h.s8.bf16 %v1840_v28 }
 0x4c5   : > { %v4795_v12 = vpop.f32.mrf.mxu1  ;;  %5089 = vmatprep.subr.bf16.mxu1 %v2725_v48  ;;  %v8292_v60 = vadd.f32 %v4793_v30, %v4753_v21  ;;  %v4755_v13 = vadd.f32 %v4754_v33, %v8255_v56  ;;  %5078 = vmatprep.mubr.bf16.mxu0 %v7657_v22  ;;  %v2653_v56 = vunpack.c.l.s8.bf16 %v1813_v4  ;;  %v1809_v22 = vld [vmem:[%s7513_s12 + $0x538] sm:$0xff]  ;;  %v2709_v48 = vunpack.c.l.s8.bf16 %v1841_v46  ;;  %v1836_v33 = vld [vmem:[%s7513_s12 + $0x610] sm:$0xff] }
 0x4c6   : > { %5119 = vmatprep.mubr.bf16.mxu1 %v7705_v11  ;;  %v4756_v1 = vpop.f32.mrf.mxu0  ;;  %v2652_v11 = vunpack.c.l.s8.bf16 %v1812_v5  ;;  %v2649_v2 = vunpack.c.h.s8.bf16 %v1809_v22  ;;  %v2645_v3 = vunpack.c.l.s8.bf16 %v1809_v22  ;;  %v1805_v4 = vld [vmem:[%s7513_s12 + $0x518] sm:$0xff]  ;;  %v2708_v30 = vunpack.c.l.s8.bf16 %v1840_v28 }
 0x4c7   : > { %v4797_v7 = vpop.f32.mrf.mxu1  ;;  %v8297_v41 = vadd.f32 %v4795_v12, %v4755_v13  ;;  %5049 = vmatpush1.bf16.msra.mxu0 %v2660_v9  ;;  %v2641_v21 = vunpack.c.h.s8.bf16 %v1805_v4  ;;  %v2705_v9 = vunpack.c.h.s8.bf16 %v1837_v40  ;;  %v2701_v5 = vunpack.c.l.s8.bf16 %v1837_v40  ;;  %v1865_v13 = vld [vmem:[%s7513_s12 + $0x6f8] sm:$0xff] }
 0x4c8   : > { %5090 = vmatpush1.bf16.msra.mxu1 %v2724_v34  ;;  %v4757_v57 = vpop.f32.mrf.mxu0  ;;  %5050 = vmatprep.subr.bf16.mxu0 %v2657_v19  ;;  %v1804_v34 = vld [vmem:[%s7513_s12 + $0x510] sm:$0xff]  ;;  %v2704_v19 = vunpack.c.h.s8.bf16 %v1836_v33  ;;  %v2700_v7 = vunpack.c.l.s8.bf16 %v1836_v33  ;;  %v2693_v22 = vunpack.c.l.s8.bf16 %v1833_v49  ;;  %v2757_v46 = vunpack.c.l.s8.bf16 %v1865_v13 }
 0x4c9   : > { %v4798_v42 = vpop.f32.mrf.mxu1  ;;  %5091 = vmatprep.subr.bf16.mxu1 %v2721_v25  ;;  %v2640_v12 = vunpack.c.h.s8.bf16 %v1804_v34  ;;  %v2637_v25 = vunpack.c.l.s8.bf16 %v1805_v4  ;;  %v2636_v1 = vunpack.c.l.s8.bf16 %v1804_v34  ;;  %v1832_v57 = vld [vmem:[%s7513_s12 + $0x5f0] sm:$0xff] }
 0x4ca   : > { %v1864_v42 = vld [vmem:[%s7513_s12 + $0x6f0] sm:$0xff] }
 0x4cb   : > { %5051 = vmatpush1.bf16.msra.mxu0 %v2656_v17  ;;  %v2697_v17 = vunpack.c.h.s8.bf16 %v1833_v49 }
 0x4cc   : > { %5092 = vmatpush1.bf16.msra.mxu1 %v2720_v36  ;;  %5052 = vmatprep.subr.bf16.mxu0 %v2653_v56  ;;  %v2761_v36 = vunpack.c.h.s8.bf16 %v1865_v13  ;;  %v2696_v56 = vunpack.c.h.s8.bf16 %v1832_v57 }
 0x4cd   : > { %5093 = vmatprep.subr.bf16.mxu1 %v2717_v26  ;;  %v2760_v26 = vunpack.c.h.s8.bf16 %v1864_v42 }
 0x4cf   : > { %5053 = vmatpush1.bf16.msra.mxu0 %v2652_v11  ;;  %v1829_v11 = vld [vmem:[%s7513_s12 + $0x5d8] sm:$0xff] }
 0x4d0   : > { %5094 = vmatpush1.bf16.msra.mxu1 %v2716_v29  ;;  %5054 = vmatprep.subr.bf16.mxu0 %v2649_v2  ;;  %v1861_v29 = vld [vmem:[%s7513_s12 + $0x6d8] sm:$0xff]  ;;  %v2692_v2 = vunpack.c.l.s8.bf16 %v1832_v57  ;;  %v2689_v43 = vunpack.c.h.s8.bf16 %v1829_v11  ;;  %v2685_v4 = vunpack.c.l.s8.bf16 %v1829_v11 }
 0x4d1   : > { %5095 = vmatprep.subr.bf16.mxu1 %v2713_v39  ;;  %v2756_v39 = vunpack.c.l.s8.bf16 %v1864_v42  ;;  %v2753_v28 = vunpack.c.h.s8.bf16 %v1861_v29  ;;  %v2749_v40 = vunpack.c.l.s8.bf16 %v1861_v29 }
 0x4d3   : > { %5055 = vmatpush1.bf16.msra.mxu0 %v2648_v16  ;;  %v1828_v16 = vld [vmem:[%s7513_s12 + $0x5d0] sm:$0xff] }
 0x4d4   : > { %5096 = vmatpush1.bf16.msra.mxu1 %v2712_v27  ;;  %5056 = vmatprep.subr.bf16.mxu0 %v2645_v3  ;;  %v1860_v27 = vld [vmem:[%s7513_s12 + $0x6d0] sm:$0xff]  ;;  %v2688_v3 = vunpack.c.h.s8.bf16 %v1828_v16 }
 0x4d5   : > { %5097 = vmatprep.subr.bf16.mxu1 %v2709_v48  ;;  %v2752_v48 = vunpack.c.h.s8.bf16 %v1860_v27 }
 0x4d7   : > { %5057 = vmatpush1.bf16.msra.mxu0 %v2644_v58  ;;  %v1825_v58 = vld [vmem:[%s7513_s12 + $0x5b8] sm:$0xff] }
 0x4d8   : > { %5098 = vmatpush1.bf16.msra.mxu1 %v2708_v30  ;;  %5058 = vmatprep.subr.bf16.mxu0 %v2641_v21  ;;  %v1857_v30 = vld [vmem:[%s7513_s12 + $0x6b8] sm:$0xff]  ;;  %v2684_v21 = vunpack.c.l.s8.bf16 %v1828_v16  ;;  %v2681_v34 = vunpack.c.h.s8.bf16 %v1825_v58  ;;  %v2677_v49 = vunpack.c.l.s8.bf16 %v1825_v58 }
 0x4d9   : > { %5099 = vmatprep.subr.bf16.mxu1 %v2705_v9  ;;  %v2748_v9 = vunpack.c.l.s8.bf16 %v1860_v27  ;;  %v2745_v33 = vunpack.c.h.s8.bf16 %v1857_v30  ;;  %v2741_v13 = vunpack.c.l.s8.bf16 %v1857_v30 }
 0x4db   : > { %5059 = vmatpush1.bf16.msra.mxu0 %v2640_v12  ;;  %v1824_v12 = vld [vmem:[%s7513_s12 + $0x5b0] sm:$0xff] }
 0x4dc   : > { %5100 = vmatpush1.bf16.msra.mxu1 %v2704_v19  ;;  %5060 = vmatprep.subr.bf16.mxu0 %v2637_v25  ;;  %v1856_v19 = vld [vmem:[%s7513_s12 + $0x6b0] sm:$0xff]  ;;  %v2680_v25 = vunpack.c.h.s8.bf16 %v1824_v12 }
 0x4dd   : > { %5101 = vmatprep.subr.bf16.mxu1 %v2701_v5  ;;  %v2744_v5 = vunpack.c.h.s8.bf16 %v1856_v19 }
 0x4df   : > { %5061 = vmatpush1.bf16.msra.mxu0 %v2636_v1  ;;  %v1821_v1 = vld [vmem:[%s7513_s12 + $0x598] sm:$0xff] }
 0x4e0   : > { %5102 = vmatpush1.bf16.msra.mxu1 %v2700_v7  ;;  %5062 = vmatprep.subr.bf16.mxu0 %v2697_v17  ;;  %v1853_v7 = vld [vmem:[%s7513_s12 + $0x698] sm:$0xff]  ;;  %v2676_v17 = vunpack.c.l.s8.bf16 %v1824_v12  ;;  %v2673_v57 = vunpack.c.h.s8.bf16 %v1821_v1  ;;  %v2669_v11 = vunpack.c.l.s8.bf16 %v1821_v1 }
 0x4e1   : > { %5103 = vmatprep.subr.bf16.mxu1 %v2761_v36  ;;  %v2740_v36 = vunpack.c.l.s8.bf16 %v1856_v19  ;;  %v2737_v42 = vunpack.c.h.s8.bf16 %v1853_v7  ;;  %v2733_v29 = vunpack.c.l.s8.bf16 %v1853_v7  ;;  %v1876_v7 = vld [vmem:[%s7513_s12 + $0x750] sm:$0xff] }
 0x4e3   : > { %5063 = vmatpush2.bf16.msra.mxu0 %v2696_v56  ;;  %v1820_v56 = vld [vmem:[%s7513_s12 + $0x590] sm:$0xff] }
 0x4e4   : > { %5104 = vmatpush2.bf16.msra.mxu1 %v2760_v26  ;;  %5064 = vmatprep.subr.bf16.mxu0 %v2693_v22  ;;  %v1852_v26 = vld [vmem:[%s7513_s12 + $0x690] sm:$0xff]  ;;  %v2672_v22 = vunpack.c.h.s8.bf16 %v1820_v56 }
 0x4e5   : > { %5105 = vmatprep.subr.bf16.mxu1 %v2757_v46  ;;  %v2736_v46 = vunpack.c.h.s8.bf16 %v1852_v26 }
 0x4e7   : > { %5065 = vmatpush2.bf16.msra.mxu0 %v2692_v2  ;;  %v1881_v2 = vld [vmem:[%s7513_s12 + $0x778] sm:$0xff] }
 0x4e8   : > { %5106 = vmatpush2.bf16.msra.mxu1 %v2756_v39  ;;  %5066 = vmatprep.subr.bf16.mxu0 %v2689_v43  ;;  %v1913_v39 = vld [vmem:[%s7513_s12 + $0x878] sm:$0xff]  ;;  %v2668_v43 = vunpack.c.l.s8.bf16 %v1820_v56  ;;  %v2793_v16 = vunpack.c.h.s8.bf16 %v1881_v2  ;;  %v2789_v58 = vunpack.c.l.s8.bf16 %v1881_v2 }
 0x4e9   : > { %5107 = vmatprep.subr.bf16.mxu1 %v2753_v28  ;;  %v2732_v28 = vunpack.c.l.s8.bf16 %v1852_v26  ;;  %v2857_v27 = vunpack.c.h.s8.bf16 %v1913_v39  ;;  %v2853_v30 = vunpack.c.l.s8.bf16 %v1913_v39  ;;  %v1872_v39 = vld [vmem:[%s7513_s12 + $0x730] sm:$0xff] }
 0x4eb   : > { %5067 = vmatpush2.bf16.msra.mxu0 %v2688_v3  ;;  %v1880_v3 = vld [vmem:[%s7513_s12 + $0x770] sm:$0xff] }
 0x4ec   : > { %5108 = vmatpush2.bf16.msra.mxu1 %v2752_v48  ;;  %5068 = vmatprep.subr.bf16.mxu0 %v2685_v4  ;;  %v1912_v48 = vld [vmem:[%s7513_s12 + $0x870] sm:$0xff]  ;;  %v2792_v4 = vunpack.c.h.s8.bf16 %v1880_v3  ;;  %v2788_v19 = vunpack.c.l.s8.bf16 %v1880_v3 }
 0x4ed   : > { %5109 = vmatprep.subr.bf16.mxu1 %v2749_v40  ;;  %v2856_v40 = vunpack.c.h.s8.bf16 %v1912_v48 }
 0x4ef   : > { %5069 = vmatpush2.bf16.msra.mxu0 %v2684_v21  ;;  %v1877_v21 = vld [vmem:[%s7513_s12 + $0x758] sm:$0xff] }
 0x4f0   : > { %5110 = vmatpush2.bf16.msra.mxu1 %v2748_v9  ;;  %5070 = vmatprep.subr.bf16.mxu0 %v2681_v34  ;;  %v1909_v9 = vld [vmem:[%s7513_s12 + $0x858] sm:$0xff] }
 0x4f1   : > { %5111 = vmatprep.subr.bf16.mxu1 %v2745_v33  ;;  %v2849_v1 = vunpack.c.h.s8.bf16 %v1909_v9 }
 0x4f3   : > { %5071 = vmatpush2.bf16.msra.mxu0 %v2680_v25  ;;  %v2852_v25 = vunpack.c.l.s8.bf16 %v1912_v48  ;;  %v1869_v48 = vld [vmem:[%s7513_s12 + $0x718] sm:$0xff] }
 0x4f4   : > { %5112 = vmatpush2.bf16.msra.mxu1 %v2744_v5  ;;  %5072 = vmatprep.subr.bf16.mxu0 %v2677_v49 }
 0x4f5   : > { %5113 = vmatprep.subr.bf16.mxu1 %v2741_v13  ;;  %v2785_v13 = vunpack.c.h.s8.bf16 %v1877_v21 }
 0x4f7   : > { %5073 = vmatpush2.bf16.msra.mxu0 %v2676_v17  ;;  %v1908_v17 = vld [vmem:[%s7513_s12 + $0x850] sm:$0xff] }
 0x4f8   : > { %5114 = vmatpush2.bf16.msra.mxu1 %v2740_v36  ;;  %5074 = vmatprep.subr.bf16.mxu0 %v2673_v57  ;;  %v2784_v57 = vunpack.c.h.s8.bf16 %v1876_v7 }
 0x4f9   : > { %5115 = vmatprep.subr.bf16.mxu1 %v2737_v42  ;;  %v2848_v42 = vunpack.c.h.s8.bf16 %v1908_v17 }
 0x4fb   : > { %5075 = vmatpush2.bf16.msra.mxu0 %v2672_v22  ;;  %v1873_v22 = vld [vmem:[%s7513_s12 + $0x738] sm:$0xff] }
 0x4fc   : > { %5116 = vmatpush2.bf16.msra.mxu1 %v2736_v46  ;;  %5076 = vmatprep.subr.bf16.mxu0 %v2669_v11  ;;  %v1905_v46 = vld [vmem:[%s7513_s12 + $0x838] sm:$0xff]  ;;  %v2844_v11 = vunpack.c.l.s8.bf16 %v1908_v17 }
 0x4fd   : > { %5117 = vmatprep.subr.bf16.mxu1 %v2733_v29  ;;  %v2777_v29 = vunpack.c.h.s8.bf16 %v1873_v22  ;;  %v2841_v2 = vunpack.c.h.s8.bf16 %v1905_v46  ;;  %v2837_v3 = vunpack.c.l.s8.bf16 %v1905_v46  ;;  %v1893_v46 = vld [vmem:[%s7513_s12 + $0x7d8] sm:$0xff] }
 0x4ff   : > { %5077 = vmatpush2.bf16.msra.mxu0 %v2668_v43  ;;  %v1904_v43 = vld [vmem:[%s7513_s12 + $0x830] sm:$0xff] }
 0x500   : > { %5118 = vmatpush2.bf16.msra.mxu1 %v2732_v28  ;;  %5128 = vmatprep.subr.bf16.mxu0 %v2793_v16  ;;  %v2776_v28 = vunpack.c.h.s8.bf16 %v1872_v39  ;;  %v2840_v16 = vunpack.c.h.s8.bf16 %v1904_v43 }
 0x501   : > { %5169 = vmatprep.subr.bf16.mxu1 %v2857_v27  ;;  %v2773_v27 = vunpack.c.l.s8.bf16 %v1873_v22 }
 0x502   : > { %v4834_v34 = vpop.f32.mrf.mxu0  ;;  %5079 = vmatmul.mubr.bf16.vlgmr.msra.gmra.mxu0 %v7709_v8 }
 0x503   : > { %v8329_v33 = vpop.f32.mrf.mxu1  ;;  %5120 = vmatmul.mubr.bf16.vlgmr.msra.gmra.mxu1 %v7760_v10  ;;  %v8334_v12 = vadd.f32 %v4834_v34, %v8292_v60  ;;  %5129 = vmatpush1.bf16.msra.mxu0 %v2792_v4  ;;  %v1901_v4 = vld [vmem:[%s7513_s12 + $0x818] sm:$0xff]  ;;  %v1900_v34 = vld [vmem:[%s7513_s12 + $0x810] sm:$0xff] }
 0x504   : > { %5170 = vmatpush1.bf16.msra.mxu1 %v2856_v40  ;;  %v4836_v5 = vpop.f32.mrf.mxu0  ;;  %5130 = vmatprep.subr.bf16.mxu0 %v2789_v58  ;;  %v2772_v40 = vunpack.c.l.s8.bf16 %v1872_v39  ;;  %v2836_v58 = vunpack.c.l.s8.bf16 %v1904_v43  ;;  %v1892_v43 = vld [vmem:[%s7513_s12 + $0x7d0] sm:$0xff] }
 0x505   : > { %v8336_v49 = vpop.f32.mrf.mxu1  ;;  %5171 = vmatprep.subr.bf16.mxu1 %v2853_v30  ;;  %v8341_v8 = vadd.f32 %v4836_v5, %v8297_v41  ;;  %5160 = vmatprep.mubr.bf16.mxu0 %v7715_v23  ;;  %v2781_v41 = vunpack.c.l.s8.bf16 %v1877_v21  ;;  %v2845_v23 = vunpack.c.l.s8.bf16 %v1909_v9  ;;  %v2769_v30 = vunpack.c.h.s8.bf16 %v1869_v48  ;;  %v1868_v9 = vld [vmem:[%s7513_s12 + $0x710] sm:$0xff] }
 0x506   : > { %5201 = vmatprep.mubr.bf16.mxu1 %v7765_v24  ;;  %v4838_v10 = vpop.f32.mrf.mxu0  ;;  %v2780_v24 = vunpack.c.l.s8.bf16 %v1876_v7  ;;  %v2833_v21 = vunpack.c.h.s8.bf16 %v1901_v4  ;;  %v2765_v5 = vunpack.c.l.s8.bf16 %v1869_v48  ;;  %v1929_v7 = vld [vmem:[%s7513_s12 + $0x8f8] sm:$0xff]  ;;  %v2764_v17 = vunpack.c.l.s8.bf16 %v1868_v9 }
 0x507   : > { %v4879_v60 = vpop.f32.mrf.mxu1  ;;  %v5706_v36 = vcombine.low %v8334_v12, %v8341_v8  ;;  %5131 = vmatpush1.bf16.msra.mxu0 %v2788_v19  ;;  %v2768_v19 = vunpack.c.h.s8.bf16 %v1868_v9  ;;  %v2828_v10 = vunpack.c.l.s8.bf16 %v1900_v34  ;;  %v2885_v22 = vunpack.c.l.s8.bf16 %v1929_v7 }
 0x508   : > { %5172 = vmatpush1.bf16.msra.mxu1 %v2852_v25  ;;  %v4839_v56 = vpop.f32.mrf.mxu0  ;;  %5132 = vmatprep.subr.bf16.mxu0 %v2785_v13  ;;  %v2832_v25 = vunpack.c.h.s8.bf16 %v1900_v34  ;;  %v2829_v13 = vunpack.c.l.s8.bf16 %v1901_v4  ;;  %v1889_v4 = vld [vmem:[%s7513_s12 + $0x7b8] sm:$0xff]  ;;  %v1888_v34 = vld [vmem:[%s7513_s12 + $0x7b0] sm:$0xff] }
 0x509   : > { %v4880_v26 = vpop.f32.mrf.mxu1  ;;  %5173 = vmatprep.subr.bf16.mxu1 %v2849_v1  ;;  %v1897_v1 = vld [vmem:[%s7513_s12 + $0x7f8] sm:$0xff]  ;;  %v1928_v56 = vld [vmem:[%s7513_s12 + $0x8f0] sm:$0xff] }
 0x50a   : > { %v2825_v60 = vunpack.c.h.s8.bf16 %v1897_v1 }
 0x50b   : > { %5133 = vmatpush1.bf16.msra.mxu0 %v2784_v57  ;;  %v2889_v57 = vunpack.c.h.s8.bf16 %v1929_v7  ;;  %v1885_v7 = vld [vmem:[%s7513_s12 + $0x798] sm:$0xff] }
 0x50c   : > { %5174 = vmatpush1.bf16.msra.mxu1 %v2848_v42  ;;  %5134 = vmatprep.subr.bf16.mxu0 %v2781_v41  ;;  %v1896_v42 = vld [vmem:[%s7513_s12 + $0x7f0] sm:$0xff]  ;;  %v2888_v41 = vunpack.c.h.s8.bf16 %v1928_v56 }
 0x50d   : > { %5175 = vmatprep.subr.bf16.mxu1 %v2845_v23  ;;  %v2824_v26 = vunpack.c.h.s8.bf16 %v1896_v42  ;;  %v2821_v23 = vunpack.c.l.s8.bf16 %v1897_v1 }
 0x50f   : > { %5135 = vmatpush1.bf16.msra.mxu0 %v2780_v24  ;;  %v1925_v24 = vld [vmem:[%s7513_s12 + $0x8d8] sm:$0xff] }
 0x510   : > { %5176 = vmatpush1.bf16.msra.mxu1 %v2844_v11  ;;  %5136 = vmatprep.subr.bf16.mxu0 %v2777_v29  ;;  %v2820_v11 = vunpack.c.l.s8.bf16 %v1896_v42  ;;  %v2884_v29 = vunpack.c.l.s8.bf16 %v1928_v56  ;;  %v2881_v39 = vunpack.c.h.s8.bf16 %v1925_v24  ;;  %v2877_v48 = vunpack.c.l.s8.bf16 %v1925_v24  ;;  %v1884_v56 = vld [vmem:[%s7513_s12 + $0x790] sm:$0xff]  ;;  %v1945_v24 = vld [vmem:[%s7513_s12 + $0x978] sm:$0xff] }
 0x511   : > { %5177 = vmatprep.subr.bf16.mxu1 %v2841_v2  ;;  %v2817_v2 = vunpack.c.h.s8.bf16 %v1893_v46 }
 0x513   : > { %5137 = vmatpush1.bf16.msra.mxu0 %v2776_v28  ;;  %v1924_v28 = vld [vmem:[%s7513_s12 + $0x8d0] sm:$0xff] }
 0x514   : > { %5178 = vmatpush1.bf16.msra.mxu1 %v2840_v16  ;;  %5138 = vmatprep.subr.bf16.mxu0 %v2773_v27  ;;  %v2816_v16 = vunpack.c.h.s8.bf16 %v1892_v43  ;;  %v2880_v27 = vunpack.c.h.s8.bf16 %v1924_v28 }
 0x515   : > { %5179 = vmatprep.subr.bf16.mxu1 %v2837_v3  ;;  %v2813_v3 = vunpack.c.l.s8.bf16 %v1893_v46 }
 0x517   : > { %5139 = vmatpush1.bf16.msra.mxu0 %v2772_v40  ;;  %v1921_v40 = vld [vmem:[%s7513_s12 + $0x8b8] sm:$0xff] }
 0x518   : > { %5180 = vmatpush1.bf16.msra.mxu1 %v2836_v58  ;;  %5140 = vmatprep.subr.bf16.mxu0 %v2769_v30  ;;  %v2812_v58 = vunpack.c.l.s8.bf16 %v1892_v43  ;;  %v2876_v30 = vunpack.c.l.s8.bf16 %v1924_v28  ;;  %v2873_v9 = vunpack.c.h.s8.bf16 %v1921_v40  ;;  %v2869_v1 = vunpack.c.l.s8.bf16 %v1921_v40  ;;  %v1944_v28 = vld [vmem:[%s7513_s12 + $0x970] sm:$0xff]  ;;  %v1941_v40 = vld [vmem:[%s7513_s12 + $0x958] sm:$0xff] }
 0x519   : > { %5181 = vmatprep.subr.bf16.mxu1 %v2833_v21  ;;  %v2809_v21 = vunpack.c.h.s8.bf16 %v1889_v4 }
 0x51b   : > { %5141 = vmatpush1.bf16.msra.mxu0 %v2768_v19  ;;  %v1920_v19 = vld [vmem:[%s7513_s12 + $0x8b0] sm:$0xff] }
 0x51c   : > { %5182 = vmatpush1.bf16.msra.mxu1 %v2832_v25  ;;  %5142 = vmatprep.subr.bf16.mxu0 %v2765_v5  ;;  %v2808_v25 = vunpack.c.h.s8.bf16 %v1888_v34  ;;  %v2872_v5 = vunpack.c.h.s8.bf16 %v1920_v19 }
 0x51d   : > { %5183 = vmatprep.subr.bf16.mxu1 %v2829_v13  ;;  %v2805_v13 = vunpack.c.l.s8.bf16 %v1889_v4 }
 0x51f   : > { %5143 = vmatpush1.bf16.msra.mxu0 %v2764_v17  ;;  %v1917_v17 = vld [vmem:[%s7513_s12 + $0x898] sm:$0xff] }
 0x520   : > { %5184 = vmatpush1.bf16.msra.mxu1 %v2828_v10  ;;  %5144 = vmatprep.subr.bf16.mxu0 %v2825_v60  ;;  %v2804_v10 = vunpack.c.l.s8.bf16 %v1888_v34  ;;  %v2868_v60 = vunpack.c.l.s8.bf16 %v1920_v19  ;;  %v2865_v42 = vunpack.c.h.s8.bf16 %v1917_v17  ;;  %v2861_v46 = vunpack.c.l.s8.bf16 %v1917_v17  ;;  %v1972_v17 = vld [vmem:[%s7513_s12 + $0xa50] sm:$0xff] }
 0x521   : > { %5185 = vmatprep.subr.bf16.mxu1 %v2889_v57  ;;  %v2801_v57 = vunpack.c.h.s8.bf16 %v1885_v7  ;;  %v2916_v34 = vunpack.c.l.s8.bf16 %v1944_v28 }
 0x523   : > { %5145 = vmatpush2.bf16.msra.mxu0 %v2824_v26  ;;  %v1916_v26 = vld [vmem:[%s7513_s12 + $0x890] sm:$0xff] }
 0x524   : > { %5186 = vmatpush2.bf16.msra.mxu1 %v2888_v41  ;;  %5146 = vmatprep.subr.bf16.mxu0 %v2821_v23  ;;  %v2800_v41 = vunpack.c.h.s8.bf16 %v1884_v56  ;;  %v2864_v23 = vunpack.c.h.s8.bf16 %v1916_v26 }
 0x525   : > { %5187 = vmatprep.subr.bf16.mxu1 %v2885_v22  ;;  %v2797_v22 = vunpack.c.l.s8.bf16 %v1885_v7  ;;  %v1940_v7 = vld [vmem:[%s7513_s12 + $0x950] sm:$0xff] }
 0x527   : > { %5147 = vmatpush2.bf16.msra.mxu0 %v2820_v11  ;;  %v1977_v11 = vld [vmem:[%s7513_s12 + $0xa78] sm:$0xff] }
 0x528   : > { %5188 = vmatpush2.bf16.msra.mxu1 %v2884_v29  ;;  %5148 = vmatprep.subr.bf16.mxu0 %v2817_v2  ;;  %v2796_v29 = vunpack.c.l.s8.bf16 %v1884_v56  ;;  %v2860_v2 = vunpack.c.l.s8.bf16 %v1916_v26  ;;  %v2985_v43 = vunpack.c.h.s8.bf16 %v1977_v11  ;;  %v2981_v4 = vunpack.c.l.s8.bf16 %v1977_v11  ;;  %v1936_v11 = vld [vmem:[%s7513_s12 + $0x930] sm:$0xff] }
 0x529   : > { %5189 = vmatprep.subr.bf16.mxu1 %v2881_v39  ;;  %v2921_v39 = vunpack.c.h.s8.bf16 %v1945_v24 }
 0x52b   : > { %5149 = vmatpush2.bf16.msra.mxu0 %v2816_v16  ;;  %v1976_v16 = vld [vmem:[%s7513_s12 + $0xa70] sm:$0xff] }
 0x52c   : > { %5190 = vmatpush2.bf16.msra.mxu1 %v2880_v27  ;;  %5150 = vmatprep.subr.bf16.mxu0 %v2813_v3  ;;  %v2920_v27 = vunpack.c.h.s8.bf16 %v1944_v28  ;;  %v2984_v3 = vunpack.c.h.s8.bf16 %v1976_v16  ;;  %v2980_v19 = vunpack.c.l.s8.bf16 %v1976_v16  ;;  %v1933_v16 = vld [vmem:[%s7513_s12 + $0x918] sm:$0xff] }
 0x52d   : > { %5191 = vmatprep.subr.bf16.mxu1 %v2877_v48  ;;  %v2917_v48 = vunpack.c.l.s8.bf16 %v1945_v24 }
 0x52f   : > { %5151 = vmatpush2.bf16.msra.mxu0 %v2812_v58  ;;  %v1973_v58 = vld [vmem:[%s7513_s12 + $0xa58] sm:$0xff] }
 0x530   : > { %5192 = vmatpush2.bf16.msra.mxu1 %v2876_v30  ;;  %5152 = vmatprep.subr.bf16.mxu0 %v2809_v21 }
 0x531   : > { %5193 = vmatprep.subr.bf16.mxu1 %v2873_v9 }
 0x533   : > { %5153 = vmatpush2.bf16.msra.mxu0 %v2808_v25 }
 0x534   : > { %5194 = vmatpush2.bf16.msra.mxu1 %v2872_v5  ;;  %5154 = vmatprep.subr.bf16.mxu0 %v2805_v13  ;;  %v2913_v13 = vunpack.c.h.s8.bf16 %v1941_v40 }
 0x535   : > { %5195 = vmatprep.subr.bf16.mxu1 %v2869_v1  ;;  %v2977_v1 = vunpack.c.h.s8.bf16 %v1973_v58 }
 0x537   : > { %5155 = vmatpush2.bf16.msra.mxu0 %v2804_v10 }
 0x538   : > { %5196 = vmatpush2.bf16.msra.mxu1 %v2868_v60  ;;  %5156 = vmatprep.subr.bf16.mxu0 %v2801_v57  ;;  %v2912_v57 = vunpack.c.h.s8.bf16 %v1940_v7 }
 0x539   : > { %5197 = vmatprep.subr.bf16.mxu1 %v2865_v42  ;;  %v2976_v42 = vunpack.c.h.s8.bf16 %v1972_v17 }
 0x53b   : > { %5157 = vmatpush2.bf16.msra.mxu0 %v2800_v41  ;;  %v2973_v41 = vunpack.c.l.s8.bf16 %v1973_v58  ;;  %v1932_v58 = vld [vmem:[%s7513_s12 + $0x910] sm:$0xff] }
 0x53c   : > { %5198 = vmatpush2.bf16.msra.mxu1 %v2864_v23  ;;  %5158 = vmatprep.subr.bf16.mxu0 %v2797_v22  ;;  %v1969_v23 = vld [vmem:[%s7513_s12 + $0xa38] sm:$0xff]  ;;  %v2972_v22 = vunpack.c.l.s8.bf16 %v1972_v17 }
 0x53d   : > { %5199 = vmatprep.subr.bf16.mxu1 %v2861_v46  ;;  %v2969_v24 = vunpack.c.h.s8.bf16 %v1969_v23  ;;  %v2965_v28 = vunpack.c.l.s8.bf16 %v1969_v23 }
 0x53f   : > { %5159 = vmatpush2.bf16.msra.mxu0 %v2796_v29  ;;  %v1968_v29 = vld [vmem:[%s7513_s12 + $0xa30] sm:$0xff] }
 0x540   : > { %5200 = vmatpush2.bf16.msra.mxu1 %v2860_v2  ;;  %5210 = vmatprep.subr.bf16.mxu0 %v2921_v39  ;;  %v2904_v2 = vunpack.c.h.s8.bf16 %v1936_v11  ;;  %v2968_v39 = vunpack.c.h.s8.bf16 %v1968_v29 }
 0x541   : > { %5251 = vmatprep.subr.bf16.mxu1 %v2985_v43 }
 0x542   : > { %v4916_v30 = vpop.f32.mrf.mxu0  ;;  %5161 = vmatmul.mubr.bf16.vlgmr.msra.gmra.mxu0 %v7769_v18 }
 0x543   : > { %v4957_v21 = vpop.f32.mrf.mxu1  ;;  %5202 = vmatmul.mubr.bf16.vlgmr.msra.gmra.mxu1 %v7822_v53  ;;  %v4917_v9 = vadd.f32 %v4916_v30, %v8329_v33  ;;  %5211 = vmatpush1.bf16.msra.mxu0 %v2920_v27  ;;  %v1965_v27 = vld [vmem:[%s7513_s12 + $0xa18] sm:$0xff]  ;;  %v1964_v30 = vld [vmem:[%s7513_s12 + $0xa10] sm:$0xff] }
 0x544   : > { %5252 = vmatpush1.bf16.msra.mxu1 %v2984_v3  ;;  %v4918_v25 = vpop.f32.mrf.mxu0  ;;  %5212 = vmatprep.subr.bf16.mxu0 %v2917_v48  ;;  %v2900_v3 = vunpack.c.l.s8.bf16 %v1936_v11  ;;  %v2964_v48 = vunpack.c.l.s8.bf16 %v1968_v29 }
 0x545   : > { %v4959_v5 = vpop.f32.mrf.mxu1  ;;  %5253 = vmatprep.subr.bf16.mxu1 %v2981_v4  ;;  %v8382_v10 = vadd.f32 %v4957_v21, %v4917_v9  ;;  %v4919_v18 = vadd.f32 %v4918_v25, %v8336_v49  ;;  %5242 = vmatprep.mubr.bf16.mxu0 %v7775_v35  ;;  %v2909_v49 = vunpack.c.l.s8.bf16 %v1941_v40  ;;  %v1937_v35 = vld [vmem:[%s7513_s12 + $0x938] sm:$0xff]  ;;  %v2897_v4 = vunpack.c.h.s8.bf16 %v1933_v16 }
 0x546   : > { %5283 = vmatprep.mubr.bf16.mxu1 %v7827_v63  ;;  %v4920_v53 = vpop.f32.mrf.mxu0  ;;  %v2908_v63 = vunpack.c.l.s8.bf16 %v1940_v7  ;;  %v2905_v46 = vunpack.c.h.s8.bf16 %v1937_v35  ;;  %v2901_v43 = vunpack.c.l.s8.bf16 %v1937_v35  ;;  %v2961_v40 = vunpack.c.h.s8.bf16 %v1965_v27  ;;  %v1961_v25 = vld [vmem:[%s7513_s12 + $0x9f8] sm:$0xff] }
 0x547   : > { %v4961_v33 = vpop.f32.mrf.mxu1  ;;  %v8387_v60 = vadd.f32 %v4959_v5, %v4919_v18  ;;  %5213 = vmatpush1.bf16.msra.mxu0 %v2916_v34  ;;  %v2896_v21 = vunpack.c.h.s8.bf16 %v1932_v58  ;;  %v2960_v9 = vunpack.c.h.s8.bf16 %v1964_v30  ;;  %v2893_v34 = vunpack.c.l.s8.bf16 %v1933_v16  ;;  %v1993_v5 = vld [vmem:[%s7513_s12 + $0xaf8] sm:$0xff]  ;;  %v1960_v18 = vld [vmem:[%s7513_s12 + $0x9f0] sm:$0xff] }
 0x548   : > { %5254 = vmatpush1.bf16.msra.mxu1 %v2980_v19  ;;  %v4921_v56 = vpop.f32.mrf.mxu0  ;;  %5214 = vmatprep.subr.bf16.mxu0 %v2913_v13  ;;  %v2957_v19 = vunpack.c.l.s8.bf16 %v1965_v27  ;;  %v2892_v13 = vunpack.c.l.s8.bf16 %v1932_v58  ;;  %v2953_v7 = vunpack.c.h.s8.bf16 %v1961_v25  ;;  %v3017_v17 = vunpack.c.h.s8.bf16 %v1993_v5  ;;  %v1992_v53 = vld [vmem:[%s7513_s12 + $0xaf0] sm:$0xff] }
 0x549   : > { %v4962_v26 = vpop.f32.mrf.mxu1  ;;  %5255 = vmatprep.subr.bf16.mxu1 %v2977_v1  ;;  %v2956_v1 = vunpack.c.l.s8.bf16 %v1964_v30  ;;  %v2952_v33 = vunpack.c.h.s8.bf16 %v1960_v18  ;;  %v3013_v56 = vunpack.c.l.s8.bf16 %v1993_v5  ;;  %v3012_v35 = vunpack.c.l.s8.bf16 %v1992_v53 }
 0x54a   : > { %v1957_v26 = vld [vmem:[%s7513_s12 + $0x9d8] sm:$0xff] }
 0x54b   : > { %5215 = vmatpush1.bf16.msra.mxu0 %v2912_v57  ;;  %v3016_v57 = vunpack.c.h.s8.bf16 %v1992_v53  ;;  %v2945_v23 = vunpack.c.h.s8.bf16 %v1957_v26  ;;  %v2941_v29 = vunpack.c.l.s8.bf16 %v1957_v26 }
 0x54c   : > { %5256 = vmatpush1.bf16.msra.mxu1 %v2976_v42  ;;  %5216 = vmatprep.subr.bf16.mxu0 %v2909_v49  ;;  %v2949_v42 = vunpack.c.l.s8.bf16 %v1961_v25  ;;  %v1989_v49 = vld [vmem:[%s7513_s12 + $0xad8] sm:$0xff] }
 0x54d   : > { %5257 = vmatprep.subr.bf16.mxu1 %v2973_v41  ;;  %v2948_v41 = vunpack.c.l.s8.bf16 %v1960_v18 }
 0x54f   : > { %5217 = vmatpush1.bf16.msra.mxu0 %v2908_v63  ;;  %v3009_v63 = vunpack.c.h.s8.bf16 %v1989_v49 }
 0x550   : > { %5258 = vmatpush1.bf16.msra.mxu1 %v2972_v22  ;;  %5218 = vmatprep.subr.bf16.mxu0 %v2905_v46  ;;  %v1956_v22 = vld [vmem:[%s7513_s12 + $0x9d0] sm:$0xff] }
 0x551   : > { %5259 = vmatprep.subr.bf16.mxu1 %v2969_v24  ;;  %v1988_v46 = vld [vmem:[%s7513_s12 + $0xad0] sm:$0xff]  ;;  %v2944_v24 = vunpack.c.h.s8.bf16 %v1956_v22 }
 0x552   : > { %v3008_v11 = vunpack.c.h.s8.bf16 %v1988_v46  ;;  %v3004_v16 = vunpack.c.l.s8.bf16 %v1988_v46 }
 0x553   : > { %5219 = vmatpush1.bf16.msra.mxu0 %v2904_v2  ;;  %v3005_v2 = vunpack.c.l.s8.bf16 %v1989_v49 }
 0x554   : > { %5260 = vmatpush1.bf16.msra.mxu1 %v2968_v39  ;;  %5220 = vmatprep.subr.bf16.mxu0 %v2901_v43  ;;  %v1953_v39 = vld [vmem:[%s7513_s12 + $0x9b8] sm:$0xff] }
 0x555   : > { %5261 = vmatprep.subr.bf16.mxu1 %v2965_v28  ;;  %v1985_v43 = vld [vmem:[%s7513_s12 + $0xab8] sm:$0xff]  ;;  %v2940_v28 = vunpack.c.l.s8.bf16 %v1956_v22  ;;  %v2937_v27 = vunpack.c.h.s8.bf16 %v1953_v39  ;;  %v2933_v30 = vunpack.c.l.s8.bf16 %v1953_v39 }
 0x557   : > { %5221 = vmatpush1.bf16.msra.mxu0 %v2900_v3  ;;  %v3001_v3 = vunpack.c.h.s8.bf16 %v1985_v43 }
 0x558   : > { %5262 = vmatpush1.bf16.msra.mxu1 %v2964_v48  ;;  %5222 = vmatprep.subr.bf16.mxu0 %v2897_v4  ;;  %v1952_v48 = vld [vmem:[%s7513_s12 + $0x9b0] sm:$0xff] }
 0x559   : > { %5263 = vmatprep.subr.bf16.mxu1 %v2961_v40  ;;  %v1984_v4 = vld [vmem:[%s7513_s12 + $0xab0] sm:$0xff]  ;;  %v2936_v40 = vunpack.c.h.s8.bf16 %v1952_v48 }
 0x55a   : > { %v3000_v58 = vunpack.c.h.s8.bf16 %v1984_v4  ;;  %v2996_v25 = vunpack.c.l.s8.bf16 %v1984_v4 }
 0x55b   : > { %5223 = vmatpush1.bf16.msra.mxu0 %v2896_v21  ;;  %v2997_v21 = vunpack.c.l.s8.bf16 %v1985_v43 }
 0x55c   : > { %5264 = vmatpush1.bf16.msra.mxu1 %v2960_v9  ;;  %5224 = vmatprep.subr.bf16.mxu0 %v2893_v34  ;;  %v1949_v9 = vld [vmem:[%s7513_s12 + $0x998] sm:$0xff] }
 0x55d   : > { %5265 = vmatprep.subr.bf16.mxu1 %v2957_v19  ;;  %v1981_v34 = vld [vmem:[%s7513_s12 + $0xa98] sm:$0xff]  ;;  %v2932_v19 = vunpack.c.l.s8.bf16 %v1952_v48  ;;  %v2929_v5 = vunpack.c.h.s8.bf16 %v1949_v9  ;;  %v2925_v53 = vunpack.c.l.s8.bf16 %v1949_v9 }
 0x55f   : > { %5225 = vmatpush1.bf16.msra.mxu0 %v2892_v13  ;;  %v2993_v13 = vunpack.c.h.s8.bf16 %v1981_v34 }
 0x560   : > { %5266 = vmatpush1.bf16.msra.mxu1 %v2956_v1  ;;  %5226 = vmatprep.subr.bf16.mxu0 %v2953_v7  ;;  %v1948_v1 = vld [vmem:[%s7513_s12 + $0x990] sm:$0xff] }
 0x561   : > { %5267 = vmatprep.subr.bf16.mxu1 %v3017_v17  ;;  %v1980_v7 = vld [vmem:[%s7513_s12 + $0xa90] sm:$0xff]  ;;  %v2928_v17 = vunpack.c.h.s8.bf16 %v1948_v1 }
 0x562   : > { %v2992_v18 = vunpack.c.h.s8.bf16 %v1980_v7  ;;  %v2988_v26 = vunpack.c.l.s8.bf16 %v1980_v7 }
 0x563   : > { %5227 = vmatpush2.bf16.msra.mxu0 %v2952_v33  ;;  %v2989_v33 = vunpack.c.l.s8.bf16 %v1981_v34 }
 0x564   : > { %5268 = vmatpush2.bf16.msra.mxu1 %v3016_v57  ;;  %5228 = vmatprep.subr.bf16.mxu0 %v2949_v42  ;;  %v2009_v57 = vld [vmem:[%s7513_s12 + $0xb78] sm:$0xff] }
 0x565   : > { %5269 = vmatprep.subr.bf16.mxu1 %v3013_v56  ;;  %v2041_v42 = vld [vmem:[%s7513_s12 + $0xc78] sm:$0xff]  ;;  %v2924_v56 = vunpack.c.l.s8.bf16 %v1948_v1  ;;  %v3049_v49 = vunpack.c.h.s8.bf16 %v2009_v57  ;;  %v3045_v46 = vunpack.c.l.s8.bf16 %v2009_v57 }
 0x567   : > { %5229 = vmatpush2.bf16.msra.mxu0 %v2948_v41  ;;  %v3113_v41 = vunpack.c.h.s8.bf16 %v2041_v42 }
 0x568   : > { %5270 = vmatpush2.bf16.msra.mxu1 %v3012_v35  ;;  %5230 = vmatprep.subr.bf16.mxu0 %v2945_v23  ;;  %v2008_v35 = vld [vmem:[%s7513_s12 + $0xb70] sm:$0xff] }
 0x569   : > { %5271 = vmatprep.subr.bf16.mxu1 %v3009_v63  ;;  %v2040_v23 = vld [vmem:[%s7513_s12 + $0xc70] sm:$0xff]  ;;  %v3048_v63 = vunpack.c.h.s8.bf16 %v2008_v35 }
 0x56a   : > { %v3112_v22 = vunpack.c.h.s8.bf16 %v2040_v23 }
 0x56b   : > { %5231 = vmatpush2.bf16.msra.mxu0 %v2944_v24  ;;  %v3109_v24 = vunpack.c.l.s8.bf16 %v2041_v42 }
 0x56c   : > { %5272 = vmatpush2.bf16.msra.mxu1 %v3008_v11  ;;  %5232 = vmatprep.subr.bf16.mxu0 %v2941_v29  ;;  %v2005_v11 = vld [vmem:[%s7513_s12 + $0xb58] sm:$0xff] }
 0x56d   : > { %5273 = vmatprep.subr.bf16.mxu1 %v3005_v2  ;;  %v2037_v29 = vld [vmem:[%s7513_s12 + $0xc58] sm:$0xff]  ;;  %v3041_v48 = vunpack.c.h.s8.bf16 %v2005_v11 }
 0x56e   : > { %v3105_v4 = vunpack.c.h.s8.bf16 %v2037_v29 }
 0x56f   : > { %5233 = vmatpush2.bf16.msra.mxu0 %v2940_v28  ;;  %v3044_v28 = vunpack.c.l.s8.bf16 %v2008_v35 }
 0x570   : > { %5274 = vmatpush2.bf16.msra.mxu1 %v3004_v16  ;;  %5234 = vmatprep.subr.bf16.mxu0 %v2937_v27  ;;  %v3108_v16 = vunpack.c.l.s8.bf16 %v2040_v23 }
 0x571   : > { %5275 = vmatprep.subr.bf16.mxu1 %v3001_v3 }
 0x573   : > { %5235 = vmatpush2.bf16.msra.mxu0 %v2936_v40  ;;  %v2004_v40 = vld [vmem:[%s7513_s12 + $0xb50] sm:$0xff] }
 0x574   : > { %5276 = vmatpush2.bf16.msra.mxu1 %v3000_v58  ;;  %5236 = vmatprep.subr.bf16.mxu0 %v2933_v30  ;;  %v2036_v58 = vld [vmem:[%s7513_s12 + $0xc50] sm:$0xff]  ;;  %v3040_v9 = vunpack.c.h.s8.bf16 %v2004_v40 }
 0x575   : > { %5277 = vmatprep.subr.bf16.mxu1 %v2997_v21  ;;  %v3104_v34 = vunpack.c.h.s8.bf16 %v2036_v58  ;;  %v3100_v1 = vunpack.c.l.s8.bf16 %v2036_v58 }
 0x577   : > { %5237 = vmatpush2.bf16.msra.mxu0 %v2932_v19 }
 0x578   : > { %5278 = vmatpush2.bf16.msra.mxu1 %v2996_v25  ;;  %5238 = vmatprep.subr.bf16.mxu0 %v2929_v5  ;;  %v3101_v5 = vunpack.c.l.s8.bf16 %v2037_v29 }
 0x579   : > { %5279 = vmatprep.subr.bf16.mxu1 %v2993_v13  ;;  %v2033_v13 = vld [vmem:[%s7513_s12 + $0xc38] sm:$0xff] }
 0x57b   : > { %5239 = vmatpush2.bf16.msra.mxu0 %v2928_v17  ;;  %v3097_v17 = vunpack.c.h.s8.bf16 %v2033_v13 }
 0x57c   : > { %5280 = vmatpush2.bf16.msra.mxu1 %v2992_v18  ;;  %5240 = vmatprep.subr.bf16.mxu0 %v2925_v53  ;;  %v2000_v18 = vld [vmem:[%s7513_s12 + $0xb30] sm:$0xff] }
 0x57d   : > { %5281 = vmatprep.subr.bf16.mxu1 %v2989_v33  ;;  %v2032_v53 = vld [vmem:[%s7513_s12 + $0xc30] sm:$0xff]  ;;  %v3032_v33 = vunpack.c.h.s8.bf16 %v2000_v18 }
 0x57e   : > { %v3096_v57 = vunpack.c.h.s8.bf16 %v2032_v53  ;;  %v3092_v35 = vunpack.c.l.s8.bf16 %v2032_v53 }
 0x57f   : > { %5241 = vmatpush2.bf16.msra.mxu0 %v2924_v56  ;;  %v3093_v56 = vunpack.c.l.s8.bf16 %v2033_v13 }
 0x580   : > { %5282 = vmatpush2.bf16.msra.mxu1 %v2988_v26  ;;  %5292 = vmatprep.subr.bf16.mxu0 %v3049_v49  ;;  %v1997_v26 = vld [vmem:[%s7513_s12 + $0xb18] sm:$0xff] }
 0x581   : > { %5333 = vmatprep.subr.bf16.mxu1 %v3113_v41  ;;  %v2029_v49 = vld [vmem:[%s7513_s12 + $0xc18] sm:$0xff]  ;;  %v3028_v41 = vunpack.c.l.s8.bf16 %v2000_v18  ;;  %v3025_v23 = vunpack.c.h.s8.bf16 %v1997_v26  ;;  %v3021_v29 = vunpack.c.l.s8.bf16 %v1997_v26  ;;  %v2048_v26 = vld [vmem:[%s7513_s12 + $0xcb0] sm:$0xff] }
 0x582   : > { %v4998_v2 = vpop.f32.mrf.mxu0  ;;  %5243 = vmatmul.mubr.bf16.vlgmr.msra.gmra.mxu0 %v7831_v0  ;;  %v2049_v18 = vld [vmem:[%s7513_s12 + $0xcb8] sm:$0xff] }
 0x583   : > { %v5039_v39 = vpop.f32.mrf.mxu1  ;;  %5284 = vmatmul.mubr.bf16.vlgmr.msra.gmra.mxu1 %v7888_v50  ;;  %v4999_v43 = vadd.f32 %v4998_v2, %v8382_v10  ;;  %5293 = vmatpush1.bf16.msra.mxu0 %v3048_v63  ;;  %v3089_v63 = vunpack.c.h.s8.bf16 %v2029_v49  ;;  %v3085_v2 = vunpack.c.l.s8.bf16 %v2029_v49 }
 0x584   : > { %5334 = vmatpush1.bf16.msra.mxu1 %v3112_v22  ;;  %v5000_v27 = vpop.f32.mrf.mxu0  ;;  %5294 = vmatprep.subr.bf16.mxu0 %v3045_v46  ;;  %v1996_v22 = vld [vmem:[%s7513_s12 + $0xb10] sm:$0xff] }
 0x585   : > { %v5041_v3 = vpop.f32.mrf.mxu1  ;;  %5335 = vmatprep.subr.bf16.mxu1 %v3109_v24  ;;  %v8424_v30 = vadd.f32 %v5039_v39, %v4999_v43  ;;  %v5001_v0 = vadd.f32 %v5000_v27, %v8387_v60  ;;  %5324 = vmatprep.mubr.bf16.mxu0 %v7837_v59  ;;  %v3037_v60 = vunpack.c.l.s8.bf16 %v2005_v11  ;;  %v2001_v59 = vld [vmem:[%s7513_s12 + $0xb38] sm:$0xff]  ;;  %v2028_v46 = vld [vmem:[%s7513_s12 + $0xc10] sm:$0xff]  ;;  %v3024_v24 = vunpack.c.h.s8.bf16 %v1996_v22 }
 0x586   : > { %5365 = vmatprep.mubr.bf16.mxu1 %v7893_v61  ;;  %v5002_v50 = vpop.f32.mrf.mxu0  ;;  %v3036_v61 = vunpack.c.l.s8.bf16 %v2004_v40  ;;  %v3033_v7 = vunpack.c.h.s8.bf16 %v2001_v59  ;;  %v3029_v42 = vunpack.c.l.s8.bf16 %v2001_v59  ;;  %v3088_v11 = vunpack.c.h.s8.bf16 %v2028_v46  ;;  %v2025_v39 = vld [vmem:[%s7513_s12 + $0xbf8] sm:$0xff]  ;;  %v2052_v59 = vld [vmem:[%s7513_s12 + $0xcd0] sm:$0xff] }
 0x587   : > { %v5043_v10 = vpop.f32.mrf.mxu1  ;;  %v8429_v21 = vadd.f32 %v5041_v3, %v5001_v0  ;;  %5295 = vmatpush1.bf16.msra.mxu0 %v3044_v28  ;;  %v2057_v43 = vld [vmem:[%s7513_s12 + $0xcf8] sm:$0xff]  ;;  %v3020_v28 = vunpack.c.l.s8.bf16 %v1996_v22  ;;  %v3081_v27 = vunpack.c.h.s8.bf16 %v2025_v39  ;;  %v3077_v0 = vunpack.c.l.s8.bf16 %v2025_v39  ;;  %v2044_v39 = vld [vmem:[%s7513_s12 + $0xc90] sm:$0xff] }
 0x588   : > { %5336 = vmatpush1.bf16.msra.mxu1 %v3108_v16  ;;  %v5003_v19 = vpop.f32.mrf.mxu0  ;;  %5296 = vmatprep.subr.bf16.mxu0 %v3041_v48  ;;  %v3084_v16 = vunpack.c.l.s8.bf16 %v2028_v46  ;;  %v3145_v3 = vunpack.c.h.s8.bf16 %v2057_v43  ;;  %v2024_v48 = vld [vmem:[%s7513_s12 + $0xbf0] sm:$0xff]  ;;  %v3141_v50 = vunpack.c.l.s8.bf16 %v2057_v43  ;;  %v2021_v10 = vld [vmem:[%s7513_s12 + $0xbd8] sm:$0xff] }
 0x589   : > { %v5044_v25 = vpop.f32.mrf.mxu1  ;;  %5337 = vmatprep.subr.bf16.mxu1 %v3105_v4  ;;  %v2056_v4 = vld [vmem:[%s7513_s12 + $0xcf0] sm:$0xff]  ;;  %v3080_v40 = vunpack.c.h.s8.bf16 %v2024_v48  ;;  %v2045_v22 = vld [vmem:[%s7513_s12 + $0xc98] sm:$0xff] }
 0x58a   : > { %v3144_v58 = vunpack.c.h.s8.bf16 %v2056_v4  ;;  %v3140_v19 = vunpack.c.l.s8.bf16 %v2056_v4  ;;  %v3073_v25 = vunpack.c.h.s8.bf16 %v2021_v10 }
 0x58b   : > { %5297 = vmatpush1.bf16.msra.mxu0 %v3040_v9  ;;  %v2053_v9 = vld [vmem:[%s7513_s12 + $0xcd8] sm:$0xff] }
 0x58c   : > { %5338 = vmatpush1.bf16.msra.mxu1 %v3104_v34  ;;  %5298 = vmatprep.subr.bf16.mxu0 %v3037_v60  ;;  %v3076_v34 = vunpack.c.l.s8.bf16 %v2024_v48  ;;  %v3137_v60 = vunpack.c.h.s8.bf16 %v2053_v9  ;;  %v2105_v48 = vld [vmem:[%s7513_s12 + $0xe78] sm:$0xff] }
 0x58d   : > { %5339 = vmatprep.subr.bf16.mxu1 %v3101_v5  ;;  %v2020_v5 = vld [vmem:[%s7513_s12 + $0xbd0] sm:$0xff] }
 0x58e   : > { %v3072_v13 = vunpack.c.h.s8.bf16 %v2020_v5  ;;  %v3068_v53 = vunpack.c.l.s8.bf16 %v2020_v5  ;;  %v2101_v5 = vld [vmem:[%s7513_s12 + $0xe58] sm:$0xff] }
 0x58f   : > { %5299 = vmatpush1.bf16.msra.mxu0 %v3036_v61  ;;  %v3136_v61 = vunpack.c.h.s8.bf16 %v2052_v59 }
 0x590   : > { %5340 = vmatpush1.bf16.msra.mxu1 %v3100_v1  ;;  %5300 = vmatprep.subr.bf16.mxu0 %v3033_v7  ;;  %v3069_v1 = vunpack.c.l.s8.bf16 %v2021_v10  ;;  %v3133_v7 = vunpack.c.l.s8.bf16 %v2053_v9  ;;  %v2104_v10 = vld [vmem:[%s7513_s12 + $0xe70] sm:$0xff] }
 0x591   : > { %5341 = vmatprep.subr.bf16.mxu1 %v3097_v17  ;;  %v2017_v17 = vld [vmem:[%s7513_s12 + $0xbb8] sm:$0xff] }
 0x593   : > { %5301 = vmatpush1.bf16.msra.mxu0 %v3032_v33  ;;  %v3132_v33 = vunpack.c.l.s8.bf16 %v2052_v59 }
 0x594   : > { %5342 = vmatpush1.bf16.msra.mxu1 %v3096_v57  ;;  %5302 = vmatprep.subr.bf16.mxu0 %v3029_v42  ;;  %v3065_v57 = vunpack.c.h.s8.bf16 %v2017_v17  ;;  %v3129_v42 = vunpack.c.h.s8.bf16 %v2049_v18 }
 0x595   : > { %5343 = vmatprep.subr.bf16.mxu1 %v3093_v56  ;;  %v2016_v56 = vld [vmem:[%s7513_s12 + $0xbb0] sm:$0xff] }
 0x596   : > { %v3064_v49 = vunpack.c.h.s8.bf16 %v2016_v56  ;;  %v3060_v46 = vunpack.c.l.s8.bf16 %v2016_v56 }
 0x597   : > { %5303 = vmatpush1.bf16.msra.mxu0 %v3028_v41  ;;  %v3128_v41 = vunpack.c.h.s8.bf16 %v2048_v26 }
 0x598   : > { %5344 = vmatpush1.bf16.msra.mxu1 %v3092_v35  ;;  %5304 = vmatprep.subr.bf16.mxu0 %v3025_v23  ;;  %v3061_v35 = vunpack.c.l.s8.bf16 %v2017_v17  ;;  %v3125_v23 = vunpack.c.l.s8.bf16 %v2049_v18 }
 0x599   : > { %5345 = vmatprep.subr.bf16.mxu1 %v3089_v63  ;;  %v2013_v63 = vld [vmem:[%s7513_s12 + $0xb98] sm:$0xff] }
 0x59b   : > { %5305 = vmatpush1.bf16.msra.mxu0 %v3024_v24  ;;  %v3124_v24 = vunpack.c.l.s8.bf16 %v2048_v26 }
 0x59c   : > { %5346 = vmatpush1.bf16.msra.mxu1 %v3088_v11  ;;  %5306 = vmatprep.subr.bf16.mxu0 %v3021_v29  ;;  %v3057_v11 = vunpack.c.h.s8.bf16 %v2013_v63  ;;  %v3121_v29 = vunpack.c.h.s8.bf16 %v2045_v22 }
 0x59d   : > { %5347 = vmatprep.subr.bf16.mxu1 %v3085_v2  ;;  %v2012_v2 = vld [vmem:[%s7513_s12 + $0xb90] sm:$0xff] }
 0x59e   : > { %v3056_v43 = vunpack.c.h.s8.bf16 %v2012_v2  ;;  %v3052_v4 = vunpack.c.l.s8.bf16 %v2012_v2  ;;  %v2096_v2 = vld [vmem:[%s7513_s12 + $0xe30] sm:$0xff] }
 0x59f   : > { %5307 = vmatpush1.bf16.msra.mxu0 %v3020_v28  ;;  %v3120_v28 = vunpack.c.h.s8.bf16 %v2044_v39 }
 0x5a0   : > { %5348 = vmatpush1.bf16.msra.mxu1 %v3084_v16  ;;  %5308 = vmatprep.subr.bf16.mxu0 %v3081_v27  ;;  %v3053_v16 = vunpack.c.l.s8.bf16 %v2013_v63  ;;  %v3117_v27 = vunpack.c.l.s8.bf16 %v2045_v22  ;;  %v3229_v63 = vunpack.c.l.s8.bf16 %v2101_v5  ;;  %v2097_v22 = vld [vmem:[%s7513_s12 + $0xe38] sm:$0xff] }
 0x5a1   : > { %5349 = vmatprep.subr.bf16.mxu1 %v3145_v3  ;;  %v2073_v3 = vld [vmem:[%s7513_s12 + $0xd78] sm:$0xff] }
 0x5a3   : > { %5309 = vmatpush2.bf16.msra.mxu0 %v3080_v40  ;;  %v3116_v40 = vunpack.c.l.s8.bf16 %v2044_v39 }
 0x5a4   : > { %5350 = vmatpush2.bf16.msra.mxu1 %v3144_v58  ;;  %5310 = vmatprep.subr.bf16.mxu0 %v3077_v0  ;;  %v3177_v58 = vunpack.c.h.s8.bf16 %v2073_v3  ;;  %v3241_v0 = vunpack.c.h.s8.bf16 %v2105_v48 }
 0x5a5   : > { %5351 = vmatprep.subr.bf16.mxu1 %v3141_v50  ;;  %v2072_v50 = vld [vmem:[%s7513_s12 + $0xd70] sm:$0xff] }
 0x5a6   : > { %v3176_v9 = vunpack.c.h.s8.bf16 %v2072_v50 }
 0x5a7   : > { %5311 = vmatpush2.bf16.msra.mxu0 %v3076_v34  ;;  %v3240_v34 = vunpack.c.h.s8.bf16 %v2104_v10 }
 0x5a8   : > { %5352 = vmatpush2.bf16.msra.mxu1 %v3140_v19  ;;  %5312 = vmatprep.subr.bf16.mxu0 %v3073_v25  ;;  %v3173_v19 = vunpack.c.l.s8.bf16 %v2073_v3  ;;  %v3237_v25 = vunpack.c.l.s8.bf16 %v2105_v48  ;;  %v2093_v3 = vld [vmem:[%s7513_s12 + $0xe18] sm:$0xff] }
 0x5a9   : > { %5353 = vmatprep.subr.bf16.mxu1 %v3137_v60  ;;  %v2069_v60 = vld [vmem:[%s7513_s12 + $0xd58] sm:$0xff] }
 0x5ab   : > { %5313 = vmatpush2.bf16.msra.mxu0 %v3072_v13 }
 0x5ac   : > { %5354 = vmatpush2.bf16.msra.mxu1 %v3136_v61  ;;  %5314 = vmatprep.subr.bf16.mxu0 %v3069_v1  ;;  %v3172_v1 = vunpack.c.l.s8.bf16 %v2072_v50  ;;  %v2092_v50 = vld [vmem:[%s7513_s12 + $0xe10] sm:$0xff] }
 0x5ad   : > { %5355 = vmatprep.subr.bf16.mxu1 %v3133_v7  ;;  %v3236_v7 = vunpack.c.l.s8.bf16 %v2104_v10 }
 0x5af   : > { %5315 = vmatpush2.bf16.msra.mxu0 %v3068_v53  ;;  %v3169_v53 = vunpack.c.h.s8.bf16 %v2069_v60 }
 0x5b0   : > { %5356 = vmatpush2.bf16.msra.mxu1 %v3132_v33  ;;  %5316 = vmatprep.subr.bf16.mxu0 %v3065_v57  ;;  %v3233_v33 = vunpack.c.h.s8.bf16 %v2101_v5  ;;  %v2068_v57 = vld [vmem:[%s7513_s12 + $0xd50] sm:$0xff] }
 0x5b1   : > { %5357 = vmatprep.subr.bf16.mxu1 %v3129_v42  ;;  %v2100_v42 = vld [vmem:[%s7513_s12 + $0xe50] sm:$0xff] }
 0x5b3   : > { %5317 = vmatpush2.bf16.msra.mxu0 %v3064_v49  ;;  %v3168_v49 = vunpack.c.h.s8.bf16 %v2068_v57 }
 0x5b4   : > { %5358 = vmatpush2.bf16.msra.mxu1 %v3128_v41  ;;  %5318 = vmatprep.subr.bf16.mxu0 %v3061_v35  ;;  %v3232_v41 = vunpack.c.h.s8.bf16 %v2100_v42 }
 0x5b5   : > { %5359 = vmatprep.subr.bf16.mxu1 %v3125_v23 }
 0x5b7   : > { %5319 = vmatpush2.bf16.msra.mxu0 %v3060_v46  ;;  %v3228_v46 = vunpack.c.l.s8.bf16 %v2100_v42  ;;  %v2117_v42 = vld [vmem:[%s7513_s12 + $0xed8] sm:$0xff] }
 0x5b8   : > { %5360 = vmatpush2.bf16.msra.mxu1 %v3124_v24  ;;  %5320 = vmatprep.subr.bf16.mxu0 %v3057_v11  ;;  %v3225_v11 = vunpack.c.h.s8.bf16 %v2097_v22 }
 0x5b9   : > { %5361 = vmatprep.subr.bf16.mxu1 %v3121_v29  ;;  %v2064_v29 = vld [vmem:[%s7513_s12 + $0xd30] sm:$0xff] }
 0x5ba   : > { %v3160_v39 = vunpack.c.h.s8.bf16 %v2064_v29  ;;  %v3156_v48 = vunpack.c.l.s8.bf16 %v2064_v29 }
 0x5bb   : > { %5321 = vmatpush2.bf16.msra.mxu0 %v3056_v43  ;;  %v3224_v43 = vunpack.c.h.s8.bf16 %v2096_v2 }
 0x5bc   : > { %5362 = vmatpush2.bf16.msra.mxu1 %v3120_v28  ;;  %5322 = vmatprep.subr.bf16.mxu0 %v3053_v16  ;;  %v3221_v16 = vunpack.c.l.s8.bf16 %v2097_v22  ;;  %v2081_v22 = vld [vmem:[%s7513_s12 + $0xdb8] sm:$0xff] }
 0x5bd   : > { %5363 = vmatprep.subr.bf16.mxu1 %v3117_v27  ;;  %v2061_v27 = vld [vmem:[%s7513_s12 + $0xd18] sm:$0xff] }
 0x5bf   : > { %5323 = vmatpush2.bf16.msra.mxu0 %v3052_v4  ;;  %v3220_v4 = vunpack.c.l.s8.bf16 %v2096_v2  ;;  %v2080_v2 = vld [vmem:[%s7513_s12 + $0xdb0] sm:$0xff] }
 0x5c0   : > { %5364 = vmatpush2.bf16.msra.mxu1 %v3116_v40  ;;  %5374 = vmatprep.subr.bf16.mxu0 %v3177_v58  ;;  %v3153_v40 = vunpack.c.h.s8.bf16 %v2061_v27  ;;  %v3217_v58 = vunpack.c.h.s8.bf16 %v2093_v3 }
 0x5c1   : > { %5415 = vmatprep.subr.bf16.mxu1 %v3241_v0  ;;  %v2060_v0 = vld [vmem:[%s7513_s12 + $0xd10] sm:$0xff] }
 0x5c2   : > { %v5080_v59 = vpop.f32.mrf.mxu0  ;;  %5325 = vmatmul.mubr.bf16.vlgmr.msra.gmra.mxu0 %v7897_v62  ;;  %v3152_v10 = vunpack.c.h.s8.bf16 %v2060_v0  ;;  %v3148_v5 = vunpack.c.l.s8.bf16 %v2060_v0 }
 0x5c3   : > { %v5121_v13 = vpop.f32.mrf.mxu1  ;;  %5366 = vmatmul.mubr.bf16.vlgmr.msra.gmra.mxu1 %v7952_v15  ;;  %v5081_v61 = vadd.f32 %v5080_v59, %v8424_v30  ;;  %5375 = vmatpush1.bf16.msra.mxu0 %v3176_v9  ;;  %v3216_v9 = vunpack.c.h.s8.bf16 %v2092_v50  ;;  %v3212_v59 = vunpack.c.l.s8.bf16 %v2092_v50  ;;  %v2076_v50 = vld [vmem:[%s7513_s12 + $0xd90] sm:$0xff] }
 0x5c4   : > { %5416 = vmatpush1.bf16.msra.mxu1 %v3240_v34  ;;  %v5082_v17 = vpop.f32.mrf.mxu0  ;;  %5376 = vmatprep.subr.bf16.mxu0 %v3173_v19  ;;  %v3149_v34 = vunpack.c.l.s8.bf16 %v2061_v27  ;;  %v3213_v19 = vunpack.c.l.s8.bf16 %v2093_v3  ;;  %v2077_v3 = vld [vmem:[%s7513_s12 + $0xd98] sm:$0xff] }
 0x5c5   : > { %v5123_v18 = vpop.f32.mrf.mxu1  ;;  %5417 = vmatprep.subr.bf16.mxu1 %v3237_v25  ;;  %v8466_v56 = vadd.f32 %v5121_v13, %v5081_v61  ;;  %v5083_v62 = vadd.f32 %v5082_v17, %v8429_v21  ;;  %5406 = vmatprep.mubr.bf16.mxu0 %v7903_v14  ;;  %v3165_v21 = vunpack.c.l.s8.bf16 %v2069_v60  ;;  %v2065_v14 = vld [vmem:[%s7513_s12 + $0xd38] sm:$0xff] }
 0x5c6   : > { %5447 = vmatprep.mubr.bf16.mxu1 %v7957_v31  ;;  %v5084_v15 = vpop.f32.mrf.mxu0  ;;  %v3164_v31 = vunpack.c.l.s8.bf16 %v2068_v57  ;;  %v3161_v24 = vunpack.c.h.s8.bf16 %v2065_v14  ;;  %v3157_v28 = vunpack.c.l.s8.bf16 %v2065_v14  ;;  %v2089_v25 = vld [vmem:[%s7513_s12 + $0xdf8] sm:$0xff]  ;;  %v3261_v14 = vunpack.c.l.s8.bf16 %v2117_v42 }
 0x5c7   : > { %v5125_v30 = vpop.f32.mrf.mxu1  ;;  %v8471_v26 = vadd.f32 %v5123_v18, %v5083_v62  ;;  %5377 = vmatpush1.bf16.msra.mxu0 %v3172_v1  ;;  %v2121_v60 = vld [vmem:[%s7513_s12 + $0xef8] sm:$0xff]  ;;  %v3209_v13 = vunpack.c.h.s8.bf16 %v2089_v25  ;;  %v2088_v1 = vld [vmem:[%s7513_s12 + $0xdf0] sm:$0xff] }
 0x5c8   : > { %5418 = vmatpush1.bf16.msra.mxu1 %v3236_v7  ;;  %v5085_v35 = vpop.f32.mrf.mxu0  ;;  %5378 = vmatprep.subr.bf16.mxu0 %v3169_v53  ;;  %v3273_v61 = vunpack.c.h.s8.bf16 %v2121_v60  ;;  %v2120_v7 = vld [vmem:[%s7513_s12 + $0xef0] sm:$0xff]  ;;  %v3208_v17 = vunpack.c.h.s8.bf16 %v2088_v1  ;;  %v3205_v53 = vunpack.c.l.s8.bf16 %v2089_v25  ;;  %v2085_v57 = vld [vmem:[%s7513_s12 + $0xdd8] sm:$0xff]  ;;  %v3204_v62 = vunpack.c.l.s8.bf16 %v2088_v1 }
 0x5c9   : > { %v5126_v23 = vpop.f32.mrf.mxu1  ;;  %5419 = vmatprep.subr.bf16.mxu1 %v3233_v33  ;;  %v3272_v18 = vunpack.c.h.s8.bf16 %v2120_v7  ;;  %v3269_v33 = vunpack.c.l.s8.bf16 %v2121_v60  ;;  %v3268_v15 = vunpack.c.l.s8.bf16 %v2120_v7  ;;  %v3201_v30 = vunpack.c.h.s8.bf16 %v2085_v57  ;;  %v2116_v35 = vld [vmem:[%s7513_s12 + $0xed0] sm:$0xff]  ;;  %v2137_v60 = vld [vmem:[%s7513_s12 + $0xf78] sm:$0xff] }
 0x5ca   : > { %v2136_v7 = vld [vmem:[%s7513_s12 + $0xf70] sm:$0xff] }
 0x5cb   : > { %5379 = vmatpush1.bf16.msra.mxu0 %v3168_v49  ;;  %v3265_v49 = vunpack.c.h.s8.bf16 %v2117_v42  ;;  %v2133_v42 = vld [vmem:[%s7513_s12 + $0xf58] sm:$0xff] }
 0x5cc   : > { %5420 = vmatpush1.bf16.msra.mxu1 %v3232_v41  ;;  %5380 = vmatprep.subr.bf16.mxu0 %v3165_v21  ;;  %v2084_v41 = vld [vmem:[%s7513_s12 + $0xdd0] sm:$0xff]  ;;  %v3264_v21 = vunpack.c.h.s8.bf16 %v2116_v35 }
 0x5cd   : > { %5421 = vmatprep.subr.bf16.mxu1 %v3229_v63  ;;  %v3200_v23 = vunpack.c.h.s8.bf16 %v2084_v41  ;;  %v3197_v63 = vunpack.c.l.s8.bf16 %v2085_v57 }
 0x5cf   : > { %5381 = vmatpush1.bf16.msra.mxu0 %v3164_v31  ;;  %v2113_v31 = vld [vmem:[%s7513_s12 + $0xeb8] sm:$0xff] }
 0x5d0   : > { %5422 = vmatpush1.bf16.msra.mxu1 %v3228_v46  ;;  %5382 = vmatprep.subr.bf16.mxu0 %v3161_v24  ;;  %v3196_v46 = vunpack.c.l.s8.bf16 %v2084_v41  ;;  %v3260_v24 = vunpack.c.l.s8.bf16 %v2116_v35  ;;  %v3257_v29 = vunpack.c.h.s8.bf16 %v2113_v31  ;;  %v3253_v27 = vunpack.c.l.s8.bf16 %v2113_v31  ;;  %v2164_v31 = vld [vmem:[%s7513_s12 + $0x1050] sm:$0xff] }
 0x5d1   : > { %5423 = vmatprep.subr.bf16.mxu1 %v3225_v11  ;;  %v3193_v11 = vunpack.c.h.s8.bf16 %v2081_v22  ;;  %v3300_v41 = vunpack.c.l.s8.bf16 %v2136_v7 }
 0x5d3   : > { %5383 = vmatpush1.bf16.msra.mxu0 %v3160_v39  ;;  %v2112_v39 = vld [vmem:[%s7513_s12 + $0xeb0] sm:$0xff] }
 0x5d4   : > { %5424 = vmatpush1.bf16.msra.mxu1 %v3224_v43  ;;  %5384 = vmatprep.subr.bf16.mxu0 %v3157_v28  ;;  %v3192_v43 = vunpack.c.h.s8.bf16 %v2080_v2  ;;  %v3256_v28 = vunpack.c.h.s8.bf16 %v2112_v39 }
 0x5d5   : > { %5425 = vmatprep.subr.bf16.mxu1 %v3221_v16  ;;  %v3189_v16 = vunpack.c.l.s8.bf16 %v2081_v22  ;;  %v2132_v22 = vld [vmem:[%s7513_s12 + $0xf50] sm:$0xff] }
 0x5d7   : > { %5385 = vmatpush1.bf16.msra.mxu0 %v3156_v48  ;;  %v2109_v48 = vld [vmem:[%s7513_s12 + $0xe98] sm:$0xff] }
 0x5d8   : > { %5426 = vmatpush1.bf16.msra.mxu1 %v3220_v4  ;;  %5386 = vmatprep.subr.bf16.mxu0 %v3153_v40  ;;  %v3188_v4 = vunpack.c.l.s8.bf16 %v2080_v2  ;;  %v3252_v40 = vunpack.c.l.s8.bf16 %v2112_v39  ;;  %v3249_v0 = vunpack.c.h.s8.bf16 %v2109_v48  ;;  %v3245_v25 = vunpack.c.l.s8.bf16 %v2109_v48  ;;  %v2128_v48 = vld [vmem:[%s7513_s12 + $0xf30] sm:$0xff] }
 0x5d9   : > { %5427 = vmatprep.subr.bf16.mxu1 %v3217_v58  ;;  %v3185_v58 = vunpack.c.h.s8.bf16 %v2077_v3 }
 0x5db   : > { %5387 = vmatpush1.bf16.msra.mxu0 %v3152_v10  ;;  %v2108_v10 = vld [vmem:[%s7513_s12 + $0xe90] sm:$0xff] }
 0x5dc   : > { %5428 = vmatpush1.bf16.msra.mxu1 %v3216_v9  ;;  %5388 = vmatprep.subr.bf16.mxu0 %v3149_v34  ;;  %v3184_v9 = vunpack.c.h.s8.bf16 %v2076_v50  ;;  %v3248_v34 = vunpack.c.h.s8.bf16 %v2108_v10 }
 0x5dd   : > { %5429 = vmatprep.subr.bf16.mxu1 %v3213_v19  ;;  %v3181_v19 = vunpack.c.l.s8.bf16 %v2077_v3 }
 0x5df   : > { %5389 = vmatpush1.bf16.msra.mxu0 %v3148_v5  ;;  %v2169_v5 = vld [vmem:[%s7513_s12 + $0x1078] sm:$0xff] }
 0x5e0   : > { %5430 = vmatpush1.bf16.msra.mxu1 %v3212_v59  ;;  %5390 = vmatprep.subr.bf16.mxu0 %v3209_v13  ;;  %v3180_v59 = vunpack.c.l.s8.bf16 %v2076_v50  ;;  %v3244_v13 = vunpack.c.l.s8.bf16 %v2108_v10  ;;  %v3369_v1 = vunpack.c.h.s8.bf16 %v2169_v5  ;;  %v3365_v57 = vunpack.c.l.s8.bf16 %v2169_v5  ;;  %v2125_v10 = vld [vmem:[%s7513_s12 + $0xf18] sm:$0xff]  ;;  %v2124_v5 = vld [vmem:[%s7513_s12 + $0xf10] sm:$0xff] }
 0x5e1   : > { %5431 = vmatprep.subr.bf16.mxu1 %v3273_v61  ;;  %v3305_v61 = vunpack.c.h.s8.bf16 %v2137_v60 }
 0x5e3   : > { %5391 = vmatpush2.bf16.msra.mxu0 %v3208_v17  ;;  %v2168_v17 = vld [vmem:[%s7513_s12 + $0x1070] sm:$0xff] }
 0x5e4   : > { %5432 = vmatpush2.bf16.msra.mxu1 %v3272_v18  ;;  %5392 = vmatprep.subr.bf16.mxu0 %v3205_v53  ;;  %v3304_v18 = vunpack.c.h.s8.bf16 %v2136_v7  ;;  %v3368_v53 = vunpack.c.h.s8.bf16 %v2168_v17  ;;  %v3364_v35 = vunpack.c.l.s8.bf16 %v2168_v17  ;;  %v2153_v17 = vld [vmem:[%s7513_s12 + $0xff8] sm:$0xff] }
 0x5e5   : > { %5433 = vmatprep.subr.bf16.mxu1 %v3269_v33  ;;  %v3301_v33 = vunpack.c.l.s8.bf16 %v2137_v60 }
 0x5e7   : > { %5393 = vmatpush2.bf16.msra.mxu0 %v3204_v62  ;;  %v2165_v62 = vld [vmem:[%s7513_s12 + $0x1058] sm:$0xff] }
 0x5e8   : > { %5434 = vmatpush2.bf16.msra.mxu1 %v3268_v15  ;;  %5394 = vmatprep.subr.bf16.mxu0 %v3201_v30 }
 0x5e9   : > { %5435 = vmatprep.subr.bf16.mxu1 %v3265_v49 }
 0x5eb   : > { %5395 = vmatpush2.bf16.msra.mxu0 %v3200_v23 }
 0x5ec   : > { %5436 = vmatpush2.bf16.msra.mxu1 %v3264_v21  ;;  %5396 = vmatprep.subr.bf16.mxu0 %v3197_v63  ;;  %v3297_v63 = vunpack.c.h.s8.bf16 %v2133_v42 }
 0x5ed   : > { %5437 = vmatprep.subr.bf16.mxu1 %v3261_v14  ;;  %v3361_v14 = vunpack.c.h.s8.bf16 %v2165_v62 }
 0x5ef   : > { %5397 = vmatpush2.bf16.msra.mxu0 %v3196_v46 }
 0x5f0   : > { %5438 = vmatpush2.bf16.msra.mxu1 %v3260_v24  ;;  %5398 = vmatprep.subr.bf16.mxu0 %v3193_v11  ;;  %v3296_v11 = vunpack.c.h.s8.bf16 %v2132_v22 }
 0x5f1   : > { %5439 = vmatprep.subr.bf16.mxu1 %v3257_v29  ;;  %v3360_v29 = vunpack.c.h.s8.bf16 %v2164_v31 }
 0x5f3   : > { %5399 = vmatpush2.bf16.msra.mxu0 %v3192_v43  ;;  %v3357_v43 = vunpack.c.l.s8.bf16 %v2165_v62  ;;  %v2152_v62 = vld [vmem:[%s7513_s12 + $0xff0] sm:$0xff] }
 0x5f4   : > { %5440 = vmatpush2.bf16.msra.mxu1 %v3256_v28  ;;  %5400 = vmatprep.subr.bf16.mxu0 %v3189_v16  ;;  %v2161_v28 = vld [vmem:[%s7513_s12 + $0x1038] sm:$0xff]  ;;  %v3356_v16 = vunpack.c.l.s8.bf16 %v2164_v31 }
 0x5f5   : > { %5441 = vmatprep.subr.bf16.mxu1 %v3253_v27  ;;  %v3353_v3 = vunpack.c.h.s8.bf16 %v2161_v28  ;;  %v3349_v50 = vunpack.c.l.s8.bf16 %v2161_v28 }
 0x5f7   : > { %5401 = vmatpush2.bf16.msra.mxu0 %v3188_v4  ;;  %v2160_v4 = vld [vmem:[%s7513_s12 + $0x1030] sm:$0xff] }
 0x5f8   : > { %5442 = vmatpush2.bf16.msra.mxu1 %v3252_v40  ;;  %5402 = vmatprep.subr.bf16.mxu0 %v3185_v58  ;;  %v3288_v40 = vunpack.c.h.s8.bf16 %v2128_v48  ;;  %v3352_v58 = vunpack.c.h.s8.bf16 %v2160_v4 }
 0x5f9   : > { %5443 = vmatprep.subr.bf16.mxu1 %v3249_v0 }
 0x5fb   : > { %5403 = vmatpush2.bf16.msra.mxu0 %v3184_v9  ;;  %v2157_v9 = vld [vmem:[%s7513_s12 + $0x1018] sm:$0xff] }
 0x5fc   : > { %5444 = vmatpush2.bf16.msra.mxu1 %v3248_v34  ;;  %5404 = vmatprep.subr.bf16.mxu0 %v3181_v19  ;;  %v3284_v34 = vunpack.c.l.s8.bf16 %v2128_v48  ;;  %v3348_v19 = vunpack.c.l.s8.bf16 %v2160_v4  ;;  %v3345_v60 = vunpack.c.h.s8.bf16 %v2157_v9  ;;  %v3341_v7 = vunpack.c.l.s8.bf16 %v2157_v9 }
 0x5fd   : > { %5445 = vmatprep.subr.bf16.mxu1 %v3245_v25  ;;  %v3281_v25 = vunpack.c.h.s8.bf16 %v2125_v10 }
 0x5ff   : > { %5405 = vmatpush2.bf16.msra.mxu0 %v3180_v59  ;;  %v2156_v59 = vld [vmem:[%s7513_s12 + $0x1010] sm:$0xff] }
 0x600   : > { %5446 = vmatpush2.bf16.msra.mxu1 %v3244_v13  ;;  %5456 = vmatprep.subr.bf16.mxu0 %v3305_v61  ;;  %v3280_v13 = vunpack.c.h.s8.bf16 %v2124_v5  ;;  %v3344_v61 = vunpack.c.h.s8.bf16 %v2156_v59 }
 0x601   : > { %5497 = vmatprep.subr.bf16.mxu1 %v3369_v1  ;;  %v3277_v1 = vunpack.c.l.s8.bf16 %v2125_v10 }
 0x602   : > { %v5162_v15 = vpop.f32.mrf.mxu0  ;;  %5407 = vmatmul.mubr.bf16.vlgmr.msra.gmra.mxu0 %v7961_v32 }
 0x603   : > { %v5203_v30 = vpop.f32.mrf.mxu1  ;;  %5448 = vmatmul.mubr.bf16.vlgmr.msra.gmra.mxu1 %v8018_v44  ;;  %v5163_v49 = vadd.f32 %v5162_v15, %v8466_v56  ;;  %5457 = vmatpush1.bf16.msra.mxu0 %v3304_v18  ;;  %v2185_v18 = vld [vmem:[%s7513_s12 + $0x10f8] sm:$0xff]  ;;  %v2184_v15 = vld [vmem:[%s7513_s12 + $0x10f0] sm:$0xff] }
 0x604   : > { %5498 = vmatpush1.bf16.msra.mxu1 %v3368_v53  ;;  %v5164_v23 = vpop.f32.mrf.mxu0  ;;  %5458 = vmatprep.subr.bf16.mxu0 %v3301_v33  ;;  %v3276_v53 = vunpack.c.l.s8.bf16 %v2124_v5  ;;  %v3340_v33 = vunpack.c.l.s8.bf16 %v2156_v59 }
 0x605   : > { %v5205_v21 = vpop.f32.mrf.mxu1  ;;  %5499 = vmatprep.subr.bf16.mxu1 %v3365_v57  ;;  %v8508_v46 = vadd.f32 %v5203_v30, %v5163_v49  ;;  %v5165_v32 = vadd.f32 %v5164_v23, %v8471_v26  ;;  %5488 = vmatprep.mubr.bf16.mxu0 %v7967_v47  ;;  %v3293_v26 = vunpack.c.l.s8.bf16 %v2133_v42  ;;  %v2129_v47 = vld [vmem:[%s7513_s12 + $0xf38] sm:$0xff]  ;;  %v3337_v57 = vunpack.c.h.s8.bf16 %v2153_v17 }
 0x606   : > { %5529 = vmatprep.mubr.bf16.mxu1 %v8023_v20  ;;  %v5166_v44 = vpop.f32.mrf.mxu0  ;;  %v3292_v20 = vunpack.c.l.s8.bf16 %v2132_v22  ;;  %v3289_v27 = vunpack.c.h.s8.bf16 %v2129_v47  ;;  %v3285_v0 = vunpack.c.l.s8.bf16 %v2129_v47  ;;  %v3401_v42 = vunpack.c.h.s8.bf16 %v2185_v18  ;;  %v2149_v23 = vld [vmem:[%s7513_s12 + $0xfd8] sm:$0xff] }
 0x607   : > { %v5207_v56 = vpop.f32.mrf.mxu1  ;;  %v8513_v24 = vadd.f32 %v5205_v21, %v5165_v32  ;;  %5459 = vmatpush1.bf16.msra.mxu0 %v3300_v41  ;;  %v3336_v30 = vunpack.c.h.s8.bf16 %v2152_v62  ;;  %v3400_v49 = vunpack.c.h.s8.bf16 %v2184_v15  ;;  %v3333_v41 = vunpack.c.l.s8.bf16 %v2153_v17  ;;  %v2181_v21 = vld [vmem:[%s7513_s12 + $0x10d8] sm:$0xff]  ;;  %v2148_v32 = vld [vmem:[%s7513_s12 + $0xfd0] sm:$0xff] }
 0x608   : > { %5500 = vmatpush1.bf16.msra.mxu1 %v3364_v35  ;;  %v5167_v2 = vpop.f32.mrf.mxu0  ;;  %5460 = vmatprep.subr.bf16.mxu0 %v3297_v63  ;;  %v3397_v35 = vunpack.c.l.s8.bf16 %v2185_v18  ;;  %v3332_v63 = vunpack.c.l.s8.bf16 %v2152_v62  ;;  %v3329_v22 = vunpack.c.h.s8.bf16 %v2149_v23  ;;  %v3393_v31 = vunpack.c.h.s8.bf16 %v2181_v21  ;;  %v2180_v44 = vld [vmem:[%s7513_s12 + $0x10d0] sm:$0xff] }
 0x609   : > { %v5208_v39 = vpop.f32.mrf.mxu1  ;;  %5501 = vmatprep.subr.bf16.mxu1 %v3361_v14  ;;  %v3396_v14 = vunpack.c.l.s8.bf16 %v2184_v15  ;;  %v3328_v56 = vunpack.c.h.s8.bf16 %v2148_v32  ;;  %v3389_v2 = vunpack.c.l.s8.bf16 %v2181_v21  ;;  %v3388_v47 = vunpack.c.l.s8.bf16 %v2180_v44 }
 0x60a   : > { %v2145_v39 = vld [vmem:[%s7513_s12 + $0xfb8] sm:$0xff] }
 0x60b   : > { %5461 = vmatpush1.bf16.msra.mxu0 %v3296_v11  ;;  %v3392_v11 = vunpack.c.h.s8.bf16 %v2180_v44  ;;  %v3321_v28 = vunpack.c.h.s8.bf16 %v2145_v39  ;;  %v3317_v4 = vunpack.c.l.s8.bf16 %v2145_v39 }
 0x60c   : > { %5502 = vmatpush1.bf16.msra.mxu1 %v3360_v29  ;;  %5462 = vmatprep.subr.bf16.mxu0 %v3293_v26  ;;  %v3325_v29 = vunpack.c.l.s8.bf16 %v2149_v23  ;;  %v2177_v26 = vld [vmem:[%s7513_s12 + $0x10b8] sm:$0xff] }
 0x60d   : > { %5503 = vmatprep.subr.bf16.mxu1 %v3357_v43  ;;  %v3324_v43 = vunpack.c.l.s8.bf16 %v2148_v32 }
 0x60f   : > { %5463 = vmatpush1.bf16.msra.mxu0 %v3292_v20  ;;  %v3385_v20 = vunpack.c.h.s8.bf16 %v2177_v26 }
 0x610   : > { %5504 = vmatpush1.bf16.msra.mxu1 %v3356_v16  ;;  %5464 = vmatprep.subr.bf16.mxu0 %v3289_v27  ;;  %v2144_v16 = vld [vmem:[%s7513_s12 + $0xfb0] sm:$0xff] }
 0x611   : > { %5505 = vmatprep.subr.bf16.mxu1 %v3353_v3  ;;  %v2176_v27 = vld [vmem:[%s7513_s12 + $0x10b0] sm:$0xff]  ;;  %v3320_v3 = vunpack.c.h.s8.bf16 %v2144_v16 }
 0x612   : > { %v3384_v48 = vunpack.c.h.s8.bf16 %v2176_v27  ;;  %v3380_v10 = vunpack.c.l.s8.bf16 %v2176_v27 }
 0x613   : > { %5465 = vmatpush1.bf16.msra.mxu0 %v3288_v40  ;;  %v3381_v40 = vunpack.c.l.s8.bf16 %v2177_v26 }
 0x614   : > { %5506 = vmatpush1.bf16.msra.mxu1 %v3352_v58  ;;  %5466 = vmatprep.subr.bf16.mxu0 %v3285_v0  ;;  %v2141_v58 = vld [vmem:[%s7513_s12 + $0xf98] sm:$0xff] }
 0x615   : > { %5507 = vmatprep.subr.bf16.mxu1 %v3349_v50  ;;  %v2173_v0 = vld [vmem:[%s7513_s12 + $0x1098] sm:$0xff]  ;;  %v3316_v50 = vunpack.c.l.s8.bf16 %v2144_v16  ;;  %v3313_v9 = vunpack.c.h.s8.bf16 %v2141_v58  ;;  %v3309_v59 = vunpack.c.l.s8.bf16 %v2141_v58 }
 0x617   : > { %5467 = vmatpush1.bf16.msra.mxu0 %v3284_v34  ;;  %v3377_v34 = vunpack.c.h.s8.bf16 %v2173_v0 }
 0x618   : > { %5508 = vmatpush1.bf16.msra.mxu1 %v3348_v19  ;;  %5468 = vmatprep.subr.bf16.mxu0 %v3281_v25  ;;  %v2140_v19 = vld [vmem:[%s7513_s12 + $0xf90] sm:$0xff] }
 0x619   : > { %5509 = vmatprep.subr.bf16.mxu1 %v3345_v60  ;;  %v2172_v25 = vld [vmem:[%s7513_s12 + $0x1090] sm:$0xff]  ;;  %v3312_v60 = vunpack.c.h.s8.bf16 %v2140_v19 }
 0x61a   : > { %v3376_v5 = vunpack.c.h.s8.bf16 %v2172_v25  ;;  %v3372_v17 = vunpack.c.l.s8.bf16 %v2172_v25 }
 0x61b   : > { %5469 = vmatpush1.bf16.msra.mxu0 %v3280_v13  ;;  %v3373_v13 = vunpack.c.l.s8.bf16 %v2173_v0 }
 0x61c   : > { %5510 = vmatpush1.bf16.msra.mxu1 %v3344_v61  ;;  %5470 = vmatprep.subr.bf16.mxu0 %v3277_v1  ;;  %v2201_v61 = vld [vmem:[%s7513_s12 + $0x1178] sm:$0xff] }
 0x61d   : > { %5511 = vmatprep.subr.bf16.mxu1 %v3341_v7  ;;  %v2233_v1 = vld [vmem:[%s7513_s12 + $0x1278] sm:$0xff]  ;;  %v3308_v7 = vunpack.c.l.s8.bf16 %v2140_v19  ;;  %v3433_v18 = vunpack.c.h.s8.bf16 %v2201_v61  ;;  %v3429_v15 = vunpack.c.l.s8.bf16 %v2201_v61 }
 0x61f   : > { %5471 = vmatpush1.bf16.msra.mxu0 %v3276_v53  ;;  %v3497_v53 = vunpack.c.h.s8.bf16 %v2233_v1 }
 0x620   : > { %5512 = vmatpush1.bf16.msra.mxu1 %v3340_v33  ;;  %5472 = vmatprep.subr.bf16.mxu0 %v3337_v57  ;;  %v2200_v33 = vld [vmem:[%s7513_s12 + $0x1170] sm:$0xff] }
 0x621   : > { %5513 = vmatprep.subr.bf16.mxu1 %v3401_v42  ;;  %v2232_v57 = vld [vmem:[%s7513_s12 + $0x1270] sm:$0xff]  ;;  %v3432_v42 = vunpack.c.h.s8.bf16 %v2200_v33 }
 0x622   : > { %v3496_v62 = vunpack.c.h.s8.bf16 %v2232_v57 }
 0x623   : > { %5473 = vmatpush2.bf16.msra.mxu0 %v3336_v30  ;;  %v3493_v30 = vunpack.c.l.s8.bf16 %v2233_v1 }
 0x624   : > { %5514 = vmatpush2.bf16.msra.mxu1 %v3400_v49  ;;  %5474 = vmatprep.subr.bf16.mxu0 %v3333_v41  ;;  %v2197_v49 = vld [vmem:[%s7513_s12 + $0x1158] sm:$0xff] }
 0x625   : > { %5515 = vmatprep.subr.bf16.mxu1 %v3397_v35  ;;  %v2229_v41 = vld [vmem:[%s7513_s12 + $0x1258] sm:$0xff]  ;;  %v3425_v32 = vunpack.c.h.s8.bf16 %v2197_v49 }
 0x626   : > { %v3489_v44 = vunpack.c.h.s8.bf16 %v2229_v41 }
 0x627   : > { %5475 = vmatpush2.bf16.msra.mxu0 %v3332_v63  ;;  %v3428_v63 = vunpack.c.l.s8.bf16 %v2200_v33 }
 0x628   : > { %5516 = vmatpush2.bf16.msra.mxu1 %v3396_v14  ;;  %5476 = vmatprep.subr.bf16.mxu0 %v3329_v22  ;;  %v3492_v14 = vunpack.c.l.s8.bf16 %v2232_v57 }
 0x629   : > { %5517 = vmatprep.subr.bf16.mxu1 %v3393_v31 }
 0x62b   : > { %5477 = vmatpush2.bf16.msra.mxu0 %v3328_v56  ;;  %v2196_v56 = vld [vmem:[%s7513_s12 + $0x1150] sm:$0xff] }
 0x62c   : > { %5518 = vmatpush2.bf16.msra.mxu1 %v3392_v11  ;;  %5478 = vmatprep.subr.bf16.mxu0 %v3325_v29  ;;  %v2228_v11 = vld [vmem:[%s7513_s12 + $0x1250] sm:$0xff]  ;;  %v3424_v39 = vunpack.c.h.s8.bf16 %v2196_v56 }
 0x62d   : > { %5519 = vmatprep.subr.bf16.mxu1 %v3389_v2  ;;  %v3488_v26 = vunpack.c.h.s8.bf16 %v2228_v11  ;;  %v3484_v16 = vunpack.c.l.s8.bf16 %v2228_v11 }
 0x62f   : > { %5479 = vmatpush2.bf16.msra.mxu0 %v3324_v43 }
 0x630   : > { %5520 = vmatpush2.bf16.msra.mxu1 %v3388_v47  ;;  %5480 = vmatprep.subr.bf16.mxu0 %v3321_v28  ;;  %v3485_v28 = vunpack.c.l.s8.bf16 %v2229_v41 }
 0x631   : > { %5521 = vmatprep.subr.bf16.mxu1 %v3385_v20  ;;  %v2225_v20 = vld [vmem:[%s7513_s12 + $0x1238] sm:$0xff] }
 0x633   : > { %5481 = vmatpush2.bf16.msra.mxu0 %v3320_v3  ;;  %v3481_v3 = vunpack.c.h.s8.bf16 %v2225_v20 }
 0x634   : > { %5522 = vmatpush2.bf16.msra.mxu1 %v3384_v48  ;;  %5482 = vmatprep.subr.bf16.mxu0 %v3317_v4  ;;  %v2192_v48 = vld [vmem:[%s7513_s12 + $0x1130] sm:$0xff] }
 0x635   : > { %5523 = vmatprep.subr.bf16.mxu1 %v3381_v40  ;;  %v2224_v4 = vld [vmem:[%s7513_s12 + $0x1230] sm:$0xff]  ;;  %v3416_v40 = vunpack.c.h.s8.bf16 %v2192_v48 }
 0x636   : > { %v3480_v58 = vunpack.c.h.s8.bf16 %v2224_v4  ;;  %v3476_v19 = vunpack.c.l.s8.bf16 %v2224_v4 }
 0x637   : > { %5483 = vmatpush2.bf16.msra.mxu0 %v3316_v50  ;;  %v3477_v50 = vunpack.c.l.s8.bf16 %v2225_v20 }
 0x638   : > { %5524 = vmatpush2.bf16.msra.mxu1 %v3380_v10  ;;  %5484 = vmatprep.subr.bf16.mxu0 %v3313_v9  ;;  %v2189_v10 = vld [vmem:[%s7513_s12 + $0x1118] sm:$0xff] }
 0x639   : > { %5525 = vmatprep.subr.bf16.mxu1 %v3377_v34  ;;  %v2221_v9 = vld [vmem:[%s7513_s12 + $0x1218] sm:$0xff]  ;;  %v3412_v34 = vunpack.c.l.s8.bf16 %v2192_v48  ;;  %v3409_v25 = vunpack.c.h.s8.bf16 %v2189_v10  ;;  %v3405_v1 = vunpack.c.l.s8.bf16 %v2189_v10  ;;  %v2236_v10 = vld [vmem:[%s7513_s12 + $0x1290] sm:$0xff] }
 0x63a   : > { %v2237_v48 = vld [vmem:[%s7513_s12 + $0x1298] sm:$0xff] }
 0x63b   : > { %5485 = vmatpush2.bf16.msra.mxu0 %v3312_v60  ;;  %v3473_v60 = vunpack.c.h.s8.bf16 %v2221_v9 }
 0x63c   : > { %5526 = vmatpush2.bf16.msra.mxu1 %v3376_v5  ;;  %5486 = vmatprep.subr.bf16.mxu0 %v3309_v59  ;;  %v2188_v5 = vld [vmem:[%s7513_s12 + $0x1110] sm:$0xff] }
 0x63d   : > { %5527 = vmatprep.subr.bf16.mxu1 %v3373_v13  ;;  %v2220_v59 = vld [vmem:[%s7513_s12 + $0x1210] sm:$0xff]  ;;  %v3408_v13 = vunpack.c.h.s8.bf16 %v2188_v5 }
 0x63e   : > { %v3472_v61 = vunpack.c.h.s8.bf16 %v2220_v59  ;;  %v3468_v33 = vunpack.c.l.s8.bf16 %v2220_v59 }
 0x63f   : > { %5487 = vmatpush2.bf16.msra.mxu0 %v3308_v7  ;;  %v3469_v7 = vunpack.c.l.s8.bf16 %v2221_v9 }
 0x640   : > { %5528 = vmatpush2.bf16.msra.mxu1 %v3372_v17  ;;  %5538 = vmatprep.subr.bf16.mxu0 %v3433_v18  ;;  %v2217_v17 = vld [vmem:[%s7513_s12 + $0x11f8] sm:$0xff] }
 0x641   : > { %5579 = vmatprep.subr.bf16.mxu1 %v3497_v53  ;;  %v2249_v18 = vld [vmem:[%s7513_s12 + $0x12f8] sm:$0xff]  ;;  %v3404_v53 = vunpack.c.l.s8.bf16 %v2188_v5  ;;  %v3465_v57 = vunpack.c.h.s8.bf16 %v2217_v17  ;;  %v3461_v41 = vunpack.c.l.s8.bf16 %v2217_v17  ;;  %v2296_v17 = vld [vmem:[%s7513_s12 + $0x1470] sm:$0xff] }
 0x642   : > { %v5244_v35 = vpop.f32.mrf.mxu0  ;;  %5489 = vmatmul.mubr.bf16.vlgmr.msra.gmra.mxu0 %v8027_v45  ;;  %v2297_v5 = vld [vmem:[%s7513_s12 + $0x1478] sm:$0xff] }
 0x643   : > { %v5285_v23 = vpop.f32.mrf.mxu1  ;;  %5530 = vmatmul.mubr.bf16.vlgmr.msra.gmra.mxu1 %v8082_v54  ;;  %v5245_v21 = vadd.f32 %v5244_v35, %v8508_v46  ;;  %5539 = vmatpush1.bf16.msra.mxu0 %v3432_v42  ;;  %v3529_v42 = vunpack.c.h.s8.bf16 %v2249_v18  ;;  %v3525_v35 = vunpack.c.l.s8.bf16 %v2249_v18 }
 0x644   : > { %5580 = vmatpush1.bf16.msra.mxu1 %v3496_v62  ;;  %v5246_v22 = vpop.f32.mrf.mxu0  ;;  %5540 = vmatprep.subr.bf16.mxu0 %v3429_v15  ;;  %v2216_v62 = vld [vmem:[%s7513_s12 + $0x11f0] sm:$0xff] }
 0x645   : > { %v5287_v31 = vpop.f32.mrf.mxu1  ;;  %5581 = vmatprep.subr.bf16.mxu1 %v3493_v30  ;;  %v8550_v29 = vadd.f32 %v5285_v23, %v5245_v21  ;;  %v5247_v45 = vadd.f32 %v5246_v22, %v8513_v24  ;;  %5570 = vmatprep.mubr.bf16.mxu0 %v8033_v38  ;;  %v3421_v24 = vunpack.c.l.s8.bf16 %v2197_v49  ;;  %v2193_v38 = vld [vmem:[%s7513_s12 + $0x1138] sm:$0xff]  ;;  %v2248_v15 = vld [vmem:[%s7513_s12 + $0x12f0] sm:$0xff]  ;;  %v3464_v30 = vunpack.c.h.s8.bf16 %v2216_v62 }
 0x646   : > { %5611 = vmatprep.mubr.bf16.mxu1 %v8087_v51  ;;  %v5248_v54 = vpop.f32.mrf.mxu0  ;;  %v3420_v51 = vunpack.c.l.s8.bf16 %v2196_v56  ;;  %v3417_v27 = vunpack.c.h.s8.bf16 %v2193_v38  ;;  %v3413_v0 = vunpack.c.l.s8.bf16 %v2193_v38  ;;  %v3528_v49 = vunpack.c.h.s8.bf16 %v2248_v15  ;;  %v2213_v23 = vld [vmem:[%s7513_s12 + $0x11d8] sm:$0xff]  ;;  %v2240_v38 = vld [vmem:[%s7513_s12 + $0x12b0] sm:$0xff] }
 0x647   : > { %v5289_v46 = vpop.f32.mrf.mxu1  ;;  %v8555_v2 = vadd.f32 %v5287_v31, %v5247_v45  ;;  %5541 = vmatpush1.bf16.msra.mxu0 %v3428_v63  ;;  %v2245_v21 = vld [vmem:[%s7513_s12 + $0x12d8] sm:$0xff]  ;;  %v3460_v63 = vunpack.c.l.s8.bf16 %v2216_v62  ;;  %v3457_v22 = vunpack.c.h.s8.bf16 %v2213_v23  ;;  %v3453_v45 = vunpack.c.l.s8.bf16 %v2213_v23 }
 0x648   : > { %5582 = vmatpush1.bf16.msra.mxu1 %v3492_v14  ;;  %v5249_v43 = vpop.f32.mrf.mxu0  ;;  %5542 = vmatprep.subr.bf16.mxu0 %v3425_v32  ;;  %v3524_v14 = vunpack.c.l.s8.bf16 %v2248_v15  ;;  %v3521_v31 = vunpack.c.h.s8.bf16 %v2245_v21  ;;  %v2212_v32 = vld [vmem:[%s7513_s12 + $0x11d0] sm:$0xff]  ;;  %v3517_v54 = vunpack.c.l.s8.bf16 %v2245_v21  ;;  %v2209_v46 = vld [vmem:[%s7513_s12 + $0x11b8] sm:$0xff]  ;;  %v3620_v23 = vunpack.c.l.s8.bf16 %v2296_v17 }
 0x649   : > { %v5290_v47 = vpop.f32.mrf.mxu1  ;;  %5583 = vmatprep.subr.bf16.mxu1 %v3489_v44  ;;  %v2244_v44 = vld [vmem:[%s7513_s12 + $0x12d0] sm:$0xff]  ;;  %v3456_v56 = vunpack.c.h.s8.bf16 %v2212_v32  ;;  %v2293_v62 = vld [vmem:[%s7513_s12 + $0x1458] sm:$0xff] }
 0x64a   : > { %v3520_v11 = vunpack.c.h.s8.bf16 %v2244_v44  ;;  %v3516_v43 = vunpack.c.l.s8.bf16 %v2244_v44  ;;  %v3449_v47 = vunpack.c.h.s8.bf16 %v2209_v46 }
 0x64b   : > { %5543 = vmatpush1.bf16.msra.mxu0 %v3424_v39  ;;  %v2241_v39 = vld [vmem:[%s7513_s12 + $0x12b8] sm:$0xff] }
 0x64c   : > { %5584 = vmatpush1.bf16.msra.mxu1 %v3488_v26  ;;  %5544 = vmatprep.subr.bf16.mxu0 %v3421_v24  ;;  %v3452_v26 = vunpack.c.l.s8.bf16 %v2212_v32  ;;  %v3513_v24 = vunpack.c.h.s8.bf16 %v2241_v39  ;;  %v2292_v32 = vld [vmem:[%s7513_s12 + $0x1450] sm:$0xff] }
 0x64d   : > { %5585 = vmatprep.subr.bf16.mxu1 %v3485_v28  ;;  %v2208_v28 = vld [vmem:[%s7513_s12 + $0x11b0] sm:$0xff] }
 0x64e   : > { %v3448_v20 = vunpack.c.h.s8.bf16 %v2208_v28  ;;  %v3444_v4 = vunpack.c.l.s8.bf16 %v2208_v28  ;;  %v3612_v28 = vunpack.c.l.s8.bf16 %v2292_v32 }
 0x64f   : > { %5545 = vmatpush1.bf16.msra.mxu0 %v3420_v51  ;;  %v3512_v51 = vunpack.c.h.s8.bf16 %v2240_v38 }
 0x650   : > { %5586 = vmatpush1.bf16.msra.mxu1 %v3484_v16  ;;  %5546 = vmatprep.subr.bf16.mxu0 %v3417_v27  ;;  %v3445_v16 = vunpack.c.l.s8.bf16 %v2209_v46  ;;  %v3509_v27 = vunpack.c.l.s8.bf16 %v2241_v39  ;;  %v3616_v46 = vunpack.c.h.s8.bf16 %v2292_v32 }
 0x651   : > { %5587 = vmatprep.subr.bf16.mxu1 %v3481_v3  ;;  %v2205_v3 = vld [vmem:[%s7513_s12 + $0x1198] sm:$0xff] }
 0x653   : > { %5547 = vmatpush1.bf16.msra.mxu0 %v3416_v40  ;;  %v3508_v40 = vunpack.c.l.s8.bf16 %v2240_v38 }
 0x654   : > { %5588 = vmatpush1.bf16.msra.mxu1 %v3480_v58  ;;  %5548 = vmatprep.subr.bf16.mxu0 %v3413_v0  ;;  %v3441_v58 = vunpack.c.h.s8.bf16 %v2205_v3  ;;  %v3505_v0 = vunpack.c.h.s8.bf16 %v2237_v48 }
 0x655   : > { %5589 = vmatprep.subr.bf16.mxu1 %v3477_v50  ;;  %v2204_v50 = vld [vmem:[%s7513_s12 + $0x1190] sm:$0xff] }
 0x656   : > { %v3440_v9 = vunpack.c.h.s8.bf16 %v2204_v50  ;;  %v3436_v59 = vunpack.c.l.s8.bf16 %v2204_v50 }
 0x657   : > { %5549 = vmatpush1.bf16.msra.mxu0 %v3412_v34  ;;  %v3504_v34 = vunpack.c.h.s8.bf16 %v2236_v10 }
 0x658   : > { %5590 = vmatpush1.bf16.msra.mxu1 %v3476_v19  ;;  %5550 = vmatprep.subr.bf16.mxu0 %v3409_v25  ;;  %v3437_v19 = vunpack.c.l.s8.bf16 %v2205_v3  ;;  %v3501_v25 = vunpack.c.l.s8.bf16 %v2237_v48 }
 0x659   : > { %5591 = vmatprep.subr.bf16.mxu1 %v3473_v60  ;;  %v2265_v60 = vld [vmem:[%s7513_s12 + $0x1378] sm:$0xff] }
 0x65b   : > { %5551 = vmatpush1.bf16.msra.mxu0 %v3408_v13  ;;  %v3500_v13 = vunpack.c.l.s8.bf16 %v2236_v10 }
 0x65c   : > { %5592 = vmatpush1.bf16.msra.mxu1 %v3472_v61  ;;  %5552 = vmatprep.subr.bf16.mxu0 %v3405_v1  ;;  %v3561_v61 = vunpack.c.h.s8.bf16 %v2265_v60  ;;  %v3625_v1 = vunpack.c.h.s8.bf16 %v2297_v5 }
 0x65d   : > { %5593 = vmatprep.subr.bf16.mxu1 %v3469_v7  ;;  %v2264_v7 = vld [vmem:[%s7513_s12 + $0x1370] sm:$0xff] }
 0x65e   : > { %v3560_v18 = vunpack.c.h.s8.bf16 %v2264_v7 }
 0x65f   : > { %5553 = vmatpush1.bf16.msra.mxu0 %v3404_v53  ;;  %v3624_v53 = vunpack.c.h.s8.bf16 %v2296_v17 }
 0x660   : > { %5594 = vmatpush1.bf16.msra.mxu1 %v3468_v33  ;;  %5554 = vmatprep.subr.bf16.mxu0 %v3465_v57  ;;  %v3557_v33 = vunpack.c.l.s8.bf16 %v2265_v60  ;;  %v3621_v57 = vunpack.c.l.s8.bf16 %v2297_v5 }
 0x661   : > { %5595 = vmatprep.subr.bf16.mxu1 %v3529_v42  ;;  %v2261_v42 = vld [vmem:[%s7513_s12 + $0x1358] sm:$0xff] }
 0x663   : > { %5555 = vmatpush2.bf16.msra.mxu0 %v3464_v30 }
 0x664   : > { %5596 = vmatpush2.bf16.msra.mxu1 %v3528_v49  ;;  %5556 = vmatprep.subr.bf16.mxu0 %v3461_v41  ;;  %v8680_v49 = vld [vmem:[#allocation6_spill] sm:$0xff] }
 0x665   : > { %5597 = vmatprep.subr.bf16.mxu1 %v3525_v35  ;;  %v3556_v35 = vunpack.c.l.s8.bf16 %v2264_v7 }
 0x667   : > { %5557 = vmatpush2.bf16.msra.mxu0 %v3460_v63 }
 0x668   : > { %5598 = vmatpush2.bf16.msra.mxu1 %v3524_v14  ;;  %5558 = vmatprep.subr.bf16.mxu0 %v3457_v22  ;;  %v3553_v14 = vunpack.c.h.s8.bf16 %v2261_v42  ;;  %v3617_v22 = vunpack.c.h.s8.bf16 %v2293_v62 }
 0x669   : > { %5599 = vmatprep.subr.bf16.mxu1 %v3521_v31  ;;  %v2260_v31 = vld [vmem:[%s7513_s12 + $0x1350] sm:$0xff] }
 0x66b   : > { %5559 = vmatpush2.bf16.msra.mxu0 %v3456_v56  ;;  %v8681_v56 = vld [vmem:[#allocation5_spill] sm:$0xff] }
 0x66c   : > { %5600 = vmatpush2.bf16.msra.mxu1 %v3520_v11  ;;  %5560 = vmatprep.subr.bf16.mxu0 %v3453_v45 }
 0x66d   : > { %5601 = vmatprep.subr.bf16.mxu1 %v3517_v54  ;;  %v3552_v54 = vunpack.c.h.s8.bf16 %v2260_v31 }
 0x66f   : > { %5561 = vmatpush2.bf16.msra.mxu0 %v3452_v26 }
 0x670   : > { %5602 = vmatpush2.bf16.msra.mxu1 %v3516_v43  ;;  %5562 = vmatprep.subr.bf16.mxu0 %v3449_v47  ;;  %v3613_v43 = vunpack.c.l.s8.bf16 %v2293_v62  ;;  %v2257_v47 = vld [vmem:[%s7513_s12 + $0x1338] sm:$0xff] }
 0x671   : > { %5603 = vmatprep.subr.bf16.mxu1 %v3513_v24  ;;  %v2289_v24 = vld [vmem:[%s7513_s12 + $0x1438] sm:$0xff]  ;;  %v3545_v38 = vunpack.c.h.s8.bf16 %v2257_v47  ;;  %v3541_v48 = vunpack.c.l.s8.bf16 %v2257_v47 }
 0x673   : > { %5563 = vmatpush2.bf16.msra.mxu0 %v3448_v20  ;;  %v3609_v20 = vunpack.c.h.s8.bf16 %v2289_v24 }
 0x674   : > { %5604 = vmatpush2.bf16.msra.mxu1 %v3512_v51  ;;  %5564 = vmatprep.subr.bf16.mxu0 %v3445_v16  ;;  %v2256_v51 = vld [vmem:[%s7513_s12 + $0x1330] sm:$0xff] }
 0x675   : > { %5605 = vmatprep.subr.bf16.mxu1 %v3509_v27  ;;  %v2288_v16 = vld [vmem:[%s7513_s12 + $0x1430] sm:$0xff]  ;;  %v3544_v27 = vunpack.c.h.s8.bf16 %v2256_v51 }
 0x676   : > { %v3608_v3 = vunpack.c.h.s8.bf16 %v2288_v16  ;;  %v3604_v50 = vunpack.c.l.s8.bf16 %v2288_v16 }
 0x677   : > { %5565 = vmatpush2.bf16.msra.mxu0 %v3444_v4  ;;  %v3605_v4 = vunpack.c.l.s8.bf16 %v2289_v24 }
 0x678   : > { %5606 = vmatpush2.bf16.msra.mxu1 %v3508_v40  ;;  %5566 = vmatprep.subr.bf16.mxu0 %v3441_v58  ;;  %v2253_v40 = vld [vmem:[%s7513_s12 + $0x1318] sm:$0xff] }
 0x679   : > { %5607 = vmatprep.subr.bf16.mxu1 %v3505_v0  ;;  %v2285_v58 = vld [vmem:[%s7513_s12 + $0x1418] sm:$0xff]  ;;  %v3540_v0 = vunpack.c.l.s8.bf16 %v2256_v51  ;;  %v3537_v10 = vunpack.c.h.s8.bf16 %v2253_v40  ;;  %v3533_v5 = vunpack.c.l.s8.bf16 %v2253_v40 }
 0x67b   : > { %5567 = vmatpush2.bf16.msra.mxu0 %v3440_v9  ;;  %v3601_v9 = vunpack.c.h.s8.bf16 %v2285_v58 }
 0x67c   : > { %5608 = vmatpush2.bf16.msra.mxu1 %v3504_v34  ;;  %5568 = vmatprep.subr.bf16.mxu0 %v3437_v19  ;;  %v2252_v34 = vld [vmem:[%s7513_s12 + $0x1310] sm:$0xff] }
 0x67d   : > { %5609 = vmatprep.subr.bf16.mxu1 %v3501_v25  ;;  %v2284_v19 = vld [vmem:[%s7513_s12 + $0x1410] sm:$0xff]  ;;  %v3536_v25 = vunpack.c.h.s8.bf16 %v2252_v34 }
 0x67e   : > { %v3600_v60 = vunpack.c.h.s8.bf16 %v2284_v19  ;;  %v3596_v7 = vunpack.c.l.s8.bf16 %v2284_v19 }
 0x67f   : > { %5569 = vmatpush2.bf16.msra.mxu0 %v3436_v59  ;;  %v3597_v59 = vunpack.c.l.s8.bf16 %v2285_v58 }
 0x680   : > { %5610 = vmatpush2.bf16.msra.mxu1 %v3500_v13  ;;  %5620 = vmatprep.subr.bf16.mxu0 %v3561_v61  ;;  %v2281_v13 = vld [vmem:[%s7513_s12 + $0x13f8] sm:$0xff] }
 0x681   : > { %5661 = vmatprep.subr.bf16.mxu1 %v3625_v1  ;;  %v2313_v61 = vld [vmem:[%s7513_s12 + $0x14f8] sm:$0xff]  ;;  %v3532_v1 = vunpack.c.l.s8.bf16 %v2252_v34  ;;  %v3593_v17 = vunpack.c.h.s8.bf16 %v2281_v13  ;;  %v3589_v62 = vunpack.c.l.s8.bf16 %v2281_v13 }
 0x682   : > { %v5326_v15 = vpop.f32.mrf.mxu0  ;;  %5571 = vmatmul.mubr.bf16.vlgmr.msra.gmra.mxu0 %v8091_v55 }
 0x683   : > { %v5367_v30 = vpop.f32.mrf.mxu1  ;;  %5612 = vmatmul.mubr.bf16.vlgmr.msra.gmra.mxu1 %v8680_v49  ;;  %v5327_v41 = vadd.f32 %v5326_v15, %v8550_v29  ;;  %5621 = vmatpush1.bf16.msra.mxu0 %v3560_v18  ;;  %v3657_v18 = vunpack.c.h.s8.bf16 %v2313_v61  ;;  %v3653_v15 = vunpack.c.l.s8.bf16 %v2313_v61  ;;  %v2309_v49 = vld [vmem:[%s7513_s12 + $0x14d8] sm:$0xff] }
 0x684   : > { %5662 = vmatpush1.bf16.msra.mxu1 %v3624_v53  ;;  %v5328_v21 = vpop.f32.mrf.mxu0  ;;  %5622 = vmatprep.subr.bf16.mxu0 %v3557_v33  ;;  %v2280_v53 = vld [vmem:[%s7513_s12 + $0x13f0] sm:$0xff] }
 0x685   : > { %v5369_v63 = vpop.f32.mrf.mxu1  ;;  %5663 = vmatprep.subr.bf16.mxu1 %v3621_v57  ;;  %v8592_v44 = vadd.f32 %v5367_v30, %v5327_v41  ;;  %v5329_v55 = vadd.f32 %v5328_v21, %v8555_v2  ;;  %5652 = vmatprep.mubr.bf16.mxu0 %v8681_v56  ;;  %v3549_v2 = vunpack.c.l.s8.bf16 %v2261_v42  ;;  %v2312_v33 = vld [vmem:[%s7513_s12 + $0x14f0] sm:$0xff]  ;;  %v3592_v57 = vunpack.c.h.s8.bf16 %v2280_v53  ;;  %v2277_v30 = vld [vmem:[%s7513_s12 + $0x13d8] sm:$0xff] }
 0x686   : > { %5693 = vmatprep.mubr.bf16.mxu1 %v8155_v37  ;;  %v5330_v29 = vpop.f32.mrf.mxu0  ;;  %v3548_v37 = vunpack.c.l.s8.bf16 %v2260_v31  ;;  %v3656_v42 = vunpack.c.h.s8.bf16 %v2312_v33  ;;  %v3588_v41 = vunpack.c.l.s8.bf16 %v2280_v53  ;;  %v3649_v21 = vunpack.c.h.s8.bf16 %v2309_v49  ;;  %v2273_v56 = vld [vmem:[%s7513_s12 + $0x13b8] sm:$0xff] }
 0x687   : > { %v5371_v11 = vpop.f32.mrf.mxu1  ;;  %v8597_v45 = vadd.f32 %v5369_v63, %v5329_v55  ;;  %5623 = vmatpush1.bf16.msra.mxu0 %v3556_v35  ;;  %v3652_v35 = vunpack.c.l.s8.bf16 %v2312_v33  ;;  %v2276_v63 = vld [vmem:[%s7513_s12 + $0x13d0] sm:$0xff]  ;;  %v3581_v32 = vunpack.c.l.s8.bf16 %v2277_v30  ;;  %v3645_v55 = vunpack.c.l.s8.bf16 %v2309_v49  ;;  %v2305_v29 = vld [vmem:[%s7513_s12 + $0x14b8] sm:$0xff] }
 0x688   : > { %5664 = vmatpush1.bf16.msra.mxu1 %v3620_v23  ;;  %v5331_v39 = vpop.f32.mrf.mxu0  ;;  %5624 = vmatprep.subr.bf16.mxu0 %v3553_v14  ;;  %v3585_v23 = vunpack.c.h.s8.bf16 %v2277_v30  ;;  %v2308_v14 = vld [vmem:[%s7513_s12 + $0x14d0] sm:$0xff]  ;;  %v3580_v11 = vunpack.c.l.s8.bf16 %v2276_v63  ;;  %v3573_v24 = vunpack.c.l.s8.bf16 %v2273_v56 }
 0x689   : > { %v5372_v26 = vpop.f32.mrf.mxu1  ;;  %5665 = vmatprep.subr.bf16.mxu1 %v3617_v22  ;;  %v3584_v22 = vunpack.c.h.s8.bf16 %v2276_v63  ;;  %v3648_v31 = vunpack.c.h.s8.bf16 %v2308_v14  ;;  %v3641_v39 = vunpack.c.h.s8.bf16 %v2305_v29 }
 0x68a   : > { %v2272_v26 = vld [vmem:[%s7513_s12 + $0x13b0] sm:$0xff] }
 0x68b   : > { %5625 = vmatpush1.bf16.msra.mxu0 %v3552_v54  ;;  %v3644_v54 = vunpack.c.l.s8.bf16 %v2308_v14 }
 0x68c   : > { %5666 = vmatpush1.bf16.msra.mxu1 %v3616_v46  ;;  %5626 = vmatprep.subr.bf16.mxu0 %v3549_v2  ;;  %v3577_v46 = vunpack.c.h.s8.bf16 %v2273_v56  ;;  %v2304_v2 = vld [vmem:[%s7513_s12 + $0x14b0] sm:$0xff] }
 0x68d   : > { %5667 = vmatprep.subr.bf16.mxu1 %v3613_v43  ;;  %v3576_v43 = vunpack.c.h.s8.bf16 %v2272_v26  ;;  %v3640_v47 = vunpack.c.h.s8.bf16 %v2304_v2  ;;  %v3636_v51 = vunpack.c.l.s8.bf16 %v2304_v2 }
 0x68f   : > { %5627 = vmatpush1.bf16.msra.mxu0 %v3548_v37  ;;  %v3637_v37 = vunpack.c.l.s8.bf16 %v2305_v29 }
 0x690   : > { %5668 = vmatpush1.bf16.msra.mxu1 %v3612_v28  ;;  %5628 = vmatprep.subr.bf16.mxu0 %v3545_v38  ;;  %v2269_v28 = vld [vmem:[%s7513_s12 + $0x1398] sm:$0xff] }
 0x691   : > { %5669 = vmatprep.subr.bf16.mxu1 %v3609_v20  ;;  %v2301_v38 = vld [vmem:[%s7513_s12 + $0x1498] sm:$0xff]  ;;  %v3572_v20 = vunpack.c.l.s8.bf16 %v2272_v26  ;;  %v3569_v16 = vunpack.c.h.s8.bf16 %v2269_v28  ;;  %v3565_v58 = vunpack.c.l.s8.bf16 %v2269_v28  ;;  %v8682_v28 = vld [vmem:[#allocation4_spill] sm:$0xff] }
 0x693   : > { %5629 = vmatpush1.bf16.msra.mxu0 %v3544_v27  ;;  %v3633_v27 = vunpack.c.h.s8.bf16 %v2301_v38 }
 0x694   : > { %5670 = vmatpush1.bf16.msra.mxu1 %v3608_v3  ;;  %5630 = vmatprep.subr.bf16.mxu0 %v3541_v48  ;;  %v2268_v3 = vld [vmem:[%s7513_s12 + $0x1390] sm:$0xff] }
 0x695   : > { %5671 = vmatprep.subr.bf16.mxu1 %v3605_v4  ;;  %v2300_v48 = vld [vmem:[%s7513_s12 + $0x1490] sm:$0xff]  ;;  %v3568_v4 = vunpack.c.h.s8.bf16 %v2268_v3 }
 0x696   : > { %v3632_v40 = vunpack.c.h.s8.bf16 %v2300_v48 }
 0x697   : > { %5631 = vmatpush1.bf16.msra.mxu0 %v3540_v0  ;;  %v3629_v0 = vunpack.c.l.s8.bf16 %v2301_v38 }
 0x698   : > { %5672 = vmatpush1.bf16.msra.mxu1 %v3604_v50  ;;  %5632 = vmatprep.subr.bf16.mxu0 %v3537_v10  ;;  %v3564_v50 = vunpack.c.l.s8.bf16 %v2268_v3  ;;  %v3628_v10 = vunpack.c.l.s8.bf16 %v2300_v48 }
 0x699   : > { %5673 = vmatprep.subr.bf16.mxu1 %v3601_v9 }
 0x69b   : > { %5633 = vmatpush1.bf16.msra.mxu0 %v3536_v25 }
 0x69c   : > { %5674 = vmatpush1.bf16.msra.mxu1 %v3600_v60  ;;  %5634 = vmatprep.subr.bf16.mxu0 %v3533_v5 }
 0x69d   : > { %5675 = vmatprep.subr.bf16.mxu1 %v3597_v59 }
 0x69f   : > { %5635 = vmatpush1.bf16.msra.mxu0 %v3532_v1 }
 0x6a0   : > { %5676 = vmatpush1.bf16.msra.mxu1 %v3596_v7  ;;  %5636 = vmatprep.subr.bf16.mxu0 %v3593_v17 }
 0x6a1   : > { %5677 = vmatprep.subr.bf16.mxu1 %v3657_v18 }
 0x6a3   : > { %5637 = vmatpush2.bf16.msra.mxu0 %v3592_v57 }
 0x6a4   : > { %5678 = vmatpush2.bf16.msra.mxu1 %v3656_v42  ;;  %5638 = vmatprep.subr.bf16.mxu0 %v3589_v62 }
 0x6a5   : > { %5679 = vmatprep.subr.bf16.mxu1 %v3653_v15 }
 0x6a7   : > { %5639 = vmatpush2.bf16.msra.mxu0 %v3588_v41 }
 0x6a8   : > { %5680 = vmatpush2.bf16.msra.mxu1 %v3652_v35  ;;  %5640 = vmatprep.subr.bf16.mxu0 %v3585_v23 }
 0x6a9   : > { %5681 = vmatprep.subr.bf16.mxu1 %v3649_v21 }
 0x6ab   : > { %5641 = vmatpush2.bf16.msra.mxu0 %v3584_v22 }
 0x6ac   : > { %5682 = vmatpush2.bf16.msra.mxu1 %v3648_v31  ;;  %5642 = vmatprep.subr.bf16.mxu0 %v3581_v32 }
 0x6ad   : > { %5683 = vmatprep.subr.bf16.mxu1 %v3645_v55  ;;  %v6053_v55 = vmov 1983009808  }
 0x6ae   : > { %v5709_v56 = vunpack.c.l.s4 %v6053_v55 }
 0x6af   : > { %5643 = vmatpush2.bf16.msra.mxu0 %v3580_v11 }
 0x6b0   : > { %5684 = vmatpush2.bf16.msra.mxu1 %v3644_v54  ;;  %5644 = vmatprep.subr.bf16.mxu0 %v3577_v46  ;;  %v5710_v46 = vunpack.c.0.s8 %v5709_v56 }
 0x6b1   : > { %5685 = vmatprep.subr.bf16.mxu1 %v3641_v39 }
 0x6b2   : > { %v5713_v38 = vsub.s32 %v5710_v46, %v8682_v28 }
 0x6b3   : > { %5645 = vmatpush2.bf16.msra.mxu0 %v3576_v43 }
 0x6b4   : > { %5686 = vmatpush2.bf16.msra.mxu1 %v3640_v47  ;;  %5646 = vmatprep.subr.bf16.mxu0 %v3573_v24  ;;  %v5714_v48 = vrot.slane %v5706_v36, %v5713_v38 }
 0x6b5   : > { %5687 = vmatprep.subr.bf16.mxu1 %v3637_v37 }
 0x6b7   : > { %5647 = vmatpush2.bf16.msra.mxu0 %v3572_v20 }
 0x6b8   : > { %5688 = vmatpush2.bf16.msra.mxu1 %v3636_v51  ;;  %5648 = vmatprep.subr.bf16.mxu0 %v3569_v16 }
 0x6b9   : > { %5689 = vmatprep.subr.bf16.mxu1 %v3633_v27 }
 0x6bb   : > { %5649 = vmatpush2.bf16.msra.mxu0 %v3568_v4 }
 0x6bc   : > { %5690 = vmatpush2.bf16.msra.mxu1 %v3632_v40  ;;  %5650 = vmatprep.subr.bf16.mxu0 %v3565_v58  ;;  %v3658_v40 = vld [vmem:[#allocation2] sm:$0xff] }
 0x6bd   : > { %5691 = vmatprep.subr.bf16.mxu1 %v3629_v0 }
 0x6bf   : > { %5651 = vmatpush2.bf16.msra.mxu0 %v3564_v50 }
 0x6c0   : > { %5692 = vmatpush2.bf16.msra.mxu1 %v3628_v10 }
 0x6c2   : > { %v5408_v9 = vpop.f32.mrf.mxu0  ;;  %5653 = vmatmul.mubr.bf16.vlgmr.msra.gmra.mxu0 %v8150_v52 }
 0x6c3   : > { %v5449_v34 = vpop.f32.mrf.mxu1  ;;  %5694 = vmatmul.mubr.bf16.vlgmr.msra.gmra.mxu1 %v8199_v6  ;;  %v5409_v19 = vadd.f32 %v5408_v9, %v8592_v44 }
 0x6c4   : > { %v5410_v25 = vpop.f32.mrf.mxu0 }
 0x6c5   : > { %v5451_v60 = vpop.f32.mrf.mxu1  ;;  %v5450_v5 = vadd.f32 %v5449_v34, %v5409_v19  ;;  %v5411_v59 = vadd.f32 %v5410_v25, %v8597_v45 }
 0x6c6   : > { %v5412_v13 = vpop.f32.mrf.mxu0 }
 0x6c7   : > { %v5453_v61 = vpop.f32.mrf.mxu1  ;;  %v5452_v1 = vadd.f32 %v5451_v60, %v5411_v59 }
 0x6c8   : > { %v5413_v7 = vpop.f32.mrf.mxu0 }
 0x6c9   : > { %v5454_v17 = vpop.f32.mrf.mxu1 }
 0x702   : > { %v5490_v18 = vpop.f32.mrf.mxu0 }
 0x703   : > { %v5531_v53 = vpop.f32.mrf.mxu1  ;;  %v5491_v33 = vadd.f32 %v5490_v18, %v5450_v5 }
 0x704   : > { %v5492_v57 = vpop.f32.mrf.mxu0 }
 0x705   : > { %v5533_v42 = vpop.f32.mrf.mxu1  ;;  %v5532_v52 = vadd.f32 %v5531_v53, %v5491_v33  ;;  %v5493_v62 = vadd.f32 %v5492_v57, %v5452_v1 }
 0x706   : > { %v5494_v6 = vpop.f32.mrf.mxu0 }
 0x707   : > { %v5535_v15 = vpop.f32.mrf.mxu1  ;;  %v5534_v44 = vadd.f32 %v5533_v42, %v5493_v62 }
 0x708   : > { %v5495_v30 = vpop.f32.mrf.mxu0 }
 0x709   : > { %v5536_v49 = vpop.f32.mrf.mxu1 }
 0x742   : > { %v5572_v41 = vpop.f32.mrf.mxu0 }
 0x743   : > { %v5613_v35 = vpop.f32.mrf.mxu1  ;;  %v5573_v45 = vadd.f32 %v5572_v41, %v5532_v52 }
 0x744   : > { %v5574_v23 = vpop.f32.mrf.mxu0 }
 0x745   : > { %v5615_v21 = vpop.f32.mrf.mxu1  ;;  %v5614_v63 = vadd.f32 %v5613_v35, %v5573_v45  ;;  %v5575_v29 = vadd.f32 %v5574_v23, %v5534_v44 }
 0x746   : > { %v5576_v14 = vpop.f32.mrf.mxu0 }
 0x747   : > { %v5617_v22 = vpop.f32.mrf.mxu1  ;;  %v5616_v39 = vadd.f32 %v5615_v21, %v5575_v29 }
 0x748   : > { %v5577_v31 = vpop.f32.mrf.mxu0 }
 0x749   : > { %v5618_v32 = vpop.f32.mrf.mxu1 }
 0x782   : > { %v5654_v11 = vpop.f32.mrf.mxu0 }
 0x783   : > { %v5695_v54 = vpop.f32.mrf.mxu1  ;;  %v5655_v26 = vadd.f32 %v5654_v11, %v5614_v63 }
 0x784   : > { %v5656_v2 = vpop.f32.mrf.mxu0 }
 0x785   : > { %v5697_v43 = vpop.f32.mrf.mxu1  ;;  %v5657_v47 = vadd.f32 %v5656_v2, %v5616_v39  ;;  %v5696_v20 = vadd.f32 %v5695_v54, %v5655_v26 }
 0x786   : > { %v5658_v24 = vpop.f32.mrf.mxu0 }
 0x787   : > { %v5699_v37 = vpop.f32.mrf.mxu1  ;;  %v5698_v51 = vadd.f32 %v5697_v43, %v5657_v47 }
 0x788   : > { %v5659_v16 = vpop.f32.mrf.mxu0 }
 0x789   : > { %v5700_v27 = vpop.f32.mrf.mxu1  ;;  %v5707_v3 = vcombine.low %v5696_v20, %v5698_v51 }
 0x78b   : > { %v5721_v4 = vrot.slane %v5707_v3, %v5713_v38 }
 0x78d   : > { %v5722_v58 = vcombine.low %v5714_v48, %v5721_v4  ;;  %5729 = sbr.rel (%p5925_p13) target bundleno = 1957 (0x7a5), region = 67 }
 0x78f   : > { %v5724_v0 = vadd.f32 %v5722_v58, %v3658_v40 }
 0x791   : > { %5725 = vst [vmem:[#allocation2] sm:$0xff] %v5724_v0 }
 0x792   : > { %v5731_v50 = vld [vmem:[%s1624_s15] sm:$0xf]  ;;  %v8683_v10 = vld [vmem:[#allocation4_spill] sm:$0xff] }
 0x793   : > { %v5735_v9 = vsub.s32 0, %v8683_v10  ;;  %v5739_v12 = vsub.s32 1, %v8683_v10  ;;  %v5743_v8 = vsub.s32 2, %v8683_v10  ;;  %v5747_v36 = vsub.s32 3, %v8683_v10  ;;  %v5768_v34 = vld [vmem:[%s1629_s18] sm:$0xf] }
 0x795   : > { %v5736_v19 = vrot.slane %v5731_v50, %v5735_v9  ;;  %v5740_v25 = vrot.slane %v5731_v50, %v5739_v12  ;;  %v5744_v60 = vrot.slane %v5731_v50, %v5743_v8  ;;  %v5773_v5 = vrot.slane %v5768_v34, %v5735_v9 }
 0x796   : > { %v5748_v59 = vrot.slane %v5731_v50, %v5747_v36  ;;  %v5777_v13 = vrot.slane %v5768_v34, %v5739_v12  ;;  %v5781_v61 = vrot.slane %v5768_v34, %v5743_v8  ;;  %v5785_v1 = vrot.slane %v5768_v34, %v5747_v36 }
 0x797   : > { %v5749_v7 = vcombine.low %v5736_v19, %v5740_v25 }
 0x798   : > { %v5750_v17 = vcombine.low %v5744_v60, %v5748_v59  ;;  %v5786_v18 = vcombine.low %v5773_v5, %v5777_v13  ;;  %v5787_v53 = vcombine.low %v5781_v61, %v5785_v1  ;;  %v5730_v62 = vld [vmem:[#allocation2] sm:$0xff] }
 0x799   : > { %v5757_v33 = vrot.slane %v5749_v7, %v5713_v38 }
 0x79a   : > { %v5764_v57 = vrot.slane %v5750_v17, %v5713_v38  ;;  %v5794_v42 = vrot.slane %v5786_v18, %v5713_v38  ;;  %v5801_v52 = vrot.slane %v5787_v53, %v5713_v38 }
 0x79c   : > { %v5765_v6 = vcombine.low %v5757_v33, %v5764_v57  ;;  %v5802_v15 = vcombine.low %v5794_v42, %v5801_v52 }
 0x79e   : > { %v5767_v44 = vmul.f32 %v5765_v6, %v5730_v62 }
 0x7a0   : > { %v5804_v30 = vadd.f32 %v5802_v15, %v5767_v44 }
 0x7a2   : > { %v5805_v49 = vmax.f32 %v5804_v30, 0.0 }
 0x7a4   : > { %5806 = vst [vmem:[%s7511_s11] sm:$0xff] %v5805_v49 }
 0x7a5 PF: > { %s14_s21 = sadd.s32 1, %s6049_s21   ;;  %s8684_s15 = smov %s6029_s16 }
 0x7a6   : > { %p11_p0 = scmp.ge.s32.totalorder %s14_s21, 6   ;;  %s8685_s16 = smov %s6130_s28 }
 0x7a7   : > { %s8686_s17 = smov %s6041_s19  ;;  %s8687_s18 = smov %s6045_s20 }
 0x7a8   : > { %s8688_s19 = smov %s8691_s22  ;;  %s8689_s20 = smov %s8695_s23 }
 0x7a9   :  { %13 = sbr.rel (!%p11_p0) target bundleno = 4 (0x4), region = 111 }

</bundles_post_ra>
